<compile_context>
chip_gen: v5e
topology: v5e:2x2
jax: 0.10.0
libtpu: 0.0.40
codegen_flags: <defaults>
</compile_context>

<pallas_src>
import functools

import jax
import jax.numpy as jnp
import numpy as np
from jax import lax
from jax.experimental import pallas as pl
from jax.experimental.pallas import tpu as pltpu

F32 = jnp.float32
BF16 = jnp.bfloat16


# ============================================================================
# Static network configuration (synthetic "pretrained" VGG-BN, 3 encoder
# blocks).  Each entry is (H, W, Cin, Cout) at the conv input resolution.
# ============================================================================
def build_configs(class_num, height=16, width=16):
    enc_io = [(3, 4), (4, 8), (8, 16)]
    enc_cfg = []
    h, w = height, width
    for cin, cout in enc_io:
        enc_cfg.append((h, w, cin, cout))
        h //= 2
        w //= 2
    enc_ch_rev = [c[3] for c in enc_cfg][::-1]          # [16, 8, 4]
    dec_cfg = []
    for i in range(len(enc_ch_rev) - 1):
        cin, cout = enc_ch_rev[i], enc_ch_rev[i + 1]
        h *= 2
        w *= 2
        dec_cfg.append([(h, w, cin, cout), (h, w, cout, cout)])
    h *= 2
    w *= 2
    dec_cfg.append([(h, w, enc_ch_rev[-1], 32), (h, w, 32, class_num)])
    layer_cfg = list(enc_cfg) + [c for blk in dec_cfg for c in blk]
    return enc_cfg, dec_cfg, layer_cfg


# ============================================================================
# Parameter construction (deterministic synthetic "pretrained" weights,
# BN folded into per-channel scale/bias, eval mode).
# ============================================================================
def _init_conv_bn(key, cin, cout):
    kw, ks, kb = jax.random.split(key, 3)
    w = jax.random.normal(kw, (3, 3, cin, cout), jnp.float32) / np.sqrt(9.0 * cin)
    scale = 1.0 + 0.1 * jax.random.normal(ks, (cout,), jnp.float32)
    bias = 0.1 * jax.random.normal(kb, (cout,), jnp.float32)
    return (w, scale, bias)


def init_raw_params(key, layer_cfg):
    keys = jax.random.split(key, len(layer_cfg))
    return [_init_conv_bn(k, cin, cout)
            for k, (_, _, cin, cout) in zip(keys, layer_cfg)]


def _band_weights(w, W):
    """(3,3,Cin,Cout) HWIO kernel -> (3, W*Cin, W*Cout) banded matrices.

    out[h, wo*Cout+co] = sum_ky (row[h+ky-1] @ Wb[ky])[wo*Cout+co] reproduces a
    3x3 cross-correlation with zero padding=1 in W.
    """
    w = np.asarray(w, np.float32)
    cin, cout = w.shape[2], w.shape[3]
    wb = np.zeros((3, W * cin, W * cout), np.float32)
    for ky in range(3):
        for kx in range(3):
            for wo in range(W):
                wi = wo + kx - 1
                if 0 <= wi < W:
                    wb[ky, wi * cin:(wi + 1) * cin,
                       wo * cout:(wo + 1) * cout] = w[ky, kx]
    return wb


def prepare_weights(raw_layers, layer_cfg, class_pad):
    """Host-side prep: banded bf16 conv weights + W-tiled f32 affine.

    The final layer's output channels are zero-padded to `class_pad` so the
    output slab is 128-lane aligned (unmasked stores)."""
    arrs = []
    n = len(layer_cfg)
    for idx, ((w, scale, bias), (_, W, _, cout)) in enumerate(
            zip(raw_layers, layer_cfg)):
        w_np = np.asarray(w, np.float32)
        s_np = np.asarray(scale, np.float32)
        b_np = np.asarray(bias, np.float32)
        if idx == n - 1 and class_pad > cout:
            pad = class_pad - cout
            w_np = np.concatenate(
                [w_np, np.zeros(w_np.shape[:3] + (pad,), np.float32)], axis=3)
            s_np = np.concatenate([s_np, np.ones((pad,), np.float32)])
            b_np = np.concatenate([b_np, np.zeros((pad,), np.float32)])
            cout = class_pad
        arrs.append(jnp.asarray(_band_weights(w_np, W), dtype=BF16))
        arrs.append(jnp.asarray(np.tile(s_np, W).reshape(1, W * cout)))
        arrs.append(jnp.asarray(np.tile(b_np, W).reshape(1, W * cout)))
    return arrs


def _pool_mats(rows, W, C):
    """Host-built 0/1 matrices for 2x2 pool / unpool on a (rows, W*C) slab.

    rows = batch*H (samples stacked on the sublane axis; H is even so global
    row parity == per-sample row parity).  No power-of-two-C assumption."""
    WC, WC2 = W * C, (W // 2) * C
    lane_sel_e = np.zeros((WC, WC2), np.float32)
    lane_sel_o = np.zeros((WC, WC2), np.float32)
    for wo in range(W // 2):
        for c in range(C):
            lane_sel_e[(2 * wo) * C + c, wo * C + c] = 1.0
            lane_sel_o[(2 * wo + 1) * C + c, wo * C + c] = 1.0
    R2 = rows // 2
    row_sel_e = np.zeros((R2, rows), np.float32)
    row_sel_o = np.zeros((R2, rows), np.float32)
    for r in range(R2):
        row_sel_e[r, 2 * r] = 1.0
        row_sel_o[r, 2 * r + 1] = 1.0
    return (lane_sel_e, lane_sel_o,
            lane_sel_e.T.copy(), lane_sel_o.T.copy(),
            row_sel_e, row_sel_o,
            row_sel_e.T.copy(), row_sel_o.T.copy())


def prepare_pool_mats(enc_cfg, batch):
    arrs = []
    for (H, W, _, cout) in enc_cfg:
        for m in _pool_mats(batch * H, W, cout):
            arrs.append(jnp.asarray(m, dtype=BF16))   # 0/1 -> exact in bf16
    return arrs


# ============================================================================
# One-time probe: pin down pltpu.roll's shift convention on this backend
# (falls back to a concatenate-based shift if roll is unavailable).
# ============================================================================
def _detect_roll_mode():
    try:
        def k(x_ref, o_ref):
            o_ref[...] = pltpu.roll(x_ref[...], shift=1, axis=0)

        x = jnp.tile(jnp.arange(8, dtype=jnp.float32)[:, None], (1, 128))
        y = pl.pallas_call(
            k, out_shape=jax.ShapeDtypeStruct((8, 128), jnp.float32))(x)
        if float(y[1, 0]) == 0.0:
            return "roll_down"   # roll(+1): out[h] = in[h-1]  (jnp.roll conv.)
        if float(y[0, 0]) == 1.0:
            return "roll_up"     # roll(+1): out[h] = in[h+1]
    except Exception:
        pass
    return "concat"


# ============================================================================
# The fused Pallas kernel (whole batch folded into the sublane/M axis).
# ============================================================================
def _make_segnet_kernel(enc_cfg, dec_cfg, roll_mode):
    n_layers = len(enc_cfg) + sum(len(b) for b in dec_cfg)
    n_levels = len(enc_cfg)

    def kernel(x_ref, *refs):
        out_ref = refs[-1]
        prm = refs[:3 * n_layers]                       # (Wb, scale, bias) x 9
        pool = refs[3 * n_layers:3 * n_layers + 8 * n_levels]

        # ---- row shifts (s[h-1], s[h+1]) with per-sample zero boundaries ----
        def shifted_rows(s, H):
            rows = s.shape[0]
            if roll_mode == "concat":
                zero = jnp.zeros_like(s[:1])
                s_dn = jnp.concatenate([zero, s[:-1]], axis=0)
                s_up = jnp.concatenate([s[1:], zero], axis=0)
            else:
                dn_shift = 1 if roll_mode == "roll_down" else rows - 1
                up_shift = rows - 1 if roll_mode == "roll_down" else 1
                s_dn = pltpu.roll(s, shift=dn_shift, axis=0)
                s_up = pltpu.roll(s, shift=up_shift, axis=0)
            ri = lax.broadcasted_iota(jnp.int32, (rows, 1), 0)
            s_dn = jnp.where((ri % H) == 0, 0.0, s_dn)        # zero top rows
            s_up = jnp.where((ri % H) == (H - 1), 0.0, s_up)  # zero bottom rows
            return s_dn, s_up

        # ---- fused conv3x3 (banded bf16 GEMM) + folded BN + ReLU ----
        def conv_bn_relu(s, li, H):
            wb, sc, bi = prm[3 * li], prm[3 * li + 1], prm[3 * li + 2]
            s_dn, s_up = shifted_rows(s, H)
            acc = jnp.dot(s_dn.astype(BF16), wb[0], preferred_element_type=F32)
            acc = acc + jnp.dot(s.astype(BF16), wb[1], preferred_element_type=F32)
            acc = acc + jnp.dot(s_up.astype(BF16), wb[2], preferred_element_type=F32)
            y = acc * sc[...] + bi[...]                  # folded BN (f32)
            return jnp.maximum(y, 0.0)                   # ReLU

        def level_mats(lvl):
            b = 8 * lvl
            return pool[b:b + 8]

        # ---- 2x2 max-pool; bf16 0/1 masks encode PyTorch first-max argmax ----
        def maxpool2x2(y, lvl):
            lse, lso, _, _, rse, rso, _, _ = level_mats(lvl)
            yb = y.astype(BF16)
            ev = jnp.dot(yb, lse[...], preferred_element_type=F32)  # even w
            od = jnp.dot(yb, lso[...], preferred_element_type=F32)  # odd w
            sel_w = (ev >= od).astype(BF16)              # left wins ties
            mw = jnp.maximum(ev, od).astype(BF16)        # bf16-exact values
            top = jnp.dot(rse[...], mw, preferred_element_type=F32)
            bot = jnp.dot(rso[...], mw, preferred_element_type=F32)
            sel_h = (top >= bot).astype(F32)             # top wins ties
            pooled = jnp.maximum(top, bot)
            sw_t = jnp.dot(rse[...], sel_w, preferred_element_type=F32)
            sw_b = jnp.dot(rso[...], sel_w, preferred_element_type=F32)
            sel_col = sel_h * sw_t + (1.0 - sel_h) * sw_b
            return pooled, sel_h.astype(BF16), sel_col.astype(BF16)

        # ---- 2x2 max-unpool, masks rebuilt from the two stored bf16 masks ----
        def max_unpool2x2(h, lvl, sel_h, sel_col):
            _, _, lce, lco, _, _, rce, rco = level_mats(lvl)
            hb = h.astype(BF16)
            m00 = sel_h * sel_col                        # top  / even column
            m01 = sel_h - m00                            # top  / odd  column
            m10 = sel_col - m00                          # bot  / even column
            m11 = (jnp.ones_like(m00) - sel_h) - m10     # bot  / odd  column
            top = (jnp.dot(hb * m00, lce[...], preferred_element_type=F32)
                   + jnp.dot(hb * m01, lco[...], preferred_element_type=F32))
            bot = (jnp.dot(hb * m10, lce[...], preferred_element_type=F32)
                   + jnp.dot(hb * m11, lco[...], preferred_element_type=F32))
            return (jnp.dot(rce[...], top.astype(BF16), preferred_element_type=F32)
                    + jnp.dot(rco[...], bot.astype(BF16), preferred_element_type=F32))

        # ---- full forward pass on the lane-dense (N*H, W*C) slab ----
        s = x_ref[...]
        li = 0
        saved = []
        for lvl, (H, _, _, _) in enumerate(enc_cfg):
            s = conv_bn_relu(s, li, H)
            li += 1
            s, sel_h, sel_col = maxpool2x2(s, lvl)
            saved.append((sel_h, sel_col))
        for blk_i, blk in enumerate(dec_cfg):
            lvl = n_levels - 1 - blk_i
            sel_h, sel_col = saved[lvl]
            s = max_unpool2x2(s, lvl, sel_h, sel_col)
            for (H, _, _, _) in blk:
                s = conv_bn_relu(s, li, H)
                li += 1
        out_ref[...] = s                                 # (N*H, W*class_pad)

    return kernel


# ============================================================================
# Public forward (NCHW in / NCHW out).  One pallas_call for the whole net.
# ============================================================================
def _const_index_map(ndim):
    return lambda n: (0,) * ndim


def segnet_forward(x_nchw, *, enc_cfg, dec_cfg, weights, pool_consts,
                   class_num, class_pad, roll_mode):
    N, cin, H, W = x_nchw.shape
    rows = N * H
    # NCHW -> lane-dense (N*H, W*Cin) slab (single tiny XLA transform).
    x_slab = jnp.transpose(x_nchw, (0, 2, 3, 1)).reshape(rows, W * cin)

    args = [x_slab] + list(weights) + list(pool_consts)
    in_specs = [pl.BlockSpec(a.shape, _const_index_map(a.ndim)) for a in args]

    out_slab = pl.pallas_call(
        _make_segnet_kernel(enc_cfg, dec_cfg, roll_mode),
        out_shape=jax.ShapeDtypeStruct((rows, W * class_pad), jnp.float32),
        grid=(1,),
        in_specs=in_specs,
        out_specs=pl.BlockSpec((rows, W * class_pad), lambda n: (0, 0)),
        compiler_params=pltpu.CompilerParams(
            dimension_semantics=("arbitrary",)),
    )(*args)

    out = out_slab.reshape(N, H, W, class_pad)[..., :class_num]
    return jnp.transpose(out, (0, 3, 1, 2))


# ============================================================================
# Pure-JAX/XLA reference (matching bf16 rounding of matmul inputs and of the
# pooling comparisons) for a sanity cross-check of the fused formulation.
# ============================================================================
def _maxpool2x2_with_indices_ref(x):
    N, H, W, C = x.shape
    xr = x.reshape(N, H // 2, 2, W // 2, 2, C)
    xr = jnp.transpose(xr, (0, 1, 3, 2, 4, 5)).reshape(N, H // 2, W // 2, 4, C)
    xq = xr.astype(BF16).astype(jnp.float32)      # kernel pools bf16 values
    return jnp.max(xq, axis=3), jnp.argmax(xq, axis=3)


def _max_unpool2x2_ref(x, idx):
    N, Hh, Ww, C = x.shape
    onehot = idx[..., None, :] == jnp.arange(4).reshape(1, 1, 1, 4, 1)
    scat = jnp.where(onehot, x[..., None, :], 0.0).reshape(N, Hh, Ww, 2, 2, C)
    return jnp.transpose(scat, (0, 1, 3, 2, 4, 5)).reshape(N, Hh * 2, Ww * 2, C)


def reference_forward(x_nchw, raw_layers, enc_cfg, dec_cfg):
    def conv_bn_relu(x, w, scale, bias):
        xq = x.astype(BF16).astype(jnp.float32)
        wq = w.astype(BF16).astype(jnp.float32)
        y = lax.conv_general_dilated(
            xq, wq, window_strides=(1, 1), padding="SAME",
            dimension_numbers=("NHWC", "HWIO", "NHWC"))
        y = y * scale.reshape(1, 1, 1, -1) + bias.reshape(1, 1, 1, -1)
        return jnp.maximum(y, 0.0)

    x = jnp.transpose(x_nchw, (0, 2, 3, 1))
    li = 0
    idx_list = []
    for _ in enc_cfg:
        w, s_, b_ = raw_layers[li]
        li += 1
        x = conv_bn_relu(x, w, s_, b_)
        x, idx = _maxpool2x2_with_indices_ref(x)
        idx_list.append(idx)
    for blk_i, blk in enumerate(dec_cfg):
        x = _max_unpool2x2_ref(x, idx_list[len(idx_list) - 1 - blk_i])
        for _ in blk:
            w, s_, b_ = raw_layers[li]
            li += 1
            x = conv_bn_relu(x, w, s_, b_)
    return jnp.transpose(x, (0, 3, 1, 2))


# ============================================================================
if __name__ == "__main__":
    key = jax.random.PRNGKey(0)
    pkey, xkey = jax.random.split(key)

    class_num = 5
    height = width = 16
    batch = 2
    enc_cfg, dec_cfg, layer_cfg = build_configs(class_num, height, width)
    raw_layers = init_raw_params(pkey, layer_cfg)

    class_pad = -(-class_num // 8) * 8                 # 5 -> 8 (128-lane slab)
    weights = prepare_weights(raw_layers, layer_cfg, class_pad)
    pool_consts = prepare_pool_mats(enc_cfg, batch)
    roll_mode = _detect_roll_mode()

    # PyTorch-style NCHW input: batch=2, RGB channels=3, spatial 16x16.
    x = jax.random.normal(xkey, (batch, 3, height, width), jnp.float32)

    fwd = jax.jit(functools.partial(
        segnet_forward, enc_cfg=enc_cfg, dec_cfg=dec_cfg, weights=weights,
        pool_consts=pool_consts, class_num=class_num, class_pad=class_pad,
        roll_mode=roll_mode))
    out = jax.block_until_ready(fwd(x))

    assert out.shape == (batch, class_num, height, width), out.shape
    assert out.dtype == jnp.float32
    assert bool(jnp.all(jnp.isfinite(out)))

    # Cross-check vs. plain-XLA reference with matching bf16 rounding.
    ref = jax.block_until_ready(reference_forward(x, raw_layers, enc_cfg, dec_cfg))
    mean_err = float(jnp.mean(jnp.abs(out - ref)))
    assert mean_err < 5e-3, f"mean abs err vs reference too large: {mean_err}"

    print("KERNEL_OK")
</pallas_src>

<mosaic_0001>
module attributes {stable_mosaic.version = 11 : i64} {
  func.func @k(%arg0: memref<8x128xf32, #tpu.memory_space<vmem>>, %arg1: memref<8x128xf32, #tpu.memory_space<vmem>>) attributes {dimension_semantics = [], scalar_prefetch = 0 : i64, scratch_operands = 0 : i64, tpu.core_type = #tpu.core_type<tc>} {
    %c0 = arith.constant 0 : index
    %c0_0 = arith.constant 0 : index
    %0 = vector.load %arg0[%c0, %c0_0] : memref<8x128xf32, #tpu.memory_space<vmem>>, vector<8x128xf32>
    %c1_i32 = arith.constant 1 : i32
    %1 = tpu.dynamic_rotate %0 by %c1_i32 dim 0 : vector<8x128xf32>, i32 -> vector<8x128xf32>
    %c0_1 = arith.constant 0 : index
    %c0_2 = arith.constant 0 : index
    %2 = vector.load %arg1[%c0_1, %c0_2] : memref<8x128xf32, #tpu.memory_space<vmem>>, vector<8x128xf32>
    tpu.vector_store %arg1[%c0_1, %c0_2], %1 {strides = array<i32>} : memref<8x128xf32, #tpu.memory_space<vmem>>, vector<8x128xf32>,
    return
  }
}

module attributes {stable_mosaic.version = 11 : i64} {
  func.func @kernel(%arg0: i32, %arg1: memref<32x48xf32, #tpu.memory_space<vmem>>, %arg2: memref<3x48x64xbf16, #tpu.memory_space<vmem>>, %arg3: memref<1x64xf32, #tpu.memory_space<vmem>>, %arg4: memref<1x64xf32, #tpu.memory_space<vmem>>, %arg5: memref<3x32x64xbf16, #tpu.memory_space<vmem>>, %arg6: memref<1x64xf32, #tpu.memory_space<vmem>>, %arg7: memref<1x64xf32, #tpu.memory_space<vmem>>, %arg8: memref<3x32x64xbf16, #tpu.memory_space<vmem>>, %arg9: memref<1x64xf32, #tpu.memory_space<vmem>>, %arg10: memref<1x64xf32, #tpu.memory_space<vmem>>, %arg11: memref<3x64x32xbf16, #tpu.memory_space<vmem>>, %arg12: memref<1x32xf32, #tpu.memory_space<vmem>>, %arg13: memref<1x32xf32, #tpu.memory_space<vmem>>, %arg14: memref<3x32x32xbf16, #tpu.memory_space<vmem>>, %arg15: memref<1x32xf32, #tpu.memory_space<vmem>>, %arg16: memref<1x32xf32, #tpu.memory_space<vmem>>, %arg17: memref<3x64x32xbf16, #tpu.memory_space<vmem>>, %arg18: memref<1x32xf32, #tpu.memory_space<vmem>>, %arg19: memref<1x32xf32, #tpu.memory_space<vmem>>, %arg20: memref<3x32x32xbf16, #tpu.memory_space<vmem>>, %arg21: memref<1x32xf32, #tpu.memory_space<vmem>>, %arg22: memref<1x32xf32, #tpu.memory_space<vmem>>, %arg23: memref<3x64x512xbf16, #tpu.memory_space<vmem>>, %arg24: memref<1x512xf32, #tpu.memory_space<vmem>>, %arg25: memref<1x512xf32, #tpu.memory_space<vmem>>, %arg26: memref<3x512x128xbf16, #tpu.memory_space<vmem>>, %arg27: memref<1x128xf32, #tpu.memory_space<vmem>>, %arg28: memref<1x128xf32, #tpu.memory_space<vmem>>, %arg29: memref<64x32xbf16, #tpu.memory_space<vmem>>, %arg30: memref<64x32xbf16, #tpu.memory_space<vmem>>, %arg31: memref<32x64xbf16, #tpu.memory_space<vmem>>, %arg32: memref<32x64xbf16, #tpu.memory_space<vmem>>, %arg33: memref<16x32xbf16, #tpu.memory_space<vmem>>, %arg34: memref<16x32xbf16, #tpu.memory_space<vmem>>, %arg35: memref<32x16xbf16, #tpu.memory_space<vmem>>, %arg36: memref<32x16xbf16, #tpu.memory_space<vmem>>, %arg37: memref<64x32xbf16, #tpu.memory_space<vmem>>, %arg38: memref<64x32xbf16, #tpu.memory_space<vmem>>, %arg39: memref<32x64xbf16, #tpu.memory_space<vmem>>, %arg40: memref<32x64xbf16, #tpu.memory_space<vmem>>, %arg41: memref<8x16xbf16, #tpu.memory_space<vmem>>, %arg42: memref<8x16xbf16, #tpu.memory_space<vmem>>, %arg43: memref<16x8xbf16, #tpu.memory_space<vmem>>, %arg44: memref<16x8xbf16, #tpu.memory_space<vmem>>, %arg45: memref<64x32xbf16, #tpu.memory_space<vmem>>, %arg46: memref<64x32xbf16, #tpu.memory_space<vmem>>, %arg47: memref<32x64xbf16, #tpu.memory_space<vmem>>, %arg48: memref<32x64xbf16, #tpu.memory_space<vmem>>, %arg49: memref<4x8xbf16, #tpu.memory_space<vmem>>, %arg50: memref<4x8xbf16, #tpu.memory_space<vmem>>, %arg51: memref<8x4xbf16, #tpu.memory_space<vmem>>, %arg52: memref<8x4xbf16, #tpu.memory_space<vmem>>, %arg53: memref<32x128xf32, #tpu.memory_space<vmem>>) attributes {dimension_semantics = [#tpu.dimension_semantics<arbitrary>], iteration_bounds = array<i64: 1>, scalar_prefetch = 0 : i64, scratch_operands = 0 : i64, tpu.core_type = #tpu.core_type<tc>, window_params = [{pipeline_mode = #tpu.pipeline_mode<synchronous>, transform_indices = @transform_0, window_bounds = array<i64: 32, 48>}, {pipeline_mode = #tpu.pipeline_mode<synchronous>, transform_indices = @transform_1, window_bounds = array<i64: 3, 48, 64>}, {pipeline_mode = #tpu.pipeline_mode<synchronous>, transform_indices = @transform_2, window_bounds = array<i64: 1, 64>}, {pipeline_mode = #tpu.pipeline_mode<synchronous>, transform_indices = @transform_3, window_bounds = array<i64: 1, 64>}, {pipeline_mode = #tpu.pipeline_mode<synchronous>, transform_indices = @transform_4, window_bounds = array<i64: 3, 32, 64>}, {pipeline_mode = #tpu.pipeline_mode<synchronous>, transform_indices = @transform_5, window_bounds = array<i64: 1, 64>}, {pipeline_mode = #tpu.pipeline_mode<synchronous>, transform_indices = @transform_6, window_bounds = array<i64: 1, 64>}, {pipeline_mode = #tpu.pipeline_mode<synchronous>, transform_indices = @transform_7, window_bounds = array<i64: 3, 32, 64>}, {pipeline_mode = #tpu.pipeline_mode<synchronous>, transform_indices = @transform_8, window_bounds = array<i64: 1, 64>}, {pipeline_mode = #tpu.pipeline_mode<synchronous>, transform_indices = @transform_9, window_bounds = array<i64: 1, 64>}, {pipeline_mode = #tpu.pipeline_mode<synchronous>, transform_indices = @transform_10, window_bounds = array<i64: 3, 64, 32>}, {pipeline_mode = #tpu.pipeline_mode<synchronous>, transform_indices = @transform_11, window_bounds = array<i64: 1, 32>}, {pipeline_mode = #tpu.pipeline_mode<synchronous>, transform_indices = @transform_12, window_bounds = array<i64: 1, 32>}, {pipeline_mode = #tpu.pipeline_mode<synchronous>, transform_indices = @transform_13, window_bounds = array<i64: 3, 32, 32>}, {pipeline_mode = #tpu.pipeline_mode<synchronous>, transform_indices = @transform_14, window_bounds = array<i64: 1, 32>}, {pipeline_mode = #tpu.pipeline_mode<synchronous>, transform_indices = @transform_15, window_bounds = array<i64: 1, 32>}, {pipeline_mode = #tpu.pipeline_mode<synchronous>, transform_indices = @transform_16, window_bounds = array<i64: 3, 64, 32>}, {pipeline_mode = #tpu.pipeline_mode<synchronous>, transform_indices = @transform_17, window_bounds = array<i64: 1, 32>}, {pipeline_mode = #tpu.pipeline_mode<synchronous>, transform_indices = @transform_18, window_bounds = array<i64: 1, 32>}, {pipeline_mode = #tpu.pipeline_mode<synchronous>, transform_indices = @transform_19, window_bounds = array<i64: 3, 32, 32>}, {pipeline_mode = #tpu.pipeline_mode<synchronous>, transform_indices = @transform_20, window_bounds = array<i64: 1, 32>}, {pipeline_mode = #tpu.pipeline_mode<synchronous>, transform_indices = @transform_21, window_bounds = array<i64: 1, 32>}, {pipeline_mode = #tpu.pipeline_mode<synchronous>, transform_indices = @transform_22, window_bounds = array<i64: 3, 64, 512>}, {pipeline_mode = #tpu.pipeline_mode<synchronous>, transform_indices = @transform_23, window_bounds = array<i64: 1, 512>}, {pipeline_mode = #tpu.pipeline_mode<synchronous>, transform_indices = @transform_24, window_bounds = array<i64: 1, 512>}, {pipeline_mode = #tpu.pipeline_mode<synchronous>, transform_indices = @transform_25, window_bounds = array<i64: 3, 512, 128>}, {pipeline_mode = #tpu.pipeline_mode<synchronous>, transform_indices = @transform_26, window_bounds = array<i64: 1, 128>}, {pipeline_mode = #tpu.pipeline_mode<synchronous>, transform_indices = @transform_27, window_bounds = array<i64: 1, 128>}, {pipeline_mode = #tpu.pipeline_mode<synchronous>, transform_indices = @transform_28, window_bounds = array<i64: 64, 32>}, {pipeline_mode = #tpu.pipeline_mode<synchronous>, transform_indices = @transform_29, window_bounds = array<i64: 64, 32>}, {pipeline_mode = #tpu.pipeline_mode<synchronous>, transform_indices = @transform_30, window_bounds = array<i64: 32, 64>}, {pipeline_mode = #tpu.pipeline_mode<synchronous>, transform_indices = @transform_31, window_bounds = array<i64: 32, 64>}, {pipeline_mode = #tpu.pipeline_mode<synchronous>, transform_indices = @transform_32, window_bounds = array<i64: 16, 32>}, {pipeline_mode = #tpu.pipeline_mode<synchronous>, transform_indices = @transform_33, window_bounds = array<i64: 16, 32>}, {pipeline_mode = #tpu.pipeline_mode<synchronous>, transform_indices = @transform_34, window_bounds = array<i64: 32, 16>}, {pipeline_mode = #tpu.pipeline_mode<synchronous>, transform_indices = @transform_35, window_bounds = array<i64: 32, 16>}, {pipeline_mode = #tpu.pipeline_mode<synchronous>, transform_indices = @transform_36, window_bounds = array<i64: 64, 32>}, {pipeline_mode = #tpu.pipeline_mode<synchronous>, transform_indices = @transform_37, window_bounds = array<i64: 64, 32>}, {pipeline_mode = #tpu.pipeline_mode<synchronous>, transform_indices = @transform_38, window_bounds = array<i64: 32, 64>}, {pipeline_mode = #tpu.pipeline_mode<synchronous>, transform_indices = @transform_39, window_bounds = array<i64: 32, 64>}, {pipeline_mode = #tpu.pipeline_mode<synchronous>, transform_indices = @transform_40, window_bounds = array<i64: 8, 16>}, {pipeline_mode = #tpu.pipeline_mode<synchronous>, transform_indices = @transform_41, window_bounds = array<i64: 8, 16>}, {pipeline_mode = #tpu.pipeline_mode<synchronous>, transform_indices = @transform_42, window_bounds = array<i64: 16, 8>}, {pipeline_mode = #tpu.pipeline_mode<synchronous>, transform_indices = @transform_43, window_bounds = array<i64: 16, 8>}, {pipeline_mode = #tpu.pipeline_mode<synchronous>, transform_indices = @transform_44, window_bounds = array<i64: 64, 32>}, {pipeline_mode = #tpu.pipeline_mode<synchronous>, transform_indices = @transform_45, window_bounds = array<i64: 64, 32>}, {pipeline_mode = #tpu.pipeline_mode<synchronous>, transform_indices = @transform_46, window_bounds = array<i64: 32, 64>}, {pipeline_mode = #tpu.pipeline_mode<synchronous>, transform_indices = @transform_47, window_bounds = array<i64: 32, 64>}, {pipeline_mode = #tpu.pipeline_mode<synchronous>, transform_indices = @transform_48, window_bounds = array<i64: 4, 8>}, {pipeline_mode = #tpu.pipeline_mode<synchronous>, transform_indices = @transform_49, window_bounds = array<i64: 4, 8>}, {pipeline_mode = #tpu.pipeline_mode<synchronous>, transform_indices = @transform_50, window_bounds = array<i64: 8, 4>}, {pipeline_mode = #tpu.pipeline_mode<synchronous>, transform_indices = @transform_51, window_bounds = array<i64: 8, 4>}, {pipeline_mode = #tpu.pipeline_mode<synchronous>, transform_indices = @transform_52, window_bounds = array<i64: 32, 128>}]} {
    %c0 = arith.constant 0 : index
    %c0_0 = arith.constant 0 : index
    %0 = vector.load %arg1[%c0, %c0_0] : memref<32x48xf32, #tpu.memory_space<vmem>>, vector<32x48xf32>
    %cst = arith.constant 0.000000e+00 : f32
    %1 = vector.broadcast %cst : f32 to vector<1x48xf32>
    %2 = vector.extract_strided_slice %0 {offsets = [0, 0], sizes = [31, 48], strides = [1, 1]} : vector<32x48xf32> to vector<31x48xf32>
    %3 = tpu.concatenate %1, %2 in 0 : vector<1x48xf32>, vector<31x48xf32> -> vector<32x48xf32>
    %4 = vector.extract_strided_slice %0 {offsets = [1, 0], sizes = [31, 48], strides = [1, 1]} : vector<32x48xf32> to vector<31x48xf32>
    %5 = tpu.concatenate %4, %1 in 0 : vector<31x48xf32>, vector<1x48xf32> -> vector<32x48xf32>
    %6 = tpu.iota {dimensions = array<i32: 0>} : vector<32x1xi32>
    %c16_i32 = arith.constant 16 : i32
    %c0_i32 = arith.constant 0 : i32
    %7 = arith.cmpi eq, %c16_i32, %c0_i32 : i32
    %c1_i32 = arith.constant 1 : i32
    %8 = arith.select %7, %c1_i32, %c16_i32 : i32
    %9 = vector.broadcast %8 : i32 to vector<32x1xi32>
    %10 = arith.remsi %6, %9 : vector<32x1xi32>
    %c0_i32_1 = arith.constant 0 : i32
    %11 = vector.broadcast %c0_i32_1 : i32 to vector<32x1xi32>
    %12 = arith.cmpi ne, %10, %11 : vector<32x1xi32>
    %c0_i32_2 = arith.constant 0 : i32
    %13 = vector.broadcast %c0_i32_2 : i32 to vector<32x1xi32>
    %14 = arith.cmpi slt, %10, %13 : vector<32x1xi32>
    %c0_i32_3 = arith.constant 0 : i32
    %15 = arith.cmpi slt, %8, %c0_i32_3 : i32
    %16 = vector.broadcast %15 : i1 to vector<32x1xi1>
    %17 = vector.broadcast %16 : vector<32x1xi1> to vector<32x1xi1>
    %18 = arith.xori %14, %17 : vector<32x1xi1>
    %19 = arith.andi %18, %12 : vector<32x1xi1>
    %20 = vector.broadcast %8 : i32 to vector<32x1xi32>
    %21 = arith.addi %10, %20 : vector<32x1xi32>
    %22 = arith.select %19, %21, %10 : vector<32x1xi1>, vector<32x1xi32>
    %c0_i32_4 = arith.constant 0 : i32
    %23 = vector.broadcast %c0_i32_4 : i32 to vector<32x1xi32>
    %24 = arith.cmpi eq, %22, %23 : vector<32x1xi32>
    %cst_5 = arith.constant 0.000000e+00 : f32
    %25 = vector.shape_cast %24 : vector<32x1xi1> to vector<32x1xi1>
    %26 = vector.broadcast %25 : vector<32x1xi1> to vector<32x48xi1>
    %27 = vector.broadcast %cst_5 : f32 to vector<32x48xf32>
    %28 = arith.select %26, %27, %3 : vector<32x48xi1>, vector<32x48xf32>
    %c16_i32_6 = arith.constant 16 : i32
    %c0_i32_7 = arith.constant 0 : i32
    %29 = arith.cmpi eq, %c16_i32_6, %c0_i32_7 : i32
    %c1_i32_8 = arith.constant 1 : i32
    %30 = arith.select %29, %c1_i32_8, %c16_i32_6 : i32
    %31 = vector.broadcast %30 : i32 to vector<32x1xi32>
    %32 = arith.remsi %6, %31 : vector<32x1xi32>
    %c0_i32_9 = arith.constant 0 : i32
    %33 = vector.broadcast %c0_i32_9 : i32 to vector<32x1xi32>
    %34 = arith.cmpi ne, %32, %33 : vector<32x1xi32>
    %c0_i32_10 = arith.constant 0 : i32
    %35 = vector.broadcast %c0_i32_10 : i32 to vector<32x1xi32>
    %36 = arith.cmpi slt, %32, %35 : vector<32x1xi32>
    %c0_i32_11 = arith.constant 0 : i32
    %37 = arith.cmpi slt, %30, %c0_i32_11 : i32
    %38 = vector.broadcast %37 : i1 to vector<32x1xi1>
    %39 = vector.broadcast %38 : vector<32x1xi1> to vector<32x1xi1>
    %40 = arith.xori %36, %39 : vector<32x1xi1>
    %41 = arith.andi %40, %34 : vector<32x1xi1>
    %42 = vector.broadcast %30 : i32 to vector<32x1xi32>
    %43 = arith.addi %32, %42 : vector<32x1xi32>
    %44 = arith.select %41, %43, %32 : vector<32x1xi1>, vector<32x1xi32>
    %c15_i32 = arith.constant 15 : i32
    %45 = vector.broadcast %c15_i32 : i32 to vector<32x1xi32>
    %46 = arith.cmpi eq, %44, %45 : vector<32x1xi32>
    %cst_12 = arith.constant 0.000000e+00 : f32
    %47 = vector.shape_cast %46 : vector<32x1xi1> to vector<32x1xi1>
    %48 = vector.broadcast %47 : vector<32x1xi1> to vector<32x48xi1>
    %49 = vector.broadcast %cst_12 : f32 to vector<32x48xf32>
    %50 = arith.select %48, %49, %5 : vector<32x48xi1>, vector<32x48xf32>
    %51 = arith.truncf %28 : vector<32x48xf32> to vector<32x48xbf16>
    %c0_13 = arith.constant 0 : index
    %c0_14 = arith.constant 0 : index
    %c0_15 = arith.constant 0 : index
    %52 = vector.load %arg2[%c0_13, %c0_14, %c0_15] : memref<3x48x64xbf16, #tpu.memory_space<vmem>>, vector<1x48x64xbf16>
    %53 = vector.shape_cast %52 : vector<1x48x64xbf16> to vector<48x64xbf16>
    %cst_16 = arith.constant dense<0.000000e+00> : vector<32x64xf32>
    %54 = tpu.matmul %51, %53, %cst_16 {dimension_numbers = #tpu.dot_dimension_numbers<[1], [0], [0], [1], [0, 0, 1, 1], [], []>} : vector<32x48xbf16>, vector<48x64xbf16>, vector<32x64xf32> -> vector<32x64xf32>
    %55 = arith.truncf %0 : vector<32x48xf32> to vector<32x48xbf16>
    %c1 = arith.constant 1 : index
    %c0_17 = arith.constant 0 : index
    %c0_18 = arith.constant 0 : index
    %56 = vector.load %arg2[%c1, %c0_17, %c0_18] : memref<3x48x64xbf16, #tpu.memory_space<vmem>>, vector<1x48x64xbf16>
    %57 = vector.shape_cast %56 : vector<1x48x64xbf16> to vector<48x64xbf16>
    %cst_19 = arith.constant dense<0.000000e+00> : vector<32x64xf32>
    %58 = tpu.matmul %55, %57, %cst_19 {dimension_numbers = #tpu.dot_dimension_numbers<[1], [0], [0], [1], [0, 0, 1, 1], [], []>} : vector<32x48xbf16>, vector<48x64xbf16>, vector<32x64xf32> -> vector<32x64xf32>
    %59 = arith.addf %54, %58 : vector<32x64xf32>
    %60 = arith.truncf %50 : vector<32x48xf32> to vector<32x48xbf16>
    %c2 = arith.constant 2 : index
    %c0_20 = arith.constant 0 : index
    %c0_21 = arith.constant 0 : index
    %61 = vector.load %arg2[%c2, %c0_20, %c0_21] : memref<3x48x64xbf16, #tpu.memory_space<vmem>>, vector<1x48x64xbf16>
    %62 = vector.shape_cast %61 : vector<1x48x64xbf16> to vector<48x64xbf16>
    %cst_22 = arith.constant dense<0.000000e+00> : vector<32x64xf32>
    %63 = tpu.matmul %60, %62, %cst_22 {dimension_numbers = #tpu.dot_dimension_numbers<[1], [0], [0], [1], [0, 0, 1, 1], [], []>} : vector<32x48xbf16>, vector<48x64xbf16>, vector<32x64xf32> -> vector<32x64xf32>
    %64 = arith.addf %59, %63 : vector<32x64xf32>
    %c0_23 = arith.constant 0 : index
    %c0_24 = arith.constant 0 : index
    %65 = vector.load %arg3[%c0_23, %c0_24] : memref<1x64xf32, #tpu.memory_space<vmem>>, vector<1x64xf32>
    %66 = vector.broadcast %65 : vector<1x64xf32> to vector<32x64xf32>
    %67 = arith.mulf %64, %66 : vector<32x64xf32>
    %c0_25 = arith.constant 0 : index
    %c0_26 = arith.constant 0 : index
    %68 = vector.load %arg4[%c0_25, %c0_26] : memref<1x64xf32, #tpu.memory_space<vmem>>, vector<1x64xf32>
    %69 = vector.broadcast %68 : vector<1x64xf32> to vector<32x64xf32>
    %70 = arith.addf %67, %69 : vector<32x64xf32>
    %cst_27 = arith.constant 0.000000e+00 : f32
    %71 = vector.broadcast %cst_27 : f32 to vector<32x64xf32>
    %72 = arith.maximumf %70, %71 : vector<32x64xf32>
    %73 = arith.truncf %72 : vector<32x64xf32> to vector<32x64xbf16>
    %c0_28 = arith.constant 0 : index
    %c0_29 = arith.constant 0 : index
    %74 = vector.load %arg29[%c0_28, %c0_29] : memref<64x32xbf16, #tpu.memory_space<vmem>>, vector<64x32xbf16>
    %cst_30 = arith.constant dense<0.000000e+00> : vector<32x32xf32>
    %75 = tpu.matmul %73, %74, %cst_30 {dimension_numbers = #tpu.dot_dimension_numbers<[1], [0], [0], [1], [0, 0, 1, 1], [], []>} : vector<32x64xbf16>, vector<64x32xbf16>, vector<32x32xf32> -> vector<32x32xf32>
    %c0_31 = arith.constant 0 : index
    %c0_32 = arith.constant 0 : index
    %76 = vector.load %arg30[%c0_31, %c0_32] : memref<64x32xbf16, #tpu.memory_space<vmem>>, vector<64x32xbf16>
    %cst_33 = arith.constant dense<0.000000e+00> : vector<32x32xf32>
    %77 = tpu.matmul %73, %76, %cst_33 {dimension_numbers = #tpu.dot_dimension_numbers<[1], [0], [0], [1], [0, 0, 1, 1], [], []>} : vector<32x64xbf16>, vector<64x32xbf16>, vector<32x32xf32> -> vector<32x32xf32>
    %78 = arith.cmpf oge, %75, %77 : vector<32x32xf32>
    %79 = arith.extui %78 : vector<32x32xi1> to vector<32x32xi32>
    %80 = arith.sitofp %79 : vector<32x32xi32> to vector<32x32xf32>
    %81 = arith.truncf %80 : vector<32x32xf32> to vector<32x32xbf16>
    %82 = arith.maximumf %75, %77 : vector<32x32xf32>
    %83 = arith.truncf %82 : vector<32x32xf32> to vector<32x32xbf16>
    %c0_34 = arith.constant 0 : index
    %c0_35 = arith.constant 0 : index
    %84 = vector.load %arg33[%c0_34, %c0_35] : memref<16x32xbf16, #tpu.memory_space<vmem>>, vector<16x32xbf16>
    %cst_36 = arith.constant dense<0.000000e+00> : vector<16x32xf32>
    %85 = tpu.matmul %84, %83, %cst_36 {dimension_numbers = #tpu.dot_dimension_numbers<[1], [0], [0], [1], [0, 0, 1, 1], [], []>} : vector<16x32xbf16>, vector<32x32xbf16>, vector<16x32xf32> -> vector<16x32xf32>
    %c0_37 = arith.constant 0 : index
    %c0_38 = arith.constant 0 : index
    %86 = vector.load %arg34[%c0_37, %c0_38] : memref<16x32xbf16, #tpu.memory_space<vmem>>, vector<16x32xbf16>
    %cst_39 = arith.constant dense<0.000000e+00> : vector<16x32xf32>
    %87 = tpu.matmul %86, %83, %cst_39 {dimension_numbers = #tpu.dot_dimension_numbers<[1], [0], [0], [1], [0, 0, 1, 1], [], []>} : vector<16x32xbf16>, vector<32x32xbf16>, vector<16x32xf32> -> vector<16x32xf32>
    %88 = arith.cmpf oge, %85, %87 : vector<16x32xf32>
    %89 = arith.extui %88 : vector<16x32xi1> to vector<16x32xi32>
    %90 = arith.sitofp %89 : vector<16x32xi32> to vector<16x32xf32>
    %91 = arith.maximumf %85, %87 : vector<16x32xf32>
    %c0_40 = arith.constant 0 : index
    %c0_41 = arith.constant 0 : index
    %92 = vector.load %arg33[%c0_40, %c0_41] : memref<16x32xbf16, #tpu.memory_space<vmem>>, vector<16x32xbf16>
    %cst_42 = arith.constant dense<0.000000e+00> : vector<16x32xf32>
    %93 = tpu.matmul %92, %81, %cst_42 {dimension_numbers = #tpu.dot_dimension_numbers<[1], [0], [0], [1], [0, 0, 1, 1], [], []>} : vector<16x32xbf16>, vector<32x32xbf16>, vector<16x32xf32> -> vector<16x32xf32>
    %c0_43 = arith.constant 0 : index
    %c0_44 = arith.constant 0 : index
    %94 = vector.load %arg34[%c0_43, %c0_44] : memref<16x32xbf16, #tpu.memory_space<vmem>>, vector<16x32xbf16>
    %cst_45 = arith.constant dense<0.000000e+00> : vector<16x32xf32>
    %95 = tpu.matmul %94, %81, %cst_45 {dimension_numbers = #tpu.dot_dimension_numbers<[1], [0], [0], [1], [0, 0, 1, 1], [], []>} : vector<16x32xbf16>, vector<32x32xbf16>, vector<16x32xf32> -> vector<16x32xf32>
    %96 = arith.mulf %90, %93 : vector<16x32xf32>
    %cst_46 = arith.constant 1.000000e+00 : f32
    %97 = vector.broadcast %cst_46 : f32 to vector<16x32xf32>
    %98 = arith.subf %97, %90 : vector<16x32xf32>
    %99 = arith.mulf %98, %95 : vector<16x32xf32>
    %100 = arith.addf %96, %99 : vector<16x32xf32>
    %101 = arith.truncf %90 : vector<16x32xf32> to vector<16x32xbf16>
    %102 = arith.truncf %100 : vector<16x32xf32> to vector<16x32xbf16>
    %cst_47 = arith.constant 0.000000e+00 : f32
    %103 = vector.broadcast %cst_47 : f32 to vector<1x32xf32>
    %104 = vector.extract_strided_slice %91 {offsets = [0, 0], sizes = [15, 32], strides = [1, 1]} : vector<16x32xf32> to vector<15x32xf32>
    %105 = tpu.concatenate %103, %104 in 0 : vector<1x32xf32>, vector<15x32xf32> -> vector<16x32xf32>
    %106 = vector.extract_strided_slice %91 {offsets = [1, 0], sizes = [15, 32], strides = [1, 1]} : vector<16x32xf32> to vector<15x32xf32>
    %107 = tpu.concatenate %106, %103 in 0 : vector<15x32xf32>, vector<1x32xf32> -> vector<16x32xf32>
    %108 = tpu.iota {dimensions = array<i32: 0>} : vector<16x1xi32>
    %c8_i32 = arith.constant 8 : i32
    %c0_i32_48 = arith.constant 0 : i32
    %109 = arith.cmpi eq, %c8_i32, %c0_i32_48 : i32
    %c1_i32_49 = arith.constant 1 : i32
    %110 = arith.select %109, %c1_i32_49, %c8_i32 : i32
    %111 = vector.broadcast %110 : i32 to vector<16x1xi32>
    %112 = arith.remsi %108, %111 : vector<16x1xi32>
    %c0_i32_50 = arith.constant 0 : i32
    %113 = vector.broadcast %c0_i32_50 : i32 to vector<16x1xi32>
    %114 = arith.cmpi ne, %112, %113 : vector<16x1xi32>
    %c0_i32_51 = arith.constant 0 : i32
    %115 = vector.broadcast %c0_i32_51 : i32 to vector<16x1xi32>
    %116 = arith.cmpi slt, %112, %115 : vector<16x1xi32>
    %c0_i32_52 = arith.constant 0 : i32
    %117 = arith.cmpi slt, %110, %c0_i32_52 : i32
    %118 = vector.broadcast %117 : i1 to vector<16x1xi1>
    %119 = vector.broadcast %118 : vector<16x1xi1> to vector<16x1xi1>
    %120 = arith.xori %116, %119 : vector<16x1xi1>
    %121 = arith.andi %120, %114 : vector<16x1xi1>
    %122 = vector.broadcast %110 : i32 to vector<16x1xi32>
    %123 = arith.addi %112, %122 : vector<16x1xi32>
    %124 = arith.select %121, %123, %112 : vector<16x1xi1>, vector<16x1xi32>
    %c0_i32_53 = arith.constant 0 : i32
    %125 = vector.broadcast %c0_i32_53 : i32 to vector<16x1xi32>
    %126 = arith.cmpi eq, %124, %125 : vector<16x1xi32>
    %cst_54 = arith.constant 0.000000e+00 : f32
    %127 = vector.shape_cast %126 : vector<16x1xi1> to vector<16x1xi1>
    %128 = vector.broadcast %127 : vector<16x1xi1> to vector<16x32xi1>
    %129 = vector.broadcast %cst_54 : f32 to vector<16x32xf32>
    %130 = arith.select %128, %129, %105 : vector<16x32xi1>, vector<16x32xf32>
    %c8_i32_55 = arith.constant 8 : i32
    %c0_i32_56 = arith.constant 0 : i32
    %131 = arith.cmpi eq, %c8_i32_55, %c0_i32_56 : i32
    %c1_i32_57 = arith.constant 1 : i32
    %132 = arith.select %131, %c1_i32_57, %c8_i32_55 : i32
    %133 = vector.broadcast %132 : i32 to vector<16x1xi32>
    %134 = arith.remsi %108, %133 : vector<16x1xi32>
    %c0_i32_58 = arith.constant 0 : i32
    %135 = vector.broadcast %c0_i32_58 : i32 to vector<16x1xi32>
    %136 = arith.cmpi ne, %134, %135 : vector<16x1xi32>
    %c0_i32_59 = arith.constant 0 : i32
    %137 = vector.broadcast %c0_i32_59 : i32 to vector<16x1xi32>
    %138 = arith.cmpi slt, %134, %137 : vector<16x1xi32>
    %c0_i32_60 = arith.constant 0 : i32
    %139 = arith.cmpi slt, %132, %c0_i32_60 : i32
    %140 = vector.broadcast %139 : i1 to vector<16x1xi1>
    %141 = vector.broadcast %140 : vector<16x1xi1> to vector<16x1xi1>
    %142 = arith.xori %138, %141 : vector<16x1xi1>
    %143 = arith.andi %142, %136 : vector<16x1xi1>
    %144 = vector.broadcast %132 : i32 to vector<16x1xi32>
    %145 = arith.addi %134, %144 : vector<16x1xi32>
    %146 = arith.select %143, %145, %134 : vector<16x1xi1>, vector<16x1xi32>
    %c7_i32 = arith.constant 7 : i32
    %147 = vector.broadcast %c7_i32 : i32 to vector<16x1xi32>
    %148 = arith.cmpi eq, %146, %147 : vector<16x1xi32>
    %cst_61 = arith.constant 0.000000e+00 : f32
    %149 = vector.shape_cast %148 : vector<16x1xi1> to vector<16x1xi1>
    %150 = vector.broadcast %149 : vector<16x1xi1> to vector<16x32xi1>
    %151 = vector.broadcast %cst_61 : f32 to vector<16x32xf32>
    %152 = arith.select %150, %151, %107 : vector<16x32xi1>, vector<16x32xf32>
    %153 = arith.truncf %130 : vector<16x32xf32> to vector<16x32xbf16>
    %c0_62 = arith.constant 0 : index
    %c0_63 = arith.constant 0 : index
    %c0_64 = arith.constant 0 : index
    %154 = vector.load %arg5[%c0_62, %c0_63, %c0_64] : memref<3x32x64xbf16, #tpu.memory_space<vmem>>, vector<1x32x64xbf16>
    %155 = vector.shape_cast %154 : vector<1x32x64xbf16> to vector<32x64xbf16>
    %cst_65 = arith.constant dense<0.000000e+00> : vector<16x64xf32>
    %156 = tpu.matmul %153, %155, %cst_65 {dimension_numbers = #tpu.dot_dimension_numbers<[1], [0], [0], [1], [0, 0, 1, 1], [], []>} : vector<16x32xbf16>, vector<32x64xbf16>, vector<16x64xf32> -> vector<16x64xf32>
    %157 = arith.truncf %91 : vector<16x32xf32> to vector<16x32xbf16>
    %c1_66 = arith.constant 1 : index
    %c0_67 = arith.constant 0 : index
    %c0_68 = arith.constant 0 : index
    %158 = vector.load %arg5[%c1_66, %c0_67, %c0_68] : memref<3x32x64xbf16, #tpu.memory_space<vmem>>, vector<1x32x64xbf16>
    %159 = vector.shape_cast %158 : vector<1x32x64xbf16> to vector<32x64xbf16>
    %cst_69 = arith.constant dense<0.000000e+00> : vector<16x64xf32>
    %160 = tpu.matmul %157, %159, %cst_69 {dimension_numbers = #tpu.dot_dimension_numbers<[1], [0], [0], [1], [0, 0, 1, 1], [], []>} : vector<16x32xbf16>, vector<32x64xbf16>, vector<16x64xf32> -> vector<16x64xf32>
    %161 = arith.addf %156, %160 : vector<16x64xf32>
    %162 = arith.truncf %152 : vector<16x32xf32> to vector<16x32xbf16>
    %c2_70 = arith.constant 2 : index
    %c0_71 = arith.constant 0 : index
    %c0_72 = arith.constant 0 : index
    %163 = vector.load %arg5[%c2_70, %c0_71, %c0_72] : memref<3x32x64xbf16, #tpu.memory_space<vmem>>, vector<1x32x64xbf16>
    %164 = vector.shape_cast %163 : vector<1x32x64xbf16> to vector<32x64xbf16>
    %cst_73 = arith.constant dense<0.000000e+00> : vector<16x64xf32>
    %165 = tpu.matmul %162, %164, %cst_73 {dimension_numbers = #tpu.dot_dimension_numbers<[1], [0], [0], [1], [0, 0, 1, 1], [], []>} : vector<16x32xbf16>, vector<32x64xbf16>, vector<16x64xf32> -> vector<16x64xf32>
    %166 = arith.addf %161, %165 : vector<16x64xf32>
    %c0_74 = arith.constant 0 : index
    %c0_75 = arith.constant 0 : index
    %167 = vector.load %arg6[%c0_74, %c0_75] : memref<1x64xf32, #tpu.memory_space<vmem>>, vector<1x64xf32>
    %168 = vector.broadcast %167 : vector<1x64xf32> to vector<16x64xf32>
    %169 = arith.mulf %166, %168 : vector<16x64xf32>
    %c0_76 = arith.constant 0 : index
    %c0_77 = arith.constant 0 : index
    %170 = vector.load %arg7[%c0_76, %c0_77] : memref<1x64xf32, #tpu.memory_space<vmem>>, vector<1x64xf32>
    %171 = vector.broadcast %170 : vector<1x64xf32> to vector<16x64xf32>
    %172 = arith.addf %169, %171 : vector<16x64xf32>
    %cst_78 = arith.constant 0.000000e+00 : f32
    %173 = vector.broadcast %cst_78 : f32 to vector<16x64xf32>
    %174 = arith.maximumf %172, %173 : vector<16x64xf32>
    %175 = arith.truncf %174 : vector<16x64xf32> to vector<16x64xbf16>
    %c0_79 = arith.constant 0 : index
    %c0_80 = arith.constant 0 : index
    %176 = vector.load %arg37[%c0_79, %c0_80] : memref<64x32xbf16, #tpu.memory_space<vmem>>, vector<64x32xbf16>
    %cst_81 = arith.constant dense<0.000000e+00> : vector<16x32xf32>
    %177 = tpu.matmul %175, %176, %cst_81 {dimension_numbers = #tpu.dot_dimension_numbers<[1], [0], [0], [1], [0, 0, 1, 1], [], []>} : vector<16x64xbf16>, vector<64x32xbf16>, vector<16x32xf32> -> vector<16x32xf32>
    %c0_82 = arith.constant 0 : index
    %c0_83 = arith.constant 0 : index
    %178 = vector.load %arg38[%c0_82, %c0_83] : memref<64x32xbf16, #tpu.memory_space<vmem>>, vector<64x32xbf16>
    %cst_84 = arith.constant dense<0.000000e+00> : vector<16x32xf32>
    %179 = tpu.matmul %175, %178, %cst_84 {dimension_numbers = #tpu.dot_dimension_numbers<[1], [0], [0], [1], [0, 0, 1, 1], [], []>} : vector<16x64xbf16>, vector<64x32xbf16>, vector<16x32xf32> -> vector<16x32xf32>
    %180 = arith.cmpf oge, %177, %179 : vector<16x32xf32>
    %181 = arith.extui %180 : vector<16x32xi1> to vector<16x32xi32>
    %182 = arith.sitofp %181 : vector<16x32xi32> to vector<16x32xf32>
    %183 = arith.truncf %182 : vector<16x32xf32> to vector<16x32xbf16>
    %184 = arith.maximumf %177, %179 : vector<16x32xf32>
    %185 = arith.truncf %184 : vector<16x32xf32> to vector<16x32xbf16>
    %c0_85 = arith.constant 0 : index
    %c0_86 = arith.constant 0 : index
    %186 = vector.load %arg41[%c0_85, %c0_86] : memref<8x16xbf16, #tpu.memory_space<vmem>>, vector<8x16xbf16>
    %cst_87 = arith.constant dense<0.000000e+00> : vector<8x32xf32>
    %187 = tpu.matmul %186, %185, %cst_87 {dimension_numbers = #tpu.dot_dimension_numbers<[1], [0], [0], [1], [0, 0, 1, 1], [], []>} : vector<8x16xbf16>, vector<16x32xbf16>, vector<8x32xf32> -> vector<8x32xf32>
    %c0_88 = arith.constant 0 : index
    %c0_89 = arith.constant 0 : index
    %188 = vector.load %arg42[%c0_88, %c0_89] : memref<8x16xbf16, #tpu.memory_space<vmem>>, vector<8x16xbf16>
    %cst_90 = arith.constant dense<0.000000e+00> : vector<8x32xf32>
    %189 = tpu.matmul %188, %185, %cst_90 {dimension_numbers = #tpu.dot_dimension_numbers<[1], [0], [0], [1], [0, 0, 1, 1], [], []>} : vector<8x16xbf16>, vector<16x32xbf16>, vector<8x32xf32> -> vector<8x32xf32>
    %190 = arith.cmpf oge, %187, %189 : vector<8x32xf32>
    %191 = arith.extui %190 : vector<8x32xi1> to vector<8x32xi32>
    %192 = arith.sitofp %191 : vector<8x32xi32> to vector<8x32xf32>
    %193 = arith.maximumf %187, %189 : vector<8x32xf32>
    %c0_91 = arith.constant 0 : index
    %c0_92 = arith.constant 0 : index
    %194 = vector.load %arg41[%c0_91, %c0_92] : memref<8x16xbf16, #tpu.memory_space<vmem>>, vector<8x16xbf16>
    %cst_93 = arith.constant dense<0.000000e+00> : vector<8x32xf32>
    %195 = tpu.matmul %194, %183, %cst_93 {dimension_numbers = #tpu.dot_dimension_numbers<[1], [0], [0], [1], [0, 0, 1, 1], [], []>} : vector<8x16xbf16>, vector<16x32xbf16>, vector<8x32xf32> -> vector<8x32xf32>
    %c0_94 = arith.constant 0 : index
    %c0_95 = arith.constant 0 : index
    %196 = vector.load %arg42[%c0_94, %c0_95] : memref<8x16xbf16, #tpu.memory_space<vmem>>, vector<8x16xbf16>
    %cst_96 = arith.constant dense<0.000000e+00> : vector<8x32xf32>
    %197 = tpu.matmul %196, %183, %cst_96 {dimension_numbers = #tpu.dot_dimension_numbers<[1], [0], [0], [1], [0, 0, 1, 1], [], []>} : vector<8x16xbf16>, vector<16x32xbf16>, vector<8x32xf32> -> vector<8x32xf32>
    %198 = arith.mulf %192, %195 : vector<8x32xf32>
    %cst_97 = arith.constant 1.000000e+00 : f32
    %199 = vector.broadcast %cst_97 : f32 to vector<8x32xf32>
    %200 = arith.subf %199, %192 : vector<8x32xf32>
    %201 = arith.mulf %200, %197 : vector<8x32xf32>
    %202 = arith.addf %198, %201 : vector<8x32xf32>
    %203 = arith.truncf %192 : vector<8x32xf32> to vector<8x32xbf16>
    %204 = arith.truncf %202 : vector<8x32xf32> to vector<8x32xbf16>
    %cst_98 = arith.constant 0.000000e+00 : f32
    %205 = vector.broadcast %cst_98 : f32 to vector<1x32xf32>
    %206 = vector.extract_strided_slice %193 {offsets = [0, 0], sizes = [7, 32], strides = [1, 1]} : vector<8x32xf32> to vector<7x32xf32>
    %207 = tpu.concatenate %205, %206 in 0 : vector<1x32xf32>, vector<7x32xf32> -> vector<8x32xf32>
    %208 = vector.extract_strided_slice %193 {offsets = [1, 0], sizes = [7, 32], strides = [1, 1]} : vector<8x32xf32> to vector<7x32xf32>
    %209 = tpu.concatenate %208, %205 in 0 : vector<7x32xf32>, vector<1x32xf32> -> vector<8x32xf32>
    %210 = tpu.iota {dimensions = array<i32: 0>} : vector<8x1xi32>
    %c4_i32 = arith.constant 4 : i32
    %c0_i32_99 = arith.constant 0 : i32
    %211 = arith.cmpi eq, %c4_i32, %c0_i32_99 : i32
    %c1_i32_100 = arith.constant 1 : i32
    %212 = arith.select %211, %c1_i32_100, %c4_i32 : i32
    %213 = vector.broadcast %212 : i32 to vector<8x1xi32>
    %214 = arith.remsi %210, %213 : vector<8x1xi32>
    %c0_i32_101 = arith.constant 0 : i32
    %215 = vector.broadcast %c0_i32_101 : i32 to vector<8x1xi32>
    %216 = arith.cmpi ne, %214, %215 : vector<8x1xi32>
    %c0_i32_102 = arith.constant 0 : i32
    %217 = vector.broadcast %c0_i32_102 : i32 to vector<8x1xi32>
    %218 = arith.cmpi slt, %214, %217 : vector<8x1xi32>
    %c0_i32_103 = arith.constant 0 : i32
    %219 = arith.cmpi slt, %212, %c0_i32_103 : i32
    %220 = vector.broadcast %219 : i1 to vector<8x1xi1>
    %221 = vector.broadcast %220 : vector<8x1xi1> to vector<8x1xi1>
    %222 = arith.xori %218, %221 : vector<8x1xi1>
    %223 = arith.andi %222, %216 : vector<8x1xi1>
    %224 = vector.broadcast %212 : i32 to vector<8x1xi32>
    %225 = arith.addi %214, %224 : vector<8x1xi32>
    %226 = arith.select %223, %225, %214 : vector<8x1xi1>, vector<8x1xi32>
    %c0_i32_104 = arith.constant 0 : i32
    %227 = vector.broadcast %c0_i32_104 : i32 to vector<8x1xi32>
    %228 = arith.cmpi eq, %226, %227 : vector<8x1xi32>
    %cst_105 = arith.constant 0.000000e+00 : f32
    %229 = vector.shape_cast %228 : vector<8x1xi1> to vector<8x1xi1>
    %230 = vector.broadcast %229 : vector<8x1xi1> to vector<8x32xi1>
    %231 = vector.broadcast %cst_105 : f32 to vector<8x32xf32>
    %232 = arith.select %230, %231, %207 : vector<8x32xi1>, vector<8x32xf32>
    %c4_i32_106 = arith.constant 4 : i32
    %c0_i32_107 = arith.constant 0 : i32
    %233 = arith.cmpi eq, %c4_i32_106, %c0_i32_107 : i32
    %c1_i32_108 = arith.constant 1 : i32
    %234 = arith.select %233, %c1_i32_108, %c4_i32_106 : i32
    %235 = vector.broadcast %234 : i32 to vector<8x1xi32>
    %236 = arith.remsi %210, %235 : vector<8x1xi32>
    %c0_i32_109 = arith.constant 0 : i32
    %237 = vector.broadcast %c0_i32_109 : i32 to vector<8x1xi32>
    %238 = arith.cmpi ne, %236, %237 : vector<8x1xi32>
    %c0_i32_110 = arith.constant 0 : i32
    %239 = vector.broadcast %c0_i32_110 : i32 to vector<8x1xi32>
    %240 = arith.cmpi slt, %236, %239 : vector<8x1xi32>
    %c0_i32_111 = arith.constant 0 : i32
    %241 = arith.cmpi slt, %234, %c0_i32_111 : i32
    %242 = vector.broadcast %241 : i1 to vector<8x1xi1>
    %243 = vector.broadcast %242 : vector<8x1xi1> to vector<8x1xi1>
    %244 = arith.xori %240, %243 : vector<8x1xi1>
    %245 = arith.andi %244, %238 : vector<8x1xi1>
    %246 = vector.broadcast %234 : i32 to vector<8x1xi32>
    %247 = arith.addi %236, %246 : vector<8x1xi32>
    %248 = arith.select %245, %247, %236 : vector<8x1xi1>, vector<8x1xi32>
    %c3_i32 = arith.constant 3 : i32
    %249 = vector.broadcast %c3_i32 : i32 to vector<8x1xi32>
    %250 = arith.cmpi eq, %248, %249 : vector<8x1xi32>
    %cst_112 = arith.constant 0.000000e+00 : f32
    %251 = vector.shape_cast %250 : vector<8x1xi1> to vector<8x1xi1>
    %252 = vector.broadcast %251 : vector<8x1xi1> to vector<8x32xi1>
    %253 = vector.broadcast %cst_112 : f32 to vector<8x32xf32>
    %254 = arith.select %252, %253, %209 : vector<8x32xi1>, vector<8x32xf32>
    %255 = arith.truncf %232 : vector<8x32xf32> to vector<8x32xbf16>
    %c0_113 = arith.constant 0 : index
    %c0_114 = arith.constant 0 : index
    %c0_115 = arith.constant 0 : index
    %256 = vector.load %arg8[%c0_113, %c0_114, %c0_115] : memref<3x32x64xbf16, #tpu.memory_space<vmem>>, vector<1x32x64xbf16>
    %257 = vector.shape_cast %256 : vector<1x32x64xbf16> to vector<32x64xbf16>
    %cst_116 = arith.constant dense<0.000000e+00> : vector<8x64xf32>
    %258 = tpu.matmul %255, %257, %cst_116 {dimension_numbers = #tpu.dot_dimension_numbers<[1], [0], [0], [1], [0, 0, 1, 1], [], []>} : vector<8x32xbf16>, vector<32x64xbf16>, vector<8x64xf32> -> vector<8x64xf32>
    %259 = arith.truncf %193 : vector<8x32xf32> to vector<8x32xbf16>
    %c1_117 = arith.constant 1 : index
    %c0_118 = arith.constant 0 : index
    %c0_119 = arith.constant 0 : index
    %260 = vector.load %arg8[%c1_117, %c0_118, %c0_119] : memref<3x32x64xbf16, #tpu.memory_space<vmem>>, vector<1x32x64xbf16>
    %261 = vector.shape_cast %260 : vector<1x32x64xbf16> to vector<32x64xbf16>
    %cst_120 = arith.constant dense<0.000000e+00> : vector<8x64xf32>
    %262 = tpu.matmul %259, %261, %cst_120 {dimension_numbers = #tpu.dot_dimension_numbers<[1], [0], [0], [1], [0, 0, 1, 1], [], []>} : vector<8x32xbf16>, vector<32x64xbf16>, vector<8x64xf32> -> vector<8x64xf32>
    %263 = arith.addf %258, %262 : vector<8x64xf32>
    %264 = arith.truncf %254 : vector<8x32xf32> to vector<8x32xbf16>
    %c2_121 = arith.constant 2 : index
    %c0_122 = arith.constant 0 : index
    %c0_123 = arith.constant 0 : index
    %265 = vector.load %arg8[%c2_121, %c0_122, %c0_123] : memref<3x32x64xbf16, #tpu.memory_space<vmem>>, vector<1x32x64xbf16>
    %266 = vector.shape_cast %265 : vector<1x32x64xbf16> to vector<32x64xbf16>
    %cst_124 = arith.constant dense<0.000000e+00> : vector<8x64xf32>
    %267 = tpu.matmul %264, %266, %cst_124 {dimension_numbers = #tpu.dot_dimension_numbers<[1], [0], [0], [1], [0, 0, 1, 1], [], []>} : vector<8x32xbf16>, vector<32x64xbf16>, vector<8x64xf32> -> vector<8x64xf32>
    %268 = arith.addf %263, %267 : vector<8x64xf32>
    %c0_125 = arith.constant 0 : index
    %c0_126 = arith.constant 0 : index
    %269 = vector.load %arg9[%c0_125, %c0_126] : memref<1x64xf32, #tpu.memory_space<vmem>>, vector<1x64xf32>
    %270 = vector.broadcast %269 : vector<1x64xf32> to vector<8x64xf32>
    %271 = arith.mulf %268, %270 : vector<8x64xf32>
    %c0_127 = arith.constant 0 : index
    %c0_128 = arith.constant 0 : index
    %272 = vector.load %arg10[%c0_127, %c0_128] : memref<1x64xf32, #tpu.memory_space<vmem>>, vector<1x64xf32>
    %273 = vector.broadcast %272 : vector<1x64xf32> to vector<8x64xf32>
    %274 = arith.addf %271, %273 : vector<8x64xf32>
    %cst_129 = arith.constant 0.000000e+00 : f32
    %275 = vector.broadcast %cst_129 : f32 to vector<8x64xf32>
    %276 = arith.maximumf %274, %275 : vector<8x64xf32>
    %277 = arith.truncf %276 : vector<8x64xf32> to vector<8x64xbf16>
    %c0_130 = arith.constant 0 : index
    %c0_131 = arith.constant 0 : index
    %278 = vector.load %arg45[%c0_130, %c0_131] : memref<64x32xbf16, #tpu.memory_space<vmem>>, vector<64x32xbf16>
    %cst_132 = arith.constant dense<0.000000e+00> : vector<8x32xf32>
    %279 = tpu.matmul %277, %278, %cst_132 {dimension_numbers = #tpu.dot_dimension_numbers<[1], [0], [0], [1], [0, 0, 1, 1], [], []>} : vector<8x64xbf16>, vector<64x32xbf16>, vector<8x32xf32> -> vector<8x32xf32>
    %c0_133 = arith.constant 0 : index
    %c0_134 = arith.constant 0 : index
    %280 = vector.load %arg46[%c0_133, %c0_134] : memref<64x32xbf16, #tpu.memory_space<vmem>>, vector<64x32xbf16>
    %cst_135 = arith.constant dense<0.000000e+00> : vector<8x32xf32>
    %281 = tpu.matmul %277, %280, %cst_135 {dimension_numbers = #tpu.dot_dimension_numbers<[1], [0], [0], [1], [0, 0, 1, 1], [], []>} : vector<8x64xbf16>, vector<64x32xbf16>, vector<8x32xf32> -> vector<8x32xf32>
    %282 = arith.cmpf oge, %279, %281 : vector<8x32xf32>
    %283 = arith.extui %282 : vector<8x32xi1> to vector<8x32xi32>
    %284 = arith.sitofp %283 : vector<8x32xi32> to vector<8x32xf32>
    %285 = arith.truncf %284 : vector<8x32xf32> to vector<8x32xbf16>
    %286 = arith.maximumf %279, %281 : vector<8x32xf32>
    %287 = arith.truncf %286 : vector<8x32xf32> to vector<8x32xbf16>
    %c0_136 = arith.constant 0 : index
    %c0_137 = arith.constant 0 : index
    %288 = vector.load %arg49[%c0_136, %c0_137] : memref<4x8xbf16, #tpu.memory_space<vmem>>, vector<4x8xbf16>
    %cst_138 = arith.constant dense<0.000000e+00> : vector<4x32xf32>
    %289 = tpu.matmul %288, %287, %cst_138 {dimension_numbers = #tpu.dot_dimension_numbers<[1], [0], [0], [1], [0, 0, 1, 1], [], []>} : vector<4x8xbf16>, vector<8x32xbf16>, vector<4x32xf32> -> vector<4x32xf32>
    %c0_139 = arith.constant 0 : index
    %c0_140 = arith.constant 0 : index
    %290 = vector.load %arg50[%c0_139, %c0_140] : memref<4x8xbf16, #tpu.memory_space<vmem>>, vector<4x8xbf16>
    %cst_141 = arith.constant dense<0.000000e+00> : vector<4x32xf32>
    %291 = tpu.matmul %290, %287, %cst_141 {dimension_numbers = #tpu.dot_dimension_numbers<[1], [0], [0], [1], [0, 0, 1, 1], [], []>} : vector<4x8xbf16>, vector<8x32xbf16>, vector<4x32xf32> -> vector<4x32xf32>
    %292 = arith.cmpf oge, %289, %291 : vector<4x32xf32>
    %293 = arith.extui %292 : vector<4x32xi1> to vector<4x32xi32>
    %294 = arith.sitofp %293 : vector<4x32xi32> to vector<4x32xf32>
    %295 = arith.maximumf %289, %291 : vector<4x32xf32>
    %c0_142 = arith.constant 0 : index
    %c0_143 = arith.constant 0 : index
    %296 = vector.load %arg49[%c0_142, %c0_143] : memref<4x8xbf16, #tpu.memory_space<vmem>>, vector<4x8xbf16>
    %cst_144 = arith.constant dense<0.000000e+00> : vector<4x32xf32>
    %297 = tpu.matmul %296, %285, %cst_144 {dimension_numbers = #tpu.dot_dimension_numbers<[1], [0], [0], [1], [0, 0, 1, 1], [], []>} : vector<4x8xbf16>, vector<8x32xbf16>, vector<4x32xf32> -> vector<4x32xf32>
    %c0_145 = arith.constant 0 : index
    %c0_146 = arith.constant 0 : index
    %298 = vector.load %arg50[%c0_145, %c0_146] : memref<4x8xbf16, #tpu.memory_space<vmem>>, vector<4x8xbf16>
    %cst_147 = arith.constant dense<0.000000e+00> : vector<4x32xf32>
    %299 = tpu.matmul %298, %285, %cst_147 {dimension_numbers = #tpu.dot_dimension_numbers<[1], [0], [0], [1], [0, 0, 1, 1], [], []>} : vector<4x8xbf16>, vector<8x32xbf16>, vector<4x32xf32> -> vector<4x32xf32>
    %300 = arith.mulf %294, %297 : vector<4x32xf32>
    %cst_148 = arith.constant 1.000000e+00 : f32
    %301 = vector.broadcast %cst_148 : f32 to vector<4x32xf32>
    %302 = arith.subf %301, %294 : vector<4x32xf32>
    %303 = arith.mulf %302, %299 : vector<4x32xf32>
    %304 = arith.addf %300, %303 : vector<4x32xf32>
    %305 = arith.truncf %294 : vector<4x32xf32> to vector<4x32xbf16>
    %306 = arith.truncf %304 : vector<4x32xf32> to vector<4x32xbf16>
    %307 = arith.truncf %295 : vector<4x32xf32> to vector<4x32xbf16>
    %308 = arith.mulf %305, %306 : vector<4x32xbf16>
    %309 = arith.subf %305, %308 : vector<4x32xbf16>
    %310 = arith.subf %306, %308 : vector<4x32xbf16>
    %cst_149 = arith.constant 1.000000e+00 : bf16
    %311 = vector.broadcast %cst_149 : bf16 to vector<4x32xbf16>
    %312 = arith.subf %311, %305 : vector<4x32xbf16>
    %313 = arith.subf %312, %310 : vector<4x32xbf16>
    %314 = arith.mulf %307, %308 : vector<4x32xbf16>
    %c0_150 = arith.constant 0 : index
    %c0_151 = arith.constant 0 : index
    %315 = vector.load %arg47[%c0_150, %c0_151] : memref<32x64xbf16, #tpu.memory_space<vmem>>, vector<32x64xbf16>
    %cst_152 = arith.constant dense<0.000000e+00> : vector<4x64xf32>
    %316 = tpu.matmul %314, %315, %cst_152 {dimension_numbers = #tpu.dot_dimension_numbers<[1], [0], [0], [1], [0, 0, 1, 1], [], []>} : vector<4x32xbf16>, vector<32x64xbf16>, vector<4x64xf32> -> vector<4x64xf32>
    %317 = arith.mulf %307, %309 : vector<4x32xbf16>
    %c0_153 = arith.constant 0 : index
    %c0_154 = arith.constant 0 : index
    %318 = vector.load %arg48[%c0_153, %c0_154] : memref<32x64xbf16, #tpu.memory_space<vmem>>, vector<32x64xbf16>
    %cst_155 = arith.constant dense<0.000000e+00> : vector<4x64xf32>
    %319 = tpu.matmul %317, %318, %cst_155 {dimension_numbers = #tpu.dot_dimension_numbers<[1], [0], [0], [1], [0, 0, 1, 1], [], []>} : vector<4x32xbf16>, vector<32x64xbf16>, vector<4x64xf32> -> vector<4x64xf32>
    %320 = arith.addf %316, %319 : vector<4x64xf32>
    %321 = arith.mulf %307, %310 : vector<4x32xbf16>
    %c0_156 = arith.constant 0 : index
    %c0_157 = arith.constant 0 : index
    %322 = vector.load %arg47[%c0_156, %c0_157] : memref<32x64xbf16, #tpu.memory_space<vmem>>, vector<32x64xbf16>
    %cst_158 = arith.constant dense<0.000000e+00> : vector<4x64xf32>
    %323 = tpu.matmul %321, %322, %cst_158 {dimension_numbers = #tpu.dot_dimension_numbers<[1], [0], [0], [1], [0, 0, 1, 1], [], []>} : vector<4x32xbf16>, vector<32x64xbf16>, vector<4x64xf32> -> vector<4x64xf32>
    %324 = arith.mulf %307, %313 : vector<4x32xbf16>
    %c0_159 = arith.constant 0 : index
    %c0_160 = arith.constant 0 : index
    %325 = vector.load %arg48[%c0_159, %c0_160] : memref<32x64xbf16, #tpu.memory_space<vmem>>, vector<32x64xbf16>
    %cst_161 = arith.constant dense<0.000000e+00> : vector<4x64xf32>
    %326 = tpu.matmul %324, %325, %cst_161 {dimension_numbers = #tpu.dot_dimension_numbers<[1], [0], [0], [1], [0, 0, 1, 1], [], []>} : vector<4x32xbf16>, vector<32x64xbf16>, vector<4x64xf32> -> vector<4x64xf32>
    %327 = arith.addf %323, %326 : vector<4x64xf32>
    %c0_162 = arith.constant 0 : index
    %c0_163 = arith.constant 0 : index
    %328 = vector.load %arg51[%c0_162, %c0_163] : memref<8x4xbf16, #tpu.memory_space<vmem>>, vector<8x4xbf16>
    %329 = arith.truncf %320 : vector<4x64xf32> to vector<4x64xbf16>
    %cst_164 = arith.constant dense<0.000000e+00> : vector<8x64xf32>
    %330 = tpu.matmul %328, %329, %cst_164 {dimension_numbers = #tpu.dot_dimension_numbers<[1], [0], [0], [1], [0, 0, 1, 1], [], []>} : vector<8x4xbf16>, vector<4x64xbf16>, vector<8x64xf32> -> vector<8x64xf32>
    %c0_165 = arith.constant 0 : index
    %c0_166 = arith.constant 0 : index
    %331 = vector.load %arg52[%c0_165, %c0_166] : memref<8x4xbf16, #tpu.memory_space<vmem>>, vector<8x4xbf16>
    %332 = arith.truncf %327 : vector<4x64xf32> to vector<4x64xbf16>
    %cst_167 = arith.constant dense<0.000000e+00> : vector<8x64xf32>
    %333 = tpu.matmul %331, %332, %cst_167 {dimension_numbers = #tpu.dot_dimension_numbers<[1], [0], [0], [1], [0, 0, 1, 1], [], []>} : vector<8x4xbf16>, vector<4x64xbf16>, vector<8x64xf32> -> vector<8x64xf32>
    %334 = arith.addf %330, %333 : vector<8x64xf32>
    %cst_168 = arith.constant 0.000000e+00 : f32
    %335 = vector.broadcast %cst_168 : f32 to vector<1x64xf32>
    %336 = vector.extract_strided_slice %334 {offsets = [0, 0], sizes = [7, 64], strides = [1, 1]} : vector<8x64xf32> to vector<7x64xf32>
    %337 = tpu.concatenate %335, %336 in 0 : vector<1x64xf32>, vector<7x64xf32> -> vector<8x64xf32>
    %338 = vector.extract_strided_slice %334 {offsets = [1, 0], sizes = [7, 64], strides = [1, 1]} : vector<8x64xf32> to vector<7x64xf32>
    %339 = tpu.concatenate %338, %335 in 0 : vector<7x64xf32>, vector<1x64xf32> -> vector<8x64xf32>
    %340 = tpu.iota {dimensions = array<i32: 0>} : vector<8x1xi32>
    %c4_i32_169 = arith.constant 4 : i32
    %c0_i32_170 = arith.constant 0 : i32
    %341 = arith.cmpi eq, %c4_i32_169, %c0_i32_170 : i32
    %c1_i32_171 = arith.constant 1 : i32
    %342 = arith.select %341, %c1_i32_171, %c4_i32_169 : i32
    %343 = vector.broadcast %342 : i32 to vector<8x1xi32>
    %344 = arith.remsi %340, %343 : vector<8x1xi32>
    %c0_i32_172 = arith.constant 0 : i32
    %345 = vector.broadcast %c0_i32_172 : i32 to vector<8x1xi32>
    %346 = arith.cmpi ne, %344, %345 : vector<8x1xi32>
    %c0_i32_173 = arith.constant 0 : i32
    %347 = vector.broadcast %c0_i32_173 : i32 to vector<8x1xi32>
    %348 = arith.cmpi slt, %344, %347 : vector<8x1xi32>
    %c0_i32_174 = arith.constant 0 : i32
    %349 = arith.cmpi slt, %342, %c0_i32_174 : i32
    %350 = vector.broadcast %349 : i1 to vector<8x1xi1>
    %351 = vector.broadcast %350 : vector<8x1xi1> to vector<8x1xi1>
    %352 = arith.xori %348, %351 : vector<8x1xi1>
    %353 = arith.andi %352, %346 : vector<8x1xi1>
    %354 = vector.broadcast %342 : i32 to vector<8x1xi32>
    %355 = arith.addi %344, %354 : vector<8x1xi32>
    %356 = arith.select %353, %355, %344 : vector<8x1xi1>, vector<8x1xi32>
    %c0_i32_175 = arith.constant 0 : i32
    %357 = vector.broadcast %c0_i32_175 : i32 to vector<8x1xi32>
    %358 = arith.cmpi eq, %356, %357 : vector<8x1xi32>
    %cst_176 = arith.constant 0.000000e+00 : f32
    %359 = vector.shape_cast %358 : vector<8x1xi1> to vector<8x1xi1>
    %360 = vector.broadcast %359 : vector<8x1xi1> to vector<8x64xi1>
    %361 = vector.broadcast %cst_176 : f32 to vector<8x64xf32>
    %362 = arith.select %360, %361, %337 : vector<8x64xi1>, vector<8x64xf32>
    %c4_i32_177 = arith.constant 4 : i32
    %c0_i32_178 = arith.constant 0 : i32
    %363 = arith.cmpi eq, %c4_i32_177, %c0_i32_178 : i32
    %c1_i32_179 = arith.constant 1 : i32
    %364 = arith.select %363, %c1_i32_179, %c4_i32_177 : i32
    %365 = vector.broadcast %364 : i32 to vector<8x1xi32>
    %366 = arith.remsi %340, %365 : vector<8x1xi32>
    %c0_i32_180 = arith.constant 0 : i32
    %367 = vector.broadcast %c0_i32_180 : i32 to vector<8x1xi32>
    %368 = arith.cmpi ne, %366, %367 : vector<8x1xi32>
    %c0_i32_181 = arith.constant 0 : i32
    %369 = vector.broadcast %c0_i32_181 : i32 to vector<8x1xi32>
    %370 = arith.cmpi slt, %366, %369 : vector<8x1xi32>
    %c0_i32_182 = arith.constant 0 : i32
    %371 = arith.cmpi slt, %364, %c0_i32_182 : i32
    %372 = vector.broadcast %371 : i1 to vector<8x1xi1>
    %373 = vector.broadcast %372 : vector<8x1xi1> to vector<8x1xi1>
    %374 = arith.xori %370, %373 : vector<8x1xi1>
    %375 = arith.andi %374, %368 : vector<8x1xi1>
    %376 = vector.broadcast %364 : i32 to vector<8x1xi32>
    %377 = arith.addi %366, %376 : vector<8x1xi32>
    %378 = arith.select %375, %377, %366 : vector<8x1xi1>, vector<8x1xi32>
    %c3_i32_183 = arith.constant 3 : i32
    %379 = vector.broadcast %c3_i32_183 : i32 to vector<8x1xi32>
    %380 = arith.cmpi eq, %378, %379 : vector<8x1xi32>
    %cst_184 = arith.constant 0.000000e+00 : f32
    %381 = vector.shape_cast %380 : vector<8x1xi1> to vector<8x1xi1>
    %382 = vector.broadcast %381 : vector<8x1xi1> to vector<8x64xi1>
    %383 = vector.broadcast %cst_184 : f32 to vector<8x64xf32>
    %384 = arith.select %382, %383, %339 : vector<8x64xi1>, vector<8x64xf32>
    %385 = arith.truncf %362 : vector<8x64xf32> to vector<8x64xbf16>
    %c0_185 = arith.constant 0 : index
    %c0_186 = arith.constant 0 : index
    %c0_187 = arith.constant 0 : index
    %386 = vector.load %arg11[%c0_185, %c0_186, %c0_187] : memref<3x64x32xbf16, #tpu.memory_space<vmem>>, vector<1x64x32xbf16>
    %387 = vector.shape_cast %386 : vector<1x64x32xbf16> to vector<64x32xbf16>
    %cst_188 = arith.constant dense<0.000000e+00> : vector<8x32xf32>
    %388 = tpu.matmul %385, %387, %cst_188 {dimension_numbers = #tpu.dot_dimension_numbers<[1], [0], [0], [1], [0, 0, 1, 1], [], []>} : vector<8x64xbf16>, vector<64x32xbf16>, vector<8x32xf32> -> vector<8x32xf32>
    %389 = arith.truncf %334 : vector<8x64xf32> to vector<8x64xbf16>
    %c1_189 = arith.constant 1 : index
    %c0_190 = arith.constant 0 : index
    %c0_191 = arith.constant 0 : index
    %390 = vector.load %arg11[%c1_189, %c0_190, %c0_191] : memref<3x64x32xbf16, #tpu.memory_space<vmem>>, vector<1x64x32xbf16>
    %391 = vector.shape_cast %390 : vector<1x64x32xbf16> to vector<64x32xbf16>
    %cst_192 = arith.constant dense<0.000000e+00> : vector<8x32xf32>
    %392 = tpu.matmul %389, %391, %cst_192 {dimension_numbers = #tpu.dot_dimension_numbers<[1], [0], [0], [1], [0, 0, 1, 1], [], []>} : vector<8x64xbf16>, vector<64x32xbf16>, vector<8x32xf32> -> vector<8x32xf32>
    %393 = arith.addf %388, %392 : vector<8x32xf32>
    %394 = arith.truncf %384 : vector<8x64xf32> to vector<8x64xbf16>
    %c2_193 = arith.constant 2 : index
    %c0_194 = arith.constant 0 : index
    %c0_195 = arith.constant 0 : index
    %395 = vector.load %arg11[%c2_193, %c0_194, %c0_195] : memref<3x64x32xbf16, #tpu.memory_space<vmem>>, vector<1x64x32xbf16>
    %396 = vector.shape_cast %395 : vector<1x64x32xbf16> to vector<64x32xbf16>
    %cst_196 = arith.constant dense<0.000000e+00> : vector<8x32xf32>
    %397 = tpu.matmul %394, %396, %cst_196 {dimension_numbers = #tpu.dot_dimension_numbers<[1], [0], [0], [1], [0, 0, 1, 1], [], []>} : vector<8x64xbf16>, vector<64x32xbf16>, vector<8x32xf32> -> vector<8x32xf32>
    %398 = arith.addf %393, %397 : vector<8x32xf32>
    %c0_197 = arith.constant 0 : index
    %c0_198 = arith.constant 0 : index
    %399 = vector.load %arg12[%c0_197, %c0_198] : memref<1x32xf32, #tpu.memory_space<vmem>>, vector<1x32xf32>
    %400 = vector.broadcast %399 : vector<1x32xf32> to vector<8x32xf32>
    %401 = arith.mulf %398, %400 : vector<8x32xf32>
    %c0_199 = arith.constant 0 : index
    %c0_200 = arith.constant 0 : index
    %402 = vector.load %arg13[%c0_199, %c0_200] : memref<1x32xf32, #tpu.memory_space<vmem>>, vector<1x32xf32>
    %403 = vector.broadcast %402 : vector<1x32xf32> to vector<8x32xf32>
    %404 = arith.addf %401, %403 : vector<8x32xf32>
    %cst_201 = arith.constant 0.000000e+00 : f32
    %405 = vector.broadcast %cst_201 : f32 to vector<8x32xf32>
    %406 = arith.maximumf %404, %405 : vector<8x32xf32>
    %cst_202 = arith.constant 0.000000e+00 : f32
    %407 = vector.broadcast %cst_202 : f32 to vector<1x32xf32>
    %408 = vector.extract_strided_slice %406 {offsets = [0, 0], sizes = [7, 32], strides = [1, 1]} : vector<8x32xf32> to vector<7x32xf32>
    %409 = tpu.concatenate %407, %408 in 0 : vector<1x32xf32>, vector<7x32xf32> -> vector<8x32xf32>
    %410 = vector.extract_strided_slice %406 {offsets = [1, 0], sizes = [7, 32], strides = [1, 1]} : vector<8x32xf32> to vector<7x32xf32>
    %411 = tpu.concatenate %410, %407 in 0 : vector<7x32xf32>, vector<1x32xf32> -> vector<8x32xf32>
    %412 = tpu.iota {dimensions = array<i32: 0>} : vector<8x1xi32>
    %c4_i32_203 = arith.constant 4 : i32
    %c0_i32_204 = arith.constant 0 : i32
    %413 = arith.cmpi eq, %c4_i32_203, %c0_i32_204 : i32
    %c1_i32_205 = arith.constant 1 : i32
    %414 = arith.select %413, %c1_i32_205, %c4_i32_203 : i32
    %415 = vector.broadcast %414 : i32 to vector<8x1xi32>
    %416 = arith.remsi %412, %415 : vector<8x1xi32>
    %c0_i32_206 = arith.constant 0 : i32
    %417 = vector.broadcast %c0_i32_206 : i32 to vector<8x1xi32>
    %418 = arith.cmpi ne, %416, %417 : vector<8x1xi32>
    %c0_i32_207 = arith.constant 0 : i32
    %419 = vector.broadcast %c0_i32_207 : i32 to vector<8x1xi32>
    %420 = arith.cmpi slt, %416, %419 : vector<8x1xi32>
    %c0_i32_208 = arith.constant 0 : i32
    %421 = arith.cmpi slt, %414, %c0_i32_208 : i32
    %422 = vector.broadcast %421 : i1 to vector<8x1xi1>
    %423 = vector.broadcast %422 : vector<8x1xi1> to vector<8x1xi1>
    %424 = arith.xori %420, %423 : vector<8x1xi1>
    %425 = arith.andi %424, %418 : vector<8x1xi1>
    %426 = vector.broadcast %414 : i32 to vector<8x1xi32>
    %427 = arith.addi %416, %426 : vector<8x1xi32>
    %428 = arith.select %425, %427, %416 : vector<8x1xi1>, vector<8x1xi32>
    %c0_i32_209 = arith.constant 0 : i32
    %429 = vector.broadcast %c0_i32_209 : i32 to vector<8x1xi32>
    %430 = arith.cmpi eq, %428, %429 : vector<8x1xi32>
    %cst_210 = arith.constant 0.000000e+00 : f32
    %431 = vector.shape_cast %430 : vector<8x1xi1> to vector<8x1xi1>
    %432 = vector.broadcast %431 : vector<8x1xi1> to vector<8x32xi1>
    %433 = vector.broadcast %cst_210 : f32 to vector<8x32xf32>
    %434 = arith.select %432, %433, %409 : vector<8x32xi1>, vector<8x32xf32>
    %c4_i32_211 = arith.constant 4 : i32
    %c0_i32_212 = arith.constant 0 : i32
    %435 = arith.cmpi eq, %c4_i32_211, %c0_i32_212 : i32
    %c1_i32_213 = arith.constant 1 : i32
    %436 = arith.select %435, %c1_i32_213, %c4_i32_211 : i32
    %437 = vector.broadcast %436 : i32 to vector<8x1xi32>
    %438 = arith.remsi %412, %437 : vector<8x1xi32>
    %c0_i32_214 = arith.constant 0 : i32
    %439 = vector.broadcast %c0_i32_214 : i32 to vector<8x1xi32>
    %440 = arith.cmpi ne, %438, %439 : vector<8x1xi32>
    %c0_i32_215 = arith.constant 0 : i32
    %441 = vector.broadcast %c0_i32_215 : i32 to vector<8x1xi32>
    %442 = arith.cmpi slt, %438, %441 : vector<8x1xi32>
    %c0_i32_216 = arith.constant 0 : i32
    %443 = arith.cmpi slt, %436, %c0_i32_216 : i32
    %444 = vector.broadcast %443 : i1 to vector<8x1xi1>
    %445 = vector.broadcast %444 : vector<8x1xi1> to vector<8x1xi1>
    %446 = arith.xori %442, %445 : vector<8x1xi1>
    %447 = arith.andi %446, %440 : vector<8x1xi1>
    %448 = vector.broadcast %436 : i32 to vector<8x1xi32>
    %449 = arith.addi %438, %448 : vector<8x1xi32>
    %450 = arith.select %447, %449, %438 : vector<8x1xi1>, vector<8x1xi32>
    %c3_i32_217 = arith.constant 3 : i32
    %451 = vector.broadcast %c3_i32_217 : i32 to vector<8x1xi32>
    %452 = arith.cmpi eq, %450, %451 : vector<8x1xi32>
    %cst_218 = arith.constant 0.000000e+00 : f32
    %453 = vector.shape_cast %452 : vector<8x1xi1> to vector<8x1xi1>
    %454 = vector.broadcast %453 : vector<8x1xi1> to vector<8x32xi1>
    %455 = vector.broadcast %cst_218 : f32 to vector<8x32xf32>
    %456 = arith.select %454, %455, %411 : vector<8x32xi1>, vector<8x32xf32>
    %457 = arith.truncf %434 : vector<8x32xf32> to vector<8x32xbf16>
    %c0_219 = arith.constant 0 : index
    %c0_220 = arith.constant 0 : index
    %c0_221 = arith.constant 0 : index
    %458 = vector.load %arg14[%c0_219, %c0_220, %c0_221] : memref<3x32x32xbf16, #tpu.memory_space<vmem>>, vector<1x32x32xbf16>
    %459 = vector.shape_cast %458 : vector<1x32x32xbf16> to vector<32x32xbf16>
    %cst_222 = arith.constant dense<0.000000e+00> : vector<8x32xf32>
    %460 = tpu.matmul %457, %459, %cst_222 {dimension_numbers = #tpu.dot_dimension_numbers<[1], [0], [0], [1], [0, 0, 1, 1], [], []>} : vector<8x32xbf16>, vector<32x32xbf16>, vector<8x32xf32> -> vector<8x32xf32>
    %461 = arith.truncf %406 : vector<8x32xf32> to vector<8x32xbf16>
    %c1_223 = arith.constant 1 : index
    %c0_224 = arith.constant 0 : index
    %c0_225 = arith.constant 0 : index
    %462 = vector.load %arg14[%c1_223, %c0_224, %c0_225] : memref<3x32x32xbf16, #tpu.memory_space<vmem>>, vector<1x32x32xbf16>
    %463 = vector.shape_cast %462 : vector<1x32x32xbf16> to vector<32x32xbf16>
    %cst_226 = arith.constant dense<0.000000e+00> : vector<8x32xf32>
    %464 = tpu.matmul %461, %463, %cst_226 {dimension_numbers = #tpu.dot_dimension_numbers<[1], [0], [0], [1], [0, 0, 1, 1], [], []>} : vector<8x32xbf16>, vector<32x32xbf16>, vector<8x32xf32> -> vector<8x32xf32>
    %465 = arith.addf %460, %464 : vector<8x32xf32>
    %466 = arith.truncf %456 : vector<8x32xf32> to vector<8x32xbf16>
    %c2_227 = arith.constant 2 : index
    %c0_228 = arith.constant 0 : index
    %c0_229 = arith.constant 0 : index
    %467 = vector.load %arg14[%c2_227, %c0_228, %c0_229] : memref<3x32x32xbf16, #tpu.memory_space<vmem>>, vector<1x32x32xbf16>
    %468 = vector.shape_cast %467 : vector<1x32x32xbf16> to vector<32x32xbf16>
    %cst_230 = arith.constant dense<0.000000e+00> : vector<8x32xf32>
    %469 = tpu.matmul %466, %468, %cst_230 {dimension_numbers = #tpu.dot_dimension_numbers<[1], [0], [0], [1], [0, 0, 1, 1], [], []>} : vector<8x32xbf16>, vector<32x32xbf16>, vector<8x32xf32> -> vector<8x32xf32>
    %470 = arith.addf %465, %469 : vector<8x32xf32>
    %c0_231 = arith.constant 0 : index
    %c0_232 = arith.constant 0 : index
    %471 = vector.load %arg15[%c0_231, %c0_232] : memref<1x32xf32, #tpu.memory_space<vmem>>, vector<1x32xf32>
    %472 = vector.broadcast %471 : vector<1x32xf32> to vector<8x32xf32>
    %473 = arith.mulf %470, %472 : vector<8x32xf32>
    %c0_233 = arith.constant 0 : index
    %c0_234 = arith.constant 0 : index
    %474 = vector.load %arg16[%c0_233, %c0_234] : memref<1x32xf32, #tpu.memory_space<vmem>>, vector<1x32xf32>
    %475 = vector.broadcast %474 : vector<1x32xf32> to vector<8x32xf32>
    %476 = arith.addf %473, %475 : vector<8x32xf32>
    %cst_235 = arith.constant 0.000000e+00 : f32
    %477 = vector.broadcast %cst_235 : f32 to vector<8x32xf32>
    %478 = arith.maximumf %476, %477 : vector<8x32xf32>
    %479 = arith.truncf %478 : vector<8x32xf32> to vector<8x32xbf16>
    %480 = arith.mulf %203, %204 : vector<8x32xbf16>
    %481 = arith.subf %203, %480 : vector<8x32xbf16>
    %482 = arith.subf %204, %480 : vector<8x32xbf16>
    %cst_236 = arith.constant 1.000000e+00 : bf16
    %483 = vector.broadcast %cst_236 : bf16 to vector<8x32xbf16>
    %484 = arith.subf %483, %203 : vector<8x32xbf16>
    %485 = arith.subf %484, %482 : vector<8x32xbf16>
    %486 = arith.mulf %479, %480 : vector<8x32xbf16>
    %c0_237 = arith.constant 0 : index
    %c0_238 = arith.constant 0 : index
    %487 = vector.load %arg39[%c0_237, %c0_238] : memref<32x64xbf16, #tpu.memory_space<vmem>>, vector<32x64xbf16>
    %cst_239 = arith.constant dense<0.000000e+00> : vector<8x64xf32>
    %488 = tpu.matmul %486, %487, %cst_239 {dimension_numbers = #tpu.dot_dimension_numbers<[1], [0], [0], [1], [0, 0, 1, 1], [], []>} : vector<8x32xbf16>, vector<32x64xbf16>, vector<8x64xf32> -> vector<8x64xf32>
    %489 = arith.mulf %479, %481 : vector<8x32xbf16>
    %c0_240 = arith.constant 0 : index
    %c0_241 = arith.constant 0 : index
    %490 = vector.load %arg40[%c0_240, %c0_241] : memref<32x64xbf16, #tpu.memory_space<vmem>>, vector<32x64xbf16>
    %cst_242 = arith.constant dense<0.000000e+00> : vector<8x64xf32>
    %491 = tpu.matmul %489, %490, %cst_242 {dimension_numbers = #tpu.dot_dimension_numbers<[1], [0], [0], [1], [0, 0, 1, 1], [], []>} : vector<8x32xbf16>, vector<32x64xbf16>, vector<8x64xf32> -> vector<8x64xf32>
    %492 = arith.addf %488, %491 : vector<8x64xf32>
    %493 = arith.mulf %479, %482 : vector<8x32xbf16>
    %c0_243 = arith.constant 0 : index
    %c0_244 = arith.constant 0 : index
    %494 = vector.load %arg39[%c0_243, %c0_244] : memref<32x64xbf16, #tpu.memory_space<vmem>>, vector<32x64xbf16>
    %cst_245 = arith.constant dense<0.000000e+00> : vector<8x64xf32>
    %495 = tpu.matmul %493, %494, %cst_245 {dimension_numbers = #tpu.dot_dimension_numbers<[1], [0], [0], [1], [0, 0, 1, 1], [], []>} : vector<8x32xbf16>, vector<32x64xbf16>, vector<8x64xf32> -> vector<8x64xf32>
    %496 = arith.mulf %479, %485 : vector<8x32xbf16>
    %c0_246 = arith.constant 0 : index
    %c0_247 = arith.constant 0 : index
    %497 = vector.load %arg40[%c0_246, %c0_247] : memref<32x64xbf16, #tpu.memory_space<vmem>>, vector<32x64xbf16>
    %cst_248 = arith.constant dense<0.000000e+00> : vector<8x64xf32>
    %498 = tpu.matmul %496, %497, %cst_248 {dimension_numbers = #tpu.dot_dimension_numbers<[1], [0], [0], [1], [0, 0, 1, 1], [], []>} : vector<8x32xbf16>, vector<32x64xbf16>, vector<8x64xf32> -> vector<8x64xf32>
    %499 = arith.addf %495, %498 : vector<8x64xf32>
    %c0_249 = arith.constant 0 : index
    %c0_250 = arith.constant 0 : index
    %500 = vector.load %arg43[%c0_249, %c0_250] : memref<16x8xbf16, #tpu.memory_space<vmem>>, vector<16x8xbf16>
    %501 = arith.truncf %492 : vector<8x64xf32> to vector<8x64xbf16>
    %cst_251 = arith.constant dense<0.000000e+00> : vector<16x64xf32>
    %502 = tpu.matmul %500, %501, %cst_251 {dimension_numbers = #tpu.dot_dimension_numbers<[1], [0], [0], [1], [0, 0, 1, 1], [], []>} : vector<16x8xbf16>, vector<8x64xbf16>, vector<16x64xf32> -> vector<16x64xf32>
    %c0_252 = arith.constant 0 : index
    %c0_253 = arith.constant 0 : index
    %503 = vector.load %arg44[%c0_252, %c0_253] : memref<16x8xbf16, #tpu.memory_space<vmem>>, vector<16x8xbf16>
    %504 = arith.truncf %499 : vector<8x64xf32> to vector<8x64xbf16>
    %cst_254 = arith.constant dense<0.000000e+00> : vector<16x64xf32>
    %505 = tpu.matmul %503, %504, %cst_254 {dimension_numbers = #tpu.dot_dimension_numbers<[1], [0], [0], [1], [0, 0, 1, 1], [], []>} : vector<16x8xbf16>, vector<8x64xbf16>, vector<16x64xf32> -> vector<16x64xf32>
    %506 = arith.addf %502, %505 : vector<16x64xf32>
    %cst_255 = arith.constant 0.000000e+00 : f32
    %507 = vector.broadcast %cst_255 : f32 to vector<1x64xf32>
    %508 = vector.extract_strided_slice %506 {offsets = [0, 0], sizes = [15, 64], strides = [1, 1]} : vector<16x64xf32> to vector<15x64xf32>
    %509 = tpu.concatenate %507, %508 in 0 : vector<1x64xf32>, vector<15x64xf32> -> vector<16x64xf32>
    %510 = vector.extract_strided_slice %506 {offsets = [1, 0], sizes = [15, 64], strides = [1, 1]} : vector<16x64xf32> to vector<15x64xf32>
    %511 = tpu.concatenate %510, %507 in 0 : vector<15x64xf32>, vector<1x64xf32> -> vector<16x64xf32>
    %512 = tpu.iota {dimensions = array<i32: 0>} : vector<16x1xi32>
    %c8_i32_256 = arith.constant 8 : i32
    %c0_i32_257 = arith.constant 0 : i32
    %513 = arith.cmpi eq, %c8_i32_256, %c0_i32_257 : i32
    %c1_i32_258 = arith.constant 1 : i32
    %514 = arith.select %513, %c1_i32_258, %c8_i32_256 : i32
    %515 = vector.broadcast %514 : i32 to vector<16x1xi32>
    %516 = arith.remsi %512, %515 : vector<16x1xi32>
    %c0_i32_259 = arith.constant 0 : i32
    %517 = vector.broadcast %c0_i32_259 : i32 to vector<16x1xi32>
    %518 = arith.cmpi ne, %516, %517 : vector<16x1xi32>
    %c0_i32_260 = arith.constant 0 : i32
    %519 = vector.broadcast %c0_i32_260 : i32 to vector<16x1xi32>
    %520 = arith.cmpi slt, %516, %519 : vector<16x1xi32>
    %c0_i32_261 = arith.constant 0 : i32
    %521 = arith.cmpi slt, %514, %c0_i32_261 : i32
    %522 = vector.broadcast %521 : i1 to vector<16x1xi1>
    %523 = vector.broadcast %522 : vector<16x1xi1> to vector<16x1xi1>
    %524 = arith.xori %520, %523 : vector<16x1xi1>
    %525 = arith.andi %524, %518 : vector<16x1xi1>
    %526 = vector.broadcast %514 : i32 to vector<16x1xi32>
    %527 = arith.addi %516, %526 : vector<16x1xi32>
    %528 = arith.select %525, %527, %516 : vector<16x1xi1>, vector<16x1xi32>
    %c0_i32_262 = arith.constant 0 : i32
    %529 = vector.broadcast %c0_i32_262 : i32 to vector<16x1xi32>
    %530 = arith.cmpi eq, %528, %529 : vector<16x1xi32>
    %cst_263 = arith.constant 0.000000e+00 : f32
    %531 = vector.shape_cast %530 : vector<16x1xi1> to vector<16x1xi1>
    %532 = vector.broadcast %531 : vector<16x1xi1> to vector<16x64xi1>
    %533 = vector.broadcast %cst_263 : f32 to vector<16x64xf32>
    %534 = arith.select %532, %533, %509 : vector<16x64xi1>, vector<16x64xf32>
    %c8_i32_264 = arith.constant 8 : i32
    %c0_i32_265 = arith.constant 0 : i32
    %535 = arith.cmpi eq, %c8_i32_264, %c0_i32_265 : i32
    %c1_i32_266 = arith.constant 1 : i32
    %536 = arith.select %535, %c1_i32_266, %c8_i32_264 : i32
    %537 = vector.broadcast %536 : i32 to vector<16x1xi32>
    %538 = arith.remsi %512, %537 : vector<16x1xi32>
    %c0_i32_267 = arith.constant 0 : i32
    %539 = vector.broadcast %c0_i32_267 : i32 to vector<16x1xi32>
    %540 = arith.cmpi ne, %538, %539 : vector<16x1xi32>
    %c0_i32_268 = arith.constant 0 : i32
    %541 = vector.broadcast %c0_i32_268 : i32 to vector<16x1xi32>
    %542 = arith.cmpi slt, %538, %541 : vector<16x1xi32>
    %c0_i32_269 = arith.constant 0 : i32
    %543 = arith.cmpi slt, %536, %c0_i32_269 : i32
    %544 = vector.broadcast %543 : i1 to vector<16x1xi1>
    %545 = vector.broadcast %544 : vector<16x1xi1> to vector<16x1xi1>
    %546 = arith.xori %542, %545 : vector<16x1xi1>
    %547 = arith.andi %546, %540 : vector<16x1xi1>
    %548 = vector.broadcast %536 : i32 to vector<16x1xi32>
    %549 = arith.addi %538, %548 : vector<16x1xi32>
    %550 = arith.select %547, %549, %538 : vector<16x1xi1>, vector<16x1xi32>
    %c7_i32_270 = arith.constant 7 : i32
    %551 = vector.broadcast %c7_i32_270 : i32 to vector<16x1xi32>
    %552 = arith.cmpi eq, %550, %551 : vector<16x1xi32>
    %cst_271 = arith.constant 0.000000e+00 : f32
    %553 = vector.shape_cast %552 : vector<16x1xi1> to vector<16x1xi1>
    %554 = vector.broadcast %553 : vector<16x1xi1> to vector<16x64xi1>
    %555 = vector.broadcast %cst_271 : f32 to vector<16x64xf32>
    %556 = arith.select %554, %555, %511 : vector<16x64xi1>, vector<16x64xf32>
    %557 = arith.truncf %534 : vector<16x64xf32> to vector<16x64xbf16>
    %c0_272 = arith.constant 0 : index
    %c0_273 = arith.constant 0 : index
    %c0_274 = arith.constant 0 : index
    %558 = vector.load %arg17[%c0_272, %c0_273, %c0_274] : memref<3x64x32xbf16, #tpu.memory_space<vmem>>, vector<1x64x32xbf16>
    %559 = vector.shape_cast %558 : vector<1x64x32xbf16> to vector<64x32xbf16>
    %cst_275 = arith.constant dense<0.000000e+00> : vector<16x32xf32>
    %560 = tpu.matmul %557, %559, %cst_275 {dimension_numbers = #tpu.dot_dimension_numbers<[1], [0], [0], [1], [0, 0, 1, 1], [], []>} : vector<16x64xbf16>, vector<64x32xbf16>, vector<16x32xf32> -> vector<16x32xf32>
    %561 = arith.truncf %506 : vector<16x64xf32> to vector<16x64xbf16>
    %c1_276 = arith.constant 1 : index
    %c0_277 = arith.constant 0 : index
    %c0_278 = arith.constant 0 : index
    %562 = vector.load %arg17[%c1_276, %c0_277, %c0_278] : memref<3x64x32xbf16, #tpu.memory_space<vmem>>, vector<1x64x32xbf16>
    %563 = vector.shape_cast %562 : vector<1x64x32xbf16> to vector<64x32xbf16>
    %cst_279 = arith.constant dense<0.000000e+00> : vector<16x32xf32>
    %564 = tpu.matmul %561, %563, %cst_279 {dimension_numbers = #tpu.dot_dimension_numbers<[1], [0], [0], [1], [0, 0, 1, 1], [], []>} : vector<16x64xbf16>, vector<64x32xbf16>, vector<16x32xf32> -> vector<16x32xf32>
    %565 = arith.addf %560, %564 : vector<16x32xf32>
    %566 = arith.truncf %556 : vector<16x64xf32> to vector<16x64xbf16>
    %c2_280 = arith.constant 2 : index
    %c0_281 = arith.constant 0 : index
    %c0_282 = arith.constant 0 : index
    %567 = vector.load %arg17[%c2_280, %c0_281, %c0_282] : memref<3x64x32xbf16, #tpu.memory_space<vmem>>, vector<1x64x32xbf16>
    %568 = vector.shape_cast %567 : vector<1x64x32xbf16> to vector<64x32xbf16>
    %cst_283 = arith.constant dense<0.000000e+00> : vector<16x32xf32>
    %569 = tpu.matmul %566, %568, %cst_283 {dimension_numbers = #tpu.dot_dimension_numbers<[1], [0], [0], [1], [0, 0, 1, 1], [], []>} : vector<16x64xbf16>, vector<64x32xbf16>, vector<16x32xf32> -> vector<16x32xf32>
    %570 = arith.addf %565, %569 : vector<16x32xf32>
    %c0_284 = arith.constant 0 : index
    %c0_285 = arith.constant 0 : index
    %571 = vector.load %arg18[%c0_284, %c0_285] : memref<1x32xf32, #tpu.memory_space<vmem>>, vector<1x32xf32>
    %572 = vector.broadcast %571 : vector<1x32xf32> to vector<16x32xf32>
    %573 = arith.mulf %570, %572 : vector<16x32xf32>
    %c0_286 = arith.constant 0 : index
    %c0_287 = arith.constant 0 : index
    %574 = vector.load %arg19[%c0_286, %c0_287] : memref<1x32xf32, #tpu.memory_space<vmem>>, vector<1x32xf32>
    %575 = vector.broadcast %574 : vector<1x32xf32> to vector<16x32xf32>
    %576 = arith.addf %573, %575 : vector<16x32xf32>
    %cst_288 = arith.constant 0.000000e+00 : f32
    %577 = vector.broadcast %cst_288 : f32 to vector<16x32xf32>
    %578 = arith.maximumf %576, %577 : vector<16x32xf32>
    %cst_289 = arith.constant 0.000000e+00 : f32
    %579 = vector.broadcast %cst_289 : f32 to vector<1x32xf32>
    %580 = vector.extract_strided_slice %578 {offsets = [0, 0], sizes = [15, 32], strides = [1, 1]} : vector<16x32xf32> to vector<15x32xf32>
    %581 = tpu.concatenate %579, %580 in 0 : vector<1x32xf32>, vector<15x32xf32> -> vector<16x32xf32>
    %582 = vector.extract_strided_slice %578 {offsets = [1, 0], sizes = [15, 32], strides = [1, 1]} : vector<16x32xf32> to vector<15x32xf32>
    %583 = tpu.concatenate %582, %579 in 0 : vector<15x32xf32>, vector<1x32xf32> -> vector<16x32xf32>
    %584 = tpu.iota {dimensions = array<i32: 0>} : vector<16x1xi32>
    %c8_i32_290 = arith.constant 8 : i32
    %c0_i32_291 = arith.constant 0 : i32
    %585 = arith.cmpi eq, %c8_i32_290, %c0_i32_291 : i32
    %c1_i32_292 = arith.constant 1 : i32
    %586 = arith.select %585, %c1_i32_292, %c8_i32_290 : i32
    %587 = vector.broadcast %586 : i32 to vector<16x1xi32>
    %588 = arith.remsi %584, %587 : vector<16x1xi32>
    %c0_i32_293 = arith.constant 0 : i32
    %589 = vector.broadcast %c0_i32_293 : i32 to vector<16x1xi32>
    %590 = arith.cmpi ne, %588, %589 : vector<16x1xi32>
    %c0_i32_294 = arith.constant 0 : i32
    %591 = vector.broadcast %c0_i32_294 : i32 to vector<16x1xi32>
    %592 = arith.cmpi slt, %588, %591 : vector<16x1xi32>
    %c0_i32_295 = arith.constant 0 : i32
    %593 = arith.cmpi slt, %586, %c0_i32_295 : i32
    %594 = vector.broadcast %593 : i1 to vector<16x1xi1>
    %595 = vector.broadcast %594 : vector<16x1xi1> to vector<16x1xi1>
    %596 = arith.xori %592, %595 : vector<16x1xi1>
    %597 = arith.andi %596, %590 : vector<16x1xi1>
    %598 = vector.broadcast %586 : i32 to vector<16x1xi32>
    %599 = arith.addi %588, %598 : vector<16x1xi32>
    %600 = arith.select %597, %599, %588 : vector<16x1xi1>, vector<16x1xi32>
    %c0_i32_296 = arith.constant 0 : i32
    %601 = vector.broadcast %c0_i32_296 : i32 to vector<16x1xi32>
    %602 = arith.cmpi eq, %600, %601 : vector<16x1xi32>
    %cst_297 = arith.constant 0.000000e+00 : f32
    %603 = vector.shape_cast %602 : vector<16x1xi1> to vector<16x1xi1>
    %604 = vector.broadcast %603 : vector<16x1xi1> to vector<16x32xi1>
    %605 = vector.broadcast %cst_297 : f32 to vector<16x32xf32>
    %606 = arith.select %604, %605, %581 : vector<16x32xi1>, vector<16x32xf32>
    %c8_i32_298 = arith.constant 8 : i32
    %c0_i32_299 = arith.constant 0 : i32
    %607 = arith.cmpi eq, %c8_i32_298, %c0_i32_299 : i32
    %c1_i32_300 = arith.constant 1 : i32
    %608 = arith.select %607, %c1_i32_300, %c8_i32_298 : i32
    %609 = vector.broadcast %608 : i32 to vector<16x1xi32>
    %610 = arith.remsi %584, %609 : vector<16x1xi32>
    %c0_i32_301 = arith.constant 0 : i32
    %611 = vector.broadcast %c0_i32_301 : i32 to vector<16x1xi32>
    %612 = arith.cmpi ne, %610, %611 : vector<16x1xi32>
    %c0_i32_302 = arith.constant 0 : i32
    %613 = vector.broadcast %c0_i32_302 : i32 to vector<16x1xi32>
    %614 = arith.cmpi slt, %610, %613 : vector<16x1xi32>
    %c0_i32_303 = arith.constant 0 : i32
    %615 = arith.cmpi slt, %608, %c0_i32_303 : i32
    %616 = vector.broadcast %615 : i1 to vector<16x1xi1>
    %617 = vector.broadcast %616 : vector<16x1xi1> to vector<16x1xi1>
    %618 = arith.xori %614, %617 : vector<16x1xi1>
    %619 = arith.andi %618, %612 : vector<16x1xi1>
    %620 = vector.broadcast %608 : i32 to vector<16x1xi32>
    %621 = arith.addi %610, %620 : vector<16x1xi32>
    %622 = arith.select %619, %621, %610 : vector<16x1xi1>, vector<16x1xi32>
    %c7_i32_304 = arith.constant 7 : i32
    %623 = vector.broadcast %c7_i32_304 : i32 to vector<16x1xi32>
    %624 = arith.cmpi eq, %622, %623 : vector<16x1xi32>
    %cst_305 = arith.constant 0.000000e+00 : f32
    %625 = vector.shape_cast %624 : vector<16x1xi1> to vector<16x1xi1>
    %626 = vector.broadcast %625 : vector<16x1xi1> to vector<16x32xi1>
    %627 = vector.broadcast %cst_305 : f32 to vector<16x32xf32>
    %628 = arith.select %626, %627, %583 : vector<16x32xi1>, vector<16x32xf32>
    %629 = arith.truncf %606 : vector<16x32xf32> to vector<16x32xbf16>
    %c0_306 = arith.constant 0 : index
    %c0_307 = arith.constant 0 : index
    %c0_308 = arith.constant 0 : index
    %630 = vector.load %arg20[%c0_306, %c0_307, %c0_308] : memref<3x32x32xbf16, #tpu.memory_space<vmem>>, vector<1x32x32xbf16>
    %631 = vector.shape_cast %630 : vector<1x32x32xbf16> to vector<32x32xbf16>
    %cst_309 = arith.constant dense<0.000000e+00> : vector<16x32xf32>
    %632 = tpu.matmul %629, %631, %cst_309 {dimension_numbers = #tpu.dot_dimension_numbers<[1], [0], [0], [1], [0, 0, 1, 1], [], []>} : vector<16x32xbf16>, vector<32x32xbf16>, vector<16x32xf32> -> vector<16x32xf32>
    %633 = arith.truncf %578 : vector<16x32xf32> to vector<16x32xbf16>
    %c1_310 = arith.constant 1 : index
    %c0_311 = arith.constant 0 : index
    %c0_312 = arith.constant 0 : index
    %634 = vector.load %arg20[%c1_310, %c0_311, %c0_312] : memref<3x32x32xbf16, #tpu.memory_space<vmem>>, vector<1x32x32xbf16>
    %635 = vector.shape_cast %634 : vector<1x32x32xbf16> to vector<32x32xbf16>
    %cst_313 = arith.constant dense<0.000000e+00> : vector<16x32xf32>
    %636 = tpu.matmul %633, %635, %cst_313 {dimension_numbers = #tpu.dot_dimension_numbers<[1], [0], [0], [1], [0, 0, 1, 1], [], []>} : vector<16x32xbf16>, vector<32x32xbf16>, vector<16x32xf32> -> vector<16x32xf32>
    %637 = arith.addf %632, %636 : vector<16x32xf32>
    %638 = arith.truncf %628 : vector<16x32xf32> to vector<16x32xbf16>
    %c2_314 = arith.constant 2 : index
    %c0_315 = arith.constant 0 : index
    %c0_316 = arith.constant 0 : index
    %639 = vector.load %arg20[%c2_314, %c0_315, %c0_316] : memref<3x32x32xbf16, #tpu.memory_space<vmem>>, vector<1x32x32xbf16>
    %640 = vector.shape_cast %639 : vector<1x32x32xbf16> to vector<32x32xbf16>
    %cst_317 = arith.constant dense<0.000000e+00> : vector<16x32xf32>
    %641 = tpu.matmul %638, %640, %cst_317 {dimension_numbers = #tpu.dot_dimension_numbers<[1], [0], [0], [1], [0, 0, 1, 1], [], []>} : vector<16x32xbf16>, vector<32x32xbf16>, vector<16x32xf32> -> vector<16x32xf32>
    %642 = arith.addf %637, %641 : vector<16x32xf32>
    %c0_318 = arith.constant 0 : index
    %c0_319 = arith.constant 0 : index
    %643 = vector.load %arg21[%c0_318, %c0_319] : memref<1x32xf32, #tpu.memory_space<vmem>>, vector<1x32xf32>
    %644 = vector.broadcast %643 : vector<1x32xf32> to vector<16x32xf32>
    %645 = arith.mulf %642, %644 : vector<16x32xf32>
    %c0_320 = arith.constant 0 : index
    %c0_321 = arith.constant 0 : index
    %646 = vector.load %arg22[%c0_320, %c0_321] : memref<1x32xf32, #tpu.memory_space<vmem>>, vector<1x32xf32>
    %647 = vector.broadcast %646 : vector<1x32xf32> to vector<16x32xf32>
    %648 = arith.addf %645, %647 : vector<16x32xf32>
    %cst_322 = arith.constant 0.000000e+00 : f32
    %649 = vector.broadcast %cst_322 : f32 to vector<16x32xf32>
    %650 = arith.maximumf %648, %649 : vector<16x32xf32>
    %651 = arith.truncf %650 : vector<16x32xf32> to vector<16x32xbf16>
    %652 = arith.mulf %101, %102 : vector<16x32xbf16>
    %653 = arith.subf %101, %652 : vector<16x32xbf16>
    %654 = arith.subf %102, %652 : vector<16x32xbf16>
    %cst_323 = arith.constant 1.000000e+00 : bf16
    %655 = vector.broadcast %cst_323 : bf16 to vector<16x32xbf16>
    %656 = arith.subf %655, %101 : vector<16x32xbf16>
    %657 = arith.subf %656, %654 : vector<16x32xbf16>
    %658 = arith.mulf %651, %652 : vector<16x32xbf16>
    %c0_324 = arith.constant 0 : index
    %c0_325 = arith.constant 0 : index
    %659 = vector.load %arg31[%c0_324, %c0_325] : memref<32x64xbf16, #tpu.memory_space<vmem>>, vector<32x64xbf16>
    %cst_326 = arith.constant dense<0.000000e+00> : vector<16x64xf32>
    %660 = tpu.matmul %658, %659, %cst_326 {dimension_numbers = #tpu.dot_dimension_numbers<[1], [0], [0], [1], [0, 0, 1, 1], [], []>} : vector<16x32xbf16>, vector<32x64xbf16>, vector<16x64xf32> -> vector<16x64xf32>
    %661 = arith.mulf %651, %653 : vector<16x32xbf16>
    %c0_327 = arith.constant 0 : index
    %c0_328 = arith.constant 0 : index
    %662 = vector.load %arg32[%c0_327, %c0_328] : memref<32x64xbf16, #tpu.memory_space<vmem>>, vector<32x64xbf16>
    %cst_329 = arith.constant dense<0.000000e+00> : vector<16x64xf32>
    %663 = tpu.matmul %661, %662, %cst_329 {dimension_numbers = #tpu.dot_dimension_numbers<[1], [0], [0], [1], [0, 0, 1, 1], [], []>} : vector<16x32xbf16>, vector<32x64xbf16>, vector<16x64xf32> -> vector<16x64xf32>
    %664 = arith.addf %660, %663 : vector<16x64xf32>
    %665 = arith.mulf %651, %654 : vector<16x32xbf16>
    %c0_330 = arith.constant 0 : index
    %c0_331 = arith.constant 0 : index
    %666 = vector.load %arg31[%c0_330, %c0_331] : memref<32x64xbf16, #tpu.memory_space<vmem>>, vector<32x64xbf16>
    %cst_332 = arith.constant dense<0.000000e+00> : vector<16x64xf32>
    %667 = tpu.matmul %665, %666, %cst_332 {dimension_numbers = #tpu.dot_dimension_numbers<[1], [0], [0], [1], [0, 0, 1, 1], [], []>} : vector<16x32xbf16>, vector<32x64xbf16>, vector<16x64xf32> -> vector<16x64xf32>
    %668 = arith.mulf %651, %657 : vector<16x32xbf16>
    %c0_333 = arith.constant 0 : index
    %c0_334 = arith.constant 0 : index
    %669 = vector.load %arg32[%c0_333, %c0_334] : memref<32x64xbf16, #tpu.memory_space<vmem>>, vector<32x64xbf16>
    %cst_335 = arith.constant dense<0.000000e+00> : vector<16x64xf32>
    %670 = tpu.matmul %668, %669, %cst_335 {dimension_numbers = #tpu.dot_dimension_numbers<[1], [0], [0], [1], [0, 0, 1, 1], [], []>} : vector<16x32xbf16>, vector<32x64xbf16>, vector<16x64xf32> -> vector<16x64xf32>
    %671 = arith.addf %667, %670 : vector<16x64xf32>
    %c0_336 = arith.constant 0 : index
    %c0_337 = arith.constant 0 : index
    %672 = vector.load %arg35[%c0_336, %c0_337] : memref<32x16xbf16, #tpu.memory_space<vmem>>, vector<32x16xbf16>
    %673 = arith.truncf %664 : vector<16x64xf32> to vector<16x64xbf16>
    %cst_338 = arith.constant dense<0.000000e+00> : vector<32x64xf32>
    %674 = tpu.matmul %672, %673, %cst_338 {dimension_numbers = #tpu.dot_dimension_numbers<[1], [0], [0], [1], [0, 0, 1, 1], [], []>} : vector<32x16xbf16>, vector<16x64xbf16>, vector<32x64xf32> -> vector<32x64xf32>
    %c0_339 = arith.constant 0 : index
    %c0_340 = arith.constant 0 : index
    %675 = vector.load %arg36[%c0_339, %c0_340] : memref<32x16xbf16, #tpu.memory_space<vmem>>, vector<32x16xbf16>
    %676 = arith.truncf %671 : vector<16x64xf32> to vector<16x64xbf16>
    %cst_341 = arith.constant dense<0.000000e+00> : vector<32x64xf32>
    %677 = tpu.matmul %675, %676, %cst_341 {dimension_numbers = #tpu.dot_dimension_numbers<[1], [0], [0], [1], [0, 0, 1, 1], [], []>} : vector<32x16xbf16>, vector<16x64xbf16>, vector<32x64xf32> -> vector<32x64xf32>
    %678 = arith.addf %674, %677 : vector<32x64xf32>
    %cst_342 = arith.constant 0.000000e+00 : f32
    %679 = vector.broadcast %cst_342 : f32 to vector<1x64xf32>
    %680 = vector.extract_strided_slice %678 {offsets = [0, 0], sizes = [31, 64], strides = [1, 1]} : vector<32x64xf32> to vector<31x64xf32>
    %681 = tpu.concatenate %679, %680 in 0 : vector<1x64xf32>, vector<31x64xf32> -> vector<32x64xf32>
    %682 = vector.extract_strided_slice %678 {offsets = [1, 0], sizes = [31, 64], strides = [1, 1]} : vector<32x64xf32> to vector<31x64xf32>
    %683 = tpu.concatenate %682, %679 in 0 : vector<31x64xf32>, vector<1x64xf32> -> vector<32x64xf32>
    %684 = tpu.iota {dimensions = array<i32: 0>} : vector<32x1xi32>
    %c16_i32_343 = arith.constant 16 : i32
    %c0_i32_344 = arith.constant 0 : i32
    %685 = arith.cmpi eq, %c16_i32_343, %c0_i32_344 : i32
    %c1_i32_345 = arith.constant 1 : i32
    %686 = arith.select %685, %c1_i32_345, %c16_i32_343 : i32
    %687 = vector.broadcast %686 : i32 to vector<32x1xi32>
    %688 = arith.remsi %684, %687 : vector<32x1xi32>
    %c0_i32_346 = arith.constant 0 : i32
    %689 = vector.broadcast %c0_i32_346 : i32 to vector<32x1xi32>
    %690 = arith.cmpi ne, %688, %689 : vector<32x1xi32>
    %c0_i32_347 = arith.constant 0 : i32
    %691 = vector.broadcast %c0_i32_347 : i32 to vector<32x1xi32>
    %692 = arith.cmpi slt, %688, %691 : vector<32x1xi32>
    %c0_i32_348 = arith.constant 0 : i32
    %693 = arith.cmpi slt, %686, %c0_i32_348 : i32
    %694 = vector.broadcast %693 : i1 to vector<32x1xi1>
    %695 = vector.broadcast %694 : vector<32x1xi1> to vector<32x1xi1>
    %696 = arith.xori %692, %695 : vector<32x1xi1>
    %697 = arith.andi %696, %690 : vector<32x1xi1>
    %698 = vector.broadcast %686 : i32 to vector<32x1xi32>
    %699 = arith.addi %688, %698 : vector<32x1xi32>
    %700 = arith.select %697, %699, %688 : vector<32x1xi1>, vector<32x1xi32>
    %c0_i32_349 = arith.constant 0 : i32
    %701 = vector.broadcast %c0_i32_349 : i32 to vector<32x1xi32>
    %702 = arith.cmpi eq, %700, %701 : vector<32x1xi32>
    %cst_350 = arith.constant 0.000000e+00 : f32
    %703 = vector.shape_cast %702 : vector<32x1xi1> to vector<32x1xi1>
    %704 = vector.broadcast %703 : vector<32x1xi1> to vector<32x64xi1>
    %705 = vector.broadcast %cst_350 : f32 to vector<32x64xf32>
    %706 = arith.select %704, %705, %681 : vector<32x64xi1>, vector<32x64xf32>
    %c16_i32_351 = arith.constant 16 : i32
    %c0_i32_352 = arith.constant 0 : i32
    %707 = arith.cmpi eq, %c16_i32_351, %c0_i32_352 : i32
    %c1_i32_353 = arith.constant 1 : i32
    %708 = arith.select %707, %c1_i32_353, %c16_i32_351 : i32
    %709 = vector.broadcast %708 : i32 to vector<32x1xi32>
    %710 = arith.remsi %684, %709 : vector<32x1xi32>
    %c0_i32_354 = arith.constant 0 : i32
    %711 = vector.broadcast %c0_i32_354 : i32 to vector<32x1xi32>
    %712 = arith.cmpi ne, %710, %711 : vector<32x1xi32>
    %c0_i32_355 = arith.constant 0 : i32
    %713 = vector.broadcast %c0_i32_355 : i32 to vector<32x1xi32>
    %714 = arith.cmpi slt, %710, %713 : vector<32x1xi32>
    %c0_i32_356 = arith.constant 0 : i32
    %715 = arith.cmpi slt, %708, %c0_i32_356 : i32
    %716 = vector.broadcast %715 : i1 to vector<32x1xi1>
    %717 = vector.broadcast %716 : vector<32x1xi1> to vector<32x1xi1>
    %718 = arith.xori %714, %717 : vector<32x1xi1>
    %719 = arith.andi %718, %712 : vector<32x1xi1>
    %720 = vector.broadcast %708 : i32 to vector<32x1xi32>
    %721 = arith.addi %710, %720 : vector<32x1xi32>
    %722 = arith.select %719, %721, %710 : vector<32x1xi1>, vector<32x1xi32>
    %c15_i32_357 = arith.constant 15 : i32
    %723 = vector.broadcast %c15_i32_357 : i32 to vector<32x1xi32>
    %724 = arith.cmpi eq, %722, %723 : vector<32x1xi32>
    %cst_358 = arith.constant 0.000000e+00 : f32
    %725 = vector.shape_cast %724 : vector<32x1xi1> to vector<32x1xi1>
    %726 = vector.broadcast %725 : vector<32x1xi1> to vector<32x64xi1>
    %727 = vector.broadcast %cst_358 : f32 to vector<32x64xf32>
    %728 = arith.select %726, %727, %683 : vector<32x64xi1>, vector<32x64xf32>
    %729 = arith.truncf %706 : vector<32x64xf32> to vector<32x64xbf16>
    %c0_359 = arith.constant 0 : index
    %c0_360 = arith.constant 0 : index
    %c0_361 = arith.constant 0 : index
    %730 = vector.load %arg23[%c0_359, %c0_360, %c0_361] : memref<3x64x512xbf16, #tpu.memory_space<vmem>>, vector<1x64x512xbf16>
    %731 = vector.shape_cast %730 : vector<1x64x512xbf16> to vector<64x512xbf16>
    %cst_362 = arith.constant dense<0.000000e+00> : vector<32x512xf32>
    %732 = tpu.matmul %729, %731, %cst_362 {dimension_numbers = #tpu.dot_dimension_numbers<[1], [0], [0], [1], [0, 0, 1, 1], [], []>} : vector<32x64xbf16>, vector<64x512xbf16>, vector<32x512xf32> -> vector<32x512xf32>
    %733 = arith.truncf %678 : vector<32x64xf32> to vector<32x64xbf16>
    %c1_363 = arith.constant 1 : index
    %c0_364 = arith.constant 0 : index
    %c0_365 = arith.constant 0 : index
    %734 = vector.load %arg23[%c1_363, %c0_364, %c0_365] : memref<3x64x512xbf16, #tpu.memory_space<vmem>>, vector<1x64x512xbf16>
    %735 = vector.shape_cast %734 : vector<1x64x512xbf16> to vector<64x512xbf16>
    %cst_366 = arith.constant dense<0.000000e+00> : vector<32x512xf32>
    %736 = tpu.matmul %733, %735, %cst_366 {dimension_numbers = #tpu.dot_dimension_numbers<[1], [0], [0], [1], [0, 0, 1, 1], [], []>} : vector<32x64xbf16>, vector<64x512xbf16>, vector<32x512xf32> -> vector<32x512xf32>
    %737 = arith.addf %732, %736 : vector<32x512xf32>
    %738 = arith.truncf %728 : vector<32x64xf32> to vector<32x64xbf16>
    %c2_367 = arith.constant 2 : index
    %c0_368 = arith.constant 0 : index
    %c0_369 = arith.constant 0 : index
    %739 = vector.load %arg23[%c2_367, %c0_368, %c0_369] : memref<3x64x512xbf16, #tpu.memory_space<vmem>>, vector<1x64x512xbf16>
    %740 = vector.shape_cast %739 : vector<1x64x512xbf16> to vector<64x512xbf16>
    %cst_370 = arith.constant dense<0.000000e+00> : vector<32x512xf32>
    %741 = tpu.matmul %738, %740, %cst_370 {dimension_numbers = #tpu.dot_dimension_numbers<[1], [0], [0], [1], [0, 0, 1, 1], [], []>} : vector<32x64xbf16>, vector<64x512xbf16>, vector<32x512xf32> -> vector<32x512xf32>
    %742 = arith.addf %737, %741 : vector<32x512xf32>
    %c0_371 = arith.constant 0 : index
    %c0_372 = arith.constant 0 : index
    %743 = vector.load %arg24[%c0_371, %c0_372] : memref<1x512xf32, #tpu.memory_space<vmem>>, vector<1x512xf32>
    %744 = vector.broadcast %743 : vector<1x512xf32> to vector<32x512xf32>
    %745 = arith.mulf %742, %744 : vector<32x512xf32>
    %c0_373 = arith.constant 0 : index
    %c0_374 = arith.constant 0 : index
    %746 = vector.load %arg25[%c0_373, %c0_374] : memref<1x512xf32, #tpu.memory_space<vmem>>, vector<1x512xf32>
    %747 = vector.broadcast %746 : vector<1x512xf32> to vector<32x512xf32>
    %748 = arith.addf %745, %747 : vector<32x512xf32>
    %cst_375 = arith.constant 0.000000e+00 : f32
    %749 = vector.broadcast %cst_375 : f32 to vector<32x512xf32>
    %750 = arith.maximumf %748, %749 : vector<32x512xf32>
    %cst_376 = arith.constant 0.000000e+00 : f32
    %751 = vector.broadcast %cst_376 : f32 to vector<1x512xf32>
    %752 = vector.extract_strided_slice %750 {offsets = [0, 0], sizes = [31, 512], strides = [1, 1]} : vector<32x512xf32> to vector<31x512xf32>
    %753 = tpu.concatenate %751, %752 in 0 : vector<1x512xf32>, vector<31x512xf32> -> vector<32x512xf32>
    %754 = vector.extract_strided_slice %750 {offsets = [1, 0], sizes = [31, 512], strides = [1, 1]} : vector<32x512xf32> to vector<31x512xf32>
    %755 = tpu.concatenate %754, %751 in 0 : vector<31x512xf32>, vector<1x512xf32> -> vector<32x512xf32>
    %756 = tpu.iota {dimensions = array<i32: 0>} : vector<32x1xi32>
    %c16_i32_377 = arith.constant 16 : i32
    %c0_i32_378 = arith.constant 0 : i32
    %757 = arith.cmpi eq, %c16_i32_377, %c0_i32_378 : i32
    %c1_i32_379 = arith.constant 1 : i32
    %758 = arith.select %757, %c1_i32_379, %c16_i32_377 : i32
    %759 = vector.broadcast %758 : i32 to vector<32x1xi32>
    %760 = arith.remsi %756, %759 : vector<32x1xi32>
    %c0_i32_380 = arith.constant 0 : i32
    %761 = vector.broadcast %c0_i32_380 : i32 to vector<32x1xi32>
    %762 = arith.cmpi ne, %760, %761 : vector<32x1xi32>
    %c0_i32_381 = arith.constant 0 : i32
    %763 = vector.broadcast %c0_i32_381 : i32 to vector<32x1xi32>
    %764 = arith.cmpi slt, %760, %763 : vector<32x1xi32>
    %c0_i32_382 = arith.constant 0 : i32
    %765 = arith.cmpi slt, %758, %c0_i32_382 : i32
    %766 = vector.broadcast %765 : i1 to vector<32x1xi1>
    %767 = vector.broadcast %766 : vector<32x1xi1> to vector<32x1xi1>
    %768 = arith.xori %764, %767 : vector<32x1xi1>
    %769 = arith.andi %768, %762 : vector<32x1xi1>
    %770 = vector.broadcast %758 : i32 to vector<32x1xi32>
    %771 = arith.addi %760, %770 : vector<32x1xi32>
    %772 = arith.select %769, %771, %760 : vector<32x1xi1>, vector<32x1xi32>
    %c0_i32_383 = arith.constant 0 : i32
    %773 = vector.broadcast %c0_i32_383 : i32 to vector<32x1xi32>
    %774 = arith.cmpi eq, %772, %773 : vector<32x1xi32>
    %cst_384 = arith.constant 0.000000e+00 : f32
    %775 = vector.shape_cast %774 : vector<32x1xi1> to vector<32x1xi1>
    %776 = vector.broadcast %775 : vector<32x1xi1> to vector<32x512xi1>
    %777 = vector.broadcast %cst_384 : f32 to vector<32x512xf32>
    %778 = arith.select %776, %777, %753 : vector<32x512xi1>, vector<32x512xf32>
    %c16_i32_385 = arith.constant 16 : i32
    %c0_i32_386 = arith.constant 0 : i32
    %779 = arith.cmpi eq, %c16_i32_385, %c0_i32_386 : i32
    %c1_i32_387 = arith.constant 1 : i32
    %780 = arith.select %779, %c1_i32_387, %c16_i32_385 : i32
    %781 = vector.broadcast %780 : i32 to vector<32x1xi32>
    %782 = arith.remsi %756, %781 : vector<32x1xi32>
    %c0_i32_388 = arith.constant 0 : i32
    %783 = vector.broadcast %c0_i32_388 : i32 to vector<32x1xi32>
    %784 = arith.cmpi ne, %782, %783 : vector<32x1xi32>
    %c0_i32_389 = arith.constant 0 : i32
    %785 = vector.broadcast %c0_i32_389 : i32 to vector<32x1xi32>
    %786 = arith.cmpi slt, %782, %785 : vector<32x1xi32>
    %c0_i32_390 = arith.constant 0 : i32
    %787 = arith.cmpi slt, %780, %c0_i32_390 : i32
    %788 = vector.broadcast %787 : i1 to vector<32x1xi1>
    %789 = vector.broadcast %788 : vector<32x1xi1> to vector<32x1xi1>
    %790 = arith.xori %786, %789 : vector<32x1xi1>
    %791 = arith.andi %790, %784 : vector<32x1xi1>
    %792 = vector.broadcast %780 : i32 to vector<32x1xi32>
    %793 = arith.addi %782, %792 : vector<32x1xi32>
    %794 = arith.select %791, %793, %782 : vector<32x1xi1>, vector<32x1xi32>
    %c15_i32_391 = arith.constant 15 : i32
    %795 = vector.broadcast %c15_i32_391 : i32 to vector<32x1xi32>
    %796 = arith.cmpi eq, %794, %795 : vector<32x1xi32>
    %cst_392 = arith.constant 0.000000e+00 : f32
    %797 = vector.shape_cast %796 : vector<32x1xi1> to vector<32x1xi1>
    %798 = vector.broadcast %797 : vector<32x1xi1> to vector<32x512xi1>
    %799 = vector.broadcast %cst_392 : f32 to vector<32x512xf32>
    %800 = arith.select %798, %799, %755 : vector<32x512xi1>, vector<32x512xf32>
    %801 = arith.truncf %778 : vector<32x512xf32> to vector<32x512xbf16>
    %c0_393 = arith.constant 0 : index
    %c0_394 = arith.constant 0 : index
    %c0_395 = arith.constant 0 : index
    %802 = vector.load %arg26[%c0_393, %c0_394, %c0_395] : memref<3x512x128xbf16, #tpu.memory_space<vmem>>, vector<1x512x128xbf16>
    %803 = vector.shape_cast %802 : vector<1x512x128xbf16> to vector<512x128xbf16>
    %cst_396 = arith.constant dense<0.000000e+00> : vector<32x128xf32>
    %804 = tpu.matmul %801, %803, %cst_396 {dimension_numbers = #tpu.dot_dimension_numbers<[1], [0], [0], [1], [0, 0, 1, 1], [], []>} : vector<32x512xbf16>, vector<512x128xbf16>, vector<32x128xf32> -> vector<32x128xf32>
    %805 = arith.truncf %750 : vector<32x512xf32> to vector<32x512xbf16>
    %c1_397 = arith.constant 1 : index
    %c0_398 = arith.constant 0 : index
    %c0_399 = arith.constant 0 : index
    %806 = vector.load %arg26[%c1_397, %c0_398, %c0_399] : memref<3x512x128xbf16, #tpu.memory_space<vmem>>, vector<1x512x128xbf16>
    %807 = vector.shape_cast %806 : vector<1x512x128xbf16> to vector<512x128xbf16>
    %cst_400 = arith.constant dense<0.000000e+00> : vector<32x128xf32>
    %808 = tpu.matmul %805, %807, %cst_400 {dimension_numbers = #tpu.dot_dimension_numbers<[1], [0], [0], [1], [0, 0, 1, 1], [], []>} : vector<32x512xbf16>, vector<512x128xbf16>, vector<32x128xf32> -> vector<32x128xf32>
    %809 = arith.addf %804, %808 : vector<32x128xf32>
    %810 = arith.truncf %800 : vector<32x512xf32> to vector<32x512xbf16>
    %c2_401 = arith.constant 2 : index
    %c0_402 = arith.constant 0 : index
    %c0_403 = arith.constant 0 : index
    %811 = vector.load %arg26[%c2_401, %c0_402, %c0_403] : memref<3x512x128xbf16, #tpu.memory_space<vmem>>, vector<1x512x128xbf16>
    %812 = vector.shape_cast %811 : vector<1x512x128xbf16> to vector<512x128xbf16>
    %cst_404 = arith.constant dense<0.000000e+00> : vector<32x128xf32>
    %813 = tpu.matmul %810, %812, %cst_404 {dimension_numbers = #tpu.dot_dimension_numbers<[1], [0], [0], [1], [0, 0, 1, 1], [], []>} : vector<32x512xbf16>, vector<512x128xbf16>, vector<32x128xf32> -> vector<32x128xf32>
    %814 = arith.addf %809, %813 : vector<32x128xf32>
    %c0_405 = arith.constant 0 : index
    %c0_406 = arith.constant 0 : index
    %815 = vector.load %arg27[%c0_405, %c0_406] : memref<1x128xf32, #tpu.memory_space<vmem>>, vector<1x128xf32>
    %816 = vector.broadcast %815 : vector<1x128xf32> to vector<32x128xf32>
    %817 = arith.mulf %814, %816 : vector<32x128xf32>
    %c0_407 = arith.constant 0 : index
    %c0_408 = arith.constant 0 : index
    %818 = vector.load %arg28[%c0_407, %c0_408] : memref<1x128xf32, #tpu.memory_space<vmem>>, vector<1x128xf32>
    %819 = vector.broadcast %818 : vector<1x128xf32> to vector<32x128xf32>
    %820 = arith.addf %817, %819 : vector<32x128xf32>
    %cst_409 = arith.constant 0.000000e+00 : f32
    %821 = vector.broadcast %cst_409 : f32 to vector<32x128xf32>
    %822 = arith.maximumf %820, %821 : vector<32x128xf32>
    %c0_410 = arith.constant 0 : index
    %c0_411 = arith.constant 0 : index
    %823 = vector.load %arg53[%c0_410, %c0_411] : memref<32x128xf32, #tpu.memory_space<vmem>>, vector<32x128xf32>
    tpu.vector_store %arg53[%c0_410, %c0_411], %822 {strides = array<i32>} : memref<32x128xf32, #tpu.memory_space<vmem>>, vector<32x128xf32>,
    return
  }
  func.func @transform_0(%arg0: i32) -> (i32, i32) {
    %c0_i32 = arith.constant 0 : i32
    %c0_i32_0 = arith.constant 0 : i32
    %c0_i32_1 = arith.constant 0 : i32
    return %c0_i32, %c0_i32_0 : i32, i32
  }
  func.func @transform_1(%arg0: i32) -> (i32, i32, i32) {
    %c0_i32 = arith.constant 0 : i32
    %c0_i32_0 = arith.constant 0 : i32
    %c0_i32_1 = arith.constant 0 : i32
    %c0_i32_2 = arith.constant 0 : i32
    return %c0_i32, %c0_i32_0, %c0_i32_1 : i32, i32, i32
  }
  func.func @transform_2(%arg0: i32) -> (i32, i32) {
    %c0_i32 = arith.constant 0 : i32
    %c0_i32_0 = arith.constant 0 : i32
    %c0_i32_1 = arith.constant 0 : i32
    return %c0_i32, %c0_i32_0 : i32, i32
  }
  func.func @transform_3(%arg0: i32) -> (i32, i32) {
    %c0_i32 = arith.constant 0 : i32
    %c0_i32_0 = arith.constant 0 : i32
    %c0_i32_1 = arith.constant 0 : i32
    return %c0_i32, %c0_i32_0 : i32, i32
  }
  func.func @transform_4(%arg0: i32) -> (i32, i32, i32) {
    %c0_i32 = arith.constant 0 : i32
    %c0_i32_0 = arith.constant 0 : i32
    %c0_i32_1 = arith.constant 0 : i32
    %c0_i32_2 = arith.constant 0 : i32
    return %c0_i32, %c0_i32_0, %c0_i32_1 : i32, i32, i32
  }
  func.func @transform_5(%arg0: i32) -> (i32, i32) {
    %c0_i32 = arith.constant 0 : i32
    %c0_i32_0 = arith.constant 0 : i32
    %c0_i32_1 = arith.constant 0 : i32
    return %c0_i32, %c0_i32_0 : i32, i32
  }
  func.func @transform_6(%arg0: i32) -> (i32, i32) {
    %c0_i32 = arith.constant 0 : i32
    %c0_i32_0 = arith.constant 0 : i32
    %c0_i32_1 = arith.constant 0 : i32
    return %c0_i32, %c0_i32_0 : i32, i32
  }
  func.func @transform_7(%arg0: i32) -> (i32, i32, i32) {
    %c0_i32 = arith.constant 0 : i32
    %c0_i32_0 = arith.constant 0 : i32
    %c0_i32_1 = arith.constant 0 : i32
    %c0_i32_2 = arith.constant 0 : i32
    return %c0_i32, %c0_i32_0, %c0_i32_1 : i32, i32, i32
  }
  func.func @transform_8(%arg0: i32) -> (i32, i32) {
    %c0_i32 = arith.constant 0 : i32
    %c0_i32_0 = arith.constant 0 : i32
    %c0_i32_1 = arith.constant 0 : i32
    return %c0_i32, %c0_i32_0 : i32, i32
  }
  func.func @transform_9(%arg0: i32) -> (i32, i32) {
    %c0_i32 = arith.constant 0 : i32
    %c0_i32_0 = arith.constant 0 : i32
    %c0_i32_1 = arith.constant 0 : i32
    return %c0_i32, %c0_i32_0 : i32, i32
  }
  func.func @transform_10(%arg0: i32) -> (i32, i32, i32) {
    %c0_i32 = arith.constant 0 : i32
    %c0_i32_0 = arith.constant 0 : i32
    %c0_i32_1 = arith.constant 0 : i32
    %c0_i32_2 = arith.constant 0 : i32
    return %c0_i32, %c0_i32_0, %c0_i32_1 : i32, i32, i32
  }
  func.func @transform_11(%arg0: i32) -> (i32, i32) {
    %c0_i32 = arith.constant 0 : i32
    %c0_i32_0 = arith.constant 0 : i32
    %c0_i32_1 = arith.constant 0 : i32
    return %c0_i32, %c0_i32_0 : i32, i32
  }
  func.func @transform_12(%arg0: i32) -> (i32, i32) {
    %c0_i32 = arith.constant 0 : i32
    %c0_i32_0 = arith.constant 0 : i32
    %c0_i32_1 = arith.constant 0 : i32
    return %c0_i32, %c0_i32_0 : i32, i32
  }
  func.func @transform_13(%arg0: i32) -> (i32, i32, i32) {
    %c0_i32 = arith.constant 0 : i32
    %c0_i32_0 = arith.constant 0 : i32
    %c0_i32_1 = arith.constant 0 : i32
    %c0_i32_2 = arith.constant 0 : i32
    return %c0_i32, %c0_i32_0, %c0_i32_1 : i32, i32, i32
  }
  func.func @transform_14(%arg0: i32) -> (i32, i32) {
    %c0_i32 = arith.constant 0 : i32
    %c0_i32_0 = arith.constant 0 : i32
    %c0_i32_1 = arith.constant 0 : i32
    return %c0_i32, %c0_i32_0 : i32, i32
  }
  func.func @transform_15(%arg0: i32) -> (i32, i32) {
    %c0_i32 = arith.constant 0 : i32
    %c0_i32_0 = arith.constant 0 : i32
    %c0_i32_1 = arith.constant 0 : i32
    return %c0_i32, %c0_i32_0 : i32, i32
  }
  func.func @transform_16(%arg0: i32) -> (i32, i32, i32) {
    %c0_i32 = arith.constant 0 : i32
    %c0_i32_0 = arith.constant 0 : i32
    %c0_i32_1 = arith.constant 0 : i32
    %c0_i32_2 = arith.constant 0 : i32
    return %c0_i32, %c0_i32_0, %c0_i32_1 : i32, i32, i32
  }
  func.func @transform_17(%arg0: i32) -> (i32, i32) {
    %c0_i32 = arith.constant 0 : i32
    %c0_i32_0 = arith.constant 0 : i32
    %c0_i32_1 = arith.constant 0 : i32
    return %c0_i32, %c0_i32_0 : i32, i32
  }
  func.func @transform_18(%arg0: i32) -> (i32, i32) {
    %c0_i32 = arith.constant 0 : i32
    %c0_i32_0 = arith.constant 0 : i32
    %c0_i32_1 = arith.constant 0 : i32
    return %c0_i32, %c0_i32_0 : i32, i32
  }
  func.func @transform_19(%arg0: i32) -> (i32, i32, i32) {
    %c0_i32 = arith.constant 0 : i32
    %c0_i32_0 = arith.constant 0 : i32
    %c0_i32_1 = arith.constant 0 : i32
    %c0_i32_2 = arith.constant 0 : i32
    return %c0_i32, %c0_i32_0, %c0_i32_1 : i32, i32, i32
  }
  func.func @transform_20(%arg0: i32) -> (i32, i32) {
    %c0_i32 = arith.constant 0 : i32
    %c0_i32_0 = arith.constant 0 : i32
    %c0_i32_1 = arith.constant 0 : i32
    return %c0_i32, %c0_i32_0 : i32, i32
  }
  func.func @transform_21(%arg0: i32) -> (i32, i32) {
    %c0_i32 = arith.constant 0 : i32
    %c0_i32_0 = arith.constant 0 : i32
    %c0_i32_1 = arith.constant 0 : i32
    return %c0_i32, %c0_i32_0 : i32, i32
  }
  func.func @transform_22(%arg0: i32) -> (i32, i32, i32) {
    %c0_i32 = arith.constant 0 : i32
    %c0_i32_0 = arith.constant 0 : i32
    %c0_i32_1 = arith.constant 0 : i32
    %c0_i32_2 = arith.constant 0 : i32
    return %c0_i32, %c0_i32_0, %c0_i32_1 : i32, i32, i32
  }
  func.func @transform_23(%arg0: i32) -> (i32, i32) {
    %c0_i32 = arith.constant 0 : i32
    %c0_i32_0 = arith.constant 0 : i32
    %c0_i32_1 = arith.constant 0 : i32
    return %c0_i32, %c0_i32_0 : i32, i32
  }
  func.func @transform_24(%arg0: i32) -> (i32, i32) {
    %c0_i32 = arith.constant 0 : i32
    %c0_i32_0 = arith.constant 0 : i32
    %c0_i32_1 = arith.constant 0 : i32
    return %c0_i32, %c0_i32_0 : i32, i32
  }
  func.func @transform_25(%arg0: i32) -> (i32, i32, i32) {
    %c0_i32 = arith.constant 0 : i32
    %c0_i32_0 = arith.constant 0 : i32
    %c0_i32_1 = arith.constant 0 : i32
    %c0_i32_2 = arith.constant 0 : i32
    return %c0_i32, %c0_i32_0, %c0_i32_1 : i32, i32, i32
  }
  func.func @transform_26(%arg0: i32) -> (i32, i32) {
    %c0_i32 = arith.constant 0 : i32
    %c0_i32_0 = arith.constant 0 : i32
    %c0_i32_1 = arith.constant 0 : i32
    return %c0_i32, %c0_i32_0 : i32, i32
  }
  func.func @transform_27(%arg0: i32) -> (i32, i32) {
    %c0_i32 = arith.constant 0 : i32
    %c0_i32_0 = arith.constant 0 : i32
    %c0_i32_1 = arith.constant 0 : i32
    return %c0_i32, %c0_i32_0 : i32, i32
  }
  func.func @transform_28(%arg0: i32) -> (i32, i32) {
    %c0_i32 = arith.constant 0 : i32
    %c0_i32_0 = arith.constant 0 : i32
    %c0_i32_1 = arith.constant 0 : i32
    return %c0_i32, %c0_i32_0 : i32, i32
  }
  func.func @transform_29(%arg0: i32) -> (i32, i32) {
    %c0_i32 = arith.constant 0 : i32
    %c0_i32_0 = arith.constant 0 : i32
    %c0_i32_1 = arith.constant 0 : i32
    return %c0_i32, %c0_i32_0 : i32, i32
  }
  func.func @transform_30(%arg0: i32) -> (i32, i32) {
    %c0_i32 = arith.constant 0 : i32
    %c0_i32_0 = arith.constant 0 : i32
    %c0_i32_1 = arith.constant 0 : i32
    return %c0_i32, %c0_i32_0 : i32, i32
  }
  func.func @transform_31(%arg0: i32) -> (i32, i32) {
    %c0_i32 = arith.constant 0 : i32
    %c0_i32_0 = arith.constant 0 : i32
    %c0_i32_1 = arith.constant 0 : i32
    return %c0_i32, %c0_i32_0 : i32, i32
  }
  func.func @transform_32(%arg0: i32) -> (i32, i32) {
    %c0_i32 = arith.constant 0 : i32
    %c0_i32_0 = arith.constant 0 : i32
    %c0_i32_1 = arith.constant 0 : i32
    return %c0_i32, %c0_i32_0 : i32, i32
  }
  func.func @transform_33(%arg0: i32) -> (i32, i32) {
    %c0_i32 = arith.constant 0 : i32
    %c0_i32_0 = arith.constant 0 : i32
    %c0_i32_1 = arith.constant 0 : i32
    return %c0_i32, %c0_i32_0 : i32, i32
  }
  func.func @transform_34(%arg0: i32) -> (i32, i32) {
    %c0_i32 = arith.constant 0 : i32
    %c0_i32_0 = arith.constant 0 : i32
    %c0_i32_1 = arith.constant 0 : i32
    return %c0_i32, %c0_i32_0 : i32, i32
  }
  func.func @transform_35(%arg0: i32) -> (i32, i32) {
    %c0_i32 = arith.constant 0 : i32
    %c0_i32_0 = arith.constant 0 : i32
    %c0_i32_1 = arith.constant 0 : i32
    return %c0_i32, %c0_i32_0 : i32, i32
  }
  func.func @transform_36(%arg0: i32) -> (i32, i32) {
    %c0_i32 = arith.constant 0 : i32
    %c0_i32_0 = arith.constant 0 : i32
    %c0_i32_1 = arith.constant 0 : i32
    return %c0_i32, %c0_i32_0 : i32, i32
  }
  func.func @transform_37(%arg0: i32) -> (i32, i32) {
    %c0_i32 = arith.constant 0 : i32
    %c0_i32_0 = arith.constant 0 : i32
    %c0_i32_1 = arith.constant 0 : i32
    return %c0_i32, %c0_i32_0 : i32, i32
  }
  func.func @transform_38(%arg0: i32) -> (i32, i32) {
    %c0_i32 = arith.constant 0 : i32
    %c0_i32_0 = arith.constant 0 : i32
    %c0_i32_1 = arith.constant 0 : i32
    return %c0_i32, %c0_i32_0 : i32, i32
  }
  func.func @transform_39(%arg0: i32) -> (i32, i32) {
    %c0_i32 = arith.constant 0 : i32
    %c0_i32_0 = arith.constant 0 : i32
    %c0_i32_1 = arith.constant 0 : i32
    return %c0_i32, %c0_i32_0 : i32, i32
  }
  func.func @transform_40(%arg0: i32) -> (i32, i32) {
    %c0_i32 = arith.constant 0 : i32
    %c0_i32_0 = arith.constant 0 : i32
    %c0_i32_1 = arith.constant 0 : i32
    return %c0_i32, %c0_i32_0 : i32, i32
  }
  func.func @transform_41(%arg0: i32) -> (i32, i32) {
    %c0_i32 = arith.constant 0 : i32
    %c0_i32_0 = arith.constant 0 : i32
    %c0_i32_1 = arith.constant 0 : i32
    return %c0_i32, %c0_i32_0 : i32, i32
  }
  func.func @transform_42(%arg0: i32) -> (i32, i32) {
    %c0_i32 = arith.constant 0 : i32
    %c0_i32_0 = arith.constant 0 : i32
    %c0_i32_1 = arith.constant 0 : i32
    return %c0_i32, %c0_i32_0 : i32, i32
  }
  func.func @transform_43(%arg0: i32) -> (i32, i32) {
    %c0_i32 = arith.constant 0 : i32
    %c0_i32_0 = arith.constant 0 : i32
    %c0_i32_1 = arith.constant 0 : i32
    return %c0_i32, %c0_i32_0 : i32, i32
  }
  func.func @transform_44(%arg0: i32) -> (i32, i32) {
    %c0_i32 = arith.constant 0 : i32
    %c0_i32_0 = arith.constant 0 : i32
    %c0_i32_1 = arith.constant 0 : i32
    return %c0_i32, %c0_i32_0 : i32, i32
  }
  func.func @transform_45(%arg0: i32) -> (i32, i32) {
    %c0_i32 = arith.constant 0 : i32
    %c0_i32_0 = arith.constant 0 : i32
    %c0_i32_1 = arith.constant 0 : i32
    return %c0_i32, %c0_i32_0 : i32, i32
  }
  func.func @transform_46(%arg0: i32) -> (i32, i32) {
    %c0_i32 = arith.constant 0 : i32
    %c0_i32_0 = arith.constant 0 : i32
    %c0_i32_1 = arith.constant 0 : i32
    return %c0_i32, %c0_i32_0 : i32, i32
  }
  func.func @transform_47(%arg0: i32) -> (i32, i32) {
    %c0_i32 = arith.constant 0 : i32
    %c0_i32_0 = arith.constant 0 : i32
    %c0_i32_1 = arith.constant 0 : i32
    return %c0_i32, %c0_i32_0 : i32, i32
  }
  func.func @transform_48(%arg0: i32) -> (i32, i32) {
    %c0_i32 = arith.constant 0 : i32
    %c0_i32_0 = arith.constant 0 : i32
    %c0_i32_1 = arith.constant 0 : i32
    return %c0_i32, %c0_i32_0 : i32, i32
  }
  func.func @transform_49(%arg0: i32) -> (i32, i32) {
    %c0_i32 = arith.constant 0 : i32
    %c0_i32_0 = arith.constant 0 : i32
    %c0_i32_1 = arith.constant 0 : i32
    return %c0_i32, %c0_i32_0 : i32, i32
  }
  func.func @transform_50(%arg0: i32) -> (i32, i32) {
    %c0_i32 = arith.constant 0 : i32
    %c0_i32_0 = arith.constant 0 : i32
    %c0_i32_1 = arith.constant 0 : i32
    return %c0_i32, %c0_i32_0 : i32, i32
  }
  func.func @transform_51(%arg0: i32) -> (i32, i32) {
    %c0_i32 = arith.constant 0 : i32
    %c0_i32_0 = arith.constant 0 : i32
    %c0_i32_1 = arith.constant 0 : i32
    return %c0_i32, %c0_i32_0 : i32, i32
  }
  func.func @transform_52(%arg0: i32) -> (i32, i32) {
    %c0_i32 = arith.constant 0 : i32
    %c0_i32_0 = arith.constant 0 : i32
    %c0_i32_1 = arith.constant 0 : i32
    return %c0_i32, %c0_i32_0 : i32, i32
  }
}

</mosaic_0001>

<bundles_post_ra>
// kernel: tpu_custom_call.1
= control target key start
LH: loop header
LB: loop body
LE: loop exit
PB: predicated region body
PF: predicated region fallthrough
CT: control target
= control target key end

     0   :  { %6 = vsyncpa [#allocation3], 0  ;;  %s115_s0 = inlined_call_operand.hbm [shape: f32[8,128], index: 0, kind: input, shape index: {}]   ;;  %s116_s1 = inlined_call_operand.hbm [shape: f32[8,128], index: 1, kind: output, shape index: {}]  }
   0x1   :  { %7 = vsyncpa [#allocation4], 0  ;;  %s13_s8 = sshll.u32 %s115_s0, 4  ;;  %s97_s9 = smov [#allocation2]   ;;  %s14_s8 = int_to_ptr.hbm [resolvable:$true] %s13_s8 }
   0x2   :  { %s15_s10 = sshll.u32 %s97_s9, 4  ;;  %s16_s10 = int_to_ptr.vmem [resolvable:$true] %s15_s10 }
   0x3   :  { %18 = dma.hbm_to_vmem [thread:$0]  %s14_s8, 128, %s16_s10, [#allocation3]  }
   0x4   :  { %93 = dma.done.wait [#allocation3], 128  }
   0x5   :  { %94 = vsyncadd [#allocation3], 4294967168  ;;  %s98_s11 = smov [#allocation5]   ;;  %s33_s15 = sshll.u32 %s116_s1, 4  ;;  %v23_v0 = vld [vmem:[#allocation2] sm:$0xff]  ;;  %s34_s15 = int_to_ptr.hbm [resolvable:$true] %s33_s15 }
   0x6   :  { %s31_s12 = sshll.u32 %s98_s11, 4  ;;  %v24_v1 = vrot.slane %v23_v0, 7  ;;  %s32_s12 = int_to_ptr.vmem [resolvable:$true] %s31_s12 }
   0x8   :  { %25 = vst [vmem:[#allocation5] sm:$0xff] %v24_v1 }
   0x9   :  { %36 = dma.vmem_to_hbm [thread:$0]  %s32_s12, 128, %s34_s15, [#allocation4]  }
   0xa   :  { %95 = dma.done.wait [#allocation4], 128  }
   0xb   :  { %96 = vsyncadd [#allocation4], 4294967168 }
   0xc   :  { %41 = vsyncpa [#allocation3], 1 }
   0xd   :  { %42 = vsyncpa [#allocation4], 1 }

// kernel: segnet_forward.1
= control target key start
LH: loop header
LB: loop body
LE: loop exit
PB: predicated region body
PF: predicated region fallthrough
CT: control target
= control target key end

     0   :  { %s7884_s6 = smov 1   ;;  %s7885_s10 = smov 2   ;;  %s9395_s0 = inlined_call_operand.smem [shape: u32[53], index: -1, kind: input, shape index: {}] }
   0x1   :  { %s7994_s5 = sld [smem:[%s9395_s0]]   ;;  %s7886_s14 = smov 3  }
   0x2   :  { %s7999_s9 = sld [smem:[%s9395_s0 + %s7884_s6]]   ;;  %s7887_s18 = smov 4  }
   0x3   :  { %s8004_s13 = sld [smem:[%s9395_s0 + %s7885_s10]]   ;;  %s7888_s22 = smov 5  }
   0x4   :  { %s8009_s17 = sld [smem:[%s9395_s0 + %s7886_s14]]   ;;  %s7889_s26 = smov 6  }
   0x5   :  { %s8014_s21 = sld [smem:[%s9395_s0 + %s7887_s18]]   ;;  %s7890_s30 = smov 7  }
   0x6   :  { %s8019_s25 = sld [smem:[%s9395_s0 + %s7888_s22]]   ;;  %s7891_s4 = smov 8  }
   0x7   :  { %9434 = sst [smem:[#allocation93_spill]] %s7994_s5  ;;  %s7892_s10 = smov 9  }
   0x8   :  { %9435 = sst [smem:[#allocation94_spill]] %s7999_s9  ;;  %s7893_s15 = smov 10  }
   0x9   :  { %s8024_s29 = sld [smem:[%s9395_s0 + %s7889_s26]]   ;;  %s7894_s20 = smov 11  }
   0xa   :  { %9436 = sst [smem:[#allocation95_spill]] %s8009_s17  ;;  %s7895_s26 = smov 12  }
   0xb   :  { %s8029_s3 = sld [smem:[%s9395_s0 + %s7890_s30]]   ;;  %s7896_s1 = smov 13  }
   0xc   :  { %9437 = sst [smem:[#allocation96_spill]] %s8019_s25  ;;  %s7897_s7 = smov 14  }
   0xd   :  { %s8034_s8 = sld [smem:[%s9395_s0 + %s7891_s4]]   ;;  %s7899_s22 = smov 16  }
   0xe   :  { %s8039_s14 = sld [smem:[%s9395_s0 + %s7892_s10]]   ;;  %s7900_s28 = smov 17  }
   0xf   :  { %s8044_s19 = sld [smem:[%s9395_s0 + %s7893_s15]]   ;;  %s7898_s15 = smov 15  }
  0x10   :  { %s8049_s24 = sld [smem:[%s9395_s0 + %s7894_s20]]  }
  0x11   :  { %9438 = sst [smem:[#allocation97_spill]] %s8029_s3 }
  0x12   :  { %s8054_s30 = sld [smem:[%s9395_s0 + %s7895_s26]]  }
  0x13   :  { %s8059_s6 = sld [smem:[%s9395_s0 + %s7896_s1]]  }
  0x14   :  { %9439 = sst [smem:[#allocation98_spill]] %s8039_s14 }
  0x15   :  { %s8064_s12 = sld [smem:[%s9395_s0 + %s7897_s7]]   ;;  %s7901_s7 = smov 18  }
  0x16   :  { %9440 = sst [smem:[#allocation99_spill]] %s8049_s24 }
  0x17   :  { %s8069_s20 = sld [smem:[%s9395_s0 + %s7898_s15]]   ;;  %s7902_s15 = smov 19  }
  0x18   :  { %s8074_s27 = sld [smem:[%s9395_s0 + %s7899_s22]]   ;;  %s7903_s22 = smov 20  }
  0x19   :  { %9441 = sst [smem:[#allocation100_spill]] %s8059_s6 }
  0x1a   :  { %s8079_s4 = sld [smem:[%s9395_s0 + %s7900_s28]]   ;;  %s7904_s28 = smov 21  }
  0x1b   :  { %s8084_s5 = sld [smem:[%s9395_s0 + %s7901_s7]]   ;;  %s7905_s7 = smov 22  }
  0x1c   :  { %s8094_s6 = sld [smem:[%s9395_s0 + %s7903_s22]]   ;;  %s7907_s22 = smov 24  }
  0x1d   :  { %9442 = sst [smem:[#allocation101_spill]] %s8069_s20 }
  0x1e   :  { %s8089_s20 = sld [smem:[%s9395_s0 + %s7902_s15]]   ;;  %s7906_s15 = smov 23  }
  0x1f   :  { %s8104_s24 = sld [smem:[%s9395_s0 + %s7905_s7]]   ;;  %s7909_s7 = smov 26  }
  0x20   :  { %9443 = sst [smem:[#allocation102_spill]] %s8079_s4 }
  0x21   :  { %s8099_s4 = sld [smem:[%s9395_s0 + %s7904_s28]]   ;;  %s7908_s28 = smov 25  }
  0x22   :  { %9445 = sst [smem:[#allocation104_spill]] %s8094_s6 }
  0x23   :  { %s8114_s6 = sld [smem:[%s9395_s0 + %s7907_s22]]   ;;  %s7911_s22 = smov 28  }
  0x24   :  { %9444 = sst [smem:[#allocation103_spill]] %s8089_s20 }
  0x25   :  { %9446 = sst [smem:[#allocation105_spill]] %s8104_s24 }
  0x26   :  { %s8109_s20 = sld [smem:[%s9395_s0 + %s7906_s15]]   ;;  %s7910_s15 = smov 27  }
  0x27   :  { %s8119_s14 = sld [smem:[%s9395_s0 + %s7908_s28]]   ;;  %s7912_s28 = smov 29  }
  0x28   :  { %s8124_s24 = sld [smem:[%s9395_s0 + %s7909_s7]]   ;;  %s7913_s7 = smov 30  }
  0x29   :  { %s8134_s3 = sld [smem:[%s9395_s0 + %s7911_s22]]   ;;  %s7915_s22 = smov 32  }
  0x2a   :  { %s8144_s25 = sld [smem:[%s9395_s0 + %s7913_s7]]   ;;  %s7917_s7 = smov 34  }
  0x2b   :  { %s8154_s17 = sld [smem:[%s9395_s0 + %s7915_s22]]   ;;  %s7919_s22 = smov 36  }
  0x2c   :  { %9447 = sst [smem:[#allocation106_spill]] %s8109_s20 }
  0x2d   :  { %9448 = sst [smem:[#allocation107_spill]] %s8119_s14 }
  0x2e   :  { %s8129_s20 = sld [smem:[%s9395_s0 + %s7910_s15]]   ;;  %s7914_s15 = smov 31  }
  0x2f   :  { %s8139_s14 = sld [smem:[%s9395_s0 + %s7912_s28]]   ;;  %s7916_s28 = smov 33  }
  0x30   :  { %s8164_s9 = sld [smem:[%s9395_s0 + %s7917_s7]]   ;;  %s7921_s7 = smov 38  }
  0x31   :  { %9452 = sst [smem:[#allocation111_spill]] %s8154_s17 }
  0x32   :  { %s8174_s17 = sld [smem:[%s9395_s0 + %s7919_s22]]   ;;  %s7923_s22 = smov 40  }
  0x34   :  { %9449 = sst [smem:[#allocation108_spill]] %s8129_s20 }
  0x35   :  { %9450 = sst [smem:[#allocation109_spill]] %s8139_s14 }
  0x36   :  { %s8149_s20 = sld [smem:[%s9395_s0 + %s7914_s15]]   ;;  %s7918_s15 = smov 35  }
  0x37   :  { %s8159_s14 = sld [smem:[%s9395_s0 + %s7916_s28]]   ;;  %s7920_s28 = smov 37  }
  0x38   :  { %9454 = sst [smem:[#allocation113_spill]] %s8164_s9 }
  0x39   :  { %9456 = sst [smem:[#allocation115_spill]] %s8174_s17 }
  0x3a   :  { %s8184_s9 = sld [smem:[%s9395_s0 + %s7921_s7]]   ;;  %s7925_s7 = smov 42  }
  0x3b   :  { %s8194_s17 = sld [smem:[%s9395_s0 + %s7923_s22]]   ;;  %s7927_s22 = smov 44  }
  0x3c   :  { %9451 = sst [smem:[#allocation110_spill]] %s8149_s20 }
  0x3d   :  { %9453 = sst [smem:[#allocation112_spill]] %s8159_s14 }
  0x3e   :  { %s8169_s20 = sld [smem:[%s9395_s0 + %s7918_s15]]   ;;  %s7922_s15 = smov 39  }
  0x3f   :  { %s8179_s14 = sld [smem:[%s9395_s0 + %s7920_s28]]   ;;  %s7924_s28 = smov 41  }
  0x40   :  { %9458 = sst [smem:[#allocation117_spill]] %s8184_s9 }
  0x41   :  { %9460 = sst [smem:[#allocation119_spill]] %s8194_s17 }
  0x42   :  { %s8204_s9 = sld [smem:[%s9395_s0 + %s7925_s7]]   ;;  %s7929_s7 = smov 46  }
  0x43   :  { %s8214_s17 = sld [smem:[%s9395_s0 + %s7927_s22]]   ;;  %s7931_s22 = smov 48  }
  0x44   :  { %9455 = sst [smem:[#allocation114_spill]] %s8169_s20 }
  0x45   :  { %9457 = sst [smem:[#allocation116_spill]] %s8179_s14 }
  0x46   :  { %s8189_s20 = sld [smem:[%s9395_s0 + %s7922_s15]]   ;;  %s7926_s15 = smov 43  }
  0x47   :  { %s8199_s14 = sld [smem:[%s9395_s0 + %s7924_s28]]   ;;  %s7928_s28 = smov 45  }
  0x48   :  { %9462 = sst [smem:[#allocation121_spill]] %s8204_s9 }
  0x49   :  { %9464 = sst [smem:[#allocation123_spill]] %s8214_s17 }
  0x4a   :  { %s8224_s9 = sld [smem:[%s9395_s0 + %s7929_s7]]   ;;  %s7933_s7 = smov 50  }
  0x4b   :  { %s8234_s17 = sld [smem:[%s9395_s0 + %s7931_s22]]   ;;  %s7935_s22 = smov 52  }
  0x4c   :  { %9459 = sst [smem:[#allocation118_spill]] %s8189_s20 }
  0x4d   :  { %9461 = sst [smem:[#allocation120_spill]] %s8199_s14 }
  0x4e   :  { %s8209_s20 = sld [smem:[%s9395_s0 + %s7926_s15]]   ;;  %s7930_s15 = smov 47  }
  0x4f   :  { %s8219_s14 = sld [smem:[%s9395_s0 + %s7928_s28]]   ;;  %s7932_s28 = smov 49  }
  0x50   :  { %9466 = sst [smem:[#allocation125_spill]] %s8224_s9 }
  0x51   :  { %9468 = sst [smem:[#allocation127_spill]] %s8234_s17 }
  0x52   :  { %s8244_s9 = sld [smem:[%s9395_s0 + %s7933_s7]]  }
  0x53   :  { %s8254_s17 = sld [smem:[%s9395_s0 + %s7935_s22]]  }
  0x54   :  { %9463 = sst [smem:[#allocation122_spill]] %s8209_s20 }
  0x55   :  { %9465 = sst [smem:[#allocation124_spill]] %s8219_s14 }
  0x56   :  { %s8229_s20 = sld [smem:[%s9395_s0 + %s7930_s15]]   ;;  %s7934_s15 = smov 51  }
  0x57   :  { %s8239_s14 = sld [smem:[%s9395_s0 + %s7932_s28]]  }
  0x5c   :  { %9467 = sst [smem:[#allocation126_spill]] %s8229_s20 }
  0x5d   :  { %s8249_s20 = sld [smem:[%s9395_s0 + %s7934_s15]]  }
  0x5e   :  { %110 = vsyncpa [#allocation3], 0 }
  0x5f   :  { %111 = vsyncpa [#allocation5], 0 }
  0x60   :  { %112 = vsyncpa [#allocation8], 0 }
  0x61   :  { %113 = vsyncpa [#allocation11], 0 }
  0x62   :  { %114 = vsyncpa [#allocation14], 0 }
  0x63   :  { %115 = vsyncpa [#allocation17], 0 }
  0x64   :  { %116 = vsyncpa [#allocation20], 0 }
  0x65   :  { %117 = vsyncpa [#allocation23], 0 }
  0x66   :  { %118 = vsyncpa [#allocation26], 0 }
  0x67   :  { %119 = vsyncpa [#allocation29], 0 }
  0x68   :  { %120 = vsyncpa [#allocation32], 0 }
  0x69   :  { %121 = vsyncpa [#allocation35], 0 }
  0x6a   :  { %122 = vsyncpa [#allocation38], 0 }
  0x6b   :  { %123 = vsyncpa [#allocation41], 0 }
  0x6c   :  { %124 = vsyncpa [#allocation44], 0 }
  0x6d   :  { %125 = vsyncpa [#allocation47], 0 }
  0x6e   :  { %126 = vsyncpa [#allocation50], 0 }
  0x6f   :  { %127 = vsyncpa [#allocation53], 0 }
  0x70   :  { %128 = vsyncpa [#allocation56], 0 }
  0x71   :  { %129 = vsyncpa [#allocation59], 0 }
  0x72   :  { %130 = vsyncpa [#allocation62], 0 }
  0x73   :  { %131 = vsyncpa [#allocation65], 0  ;;  %s153_s0 = sshll.u32 %s8004_s13, 4  ;;  %s154_s0 = int_to_ptr.hbm [resolvable:$true] %s153_s0 }
  0x74   :  { %132 = vsyncpa [#allocation68], 0  ;;  %s7936_s28 = smov [#allocation4]   ;;  %s6758_s2 = sshra.s32 %s154_s0, 4  ;;  %s6759_s2 = int_to_ptr.hbm [resolvable:$true] %s6758_s2 }
  0x75   :  { %s155_s1 = sshll.u32 %s7936_s28, 4  ;;  %s6760_s7 = scalar_lea.hbm %s6759_s2, 1  ;;  %s156_s1 = int_to_ptr.vmem [resolvable:$true] %s155_s1 }
  0x76   :  { %p6761_p0 = scmp.ne.s32.totalorder %s6759_s2, %s6760_s7  ;;  %s6762_s10 = scalar_lea.hbm %s8004_s13, 1 }
  0x77   :  { %p6763_p1 = scmp.lt.s32.totalorder %s6759_s2, %s8004_s13  ;;  %p6764_p2 = scmp.lt.s32.totalorder %s6762_s10, %s6760_s7 }
  0x79   :  { %p6765_p3 = por %p6764_p2, %p6763_p1 }
  0x7b   :  { %p6766_p4 = pnand %p6765_p3, %p6761_p0 }
  0x7d   :  { %6769 = shalt.err (!%p6766_p4)
}
  0x7e   :  { %158 = dma.hbm_to_vmem [thread:$0]  %s154_s0, 16, %s156_s1, [#allocation5]  }
  0x7f   :  { %s174_s11 = sshll.u32 %s8014_s21, 4  ;;  %s7937_s15 = smov [#allocation7]   ;;  %s175_s11 = int_to_ptr.hbm [resolvable:$true] %s174_s11 }
  0x80   :  { %s176_s16 = sshll.u32 %s7937_s15, 4  ;;  %s199_s18 = sshll.u32 %s8024_s29, 4  ;;  %s177_s16 = int_to_ptr.vmem [resolvable:$true] %s176_s16  ;;  %s8261_s18 = int_to_ptr.hbm [resolvable:$true] %s199_s18 }
  0x81   :  { %s6782_s22 = sshra.s32 %s175_s11, 4  ;;  %s6786_s23 = scalar_lea.hbm %s8014_s21, 48  ;;  %s6783_s22 = int_to_ptr.hbm [resolvable:$true] %s6782_s22 }
  0x82   :  { %s6784_s13 = scalar_lea.hbm %s6783_s22, 48  ;;  %p6787_p6 = scmp.lt.s32.totalorder %s6783_s22, %s8014_s21 }
  0x83   :  { %p6785_p5 = scmp.ne.s32.totalorder %s6783_s22, %s6784_s13  ;;  %p6788_p7 = scmp.lt.s32.totalorder %s6786_s23, %s6784_s13 }
  0x85   :  { %p6789_p8 = por %p6788_p7, %p6787_p6 }
  0x87   :  { %p6790_p9 = pnand %p6789_p8, %p6785_p5 }
  0x89   :  { %6793 = shalt.err (!%p6790_p9)
}
  0x8a   :  { %s7938_s26 = smov 64   ;;  %s7939_s0 = smov 4  }
  0x8b   :  { %182 = dma.hbm_to_vmem [thread:$0]  %s175_s11, 768, %s177_s16, [#allocation8], %s7938_s26, %s7938_s26, %s7939_s0  }
  0x8c   :  { %s223_s28 = sshll.u32 %s8034_s8, 4  ;;  %s7940_s1 = smov [#allocation10]   ;;  %s224_s28 = int_to_ptr.hbm [resolvable:$true] %s223_s28 }
  0x8d   :  { %s201_s2 = sshll.u32 %s7940_s1, 4  ;;  %s6806_s21 = sshra.s32 %s8261_s18, 4  ;;  %s202_s2 = int_to_ptr.vmem [resolvable:$true] %s201_s2  ;;  %s6807_s21 = int_to_ptr.hbm [resolvable:$true] %s6806_s21 }
  0x8e   :  { %s6808_s7 = scalar_lea.hbm %s6807_s21, 1  ;;  %s6810_s10 = scalar_lea.hbm %s8024_s29, 1 }
  0x8f   :  { %p6809_p10 = scmp.ne.s32.totalorder %s6807_s21, %s6808_s7  ;;  %p6811_p11 = scmp.lt.s32.totalorder %s6807_s21, %s8024_s29 }
  0x90   :  { %p6812_p12 = scmp.lt.s32.totalorder %s6810_s10, %s6808_s7 }
  0x92   :  { %p6813_p13 = por %p6812_p12, %p6811_p11 }
  0x94   :  { %p6814_p0 = pnand %p6813_p13, %p6809_p10 }
  0x96   :  { %6817 = shalt.err (!%p6814_p0)
}
  0x97   :  { %204 = dma.hbm_to_vmem [thread:$0]  %s8261_s18, 16, %s202_s2, [#allocation11]  }
  0x98   :  { %s7941_s11 = smov [#allocation13]   ;;  %s244_s16 = sshll.u32 %s8044_s19, 4  ;;  %s8274_s16 = int_to_ptr.hbm [resolvable:$true] %s244_s16 }
  0x99   :  { %s225_s15 = sshll.u32 %s7941_s11, 4  ;;  %s6830_s22 = sshra.s32 %s224_s28, 4  ;;  %s226_s15 = int_to_ptr.vmem [resolvable:$true] %s225_s15  ;;  %s6831_s22 = int_to_ptr.hbm [resolvable:$true] %s6830_s22 }
  0x9a   :  { %s6832_s13 = scalar_lea.hbm %s6831_s22, 1  ;;  %s6834_s29 = scalar_lea.hbm %s8034_s8, 1 }
  0x9b   :  { %p6833_p1 = scmp.ne.s32.totalorder %s6831_s22, %s6832_s13  ;;  %p6835_p2 = scmp.lt.s32.totalorder %s6831_s22, %s8034_s8 }
  0x9c   :  { %p6836_p3 = scmp.lt.s32.totalorder %s6834_s29, %s6832_s13 }
  0x9e   :  { %p6837_p4 = por %p6836_p3, %p6835_p2 }
  0xa0   :  { %p6838_p5 = pnand %p6837_p4, %p6833_p1 }
  0xa2   :  { %6841 = shalt.err (!%p6838_p5)
}
  0xa3   :  { %228 = dma.hbm_to_vmem [thread:$0]  %s224_s28, 16, %s226_s15, [#allocation14]  }
  0xa4   :  { %s269_s18 = sshll.u32 %s8054_s30, 4  ;;  %s7942_s23 = smov [#allocation16]   ;;  %s270_s18 = int_to_ptr.hbm [resolvable:$true] %s269_s18 }
  0xa5   :  { %s246_s1 = sshll.u32 %s7942_s23, 4  ;;  %s6854_s2 = sshra.s32 %s8274_s16, 4  ;;  %s247_s1 = int_to_ptr.vmem [resolvable:$true] %s246_s1  ;;  %s6855_s2 = int_to_ptr.hbm [resolvable:$true] %s6854_s2 }
  0xa6   :  { %s6856_s21 = scalar_lea.hbm %s6855_s2, 96  ;;  %s6858_s7 = scalar_lea.hbm %s8044_s19, 96 }
  0xa7   :  { %p6857_p6 = scmp.ne.s32.totalorder %s6855_s2, %s6856_s21  ;;  %p6859_p7 = scmp.lt.s32.totalorder %s6855_s2, %s8044_s19 }
  0xa8   :  { %p6860_p8 = scmp.lt.s32.totalorder %s6858_s7, %s6856_s21 }
  0xaa   :  { %p6861_p9 = por %p6860_p8, %p6859_p7 }
  0xac   :  { %p6862_p10 = pnand %p6861_p9, %p6857_p6 }
  0xae   :  { %6865 = shalt.err (!%p6862_p10)
}
  0xaf   :  { %252 = dma.hbm_to_vmem [thread:$0]  %s8274_s16, 1536, %s247_s1, [#allocation17], %s7938_s26, %s7938_s26, %s7939_s0  }
  0xb0   :  { %s7943_s8 = smov [#allocation19]   ;;  %s293_s10 = sshll.u32 %s8064_s12, 4  ;;  %s294_s10 = int_to_ptr.hbm [resolvable:$true] %s293_s10 }
  0xb1   :  { %s271_s28 = sshll.u32 %s7943_s8, 4  ;;  %s6878_s11 = sshra.s32 %s270_s18, 4  ;;  %s272_s28 = int_to_ptr.vmem [resolvable:$true] %s271_s28  ;;  %s6879_s11 = int_to_ptr.hbm [resolvable:$true] %s6878_s11 }
  0xb2   :  { %s6880_s19 = scalar_lea.hbm %s6879_s11, 1  ;;  %s6882_s15 = scalar_lea.hbm %s8054_s30, 1 }
  0xb3   :  { %p6881_p11 = scmp.ne.s32.totalorder %s6879_s11, %s6880_s19  ;;  %p6883_p12 = scmp.lt.s32.totalorder %s6879_s11, %s8054_s30 }
  0xb4   :  { %p6884_p13 = scmp.lt.s32.totalorder %s6882_s15, %s6880_s19 }
  0xb6   :  { %p6885_p0 = por %p6884_p13, %p6883_p12 }
  0xb8   :  { %p6886_p1 = pnand %p6885_p0, %p6881_p11 }
  0xba   :  { %6889 = shalt.err (!%p6886_p1)
}
  0xbb   :  { %274 = dma.hbm_to_vmem [thread:$0]  %s270_s18, 16, %s272_s28, [#allocation20]  }
  0xbc   :  { %s314_s16 = sshll.u32 %s8074_s27, 4  ;;  %s7944_s22 = smov [#allocation22]   ;;  %s8290_s16 = int_to_ptr.hbm [resolvable:$true] %s314_s16 }
  0xbd   :  { %s295_s13 = sshll.u32 %s7944_s22, 4  ;;  %s6902_s29 = sshra.s32 %s294_s10, 4  ;;  %s296_s13 = int_to_ptr.vmem [resolvable:$true] %s295_s13  ;;  %s6903_s29 = int_to_ptr.hbm [resolvable:$true] %s6902_s29 }
  0xbe   :  { %s6904_s23 = scalar_lea.hbm %s6903_s29, 1  ;;  %s6906_s1 = scalar_lea.hbm %s8064_s12, 1 }
  0xbf   :  { %p6905_p2 = scmp.ne.s32.totalorder %s6903_s29, %s6904_s23  ;;  %p6907_p3 = scmp.lt.s32.totalorder %s6903_s29, %s8064_s12 }
  0xc0   :  { %p6908_p4 = scmp.lt.s32.totalorder %s6906_s1, %s6904_s23 }
  0xc2   :  { %p6909_p5 = por %p6908_p4, %p6907_p3 }
  0xc4   :  { %p6910_p6 = pnand %p6909_p5, %p6905_p2 }
  0xc6   :  { %6913 = shalt.err (!%p6910_p6)
}
  0xc7   :  { %298 = dma.hbm_to_vmem [thread:$0]  %s294_s10, 16, %s296_s13, [#allocation23]  }
  0xc8   :  { %s7945_s30 = smov [#allocation25]   ;;  %s339_s2 = sshll.u32 %s8084_s5, 4  ;;  %s340_s2 = int_to_ptr.hbm [resolvable:$true] %s339_s2 }
  0xc9   :  { %s316_s18 = sshll.u32 %s7945_s30, 4  ;;  %s6926_s21 = sshra.s32 %s8290_s16, 4  ;;  %s317_s18 = int_to_ptr.vmem [resolvable:$true] %s316_s18  ;;  %s6927_s21 = int_to_ptr.hbm [resolvable:$true] %s6926_s21 }
  0xca   :  { %s6928_s7 = scalar_lea.hbm %s6927_s21, 96  ;;  %s6930_s8 = scalar_lea.hbm %s8074_s27, 96 }
  0xcb   :  { %p6929_p7 = scmp.ne.s32.totalorder %s6927_s21, %s6928_s7  ;;  %p6931_p8 = scmp.lt.s32.totalorder %s6927_s21, %s8074_s27 }
  0xcc   :  { %p6932_p9 = scmp.lt.s32.totalorder %s6930_s8, %s6928_s7 }
  0xce   :  { %p6933_p10 = por %p6932_p9, %p6931_p8 }
  0xd0   :  { %p6934_p11 = pnand %p6933_p10, %p6929_p7 }
  0xd2   :  { %6937 = shalt.err (!%p6934_p11)
}
  0xd3   :  { %322 = dma.hbm_to_vmem [thread:$0]  %s8290_s16, 1536, %s317_s18, [#allocation26], %s7938_s26, %s7938_s26, %s7939_s0  }
  0xd4   :  { %s363_s12 = sshll.u32 %s8099_s4, 4  ;;  %s7946_s28 = smov [#allocation28]   ;;  %s364_s12 = int_to_ptr.hbm [resolvable:$true] %s363_s12 }
  0xd5   :  { %s341_s10 = sshll.u32 %s7946_s28, 4  ;;  %s6950_s11 = sshra.s32 %s340_s2, 4  ;;  %s342_s10 = int_to_ptr.vmem [resolvable:$true] %s341_s10  ;;  %s6951_s11 = int_to_ptr.hbm [resolvable:$true] %s6950_s11 }
  0xd6   :  { %s6952_s27 = scalar_lea.hbm %s6951_s11, 1  ;;  %s6954_s19 = scalar_lea.hbm %s8084_s5, 1 }
  0xd7   :  { %p6953_p12 = scmp.ne.s32.totalorder %s6951_s11, %s6952_s27  ;;  %p6955_p13 = scmp.lt.s32.totalorder %s6951_s11, %s8084_s5 }
  0xd8   :  { %p6956_p0 = scmp.lt.s32.totalorder %s6954_s19, %s6952_s27 }
  0xda   :  { %p6957_p1 = por %p6956_p0, %p6955_p13 }
  0xdc   :  { %p6958_p2 = pnand %p6957_p1, %p6953_p12 }
  0xde   :  { %6961 = shalt.err (!%p6958_p2)
}
  0xdf   :  { %344 = dma.hbm_to_vmem [thread:$0]  %s340_s2, 16, %s342_s10, [#allocation29]  }
  0xe0   :  { %s7947_s15 = smov [#allocation31]   ;;  %s387_s22 = sshll.u32 %s8114_s6, 4  ;;  %s388_s22 = int_to_ptr.hbm [resolvable:$true] %s387_s22 }
  0xe1   :  { %s365_s16 = sshll.u32 %s7947_s15, 4  ;;  %s6974_s13 = sshra.s32 %s364_s12, 4  ;;  %s366_s16 = int_to_ptr.vmem [resolvable:$true] %s365_s16  ;;  %s6975_s13 = int_to_ptr.hbm [resolvable:$true] %s6974_s13 }
  0xe2   :  { %s6976_s29 = scalar_lea.hbm %s6975_s13, 1  ;;  %s6978_s23 = scalar_lea.hbm %s8099_s4, 1 }
  0xe3   :  { %p6977_p3 = scmp.ne.s32.totalorder %s6975_s13, %s6976_s29  ;;  %p6979_p4 = scmp.lt.s32.totalorder %s6975_s13, %s8099_s4 }
  0xe4   :  { %p6980_p5 = scmp.lt.s32.totalorder %s6978_s23, %s6976_s29 }
  0xe6   :  { %p6981_p6 = por %p6980_p5, %p6979_p4 }
  0xe8   :  { %p6982_p7 = pnand %p6981_p6, %p6977_p3 }
  0xea   :  { %6985 = shalt.err (!%p6982_p7)
}
  0xeb   :  { %368 = dma.hbm_to_vmem [thread:$0]  %s364_s12, 16, %s366_s16, [#allocation32]  }
  0xec   :  { %s411_s5 = sshll.u32 %s8124_s24, 4  ;;  %s7948_s1 = smov [#allocation34]   ;;  %s412_s5 = int_to_ptr.hbm [resolvable:$true] %s411_s5 }
  0xed   :  { %s389_s30 = sshll.u32 %s7948_s1, 4  ;;  %s6998_s18 = sshra.s32 %s388_s22, 4  ;;  %s390_s30 = int_to_ptr.vmem [resolvable:$true] %s389_s30  ;;  %s6999_s18 = int_to_ptr.hbm [resolvable:$true] %s6998_s18 }
  0xee   :  { %s7000_s2 = scalar_lea.hbm %s6999_s18, 4  ;;  %s7002_s21 = scalar_lea.hbm %s8114_s6, 4 }
  0xef   :  { %p7001_p8 = scmp.ne.s32.totalorder %s6999_s18, %s7000_s2  ;;  %p7003_p9 = scmp.lt.s32.totalorder %s6999_s18, %s8114_s6 }
  0xf0   :  { %p7004_p10 = scmp.lt.s32.totalorder %s7002_s21, %s7000_s2 }
  0xf2   :  { %p7005_p11 = por %p7004_p10, %p7003_p9 }
  0xf4   :  { %p7006_p12 = pnand %p7005_p11, %p7001_p8 }
  0xf6   :  { %7009 = shalt.err (!%p7006_p12)
}
  0xf7   :  { %392 = dma.hbm_to_vmem [thread:$0]  %s388_s22, 64, %s390_s30, [#allocation35]  }
  0xf8   :  { %s7949_s4 = smov [#allocation37]   ;;  %s432_s8 = sshll.u32 %s8134_s3, 4  ;;  %s8312_s8 = int_to_ptr.hbm [resolvable:$true] %s432_s8 }
  0xf9   :  { %s413_s7 = sshll.u32 %s7949_s4, 4  ;;  %s7022_s12 = sshra.s32 %s412_s5, 4  ;;  %s414_s7 = int_to_ptr.vmem [resolvable:$true] %s413_s7  ;;  %s7023_s12 = int_to_ptr.hbm [resolvable:$true] %s7022_s12 }
  0xfa   :  { %s7024_s28 = scalar_lea.hbm %s7023_s12, 1  ;;  %s7026_s10 = scalar_lea.hbm %s8124_s24, 1 }
  0xfb   :  { %p7025_p13 = scmp.ne.s32.totalorder %s7023_s12, %s7024_s28  ;;  %p7027_p0 = scmp.lt.s32.totalorder %s7023_s12, %s8124_s24 }
  0xfc   :  { %p7028_p1 = scmp.lt.s32.totalorder %s7026_s10, %s7024_s28 }
  0xfe   :  { %p7029_p2 = por %p7028_p1, %p7027_p0 }
 0x100   :  { %p7030_p3 = pnand %p7029_p2, %p7025_p13 }
 0x102   :  { %7033 = shalt.err (!%p7030_p3)
}
 0x103   :  { %416 = dma.hbm_to_vmem [thread:$0]  %s412_s5, 16, %s414_s7, [#allocation38]  }
 0x104   :  { %s458_s6 = sshll.u32 %s8144_s25, 4  ;;  %s7950_s11 = smov [#allocation40]   ;;  %s8317_s6 = int_to_ptr.hbm [resolvable:$true] %s458_s6 }
 0x105   :  { %s434_s27 = sshll.u32 %s7950_s11, 4  ;;  %s7046_s19 = sshra.s32 %s8312_s8, 4  ;;  %s435_s27 = int_to_ptr.vmem [resolvable:$true] %s434_s27  ;;  %s7047_s19 = int_to_ptr.hbm [resolvable:$true] %s7046_s19 }
 0x106   :  { %s7048_s15 = scalar_lea.hbm %s7047_s19, 32  ;;  %s7050_s24 = scalar_lea.hbm %s8134_s3, 32 }
 0x107   :  { %p7049_p4 = scmp.ne.s32.totalorder %s7047_s19, %s7048_s15  ;;  %p7051_p5 = scmp.lt.s32.totalorder %s7047_s19, %s8134_s3 }
 0x108   :  { %p7052_p6 = scmp.lt.s32.totalorder %s7050_s24, %s7048_s15 }
 0x10a   :  { %p7053_p7 = por %p7052_p6, %p7051_p5 }
 0x10c   :  { %p7054_p8 = pnand %p7053_p7, %p7049_p4 }
 0x10e   :  { %7057 = shalt.err (!%p7054_p8)
}
 0x10f   :  { %s9469_s16 = sld [smem:[#allocation111_spill]]  ;;  %s7951_s22 = smov [#allocation43]  }
 0x110   :  { %440 = dma.hbm_to_vmem [thread:$0]  %s8312_s8, 512, %s435_s27, [#allocation41], %s7938_s26, %s7938_s26, %s7939_s0  }
 0x111   :  { %s460_s13 = sshll.u32 %s7951_s22, 4  ;;  %s7070_s3 = sshra.s32 %s8317_s6, 4  ;;  %s461_s13 = int_to_ptr.vmem [resolvable:$true] %s460_s13  ;;  %s7071_s3 = int_to_ptr.hbm [resolvable:$true] %s7070_s3 }
 0x112   :  { %s7072_s23 = scalar_lea.hbm %s7071_s3, 16  ;;  %s7074_s5 = scalar_lea.hbm %s8144_s25, 16 }
 0x113   :  { %p7073_p9 = scmp.ne.s32.totalorder %s7071_s3, %s7072_s23  ;;  %p7075_p10 = scmp.lt.s32.totalorder %s7071_s3, %s8144_s25 }
 0x114   :  { %p7076_p11 = scmp.lt.s32.totalorder %s7074_s5, %s7072_s23 }
 0x115   :  { %s484_s29 = sshll.u32 %s9469_s16, 4  ;;  %s8327_s29 = int_to_ptr.hbm [resolvable:$true] %s484_s29 }
 0x116   :  { %p7077_p12 = por %p7076_p11, %p7075_p10 }
 0x118   :  { %p7078_p13 = pnand %p7077_p12, %p7073_p9 }
 0x11a   :  { %7081 = shalt.err (!%p7078_p13)
}
 0x11b   :  { %s9470_s1 = sld [smem:[#allocation113_spill]]  ;;  %s7952_s18 = smov [#allocation46]  }
 0x11c   :  { %466 = dma.hbm_to_vmem [thread:$0]  %s8317_s6, 256, %s461_s13, [#allocation44], %s7938_s26, %s7938_s26, %s7939_s0  }
 0x11d   :  { %s486_s2 = sshll.u32 %s7952_s18, 4  ;;  %s7094_s25 = sshra.s32 %s8327_s29, 4  ;;  %s487_s2 = int_to_ptr.vmem [resolvable:$true] %s486_s2  ;;  %s7095_s25 = int_to_ptr.hbm [resolvable:$true] %s7094_s25 }
 0x11e   :  { %s7096_s21 = scalar_lea.hbm %s7095_s25, 8  ;;  %s7098_s4 = scalar_lea.hbm %s9469_s16, 8 }
 0x11f   :  { %p7097_p0 = scmp.ne.s32.totalorder %s7095_s25, %s7096_s21  ;;  %p7099_p1 = scmp.lt.s32.totalorder %s7095_s25, %s9469_s16 }
 0x120   :  { %p7100_p2 = scmp.lt.s32.totalorder %s7098_s4, %s7096_s21 }
 0x121   :  { %s510_s30 = sshll.u32 %s9470_s1, 4  ;;  %s8337_s30 = int_to_ptr.hbm [resolvable:$true] %s510_s30 }
 0x122   :  { %p7101_p3 = por %p7100_p2, %p7099_p1 }
 0x124   :  { %p7102_p4 = pnand %p7101_p3, %p7097_p0 }
 0x126   :  { %7105 = shalt.err (!%p7102_p4)
}
 0x127   :  { %s9471_s7 = sld [smem:[#allocation115_spill]]  ;;  %s7953_s8 = smov [#allocation49]  }
 0x128   :  { %492 = dma.hbm_to_vmem [thread:$0]  %s8327_s29, 128, %s487_s2, [#allocation47], %s7938_s26, %s7938_s26, %s7939_s0  }
 0x129   :  { %s512_s12 = sshll.u32 %s7953_s8, 4  ;;  %s7118_s10 = sshra.s32 %s8337_s30, 4  ;;  %s513_s12 = int_to_ptr.vmem [resolvable:$true] %s512_s12  ;;  %s7119_s10 = int_to_ptr.hbm [resolvable:$true] %s7118_s10 }
 0x12a   :  { %s7120_s6 = scalar_lea.hbm %s7119_s10, 16  ;;  %s7122_s11 = scalar_lea.hbm %s9470_s1, 16 }
 0x12b   :  { %p7121_p5 = scmp.ne.s32.totalorder %s7119_s10, %s7120_s6  ;;  %p7123_p6 = scmp.lt.s32.totalorder %s7119_s10, %s9470_s1 }
 0x12c   :  { %p7124_p7 = scmp.lt.s32.totalorder %s7122_s11, %s7120_s6 }
 0x12d   :  { %s536_s28 = sshll.u32 %s9471_s7, 4  ;;  %s8347_s28 = int_to_ptr.hbm [resolvable:$true] %s536_s28 }
 0x12e   :  { %p7125_p8 = por %p7124_p7, %p7123_p6 }
 0x130   :  { %p7126_p9 = pnand %p7125_p8, %p7121_p5 }
 0x132   :  { %7129 = shalt.err (!%p7126_p9)
}
 0x133   :  { %s9472_s27 = sld [smem:[#allocation117_spill]]  ;;  %s7954_s15 = smov [#allocation52]  }
 0x134   :  { %518 = dma.hbm_to_vmem [thread:$0]  %s8337_s30, 256, %s513_s12, [#allocation50], %s7938_s26, %s7938_s26, %s7939_s0  }
 0x135   :  { %s538_s24 = sshll.u32 %s7954_s15, 4  ;;  %s7142_s16 = sshra.s32 %s8347_s28, 4  ;;  %s539_s24 = int_to_ptr.vmem [resolvable:$true] %s538_s24  ;;  %s7143_s16 = int_to_ptr.hbm [resolvable:$true] %s7142_s16 }
 0x136   :  { %s7144_s22 = scalar_lea.hbm %s7143_s16, 32  ;;  %s7146_s13 = scalar_lea.hbm %s9471_s7, 32 }
 0x137   :  { %p7145_p10 = scmp.ne.s32.totalorder %s7143_s16, %s7144_s22  ;;  %p7147_p11 = scmp.lt.s32.totalorder %s7143_s16, %s9471_s7 }
 0x138   :  { %p7148_p12 = scmp.lt.s32.totalorder %s7146_s13, %s7144_s22 }
 0x139   :  { %s562_s19 = sshll.u32 %s9472_s27, 4  ;;  %s8357_s19 = int_to_ptr.hbm [resolvable:$true] %s562_s19 }
 0x13a   :  { %p7149_p13 = por %p7148_p12, %p7147_p11 }
 0x13c   :  { %p7150_p0 = pnand %p7149_p13, %p7145_p10 }
 0x13e   :  { %7153 = shalt.err (!%p7150_p0)
}
 0x13f   :  { %s9473_s29 = sld [smem:[#allocation119_spill]]  ;;  %s7955_s3 = smov [#allocation55]  }
 0x140   :  { %544 = dma.hbm_to_vmem [thread:$0]  %s8347_s28, 512, %s539_s24, [#allocation53], %s7938_s26, %s7938_s26, %s7939_s0  }
 0x141   :  { %s564_s23 = sshll.u32 %s7955_s3, 4  ;;  %s7166_s1 = sshra.s32 %s8357_s19, 4  ;;  %s565_s23 = int_to_ptr.vmem [resolvable:$true] %s564_s23  ;;  %s7167_s1 = int_to_ptr.hbm [resolvable:$true] %s7166_s1 }
 0x142   :  { %s7168_s30 = scalar_lea.hbm %s7167_s1, 16  ;;  %s7170_s18 = scalar_lea.hbm %s9472_s27, 16 }
 0x143   :  { %p7169_p1 = scmp.ne.s32.totalorder %s7167_s1, %s7168_s30  ;;  %p7171_p2 = scmp.lt.s32.totalorder %s7167_s1, %s9472_s27 }
 0x144   :  { %p7172_p3 = scmp.lt.s32.totalorder %s7170_s18, %s7168_s30 }
 0x145   :  { %s589_s5 = sshll.u32 %s9473_s29, 4  ;;  %s590_s5 = int_to_ptr.hbm [resolvable:$true] %s589_s5 }
 0x146   :  { %p7173_p4 = por %p7172_p3, %p7171_p2 }
 0x148   :  { %p7174_p5 = pnand %p7173_p4, %p7169_p1 }
 0x14a   :  { %7177 = shalt.err (!%p7174_p5)
}
 0x14b   :  { %s9474_s2 = sld [smem:[#allocation121_spill]]  ;;  %s7956_s21 = smov [#allocation58]  }
 0x14c   :  { %570 = dma.hbm_to_vmem [thread:$0]  %s8357_s19, 256, %s565_s23, [#allocation56], %s7938_s26, %s7938_s26, %s7939_s0  }
 0x14d   :  { %s591_s4 = sshll.u32 %s7956_s21, 4  ;;  %s7190_s7 = sshra.s32 %s590_s5, 4  ;;  %s592_s4 = int_to_ptr.vmem [resolvable:$true] %s591_s4  ;;  %s7191_s7 = int_to_ptr.hbm [resolvable:$true] %s7190_s7 }
 0x14e   :  { %s7192_s8 = scalar_lea.hbm %s7191_s7, 4  ;;  %s7194_s12 = scalar_lea.hbm %s9473_s29, 4 }
 0x14f   :  { %p7193_p6 = scmp.ne.s32.totalorder %s7191_s7, %s7192_s8  ;;  %p7195_p7 = scmp.lt.s32.totalorder %s7191_s7, %s9473_s29 }
 0x150   :  { %p7196_p8 = scmp.lt.s32.totalorder %s7194_s12, %s7192_s8 }
 0x151   :  { %s610_s25 = sshll.u32 %s9474_s2, 4  ;;  %s8375_s25 = int_to_ptr.hbm [resolvable:$true] %s610_s25 }
 0x152   :  { %p7197_p9 = por %p7196_p8, %p7195_p7 }
 0x154   :  { %p7198_p10 = pnand %p7197_p9, %p7193_p6 }
 0x156   :  { %7201 = shalt.err (!%p7198_p10)
}
 0x157   :  { %594 = dma.hbm_to_vmem [thread:$0]  %s590_s5, 64, %s592_s4, [#allocation59]  }
 0x158   :  { %s9475_s28 = sld [smem:[#allocation123_spill]]  ;;  %s7957_s10 = smov [#allocation61]  }
 0x159   :  { %s612_s6 = sshll.u32 %s7957_s10, 4  ;;  %s7214_s27 = sshra.s32 %s8375_s25, 4  ;;  %s613_s6 = int_to_ptr.vmem [resolvable:$true] %s612_s6  ;;  %s7215_s27 = int_to_ptr.hbm [resolvable:$true] %s7214_s27 }
 0x15a   :  { %s7216_s19 = scalar_lea.hbm %s7215_s27, 8  ;;  %s7218_s15 = scalar_lea.hbm %s9474_s2, 8 }
 0x15b   :  { %p7217_p11 = scmp.ne.s32.totalorder %s7215_s27, %s7216_s19  ;;  %p7219_p12 = scmp.lt.s32.totalorder %s7215_s27, %s9474_s2 }
 0x15c   :  { %p7220_p13 = scmp.lt.s32.totalorder %s7218_s15, %s7216_s19 }
 0x15e   :  { %s636_s11 = sshll.u32 %s9475_s28, 4  ;;  %p7221_p0 = por %p7220_p13, %p7219_p12  ;;  %s8380_s11 = int_to_ptr.hbm [resolvable:$true] %s636_s11 }
 0x160   :  { %p7222_p1 = pnand %p7221_p0, %p7217_p11 }
 0x162   :  { %7225 = shalt.err (!%p7222_p1)
}
 0x163   :  { %s9476_s24 = sld [smem:[#allocation125_spill]]  ;;  %s7958_s22 = smov [#allocation64]  }
 0x164   :  { %618 = dma.hbm_to_vmem [thread:$0]  %s8375_s25, 128, %s613_s6, [#allocation62], %s7938_s26, %s7938_s26, %s7939_s0  }
 0x165   :  { %s638_s13 = sshll.u32 %s7958_s22, 4  ;;  %s7238_s29 = sshra.s32 %s8380_s11, 4  ;;  %s639_s13 = int_to_ptr.vmem [resolvable:$true] %s638_s13  ;;  %s7239_s29 = int_to_ptr.hbm [resolvable:$true] %s7238_s29 }
 0x166   :  { %s7240_s3 = scalar_lea.hbm %s7239_s29, 32  ;;  %s7242_s23 = scalar_lea.hbm %s9475_s28, 32 }
 0x167   :  { %p7241_p2 = scmp.ne.s32.totalorder %s7239_s29, %s7240_s3  ;;  %p7243_p3 = scmp.lt.s32.totalorder %s7239_s29, %s9475_s28 }
 0x168   :  { %p7244_p4 = scmp.lt.s32.totalorder %s7242_s23, %s7240_s3 }
 0x169   :  { %s662_s16 = sshll.u32 %s9476_s24, 4  ;;  %s8390_s16 = int_to_ptr.hbm [resolvable:$true] %s662_s16 }
 0x16a   :  { %p7245_p5 = por %p7244_p4, %p7243_p3 }
 0x16c   :  { %p7246_p6 = pnand %p7245_p5, %p7241_p2 }
 0x16e   :  { %7249 = shalt.err (!%p7246_p6)
}
 0x16f   :  { %s9477_s5 = sld [smem:[#allocation94_spill]]  ;;  %s7959_s1 = smov [#allocation67]  }
 0x170   :  { %644 = dma.hbm_to_vmem [thread:$0]  %s8380_s11, 512, %s639_s13, [#allocation65], %s7938_s26, %s7938_s26, %s7939_s0  }
 0x171   :  { %s664_s30 = sshll.u32 %s7959_s1, 4  ;;  %s7262_s2 = sshra.s32 %s8390_s16, 4  ;;  %s665_s30 = int_to_ptr.vmem [resolvable:$true] %s664_s30  ;;  %s7263_s2 = int_to_ptr.hbm [resolvable:$true] %s7262_s2 }
 0x172   :  { %s7264_s25 = scalar_lea.hbm %s7263_s2, 16  ;;  %s7266_s21 = scalar_lea.hbm %s9476_s24, 16 }
 0x173   :  { %p7265_p7 = scmp.ne.s32.totalorder %s7263_s2, %s7264_s25  ;;  %p7267_p8 = scmp.lt.s32.totalorder %s7263_s2, %s9476_s24 }
 0x174   :  { %p7268_p9 = scmp.lt.s32.totalorder %s7266_s21, %s7264_s25 }
 0x175   :  { %s139_s18 = sshll.u32 %s9477_s5, 4  ;;  %s8400_s18 = int_to_ptr.hbm [resolvable:$true] %s139_s18 }
 0x176   :  { %p7269_p10 = por %p7268_p9, %p7267_p8 }
 0x178   :  { %p7270_p11 = pnand %p7269_p10, %p7265_p7 }
 0x17a   :  { %7273 = shalt.err (!%p7270_p11)
}
 0x17b   :  { %s9478_s4 = sld [smem:[#allocation95_spill]]  ;;  %s7960_s8 = smov [#allocation2]  }
 0x17c   :  { %670 = dma.hbm_to_vmem [thread:$0]  %s8390_s16, 256, %s665_s30, [#allocation68], %s7938_s26, %s7938_s26, %s7939_s0  }
 0x17d   :  { %s141_s12 = sshll.u32 %s7960_s8, 4  ;;  %s7286_s28 = sshra.s32 %s8400_s18, 4  ;;  %s142_s12 = int_to_ptr.vmem [resolvable:$true] %s141_s12  ;;  %s7287_s28 = int_to_ptr.hbm [resolvable:$true] %s7286_s28 }
 0x17e   :  { %s7288_s10 = scalar_lea.hbm %s7287_s28, 72  ;;  %s7290_s6 = scalar_lea.hbm %s9477_s5, 72 }
 0x17f   :  { %p7289_p12 = scmp.ne.s32.totalorder %s7287_s28, %s7288_s10  ;;  %p7291_p13 = scmp.lt.s32.totalorder %s7287_s28, %s9477_s5 }
 0x180   :  { %p7292_p0 = scmp.lt.s32.totalorder %s7290_s6, %s7288_s10 }
 0x181   :  { %s164_s7 = sshll.u32 %s9478_s4, 4  ;;  %s165_s7 = int_to_ptr.hbm [resolvable:$true] %s164_s7 }
 0x182   :  { %p7293_p1 = por %p7292_p0, %p7291_p13 }
 0x184   :  { %p7294_p2 = pnand %p7293_p1, %p7289_p12 }
 0x186   :  { %7297 = shalt.err (!%p7294_p2)
}
 0x187   :  { %s9479_s11 = sld [smem:[#allocation96_spill]]  ;;  %s7961_s27 = smov [#allocation6]  }
 0x188   :  { %147 = dma.hbm_to_vmem [thread:$0]  %s8400_s18, 1152, %s142_s12, [#allocation3], %s7938_s26, %s7938_s26, %s7939_s0  }
 0x189   :  { %s166_s19 = sshll.u32 %s7961_s27, 4  ;;  %s7310_s24 = sshra.s32 %s165_s7, 4  ;;  %s167_s19 = int_to_ptr.vmem [resolvable:$true] %s166_s19  ;;  %s7311_s24 = int_to_ptr.hbm [resolvable:$true] %s7310_s24 }
 0x18a   :  { %s7312_s16 = scalar_lea.hbm %s7311_s24, 1  ;;  %s7314_s22 = scalar_lea.hbm %s9478_s4, 1 }
 0x18b   :  { %p7313_p3 = scmp.ne.s32.totalorder %s7311_s24, %s7312_s16  ;;  %p7315_p4 = scmp.lt.s32.totalorder %s7311_s24, %s9478_s4 }
 0x18c   :  { %p7316_p5 = scmp.lt.s32.totalorder %s7314_s22, %s7312_s16 }
 0x18d   :  { %s188_s15 = sshll.u32 %s9479_s11, 4  ;;  %s189_s15 = int_to_ptr.hbm [resolvable:$true] %s188_s15 }
 0x18e   :  { %p7317_p6 = por %p7316_p5, %p7315_p4 }
 0x190   :  { %p7318_p7 = pnand %p7317_p6, %p7313_p3 }
 0x192   :  { %7321 = shalt.err (!%p7318_p7)
}
 0x193   :  { %169 = dma.hbm_to_vmem [thread:$0]  %s165_s7, 16, %s167_s19, [#allocation5]  }
 0x194   :  { %s9480_s13 = sld [smem:[#allocation97_spill]]  ;;  %s7962_s3 = smov [#allocation9]  }
 0x195   :  { %s190_s23 = sshll.u32 %s7962_s3, 4  ;;  %s7334_s5 = sshra.s32 %s189_s15, 4  ;;  %s191_s23 = int_to_ptr.vmem [resolvable:$true] %s190_s23  ;;  %s7335_s5 = int_to_ptr.hbm [resolvable:$true] %s7334_s5 }
 0x196   :  { %s7336_s1 = scalar_lea.hbm %s7335_s5, 1  ;;  %s7338_s30 = scalar_lea.hbm %s9479_s11, 1 }
 0x197   :  { %p7337_p8 = scmp.ne.s32.totalorder %s7335_s5, %s7336_s1  ;;  %p7339_p9 = scmp.lt.s32.totalorder %s7335_s5, %s9479_s11 }
 0x198   :  { %p7340_p10 = scmp.lt.s32.totalorder %s7338_s30, %s7336_s1 }
 0x19a   :  { %s209_s29 = sshll.u32 %s9480_s13, 4  ;;  %p7341_p11 = por %p7340_p10, %p7339_p9  ;;  %s8421_s29 = int_to_ptr.hbm [resolvable:$true] %s209_s29 }
 0x19c   :  { %p7342_p12 = pnand %p7341_p11, %p7337_p8 }
 0x19e   :  { %7345 = shalt.err (!%p7342_p12)
}
 0x19f   :  { %193 = dma.hbm_to_vmem [thread:$0]  %s189_s15, 16, %s191_s23, [#allocation8]  }
 0x1a0   :  { %s9481_s18 = sld [smem:[#allocation98_spill]]  ;;  %s7963_s2 = smov [#allocation12]  }
 0x1a1   :  { %s211_s25 = sshll.u32 %s7963_s2, 4  ;;  %s7358_s4 = sshra.s32 %s8421_s29, 4  ;;  %s212_s25 = int_to_ptr.vmem [resolvable:$true] %s211_s25  ;;  %s7359_s4 = int_to_ptr.hbm [resolvable:$true] %s7358_s4 }
 0x1a2   :  { %s7360_s7 = scalar_lea.hbm %s7359_s4, 48  ;;  %s7362_s8 = scalar_lea.hbm %s9480_s13, 48 }
 0x1a3   :  { %p7361_p13 = scmp.ne.s32.totalorder %s7359_s4, %s7360_s7  ;;  %p7363_p0 = scmp.lt.s32.totalorder %s7359_s4, %s9480_s13 }
 0x1a4   :  { %p7364_p1 = scmp.lt.s32.totalorder %s7362_s8, %s7360_s7 }
 0x1a6   :  { %s234_s21 = sshll.u32 %s9481_s18, 4  ;;  %p7365_p2 = por %p7364_p1, %p7363_p0  ;;  %s235_s21 = int_to_ptr.hbm [resolvable:$true] %s234_s21 }
 0x1a8   :  { %p7366_p3 = pnand %p7365_p2, %p7361_p13 }
 0x1aa   :  { %7369 = shalt.err (!%p7366_p3)
}
 0x1ab   :  { %s9482_s12 = sld [smem:[#allocation99_spill]]  ;;  %s7964_s10 = smov [#allocation15]  }
 0x1ac   :  { %217 = dma.hbm_to_vmem [thread:$0]  %s8421_s29, 768, %s212_s25, [#allocation11], %s7938_s26, %s7938_s26, %s7939_s0  }
 0x1ad   :  { %s236_s6 = sshll.u32 %s7964_s10, 4  ;;  %s7382_s11 = sshra.s32 %s235_s21, 4  ;;  %s237_s6 = int_to_ptr.vmem [resolvable:$true] %s236_s6  ;;  %s7383_s11 = int_to_ptr.hbm [resolvable:$true] %s7382_s11 }
 0x1ae   :  { %s7384_s27 = scalar_lea.hbm %s7383_s11, 1  ;;  %s7386_s19 = scalar_lea.hbm %s9481_s18, 1 }
 0x1af   :  { %p7385_p4 = scmp.ne.s32.totalorder %s7383_s11, %s7384_s27  ;;  %p7387_p5 = scmp.lt.s32.totalorder %s7383_s11, %s9481_s18 }
 0x1b0   :  { %p7388_p6 = scmp.lt.s32.totalorder %s7386_s19, %s7384_s27 }
 0x1b1   :  { %s258_s28 = sshll.u32 %s9482_s12, 4  ;;  %s259_s28 = int_to_ptr.hbm [resolvable:$true] %s258_s28 }
 0x1b2   :  { %p7389_p7 = por %p7388_p6, %p7387_p5 }
 0x1b4   :  { %p7390_p8 = pnand %p7389_p7, %p7385_p4 }
 0x1b6   :  { %7393 = shalt.err (!%p7390_p8)
}
 0x1b7   :  { %239 = dma.hbm_to_vmem [thread:$0]  %s235_s21, 16, %s237_s6, [#allocation14]  }
 0x1b8   :  { %s9483_s15 = sld [smem:[#allocation100_spill]]  ;;  %s7965_s24 = smov [#allocation18]  }
 0x1b9   :  { %s260_s16 = sshll.u32 %s7965_s24, 4  ;;  %s7406_s13 = sshra.s32 %s259_s28, 4  ;;  %s261_s16 = int_to_ptr.vmem [resolvable:$true] %s260_s16  ;;  %s7407_s13 = int_to_ptr.hbm [resolvable:$true] %s7406_s13 }
 0x1ba   :  { %s7408_s29 = scalar_lea.hbm %s7407_s13, 1  ;;  %s7410_s3 = scalar_lea.hbm %s9482_s12, 1 }
 0x1bb   :  { %p7409_p9 = scmp.ne.s32.totalorder %s7407_s13, %s7408_s29  ;;  %p7411_p10 = scmp.lt.s32.totalorder %s7407_s13, %s9482_s12 }
 0x1bc   :  { %p7412_p11 = scmp.lt.s32.totalorder %s7410_s3, %s7408_s29 }
 0x1be   :  { %s279_s22 = sshll.u32 %s9483_s15, 4  ;;  %p7413_p12 = por %p7412_p11, %p7411_p10  ;;  %s8437_s22 = int_to_ptr.hbm [resolvable:$true] %s279_s22 }
 0x1c0   :  { %p7414_p13 = pnand %p7413_p12, %p7409_p9 }
 0x1c2   :  { %7417 = shalt.err (!%p7414_p13)
}
 0x1c3   :  { %263 = dma.hbm_to_vmem [thread:$0]  %s259_s28, 16, %s261_s16, [#allocation17]  }
 0x1c4   :  { %s9484_s23 = sld [smem:[#allocation101_spill]]  ;;  %s7966_s1 = smov [#allocation21]  }
 0x1c5   :  { %s281_s30 = sshll.u32 %s7966_s1, 4  ;;  %s7430_s18 = sshra.s32 %s8437_s22, 4  ;;  %s282_s30 = int_to_ptr.vmem [resolvable:$true] %s281_s30  ;;  %s7431_s18 = int_to_ptr.hbm [resolvable:$true] %s7430_s18 }
 0x1c6   :  { %s7432_s2 = scalar_lea.hbm %s7431_s18, 48  ;;  %s7434_s25 = scalar_lea.hbm %s9483_s15, 48 }
 0x1c7   :  { %p7433_p0 = scmp.ne.s32.totalorder %s7431_s18, %s7432_s2  ;;  %p7435_p1 = scmp.lt.s32.totalorder %s7431_s18, %s9483_s15 }
 0x1c8   :  { %p7436_p2 = scmp.lt.s32.totalorder %s7434_s25, %s7432_s2 }
 0x1ca   :  { %s304_s5 = sshll.u32 %s9484_s23, 4  ;;  %p7437_p3 = por %p7436_p2, %p7435_p1  ;;  %s305_s5 = int_to_ptr.hbm [resolvable:$true] %s304_s5 }
 0x1cc   :  { %p7438_p4 = pnand %p7437_p3, %p7433_p0 }
 0x1ce   :  { %7441 = shalt.err (!%p7438_p4)
}
 0x1cf   :  { %s9485_s21 = sld [smem:[#allocation102_spill]]  ;;  %s7967_s4 = smov [#allocation24]  }
 0x1d0   :  { %287 = dma.hbm_to_vmem [thread:$0]  %s8437_s22, 768, %s282_s30, [#allocation20], %s7938_s26, %s7938_s26, %s7939_s0  }
 0x1d1   :  { %s306_s7 = sshll.u32 %s7967_s4, 4  ;;  %s7454_s12 = sshra.s32 %s305_s5, 4  ;;  %s307_s7 = int_to_ptr.vmem [resolvable:$true] %s306_s7  ;;  %s7455_s12 = int_to_ptr.hbm [resolvable:$true] %s7454_s12 }
 0x1d2   :  { %s7456_s28 = scalar_lea.hbm %s7455_s12, 1  ;;  %s7458_s10 = scalar_lea.hbm %s9484_s23, 1 }
 0x1d3   :  { %p7457_p5 = scmp.ne.s32.totalorder %s7455_s12, %s7456_s28  ;;  %p7459_p6 = scmp.lt.s32.totalorder %s7455_s12, %s9484_s23 }
 0x1d4   :  { %p7460_p7 = scmp.lt.s32.totalorder %s7458_s10, %s7456_s28 }
 0x1d5   :  { %s328_s8 = sshll.u32 %s9485_s21, 4  ;;  %s329_s8 = int_to_ptr.hbm [resolvable:$true] %s328_s8 }
 0x1d6   :  { %p7461_p8 = por %p7460_p7, %p7459_p6 }
 0x1d8   :  { %p7462_p9 = pnand %p7461_p8, %p7457_p5 }
 0x1da   :  { %7465 = shalt.err (!%p7462_p9)
}
 0x1db   :  { %309 = dma.hbm_to_vmem [thread:$0]  %s305_s5, 16, %s307_s7, [#allocation23]  }
 0x1dc   :  { %s9486_s6 = sld [smem:[#allocation104_spill]]  ;;  %s7968_s27 = smov [#allocation27]  }
 0x1dd   :  { %s330_s19 = sshll.u32 %s7968_s27, 4  ;;  %s7478_s15 = sshra.s32 %s329_s8, 4  ;;  %s331_s19 = int_to_ptr.vmem [resolvable:$true] %s330_s19  ;;  %s7479_s15 = int_to_ptr.hbm [resolvable:$true] %s7478_s15 }
 0x1de   :  { %s7480_s24 = scalar_lea.hbm %s7479_s15, 1  ;;  %s7482_s16 = scalar_lea.hbm %s9485_s21, 1 }
 0x1df   :  { %p7481_p10 = scmp.ne.s32.totalorder %s7479_s15, %s7480_s24  ;;  %p7483_p11 = scmp.lt.s32.totalorder %s7479_s15, %s9485_s21 }
 0x1e0   :  { %p7484_p12 = scmp.lt.s32.totalorder %s7482_s16, %s7480_s24 }
 0x1e2   :  { %s352_s11 = sshll.u32 %s9486_s6, 4  ;;  %p7485_p13 = por %p7484_p12, %p7483_p11  ;;  %s353_s11 = int_to_ptr.hbm [resolvable:$true] %s352_s11 }
 0x1e4   :  { %p7486_p0 = pnand %p7485_p13, %p7481_p10 }
 0x1e6   :  { %7489 = shalt.err (!%p7486_p0)
}
 0x1e7   :  { %333 = dma.hbm_to_vmem [thread:$0]  %s329_s8, 16, %s331_s19, [#allocation26]  }
 0x1e8   :  { %s9487_s22 = sld [smem:[#allocation106_spill]]  ;;  %s7969_s13 = smov [#allocation30]  }
 0x1e9   :  { %s354_s29 = sshll.u32 %s7969_s13, 4  ;;  %s7502_s23 = sshra.s32 %s353_s11, 4  ;;  %s355_s29 = int_to_ptr.vmem [resolvable:$true] %s354_s29  ;;  %s7503_s23 = int_to_ptr.hbm [resolvable:$true] %s7502_s23 }
 0x1ea   :  { %s7504_s5 = scalar_lea.hbm %s7503_s23, 1  ;;  %s7506_s1 = scalar_lea.hbm %s9486_s6, 1 }
 0x1eb   :  { %p7505_p1 = scmp.ne.s32.totalorder %s7503_s23, %s7504_s5  ;;  %p7507_p2 = scmp.lt.s32.totalorder %s7503_s23, %s9486_s6 }
 0x1ec   :  { %p7508_p3 = scmp.lt.s32.totalorder %s7506_s1, %s7504_s5 }
 0x1ee   :  { %s376_s3 = sshll.u32 %s9487_s22, 4  ;;  %p7509_p4 = por %p7508_p3, %p7507_p2  ;;  %s377_s3 = int_to_ptr.hbm [resolvable:$true] %s376_s3 }
 0x1f0   :  { %p7510_p5 = pnand %p7509_p4, %p7505_p1 }
 0x1f2   :  { %7513 = shalt.err (!%p7510_p5)
}
 0x1f3   :  { %357 = dma.hbm_to_vmem [thread:$0]  %s353_s11, 16, %s355_s29, [#allocation29]  }
 0x1f4   :  { %s9488_s30 = sld [smem:[#allocation107_spill]]  ;;  %s7970_s2 = smov [#allocation33]  }
 0x1f5   :  { %s378_s25 = sshll.u32 %s7970_s2, 4  ;;  %s7526_s21 = sshra.s32 %s377_s3, 4  ;;  %s379_s25 = int_to_ptr.vmem [resolvable:$true] %s378_s25  ;;  %s7527_s21 = int_to_ptr.hbm [resolvable:$true] %s7526_s21 }
 0x1f6   :  { %s7528_s4 = scalar_lea.hbm %s7527_s21, 4  ;;  %s7530_s7 = scalar_lea.hbm %s9487_s22, 4 }
 0x1f7   :  { %p7529_p6 = scmp.ne.s32.totalorder %s7527_s21, %s7528_s4  ;;  %p7531_p7 = scmp.lt.s32.totalorder %s7527_s21, %s9487_s22 }
 0x1f8   :  { %p7532_p8 = scmp.lt.s32.totalorder %s7530_s7, %s7528_s4 }
 0x1fa   :  { %s397_s18 = sshll.u32 %s9488_s30, 4  ;;  %p7533_p9 = por %p7532_p8, %p7531_p7  ;;  %s8459_s18 = int_to_ptr.hbm [resolvable:$true] %s397_s18 }
 0x1fc   :  { %p7534_p10 = pnand %p7533_p9, %p7529_p6 }
 0x1fe   :  { %7537 = shalt.err (!%p7534_p10)
}
 0x1ff   :  { %381 = dma.hbm_to_vmem [thread:$0]  %s377_s3, 64, %s379_s25, [#allocation32]  }
 0x200   :  { %s9489_s8 = sld [smem:[#allocation108_spill]]  ;;  %s7971_s12 = smov [#allocation36]  }
 0x201   :  { %s399_s28 = sshll.u32 %s7971_s12, 4  ;;  %s7550_s6 = sshra.s32 %s8459_s18, 4  ;;  %s400_s28 = int_to_ptr.vmem [resolvable:$true] %s399_s28  ;;  %s7551_s6 = int_to_ptr.hbm [resolvable:$true] %s7550_s6 }
 0x202   :  { %s7552_s11 = scalar_lea.hbm %s7551_s6, 768  ;;  %s7554_s27 = scalar_lea.hbm %s9488_s30, 768 }
 0x203   :  { %p7553_p11 = scmp.ne.s32.totalorder %s7551_s6, %s7552_s11  ;;  %p7555_p12 = scmp.lt.s32.totalorder %s7551_s6, %s9488_s30 }
 0x204   :  { %p7556_p13 = scmp.lt.s32.totalorder %s7554_s27, %s7552_s11 }
 0x206   :  { %s422_s10 = sshll.u32 %s9489_s8, 4  ;;  %p7557_p0 = por %p7556_p13, %p7555_p12  ;;  %s423_s10 = int_to_ptr.hbm [resolvable:$true] %s422_s10 }
 0x208   :  { %p7558_p1 = pnand %p7557_p0, %p7553_p11 }
 0x20a   :  { %7561 = shalt.err (!%p7558_p1)
}
 0x20b   :  { %s9490_s19 = sld [smem:[#allocation109_spill]]  ;;  %s7972_s24 = smov [#allocation39]  }
 0x20c   :  { %405 = dma.hbm_to_vmem [thread:$0]  %s8459_s18, 12288, %s400_s28, [#allocation35], %s7938_s26, %s7938_s26, %s7939_s0  }
 0x20d   :  { %s424_s16 = sshll.u32 %s7972_s24, 4  ;;  %s7574_s22 = sshra.s32 %s423_s10, 4  ;;  %s425_s16 = int_to_ptr.vmem [resolvable:$true] %s424_s16  ;;  %s7575_s22 = int_to_ptr.hbm [resolvable:$true] %s7574_s22 }
 0x20e   :  { %s7576_s13 = scalar_lea.hbm %s7575_s22, 1  ;;  %s7578_s29 = scalar_lea.hbm %s9489_s8, 1 }
 0x20f   :  { %p7577_p2 = scmp.ne.s32.totalorder %s7575_s22, %s7576_s13  ;;  %p7579_p3 = scmp.lt.s32.totalorder %s7575_s22, %s9489_s8 }
 0x210   :  { %p7580_p4 = scmp.lt.s32.totalorder %s7578_s29, %s7576_s13 }
 0x211   :  { %s445_s15 = sshll.u32 %s9490_s19, 4  ;;  %s8472_s15 = int_to_ptr.hbm [resolvable:$true] %s445_s15 }
 0x212   :  { %p7581_p5 = por %p7580_p4, %p7579_p3 }
 0x214   :  { %p7582_p6 = pnand %p7581_p5, %p7577_p2 }
 0x216   :  { %7585 = shalt.err (!%p7582_p6)
}
 0x217   :  { %427 = dma.hbm_to_vmem [thread:$0]  %s423_s10, 16, %s425_s16, [#allocation38]  }
 0x218   :  { %s9491_s3 = sld [smem:[#allocation110_spill]]  ;;  %s7973_s23 = smov [#allocation42]  }
 0x219   :  { %s447_s5 = sshll.u32 %s7973_s23, 4  ;;  %s7598_s30 = sshra.s32 %s8472_s15, 4  ;;  %s448_s5 = int_to_ptr.vmem [resolvable:$true] %s447_s5  ;;  %s7599_s30 = int_to_ptr.hbm [resolvable:$true] %s7598_s30 }
 0x21a   :  { %s7600_s18 = scalar_lea.hbm %s7599_s30, 32  ;;  %s7602_s2 = scalar_lea.hbm %s9490_s19, 32 }
 0x21b   :  { %p7601_p7 = scmp.ne.s32.totalorder %s7599_s30, %s7600_s18  ;;  %p7603_p8 = scmp.lt.s32.totalorder %s7599_s30, %s9490_s19 }
 0x21c   :  { %p7604_p9 = scmp.lt.s32.totalorder %s7602_s2, %s7600_s18 }
 0x21e   :  { %s471_s1 = sshll.u32 %s9491_s3, 4  ;;  %p7605_p10 = por %p7604_p9, %p7603_p8  ;;  %s8477_s1 = int_to_ptr.hbm [resolvable:$true] %s471_s1 }
 0x220   :  { %p7606_p11 = pnand %p7605_p10, %p7601_p7 }
 0x222   :  { %7609 = shalt.err (!%p7606_p11)
}
 0x223   :  { %s9492_s25 = sld [smem:[#allocation112_spill]]  ;;  %s7974_s4 = smov [#allocation45]  }
 0x224   :  { %453 = dma.hbm_to_vmem [thread:$0]  %s8472_s15, 512, %s448_s5, [#allocation41], %s7938_s26, %s7938_s26, %s7939_s0  }
 0x225   :  { %s473_s7 = sshll.u32 %s7974_s4, 4  ;;  %s7622_s8 = sshra.s32 %s8477_s1, 4  ;;  %s474_s7 = int_to_ptr.vmem [resolvable:$true] %s473_s7  ;;  %s7623_s8 = int_to_ptr.hbm [resolvable:$true] %s7622_s8 }
 0x226   :  { %s7624_s12 = scalar_lea.hbm %s7623_s8, 16  ;;  %s7626_s28 = scalar_lea.hbm %s9491_s3, 16 }
 0x227   :  { %p7625_p12 = scmp.ne.s32.totalorder %s7623_s8, %s7624_s12  ;;  %p7627_p13 = scmp.lt.s32.totalorder %s7623_s8, %s9491_s3 }
 0x228   :  { %p7628_p0 = scmp.lt.s32.totalorder %s7626_s28, %s7624_s12 }
 0x229   :  { %s497_s21 = sshll.u32 %s9492_s25, 4  ;;  %s8487_s21 = int_to_ptr.hbm [resolvable:$true] %s497_s21 }
 0x22a   :  { %p7629_p1 = por %p7628_p0, %p7627_p13 }
 0x22c   :  { %p7630_p2 = pnand %p7629_p1, %p7625_p12 }
 0x22e   :  { %7633 = shalt.err (!%p7630_p2)
}
 0x22f   :  { %s9493_s10 = sld [smem:[#allocation114_spill]]  ;;  %s7975_s6 = smov [#allocation48]  }
 0x230   :  { %479 = dma.hbm_to_vmem [thread:$0]  %s8477_s1, 256, %s474_s7, [#allocation44], %s7938_s26, %s7938_s26, %s7939_s0  }
 0x231   :  { %s499_s11 = sshll.u32 %s7975_s6, 4  ;;  %s7646_s19 = sshra.s32 %s8487_s21, 4  ;;  %s500_s11 = int_to_ptr.vmem [resolvable:$true] %s499_s11  ;;  %s7647_s19 = int_to_ptr.hbm [resolvable:$true] %s7646_s19 }
 0x232   :  { %s7648_s15 = scalar_lea.hbm %s7647_s19, 8  ;;  %s7650_s24 = scalar_lea.hbm %s9492_s25, 8 }
 0x233   :  { %p7649_p3 = scmp.ne.s32.totalorder %s7647_s19, %s7648_s15  ;;  %p7651_p4 = scmp.lt.s32.totalorder %s7647_s19, %s9492_s25 }
 0x234   :  { %p7652_p5 = scmp.lt.s32.totalorder %s7650_s24, %s7648_s15 }
 0x235   :  { %s523_s27 = sshll.u32 %s9493_s10, 4  ;;  %s8497_s27 = int_to_ptr.hbm [resolvable:$true] %s523_s27 }
 0x236   :  { %p7653_p6 = por %p7652_p5, %p7651_p4 }
 0x238   :  { %p7654_p7 = pnand %p7653_p6, %p7649_p3 }
 0x23a   :  { %7657 = shalt.err (!%p7654_p7)
}
 0x23b   :  { %s9494_s16 = sld [smem:[#allocation116_spill]]  ;;  %s7976_s13 = smov [#allocation51]  }
 0x23c   :  { %505 = dma.hbm_to_vmem [thread:$0]  %s8487_s21, 128, %s500_s11, [#allocation47], %s7938_s26, %s7938_s26, %s7939_s0  }
 0x23d   :  { %s525_s29 = sshll.u32 %s7976_s13, 4  ;;  %s7670_s3 = sshra.s32 %s8497_s27, 4  ;;  %s526_s29 = int_to_ptr.vmem [resolvable:$true] %s525_s29  ;;  %s7671_s3 = int_to_ptr.hbm [resolvable:$true] %s7670_s3 }
 0x23e   :  { %s7672_s23 = scalar_lea.hbm %s7671_s3, 16  ;;  %s7674_s5 = scalar_lea.hbm %s9493_s10, 16 }
 0x23f   :  { %p7673_p8 = scmp.ne.s32.totalorder %s7671_s3, %s7672_s23  ;;  %p7675_p9 = scmp.lt.s32.totalorder %s7671_s3, %s9493_s10 }
 0x240   :  { %p7676_p10 = scmp.lt.s32.totalorder %s7674_s5, %s7672_s23 }
 0x241   :  { %s549_s22 = sshll.u32 %s9494_s16, 4  ;;  %s8507_s22 = int_to_ptr.hbm [resolvable:$true] %s549_s22 }
 0x242   :  { %p7677_p11 = por %p7676_p10, %p7675_p9 }
 0x244   :  { %p7678_p12 = pnand %p7677_p11, %p7673_p8 }
 0x246   :  { %7681 = shalt.err (!%p7678_p12)
}
 0x247   :  { %s9495_s1 = sld [smem:[#allocation118_spill]]  ;;  %s7977_s30 = smov [#allocation54]  }
 0x248   :  { %531 = dma.hbm_to_vmem [thread:$0]  %s8497_s27, 256, %s526_s29, [#allocation50], %s7938_s26, %s7938_s26, %s7939_s0  }
 0x249   :  { %s551_s18 = sshll.u32 %s7977_s30, 4  ;;  %s7694_s25 = sshra.s32 %s8507_s22, 4  ;;  %s552_s18 = int_to_ptr.vmem [resolvable:$true] %s551_s18  ;;  %s7695_s25 = int_to_ptr.hbm [resolvable:$true] %s7694_s25 }
 0x24a   :  { %s7696_s21 = scalar_lea.hbm %s7695_s25, 32  ;;  %s7698_s4 = scalar_lea.hbm %s9494_s16, 32 }
 0x24b   :  { %p7697_p13 = scmp.ne.s32.totalorder %s7695_s25, %s7696_s21  ;;  %p7699_p0 = scmp.lt.s32.totalorder %s7695_s25, %s9494_s16 }
 0x24c   :  { %p7700_p1 = scmp.lt.s32.totalorder %s7698_s4, %s7696_s21 }
 0x24d   :  { %s575_s2 = sshll.u32 %s9495_s1, 4  ;;  %s8517_s2 = int_to_ptr.hbm [resolvable:$true] %s575_s2 }
 0x24e   :  { %p7701_p2 = por %p7700_p1, %p7699_p0 }
 0x250   :  { %p7702_p3 = pnand %p7701_p2, %p7697_p13 }
 0x252   :  { %7705 = shalt.err (!%p7702_p3)
}
 0x253   :  { %s9496_s7 = sld [smem:[#allocation120_spill]]  ;;  %s7978_s12 = smov [#allocation57]  }
 0x254   :  { %557 = dma.hbm_to_vmem [thread:$0]  %s8507_s22, 512, %s552_s18, [#allocation53], %s7938_s26, %s7938_s26, %s7939_s0  }
 0x255   :  { %s577_s28 = sshll.u32 %s7978_s12, 4  ;;  %s7718_s10 = sshra.s32 %s8517_s2, 4  ;;  %s578_s28 = int_to_ptr.vmem [resolvable:$true] %s577_s28  ;;  %s7719_s10 = int_to_ptr.hbm [resolvable:$true] %s7718_s10 }
 0x256   :  { %s7720_s6 = scalar_lea.hbm %s7719_s10, 16  ;;  %s7722_s11 = scalar_lea.hbm %s9495_s1, 16 }
 0x257   :  { %p7721_p4 = scmp.ne.s32.totalorder %s7719_s10, %s7720_s6  ;;  %p7723_p5 = scmp.lt.s32.totalorder %s7719_s10, %s9495_s1 }
 0x258   :  { %p7724_p6 = scmp.lt.s32.totalorder %s7722_s11, %s7720_s6 }
 0x259   :  { %s600_s8 = sshll.u32 %s9496_s7, 4  ;;  %s601_s8 = int_to_ptr.hbm [resolvable:$true] %s600_s8 }
 0x25a   :  { %p7725_p7 = por %p7724_p6, %p7723_p5 }
 0x25c   :  { %p7726_p8 = pnand %p7725_p7, %p7721_p4 }
 0x25e   :  { %7729 = shalt.err (!%p7726_p8)
}
 0x25f   :  { %s9497_s27 = sld [smem:[#allocation122_spill]]  ;;  %s7979_s19 = smov [#allocation60]  }
 0x260   :  { %583 = dma.hbm_to_vmem [thread:$0]  %s8517_s2, 256, %s578_s28, [#allocation56], %s7938_s26, %s7938_s26, %s7939_s0  }
 0x261   :  { %s602_s15 = sshll.u32 %s7979_s19, 4  ;;  %s7742_s16 = sshra.s32 %s601_s8, 4  ;;  %s603_s15 = int_to_ptr.vmem [resolvable:$true] %s602_s15  ;;  %s7743_s16 = int_to_ptr.hbm [resolvable:$true] %s7742_s16 }
 0x262   :  { %s7744_s22 = scalar_lea.hbm %s7743_s16, 4  ;;  %s7746_s13 = scalar_lea.hbm %s9496_s7, 4 }
 0x263   :  { %p7745_p9 = scmp.ne.s32.totalorder %s7743_s16, %s7744_s22  ;;  %p7747_p10 = scmp.lt.s32.totalorder %s7743_s16, %s9496_s7 }
 0x264   :  { %p7748_p11 = scmp.lt.s32.totalorder %s7746_s13, %s7744_s22 }
 0x265   :  { %s623_s24 = sshll.u32 %s9497_s27, 4  ;;  %s8535_s24 = int_to_ptr.hbm [resolvable:$true] %s623_s24 }
 0x266   :  { %p7749_p12 = por %p7748_p11, %p7747_p10 }
 0x268   :  { %p7750_p13 = pnand %p7749_p12, %p7745_p9 }
 0x26a   :  { %7753 = shalt.err (!%p7750_p13)
}
 0x26b   :  { %605 = dma.hbm_to_vmem [thread:$0]  %s601_s8, 64, %s603_s15, [#allocation59]  }
 0x26c   :  { %s9498_s29 = sld [smem:[#allocation124_spill]]  ;;  %s7980_s23 = smov [#allocation63]  }
 0x26d   :  { %s625_s5 = sshll.u32 %s7980_s23, 4  ;;  %s7766_s1 = sshra.s32 %s8535_s24, 4  ;;  %s626_s5 = int_to_ptr.vmem [resolvable:$true] %s625_s5  ;;  %s7767_s1 = int_to_ptr.hbm [resolvable:$true] %s7766_s1 }
 0x26e   :  { %s7768_s30 = scalar_lea.hbm %s7767_s1, 8  ;;  %s7770_s18 = scalar_lea.hbm %s9497_s27, 8 }
 0x26f   :  { %p7769_p0 = scmp.ne.s32.totalorder %s7767_s1, %s7768_s30  ;;  %p7771_p1 = scmp.lt.s32.totalorder %s7767_s1, %s9497_s27 }
 0x270   :  { %p7772_p2 = scmp.lt.s32.totalorder %s7770_s18, %s7768_s30 }
 0x272   :  { %s649_s3 = sshll.u32 %s9498_s29, 4  ;;  %p7773_p3 = por %p7772_p2, %p7771_p1  ;;  %s8540_s3 = int_to_ptr.hbm [resolvable:$true] %s649_s3 }
 0x274   :  { %p7774_p4 = pnand %p7773_p3, %p7769_p0 }
 0x276   :  { %7777 = shalt.err (!%p7774_p4)
}
 0x277   :  { %s9499_s2 = sld [smem:[#allocation127_spill]]  ;;  %s7981_s25 = smov [#allocation66]  }
 0x278   :  { %631 = dma.hbm_to_vmem [thread:$0]  %s8535_s24, 128, %s626_s5, [#allocation62], %s7938_s26, %s7938_s26, %s7939_s0  }
 0x279   :  { %s651_s21 = sshll.u32 %s7981_s25, 4  ;;  %s7790_s7 = sshra.s32 %s8540_s3, 4  ;;  %s652_s21 = int_to_ptr.vmem [resolvable:$true] %s651_s21  ;;  %s7791_s7 = int_to_ptr.hbm [resolvable:$true] %s7790_s7 }
 0x27a   :  { %s7792_s8 = scalar_lea.hbm %s7791_s7, 32  ;;  %s7794_s12 = scalar_lea.hbm %s9498_s29, 32 }
 0x27b   :  { %p7793_p5 = scmp.ne.s32.totalorder %s7791_s7, %s7792_s8  ;;  %p7795_p6 = scmp.lt.s32.totalorder %s7791_s7, %s9498_s29 }
 0x27c   :  { %p7796_p7 = scmp.lt.s32.totalorder %s7794_s12, %s7792_s8 }
 0x27d   :  { %s678_s4 = sshll.u32 %s9499_s2, 4  ;;  %s679_s4 = int_to_ptr.hbm [resolvable:$true] %s678_s4 }
 0x27e   :  { %p7797_p8 = por %p7796_p7, %p7795_p6 }
 0x280   :  { %p7798_p9 = pnand %p7797_p8, %p7793_p5 }
 0x282   :  { %7801 = shalt.err (!%p7798_p9)
}
 0x283   :  { %657 = dma.hbm_to_vmem [thread:$0]  %s8540_s3, 512, %s652_s21, [#allocation65], %s7938_s26, %s7938_s26, %s7939_s0  }
 0x284   :  { %s7982_s28 = smov [#allocation69]   ;;  %s7814_s6 = sshra.s32 %s679_s4, 4  ;;  %s7815_s6 = int_to_ptr.hbm [resolvable:$true] %s7814_s6 }
 0x285   :  { %s680_s10 = sshll.u32 %s7982_s28, 4  ;;  %s7816_s11 = scalar_lea.hbm %s7815_s6, 2  ;;  %s681_s10 = int_to_ptr.vmem [resolvable:$true] %s680_s10 }
 0x286   :  { %p7817_p10 = scmp.ne.s32.totalorder %s7815_s6, %s7816_s11  ;;  %s7818_s27 = scalar_lea.hbm %s9499_s2, 2 }
 0x287   :  { %p7819_p11 = scmp.lt.s32.totalorder %s7815_s6, %s9499_s2  ;;  %p7820_p12 = scmp.lt.s32.totalorder %s7818_s27, %s7816_s11 }
 0x289   :  { %p7821_p13 = por %p7820_p12, %p7819_p11 }
 0x28b   :  { %p7822_p0 = pnand %p7821_p13, %p7817_p10 }
 0x28d   :  { %7825 = shalt.err (!%p7822_p0)
}
 0x28e   :  { %683 = dma.hbm_to_vmem [thread:$0]  %s679_s4, 32, %s681_s10, [#allocation68]  }
 0x28f   :  { %7838 = dma.done.wait [#allocation3], 1152  }
 0x290   :  { %7839 = vsyncadd [#allocation3], 4294966144 }
 0x291   :  { %7840 = dma.done.wait [#allocation5], 32  }
 0x292   :  { %7841 = vsyncadd [#allocation5], 4294967264 }
 0x293   :  { %7842 = dma.done.wait [#allocation8], 784  }
 0x294   :  { %7843 = vsyncadd [#allocation8], 4294966512 }
 0x295   :  { %7844 = dma.done.wait [#allocation11], 784  }
 0x296   :  { %7845 = vsyncadd [#allocation11], 4294966512 }
 0x297   :  { %7846 = dma.done.wait [#allocation14], 32  }
 0x298   :  { %7847 = vsyncadd [#allocation14], 4294967264 }
 0x299   :  { %7848 = dma.done.wait [#allocation17], 1552  }
 0x29a   :  { %7849 = vsyncadd [#allocation17], 4294965744 }
 0x29b   :  { %7850 = dma.done.wait [#allocation20], 784  }
 0x29c   :  { %7851 = vsyncadd [#allocation20], 4294966512 }
 0x29d   :  { %7852 = dma.done.wait [#allocation23], 32  }
 0x29e   :  { %7853 = vsyncadd [#allocation23], 4294967264 }
 0x29f   :  { %7854 = dma.done.wait [#allocation26], 1552  }
 0x2a0   :  { %7855 = vsyncadd [#allocation26], 4294965744 }
 0x2a1   :  { %7856 = dma.done.wait [#allocation29], 32  }
 0x2a2   :  { %7857 = vsyncadd [#allocation29], 4294967264 }
 0x2a3   :  { %7858 = dma.done.wait [#allocation32], 80  }
 0x2a4   :  { %7859 = vsyncadd [#allocation32], 4294967216 }
 0x2a5   :  { %7860 = dma.done.wait [#allocation35], 12352  }
 0x2a6   :  { %7861 = vsyncadd [#allocation35], 4294954944 }
 0x2a7   :  { %7862 = dma.done.wait [#allocation38], 32  }
 0x2a8   :  { %7863 = vsyncadd [#allocation38], 4294967264 }
 0x2a9   :  { %7864 = dma.done.wait [#allocation41], 1024  }
 0x2aa   :  { %7865 = vsyncadd [#allocation41], 4294966272 }
 0x2ab   :  { %7866 = dma.done.wait [#allocation44], 512  }
 0x2ac   :  { %7867 = vsyncadd [#allocation44], 4294966784 }
 0x2ad   :  { %7868 = dma.done.wait [#allocation47], 256  }
 0x2ae   :  { %7869 = vsyncadd [#allocation47], 4294967040 }
 0x2af   :  { %7870 = dma.done.wait [#allocation50], 512  }
 0x2b0   :  { %7871 = vsyncadd [#allocation50], 4294966784 }
 0x2b1   :  { %7872 = dma.done.wait [#allocation53], 1024  }
 0x2b2   :  { %7873 = vsyncadd [#allocation53], 4294966272 }
 0x2b3   :  { %7874 = dma.done.wait [#allocation56], 512  }
 0x2b4   :  { %7875 = vsyncadd [#allocation56], 4294966784 }
 0x2b5   :  { %7876 = dma.done.wait [#allocation59], 128  }
 0x2b6   :  { %7877 = vsyncadd [#allocation59], 4294967168 }
 0x2b7   :  { %7878 = dma.done.wait [#allocation62], 256  }
 0x2b8   :  { %7879 = vsyncadd [#allocation62], 4294967040 }
 0x2b9   :  { %7880 = dma.done.wait [#allocation65], 1024  }
 0x2ba   :  { %7881 = vsyncadd [#allocation65], 4294966272 }
 0x2bb   :  { %7882 = dma.done.wait [#allocation68], 288  }
 0x2bc   :  { %7883 = vsyncadd [#allocation68], 4294967008  ;;  %s9500_s26 = sld [smem:[#allocation93_spill]]  ;;  %v905_v0 = vlaneseq  ;;  %v6394_v3 = vld [vmem:[#allocation2 + $0x28] sm:$0xff]  ;;  %v6391_v4 = vld [vmem:[#allocation2 + $0x10] sm:$0xff]  ;;  %vm879_vm0 = vcmask 1040384  }
 0x2bd   :  { %v6393_v6 = vld [vmem:[#allocation2 + $0x20] sm:$0xff]  ;;  %v6390_v7 = vld [vmem:[#allocation2 + $0x8] sm:$0xff]  ;;  %6634 = vmatpush.bf16.msra.mxu2 %v6394_v3  ;;  %6637 = vmatpush.bf16.msra.mxu3 %v6391_v4  ;;  %v6392_v18 = vld [vmem:[#allocation2 + $0x18] sm:$0xff]  ;;  %vm1025_vm3 = vcmask 392192   ;;  %vm9432_vm4 = vcmask 1046528   ;;  %vm1204_vm7 = vcmask 523264  }
 0x2be   :  { %v8559_v1 = vshrl.u32 %v905_v0, 7  ;;  %1037 = vmatpush.bf16.msra.mxu0 %v6394_v3  ;;  %1080 = vmatpush.bf16.msra.mxu1 %v6391_v4  ;;  %v6389_v20 = vld [vmem:[#allocation2] sm:$0xff]  ;;  %v6396_v30 = vld [vmem:[#allocation2 + $0x38] sm:$0xff]  ;;  %v6395_v35 = vld [vmem:[#allocation2 + $0x30] sm:$0xff]  ;;  %vm1308_vm14 = vcmask 261120   ;;  %s9523_s0 = sld [smem:[#allocation126_spill]] }
 0x2bf   :  { %v6397_v25 = vld [vmem:[#allocation2 + $0x40] sm:$0xff]  ;;  %v6401_v52 = vld [vmem:[#allocation40 + $0x18] sm:$0xff]  ;;  %v6400_v54 = vld [vmem:[#allocation40 + $0x10] sm:$0xff] }
 0x2c0   :  { %v908_v2 = vadd.s32 16, %v8559_v1  ;;  %v914_v8 = vand.u32 15, %v8559_v1  ;;  %v8588_v32 = vadd.s32 8, %v8559_v1  ;;  %v909_v44 = vadd.s32 24, %v8559_v1  ;;  %v6405_v53 = vld [vmem:[#allocation42 + $0x18] sm:$0xff]  ;;  %v6404_v55 = vld [vmem:[#allocation42 + $0x10] sm:$0xff] }
 0x2c1   :  { %6635 = vmatpush.bf16.msra.mxu2 %v6393_v6  ;;  %6638 = vmatpush.bf16.msra.mxu3 %v6390_v7  ;;  %v6399_v56 = vld [vmem:[#allocation40 + $0x8] sm:$0xff]  ;;  %v6398_v58 = vld [vmem:[#allocation40] sm:$0xff] }
 0x2c2   :  { %v928_v5 = vand.u32 15, %v908_v2  ;;  %v8564_v9 = vld [vmem:[%s9500_s26 + $0x10] sm:$0xff]  ;;  %v874_v10 = vld [vmem:[%s9500_s26 + $0x18] sm:$0xff]  ;;  %v872_v11 = vld [vmem:[%s9500_s26 + $0x8] sm:$0xff]  ;;  %vm8574_vm2 = vcmp.eq.s32.totalorder %v914_v8, 0  ;;  %1038 = vmatpush.bf16.msra.mxu0 %v6393_v6  ;;  %1081 = vmatpush.bf16.msra.mxu1 %v6390_v7  ;;  %v921_v37 = vand.u32 15, %v8588_v32 }
 0x2c3   :  { %v883_v12 = vrot.slane %v8564_v9, 7  ;;  %v885_v13 = vrot.slane %v874_v10, 7  ;;  %v871_v14 = vld [vmem:[%s9500_s26] sm:$0xff]  ;;  %v881_v15 = vrot.slane %v872_v11, 7  ;;  %v999_v28 = vpack.c.bf16 %v874_v10, %v8564_v9  ;;  %v6403_v57 = vld [vmem:[#allocation42 + $0x8] sm:$0xff] }
 0x2c4   :  { %vm8570_vm1 = vcmp.eq.s32.totalorder %v928_v5, 0  ;;  %v880_v17 = vrot.slane %v871_v14, 7  ;;  %v998_v31 = vpack.c.bf16 %v872_v11, %v871_v14  ;;  %v896_v34 = vrot.slane %v8564_v9, 1  ;;  %v6402_v59 = vld [vmem:[#allocation42] sm:$0xff]  ;;  %v6742_v4 = vld [vmem:[#allocation4] ss:$0 sm:$0xff] }
 0x2c5   :  { %v884_v21 = vsel %vm879_vm0, %v881_v15, %v883_v12  ;;  %v886_v22 = vsel %vm879_vm0, %v883_v12, %v885_v13  ;;  %6636 = vmatpush.bf16.msra.mxu2 %v6392_v18  ;;  %6639 = vmatpush.bf16.msra.mxu3 %v6389_v20  ;;  %v894_v36 = vrot.slane %v872_v11, 1  ;;  %v893_v38 = vrot.slane %v871_v14, 1  ;;  %v6743_v9 = vld [vmem:[#allocation6] ss:$0 sm:$0xff] }
 0x2c6   :  { %v891_v23 = vsel %vm879_vm0, 0.0, %v880_v17  ;;  %v972_v24 = vsel %vm8570_vm1, 0.0, %v884_v21  ;;  %v882_v26 = vsel %vm879_vm0, %v880_v17, %v881_v15  ;;  %1039 = vmatpush.bf16.msra.mxu0 %v6392_v18  ;;  %1082 = vmatpush.bf16.msra.mxu1 %v6389_v20  ;;  %vm8597_vm5 = vcmp.eq.s32.totalorder %v921_v37, 15 }
 0x2c7   :  { %v970_v27 = vsel %vm8574_vm2, 0.0, %v891_v23  ;;  %v991_v29 = vpack.c.bf16 %v886_v22, %v972_v24  ;;  %v897_v39 = vsel %vm9432_vm4, %v894_v36, %v896_v34  ;;  %v895_v41 = vsel %vm9432_vm4, %v893_v38, %v894_v36 }
 0x2c8   :  { %v990_v33 = vpack.c.bf16 %v882_v26, %v970_v27  ;;  %5207 = vmatmul.msk.bf16.vlgmr.msra.gmra.mxu2 %vm1025_vm3, %v999_v28  ;;  %v987_v42 = vsel %vm8597_vm5, 0.0, %v897_v39  ;;  %v898_v45 = vrot.slane %v874_v10, 1  ;;  %v935_v46 = vand.u32 15, %v909_v44 }
 0x2c9   :  { %1132 = vmatpush.bf16.msrb.mxu2 %v6397_v25  ;;  %5221 = vmatmul.msk.bf16.vlgmr.msra.gmra.mxu3 %vm1025_vm3, %v991_v29  ;;  %v1094_v43 = vpack.c.bf16 %v987_v42, %v895_v41 }
 0x2ca   :  { %5206 = vmatmul.msk.bf16.vlgmr.msra.gmra.mxu0 %vm1025_vm3, %v998_v31  ;;  %5220 = vmatmul.msk.bf16.vlgmr.msra.gmra.mxu1 %vm1025_vm3, %v990_v33  ;;  %v904_v47 = vsel %vm9432_vm4, %v898_v45, 0.0  ;;  %vm8607_vm6 = vcmp.eq.s32.totalorder %v935_v46, 15  ;;  %v899_v49 = vsel %vm9432_vm4, %v896_v34, %v898_v45 }
 0x2cb   :  { %v989_v50 = vsel %vm8607_vm6, 0.0, %v904_v47  ;;  %1215 = vmatpush.bf16.msrb.mxu3 %v6401_v52  ;;  %1266 = vmatpush.bf16.msrb.mxu0 %v6405_v53 }
 0x2cc   :  { %v1095_v51 = vpack.c.bf16 %v989_v50, %v899_v49  ;;  %v7983_v49 = vmov 1.0|1.0  }
 0x2cd   :  { %1133 = vmatpush.bf16.msrb.mxu2 %v6396_v30 }
 0x2cf   :  { %1216 = vmatpush.bf16.msrb.mxu3 %v6400_v54  ;;  %1267 = vmatpush.bf16.msrb.mxu0 %v6404_v55  ;;  %v6406_v54 = vld [vmem:[#allocation46] sm:$0xff]  ;;  %v6407_v55 = vld [vmem:[#allocation48] sm:$0xff] }
 0x2d1   :  { %1134 = vmatpush.bf16.msrb.mxu2 %v6395_v35 }
 0x2d3   :  { %1217 = vmatpush.bf16.msrb.mxu3 %v6399_v56  ;;  %1268 = vmatpush.bf16.msrb.mxu0 %v6403_v57  ;;  %v6411_v56 = vld [vmem:[#allocation7 + $0x18] sm:$0xff]  ;;  %v6410_v57 = vld [vmem:[#allocation7 + $0x10] sm:$0xff] }
 0x2d7   :  { %1218 = vmatpush.bf16.msrb.mxu3 %v6398_v58  ;;  %1269 = vmatpush.bf16.msrb.mxu0 %v6402_v59  ;;  %v6409_v58 = vld [vmem:[#allocation7 + $0x8] sm:$0xff] }
 0x2d8   :  { %5234 = vmatmul.msk.bf16.vlgmr.msrb.gmra.mxu2 %vm1025_vm3, %v1094_v43  ;;  %v6413_v59 = vld [vmem:[#allocation7 + $0x28] sm:$0xff] }
 0x2db   :  { %1548 = vmatpush.bf16.msra.mxu0 %v6413_v59 }
 0x2e8   :  { %5235 = vmatmul.msk.bf16.gmra.mxu2 %vm1025_vm3, %v1095_v51 }
 0x347   :  { %v1041_v62 = vpop.f32.mrf.mxu0  ;;  %v1084_v63 = vpop.f32.mrf.mxu1 }
 0x348   :  { %v1085_v0 = vadd.f32 %v1084_v63, %v1041_v62 }
 0x34b   :  { %v1046_v60 = vpop.f32.mrf.mxu2 }
 0x34c   :  { %v1089_v12 = vpop.f32.mrf.mxu3 }
 0x34d   :  { %v1090_v21 = vadd.f32 %v1089_v12, %v1046_v60  ;;  %v6408_v60 = vld [vmem:[#allocation7] sm:$0xff] }
 0x34f   :  { %v1043_v5 = vpop.f32.mrf.mxu0  ;;  %v1086_v6 = vpop.f32.mrf.mxu1 }
 0x350   :  { %v1087_v7 = vadd.f32 %v1086_v6, %v1043_v5 }
 0x353   :  { %v1048_v61 = vpop.f32.mrf.mxu2 }
 0x354   :  { %v1091_v24 = vpop.f32.mrf.mxu3 }
 0x355   :  { %v1092_v25 = vadd.f32 %v1091_v24, %v1048_v61  ;;  %v6412_v61 = vld [vmem:[#allocation7 + $0x20] sm:$0xff] }
 0x356   :  { %1549 = vmatpush.bf16.msra.mxu0 %v6412_v61 }
 0x35b   :  { %v1136_v2 = vpop.f32.mrf.mxu2 }
 0x35c   :  { %v1146_v3 = vadd.f32 %v1136_v2, %v1085_v0  ;;  %v7984_v2 = vmov 0.0  }
 0x35e   :  { %v1154_v8 = vmul.f32 %v6742_v4, %v1146_v3 }
 0x360   :  { %v1162_v13 = vadd.f32 %v6743_v9, %v1154_v8  ;;  %v1423_v8 = vand.u32 7, %v8588_v32 }
 0x362   :  { %v1166_v17 = vmax.f32 %v1162_v13, 0.0 }
 0x363   :  { %v1138_v10 = vpop.f32.mrf.mxu2 }
 0x364   :  { %v1147_v11 = vadd.f32 %v1138_v10, %v1087_v7  ;;  %v1416_v7 = vand.u32 7, %v8559_v1 }
 0x366   :  { %v1155_v14 = vmul.f32 %v6742_v4, %v1147_v11  ;;  %vm8642_vm3 = vcmp.eq.s32.totalorder %v1416_v7, 0 }
 0x368   :  { %v1163_v15 = vadd.f32 %v6743_v9, %v1155_v14 }
 0x36a   :  { %v1167_v18 = vmax.f32 %v1163_v15, 0.0 }
 0x36b   :  { %v1141_v20 = vpop.f32.mrf.mxu2 }
 0x36c   :  { %v1170_v22 = vpack.c.bf16 %v1167_v18, %v1166_v17  ;;  %v1148_v23 = vadd.f32 %v1141_v20, %v1090_v21 }
 0x36e   :  { %5252 = vmatmul.msk.bf16.vlgmr.msrb.gmra.mxu3 %vm1204_vm7, %v1170_v22  ;;  %5270 = vmatmul.msk.bf16.vlgmr.msrb.gmra.mxu0 %vm1204_vm7, %v1170_v22  ;;  %v1156_v26 = vmul.f32 %v6742_v4, %v1148_v23 }
 0x370   :  { %v1164_v29 = vadd.f32 %v6743_v9, %v1156_v26 }
 0x372   :  { %v1168_v33 = vmax.f32 %v1164_v29, 0.0 }
 0x373   :  { %v1143_v27 = vpop.f32.mrf.mxu2 }
 0x374   :  { %v1149_v28 = vadd.f32 %v1143_v27, %v1092_v25 }
 0x376   :  { %v1157_v30 = vmul.f32 %v6742_v4, %v1149_v28 }
 0x378   :  { %v1165_v31 = vadd.f32 %v6743_v9, %v1157_v30 }
 0x37a   :  { %v1169_v34 = vmax.f32 %v1165_v31, 0.0 }
 0x37c   :  { %v1171_v35 = vpack.c.bf16 %v1169_v34, %v1168_v33 }
 0x37e   :  { %5253 = vmatmul.msk.bf16.gmra.mxu3 %vm1204_vm7, %v1171_v35  ;;  %5271 = vmatmul.msk.bf16.gmra.mxu0 %vm1204_vm7, %v1171_v35 }
 0x3eb   :  { %v1271_v36 = vpop.f32.mrf.mxu0 }
 0x3f1   :  { %v1220_v37 = vpop.f32.mrf.mxu3 }
 0x3f2   :  { %vm1281_vm12 = vcmp.ge.f32.partialorder %v1220_v37, %v1271_v36  ;;  %v1295_v52 = vmax.f32 %v1220_v37, %v1271_v36 }
 0x3f3   :  { %v1273_v38 = vpop.f32.mrf.mxu0 }
 0x3f9   :  { %v1222_v39 = vpop.f32.mrf.mxu3 }
 0x3fa   :  { %vm1282_vm11 = vcmp.ge.f32.partialorder %v1222_v39, %v1273_v38  ;;  %v1296_v51 = vmax.f32 %v1222_v39, %v1273_v38 }
 0x3fb   :  { %v1276_v41 = vpop.f32.mrf.mxu0  ;;  %vm5290_vm13 = vmpackc.low %vm1282_vm11, %vm1281_vm12 }
 0x3fc   :  { %v1299_v53 = vpack.c.bf16 %v1296_v51, %v1295_v52  ;;  %v6417_v51 = vld [vmem:[#allocation52 + $0x18] sm:$0xff] }
 0x3fd   :  { %v6421_v52 = vld [vmem:[#allocation54 + $0x18] sm:$0xff] }
 0x401   :  { %v1225_v42 = vpop.f32.mrf.mxu3 }
 0x402   :  { %vm1283_vm8 = vcmp.ge.f32.partialorder %v1225_v42, %v1276_v41  ;;  %v1297_v45 = vmax.f32 %v1225_v42, %v1276_v41 }
 0x403   :  { %v1278_v43 = vpop.f32.mrf.mxu0 }
 0x409   :  { %v1227_v44 = vpop.f32.mrf.mxu3 }
 0x40a   :  { %vm1284_vm9 = vcmp.ge.f32.partialorder %v1227_v44, %v1278_v43  ;;  %v1298_v46 = vmax.f32 %v1227_v44, %v1278_v43 }
 0x40b   :  { %vm8619_vm10 = vmpackc.low %vm1284_vm9, %vm1283_vm8  ;;  %vm8648_vm8 = vcmp.eq.s32.totalorder %v1423_v8, 7  ;;  %vm8653_vm9 = vcmp.eq.s32.totalorder %v1423_v8, 0  ;;  %v6745_v8 = vld [vmem:[#allocation10] ss:$0 sm:$0xff] }
 0x40c   :  { %5289 = vmatpush.bf16.msk.msra.mxu3 %vm8619_vm10, %v7983_v49  ;;  %v1300_v50 = vpack.c.bf16 %v1298_v46, %v1297_v45 }
 0x40e   :  { %1318 = vmatpush.bf16.msrb.mxu1 %v1300_v50  ;;  %1342 = vmatpush.bf16.msra.mxu2 %v1300_v50 }
 0x410   :  { %5291 = vmatpush.bf16.msk.msra.mxu3 %vm5290_vm13, %v7983_v49 }
 0x412   :  { %1319 = vmatpush.bf16.msrb.mxu1 %v1299_v53  ;;  %1343 = vmatpush.bf16.msra.mxu2 %v1299_v53  ;;  %v6416_v53 = vld [vmem:[#allocation52 + $0x10] sm:$0xff] }
 0x413   :  { %5292 = vmatmul.msk.bf16.vlgmr.msra.gmra.mxu3 %vm1308_vm14, %v6406_v54 }
 0x414   :  { %1513 = vmatpush.bf16.msrb.mxu3 %v6409_v58  ;;  %v6418_v58 = vld [vmem:[#allocation54] sm:$0xff] }
 0x415   :  { %5280 = vmatmul.msk.bf16.vlgmr.msrb.gmra.mxu1 %vm1308_vm14, %v6406_v54  ;;  %5285 = vmatmul.msk.bf16.vlgmr.msra.gmra.mxu2 %vm1308_vm14, %v6407_v55  ;;  %v6420_v54 = vld [vmem:[#allocation54 + $0x10] sm:$0xff] }
 0x416   :  { %5294 = vmatpush.bf16.msk.msra.mxu1 %vm8619_vm10, %v7983_v49  ;;  %1484 = vmatpush.bf16.msrb.mxu2 %v6411_v56  ;;  %vm8657_vm10 = vcmp.eq.s32.totalorder %v1416_v7, 7  ;;  %v6419_v56 = vld [vmem:[#allocation54 + $0x8] sm:$0xff] }
 0x418   :  { %1514 = vmatpush.bf16.msrb.mxu3 %v6408_v60 }
 0x41a   :  { %5296 = vmatpush.bf16.msk.msra.mxu1 %vm5290_vm13, %v7983_v49  ;;  %1485 = vmatpush.bf16.msrb.mxu2 %v6410_v57  ;;  %v6414_v57 = vld [vmem:[#allocation52] sm:$0xff] }
 0x41e   :  { %1612 = vmatpush.bf16.msrb.mxu1 %v6417_v51  ;;  %1658 = vmatpush.bf16.msra.mxu2 %v6421_v52  ;;  %v6431_v51 = vld [vmem:[#allocation64 + $0x18] sm:$0xff] }
 0x41f   :  { %v6435_v52 = vld [vmem:[#allocation66 + $0x18] sm:$0xff] }
 0x422   :  { %1613 = vmatpush.bf16.msrb.mxu1 %v6416_v53  ;;  %1659 = vmatpush.bf16.msra.mxu2 %v6420_v54 }
 0x425   :  { %5297 = vmatmul.msk.bf16.vlgmr.msra.gmra.mxu1 %vm1308_vm14, %v6407_v55  ;;  %v6415_v55 = vld [vmem:[#allocation52 + $0x8] sm:$0xff] }
 0x426   :  { %1614 = vmatpush.bf16.msrb.mxu1 %v6415_v55  ;;  %1660 = vmatpush.bf16.msra.mxu2 %v6419_v56 }
 0x42a   :  { %1615 = vmatpush.bf16.msrb.mxu1 %v6414_v57  ;;  %1661 = vmatpush.bf16.msra.mxu2 %v6418_v58 }
 0x492   :  { %v1321_v62 = vpop.f32.mrf.mxu1 }
 0x496   :  { %v1367_v0 = vpop.f32.mrf.mxu3 }
 0x498   :  { %v1345_v63 = vpop.f32.mrf.mxu2 }
 0x499   :  { %vm1350_vm15 = vcmp.ge.f32.partialorder %v1321_v62, %v1345_v63  ;;  %v1356_v4 = vmax.f32 %v1321_v62, %v1345_v63 }
 0x49a   :  { %v5286_v3 = vsel %vm1350_vm15, 1.0, %v7984_v2  ;;  %v8636_v5 = vpop.f32.mrf.mxu1  ;;  %vm9431_vm15 = vcmask 130048  }
 0x49b   :  { %v1386_v6 = vmul.f32 %v5286_v3, %v1367_v0  ;;  %v1400_v9 = vrot.slane %v1356_v4, 7  ;;  %v1388_v14 = vsub.f32 1.0, %v5286_v3  ;;  %v1406_v17 = vrot.slane %v1356_v4, 1 }
 0x49d   :  { %v1405_v15 = vsel %vm879_vm0, 0.0, %v1400_v9  ;;  %v3051_v44 = vpack.c.bf16 %v1388_v14, %v1388_v14 }
 0x49e   :  { %v1442_v29 = vsel %vm8642_vm3, 0.0, %v1405_v15  ;;  %v8686_v59 = vpop.f32.mrf.mxu3 }
 0x49f   :  { %v3053_v46 = vunpack.c.l.bf16 %v3051_v44 }
 0x4a0   :  { %v8640_v10 = vpop.f32.mrf.mxu2 }
 0x4a1   :  { %v1357_v12 = vmax.f32 %v8636_v5, %v8640_v10 }
 0x4a2   :  { %v1381_v18 = vpop.f32.mrf.mxu1 }
 0x4a3   :  { %v1401_v21 = vrot.slane %v1357_v12, 7  ;;  %v1407_v22 = vrot.slane %v1357_v12, 1  ;;  %v1457_v23 = vpack.c.bf16 %v1357_v12, %v1356_v4  ;;  %v1390_v24 = vmul.f32 %v1388_v14, %v1381_v18 }
 0x4a5   :  { %v1402_v25 = vsel %vm879_vm0, %v1400_v9, %v1401_v21  ;;  %v1408_v26 = vsel %vm9432_vm4, %v1406_v17, %v1407_v22  ;;  %v1411_v27 = vsel %vm9432_vm4, %v1407_v22, 0.0  ;;  %v1392_v28 = vadd.f32 %v1390_v24, %v1386_v6  ;;  %5306 = vmatmul.msk.bf16.vlgmr.msrb.gmra.mxu2 %vm1308_vm14, %v1457_v23 }
 0x4a6   :  { %v1451_v30 = vsel %vm8648_vm8, 0.0, %v1411_v27  ;;  %v1443_v31 = vsel %vm8653_vm9, 0.0, %v1402_v25  ;;  %v1450_v33 = vsel %vm8657_vm10, 0.0, %v1408_v26 }
 0x4a7   :  { %v1396_v34 = vpack.c.bf16 %v1392_v28, %v1392_v28  ;;  %v1452_v35 = vpack.c.bf16 %v1443_v31, %v1442_v29  ;;  %v1521_v36 = vpack.c.bf16 %v1451_v30, %v1450_v33  ;;  %v6425_v33 = vld [vmem:[#allocation12 + $0x18] sm:$0xff] }
 0x4a9   :  { %v3033_v37 = vunpack.c.l.bf16 %v1396_v34  ;;  %5315 = vmatmul.msk.bf16.vlgmr.msrb.gmra.mxu3 %vm1308_vm14, %v1452_v35  ;;  %5324 = vmatmul.msk.bf16.vlgmr.msra.gmra.mxu0 %vm1308_vm14, %v1521_v36  ;;  %v1678_v34 = vld [vmem:[#allocation58] sm:$0xf]  ;;  %v1696_v35 = vld [vmem:[#allocation60] sm:$0xf] }
 0x4aa   :  { %v8690_v24 = vpop.f32.mrf.mxu1  ;;  %v6424_v36 = vld [vmem:[#allocation12 + $0x10] sm:$0xff] }
 0x4ab   :  { %v3035_v38 = vmul.f32 %v5286_v3, %v3033_v37 }
 0x4ad   :  { %v3037_v39 = vpack.c.bf16 %v3035_v38, %v3035_v38  ;;  %v6427_v38 = vld [vmem:[#allocation12 + $0x28] sm:$0xff] }
 0x4af   :  { %v8675_v41 = vunpack.c.l.bf16 %v3037_v39  ;;  %v6426_v39 = vld [vmem:[#allocation12 + $0x20] sm:$0xff] }
 0x4b1   :  { %v8678_v42 = vsub.f32 %v5286_v3, %v8675_v41  ;;  %v3045_v43 = vsub.f32 %v3033_v37, %v8675_v41  ;;  %v6744_v3 = vld [vmem:[#allocation9] ss:$0 sm:$0xff]  ;;  %v6423_v37 = vld [vmem:[#allocation12 + $0x8] sm:$0xff] }
 0x4b3   :  { %v3047_v45 = vpack.c.bf16 %v3045_v43, %v3045_v43 }
 0x4b5   :  { %v8681_v47 = vunpack.c.l.bf16 %v3047_v45  ;;  %v1760_v45 = vand.u32 3, %v8559_v1 }
 0x4b7   :  { %v8684_v50 = vsub.f32 %v3053_v46, %v8681_v47 }
 0x526   :  { %v1551_v61 = vpop.f32.mrf.mxu0 }
 0x528   :  { %v1487_v60 = vpop.f32.mrf.mxu2 }
 0x52c   :  { %v1516_v62 = vpop.f32.mrf.mxu3 }
 0x52d   :  { %v1517_v63 = vadd.f32 %v1516_v62, %v1487_v60 }
 0x52e   :  { %v1553_v12 = vpop.f32.mrf.mxu0 }
 0x52f   :  { %v1556_v0 = vadd.f32 %v1551_v61, %v1517_v63 }
 0x530   :  { %v1489_v4 = vpop.f32.mrf.mxu2 }
 0x531   :  { %v1562_v7 = vmul.f32 %v6744_v3, %v1556_v0 }
 0x533   :  { %v1568_v15 = vadd.f32 %v6745_v8, %v1562_v7 }
 0x534   :  { %v1518_v6 = vpop.f32.mrf.mxu3 }
 0x535   :  { %v1519_v9 = vadd.f32 %v1518_v6, %v1489_v4  ;;  %v1570_v21 = vmax.f32 %v1568_v15, 0.0 }
 0x537   :  { %v1557_v14 = vadd.f32 %v1553_v12, %v1519_v9 }
 0x539   :  { %v1563_v17 = vmul.f32 %v6744_v3, %v1557_v14 }
 0x53b   :  { %v1569_v18 = vadd.f32 %v6745_v8, %v1563_v17 }
 0x53d   :  { %v1571_v22 = vmax.f32 %v1569_v18, 0.0 }
 0x53f   :  { %v1572_v23 = vpack.c.bf16 %v1571_v22, %v1570_v21 }
 0x541   :  { %5341 = vmatmul.msk.bf16.vlgmr.msrb.gmra.mxu1 %vm1204_vm7, %v1572_v23  ;;  %5358 = vmatmul.msk.bf16.vlgmr.msra.gmra.mxu2 %vm1204_vm7, %v1572_v23 }
 0x5be   :  { %v1617_v25 = vpop.f32.mrf.mxu1 }
 0x5c4   :  { %v1663_v26 = vpop.f32.mrf.mxu2 }
 0x5c5   :  { %vm1668_vm11 = vcmp.ge.f32.partialorder %v1617_v25, %v1663_v26  ;;  %v1675_v29 = vmax.f32 %v1617_v25, %v1663_v26 }
 0x5c6   :  { %v1619_v27 = vpop.f32.mrf.mxu1 }
 0x5cc   :  { %v1665_v28 = vpop.f32.mrf.mxu2 }
 0x5cd   :  { %vm1669_vm12 = vcmp.ge.f32.partialorder %v1619_v27, %v1665_v28  ;;  %v1676_v30 = vmax.f32 %v1619_v27, %v1665_v28 }
 0x5ce   :  { %vm5364_vm13 = vmpackc.low %vm1669_vm12, %vm1668_vm11  ;;  %vm8700_vm12 = vcmp.eq.s32.totalorder %v1760_v45, 0 }
 0x5cf   :  { %v1677_v31 = vpack.c.bf16 %v1676_v30, %v1675_v29  ;;  %5365 = vmatpush.bf16.msk.msra.mxu1 %vm5364_vm13, %v7983_v49  ;;  %5368 = vmatpush.bf16.msk.msrb.mxu2 %vm5364_vm13, %v7983_v49  ;;  %v6422_v49 = vld [vmem:[#allocation12] sm:$0xff]  ;;  %vm8704_vm13 = vcmp.eq.s32.totalorder %v1760_v45, 3 }
 0x5d1   :  { %1690 = vmatpush.bf16.msra.mxu3 %v1677_v31  ;;  %1707 = vmatpush.bf16.msrb.mxu0 %v1677_v31 }
 0x5d2   :  { %5369 = vmatmul.msk.bf16.vlgmr.msrb.gmra.mxu2 %vm9431_vm15, %v1696_v35  ;;  %5366 = vmatmul.msk.bf16.vlgmr.msra.gmra.mxu1 %vm9431_vm15, %v1678_v34 }
 0x5d3   :  { %1870 = vmatpush.bf16.msrb.mxu1 %v6427_v38  ;;  %1929 = vmatpush.bf16.msra.mxu2 %v6431_v51  ;;  %v6428_v38 = vld [vmem:[#allocation64] sm:$0xff] }
 0x5d4   :  { %5361 = vmatmul.msk.bf16.vlgmr.msra.gmra.mxu3 %vm9431_vm15, %v1678_v34  ;;  %5362 = vmatmul.msk.bf16.vlgmr.msrb.gmra.mxu0 %vm9431_vm15, %v1696_v35  ;;  %v6430_v34 = vld [vmem:[#allocation64 + $0x10] sm:$0xff]  ;;  %vm1994_vm15 = vcmask 1043456  }
 0x5d5   :  { %1808 = vmatpush.bf16.msrb.mxu3 %v6425_v33  ;;  %1836 = vmatpush.bf16.msra.mxu0 %v6423_v37  ;;  %v6434_v35 = vld [vmem:[#allocation66 + $0x10] sm:$0xff]  ;;  %v6433_v37 = vld [vmem:[#allocation66 + $0x8] sm:$0xff] }
 0x5d7   :  { %1871 = vmatpush.bf16.msrb.mxu1 %v6426_v39  ;;  %1930 = vmatpush.bf16.msra.mxu2 %v6430_v34 }
 0x5d9   :  { %1809 = vmatpush.bf16.msrb.mxu3 %v6424_v36  ;;  %1837 = vmatpush.bf16.msra.mxu0 %v6422_v49  ;;  %v6429_v36 = vld [vmem:[#allocation64 + $0x8] sm:$0xff]  ;;  %v6432_v49 = vld [vmem:[#allocation66] sm:$0xff] }
 0x5db   :  { %1931 = vmatpush.bf16.msra.mxu2 %v6429_v36 }
 0x5dd   :  { %1974 = vmatpush.bf16.msra.mxu3 %v6435_v52  ;;  %v6747_v52 = vld [vmem:[#allocation15] ss:$0 sm:$0xff] }
 0x5df   :  { %1932 = vmatpush.bf16.msra.mxu2 %v6428_v38 }
 0x5e1   :  { %1975 = vmatpush.bf16.msra.mxu3 %v6434_v35 }
 0x5e5   :  { %1976 = vmatpush.bf16.msra.mxu3 %v6433_v37 }
 0x5e9   :  { %1977 = vmatpush.bf16.msra.mxu3 %v6432_v49 }
 0x64f   :  { %v1726_v43 = vpop.f32.mrf.mxu1 }
 0x651   :  { %v1709_v44 = vpop.f32.mrf.mxu0 }
 0x655   :  { %v1739_v46 = vpop.f32.mrf.mxu2 }
 0x657   :  { %v1692_v53 = vpop.f32.mrf.mxu3  ;;  %v1728_v54 = vpop.f32.mrf.mxu1 }
 0x658   :  { %vm1713_vm11 = vcmp.ge.f32.partialorder %v1692_v53, %v1709_v44  ;;  %v1716_v55 = vmax.f32 %v1692_v53, %v1709_v44 }
 0x659   :  { %v5363_v56 = vsel %vm1713_vm11, 1.0, %v7984_v2  ;;  %v1711_v1 = vpop.f32.mrf.mxu0 }
 0x65a   :  { %v1750_v60 = vrot.slane %v1716_v55, 7  ;;  %v1753_v61 = vrot.slane %v1716_v55, 1  ;;  %v1781_v62 = vpack.c.bf16 %v1716_v55, %v1716_v55  ;;  %v1743_v63 = vmul.f32 %v5363_v56, %v1726_v43 }
 0x65b   :  { %v1744_v0 = vsub.f32 1.0, %v5363_v56 }
 0x65c   :  { %v1752_v3 = vsel %vm879_vm0, 0.0, %v1750_v60  ;;  %v1755_v4 = vsel %vm9432_vm4, %v1753_v61, 0.0  ;;  %5378 = vmatmul.msk.bf16.vlgmr.msrb.gmra.mxu3 %vm1308_vm14, %v1781_v62  ;;  %vm9433_vm4 = vcmask 64512  }
 0x65d   :  { %v1771_v6 = vsel %vm8700_vm12, 0.0, %v1752_v3  ;;  %v1775_v7 = vsel %vm8704_vm13, 0.0, %v1755_v4  ;;  %v1745_v8 = vmul.f32 %v1744_v0, %v1739_v46  ;;  %v1741_v9 = vpop.f32.mrf.mxu2  ;;  %v2537_v28 = vpack.c.bf16 %v1744_v0, %v1744_v0  ;;  %v6746_v46 = vld [vmem:[#allocation13] ss:$0 sm:$0xff] }
 0x65e   :  { %v1776_v12 = vpack.c.bf16 %v1771_v6, %v1771_v6  ;;  %v1843_v14 = vpack.c.bf16 %v1775_v7, %v1775_v7  ;;  %v1989_v9 = vld [vmem:[#allocation69] sm:$0x3] }
 0x65f   :  { %v1746_v15 = vadd.f32 %v1745_v8, %v1743_v63  ;;  %v1694_v17 = vpop.f32.mrf.mxu3  ;;  %v2538_v30 = vunpack.c.l.bf16 %v2537_v28 }
 0x660   :  { %5387 = vmatmul.msk.bf16.vlgmr.msra.gmra.mxu0 %vm1308_vm14, %v1776_v12  ;;  %5396 = vmatmul.msk.bf16.vlgmr.msrb.gmra.mxu1 %vm1308_vm14, %v1843_v14  ;;  %v2011_v12 = vld [vmem:[%s8239_s14] sm:$0x3]  ;;  %v6437_v17 = vld [vmem:[#allocation67 + $0x8] sm:$0xff]  ;;  %s9532_s14 = sld [smem:[#allocation105_spill]] }
 0x661   :  { %v1748_v18 = vpack.c.bf16 %v1746_v15, %v1746_v15 }
 0x663   :  { %v2528_v21 = vunpack.c.l.bf16 %v1748_v18  ;;  %v6436_v18 = vld [vmem:[#allocation67] sm:$0xff] }
 0x665   :  { %v2529_v22 = vmul.f32 %v5363_v56, %v2528_v21 }
 0x667   :  { %v2530_v23 = vpack.c.bf16 %v2529_v22, %v2529_v22  ;;  %v6438_v22 = vld [vmem:[%s9523_s0] sm:$0xff] }
 0x669   :  { %v8717_v25 = vunpack.c.l.bf16 %v2530_v23 }
 0x66b   :  { %v8720_v26 = vsub.f32 %v5363_v56, %v8717_v25  ;;  %v2534_v27 = vsub.f32 %v2528_v21, %v8717_v25  ;;  %v6439_v21 = vld [vmem:[%s9523_s0 + $0x8] sm:$0xff] }
 0x66d   :  { %v2535_v29 = vpack.c.bf16 %v2534_v27, %v2534_v27 }
 0x66f   :  { %v8723_v31 = vunpack.c.l.bf16 %v2535_v29 }
 0x671   :  { %v8726_v33 = vsub.f32 %v2538_v30, %v8723_v31 }
 0x6dd   :  { %v1839_v39 = vpop.f32.mrf.mxu0  ;;  %v1873_v43 = vpop.f32.mrf.mxu1 }
 0x6df   :  { %v1811_v44 = vpop.f32.mrf.mxu3 }
 0x6e0   :  { %v1840_v45 = vadd.f32 %v1839_v39, %v1811_v44 }
 0x6e2   :  { %v1877_v51 = vadd.f32 %v1873_v43, %v1840_v45 }
 0x6e4   :  { %v1882_v53 = vmul.f32 %v6746_v46, %v1877_v51 }
 0x6e5   :  { %v1841_v54 = vpop.f32.mrf.mxu0  ;;  %v1875_v55 = vpop.f32.mrf.mxu1 }
 0x6e6   :  { %v1887_v56 = vadd.f32 %v6747_v52, %v1882_v53 }
 0x6e7   :  { %v1813_v1 = vpop.f32.mrf.mxu3 }
 0x6e8   :  { %v1888_v60 = vmax.f32 %v1887_v56, 0.0 }
 0x6ea   :  { %v1889_v61 = vpack.c.bf16 %v1888_v60, %v1888_v60 }
 0x6ec   :  { %5413 = vmatmul.msk.bf16.vlgmr.msra.gmra.mxu2 %vm1204_vm7, %v1889_v61  ;;  %5430 = vmatmul.msk.bf16.vlgmr.msra.gmra.mxu3 %vm1204_vm7, %v1889_v61 }
 0x76f   :  { %v1934_v62 = vpop.f32.mrf.mxu2  ;;  %v1979_v63 = vpop.f32.mrf.mxu3 }
 0x770   :  { %vm1983_vm11 = vcmp.ge.f32.partialorder %v1934_v62, %v1979_v63  ;;  %v1987_v0 = vmax.f32 %v1934_v62, %v1979_v63 }
 0x771   :  { %v5431_v3 = vsel %vm1983_vm11, 1.0, %v7984_v2 }
 0x772   :  { %v1986_v4 = vpack.c.bf16 %v5431_v3, %v5431_v3  ;;  %v1988_v6 = vpack.c.bf16 %v1987_v0, %v1987_v0 }
 0x774   :  { %v2033_v7 = vsel %vm1994_vm15, %v1986_v4, 0  ;;  %v1996_v8 = vsel %vm1994_vm15, %v1988_v6, 0 }
 0x775   :  { %2042 = vmatpush.bf16.msrb.mxu2 %v2033_v7  ;;  %2055 = vmatpush.bf16.msrb.mxu3 %v2033_v7 }
 0x776   :  { %2005 = vmatpush.bf16.msrb.mxu0 %v1996_v8  ;;  %2022 = vmatpush.bf16.msra.mxu1 %v1996_v8 }
 0x777   :  { %v1936_v14 = vpop.f32.mrf.mxu2  ;;  %v1981_v15 = vpop.f32.mrf.mxu3 }
 0x778   :  { %5435 = vmatmul.msk.bf16.vlgmr.msrb.gmra.mxu2 %vm9433_vm4, %v1989_v9  ;;  %5436 = vmatmul.msk.bf16.vlgmr.msrb.gmra.mxu3 %vm9433_vm4, %v2011_v12 }
 0x779   :  { %5432 = vmatmul.msk.bf16.vlgmr.msrb.gmra.mxu0 %vm9433_vm4, %v1989_v9  ;;  %5433 = vmatmul.msk.bf16.vlgmr.msra.gmra.mxu1 %vm9433_vm4, %v2011_v12  ;;  %vm2194_vm4 = vcmask 31744  }
 0x77a   :  { %2146 = vmatpush.bf16.msrb.mxu1 %v6437_v17  ;;  %2183 = vmatpush.bf16.msra.mxu3 %v6437_v17 }
 0x77b   :  { %2118 = vmatpush.bf16.msra.mxu0 %v6439_v21  ;;  %2167 = vmatpush.bf16.msra.mxu2 %v6439_v21 }
 0x77e   :  { %2147 = vmatpush.bf16.msrb.mxu1 %v6436_v18  ;;  %2184 = vmatpush.bf16.msra.mxu3 %v6436_v18 }
 0x77f   :  { %2119 = vmatpush.bf16.msra.mxu0 %v6438_v22  ;;  %2168 = vmatpush.bf16.msra.mxu2 %v6438_v22  ;;  %v6447_v22 = vld [vmem:[#allocation16 + $0x38] sm:$0xff] }
 0x783   :  { %2293 = vmatpush.bf16.msrb.mxu2 %v6447_v22 }
 0x7f6   :  { %v2007_v23 = vpop.f32.mrf.mxu0  ;;  %v2024_v27 = vpop.f32.mrf.mxu1 }
 0x7f7   :  { %vm2028_vm11 = vcmp.ge.f32.partialorder %v2007_v23, %v2024_v27  ;;  %v2031_v39 = vmax.f32 %v2007_v23, %v2024_v27  ;;  %v6443_v23 = vld [vmem:[#allocation16 + $0x18] sm:$0xff]  ;;  %v6446_v27 = vld [vmem:[#allocation16 + $0x30] sm:$0xff] }
 0x7f8   :  { %v5434_v28 = vsel %vm2028_vm11, 1.0, %v7984_v2  ;;  %2333 = vmatpush.bf16.msrb.mxu3 %v6443_v23  ;;  %2294 = vmatpush.bf16.msrb.mxu2 %v6446_v27  ;;  %vm2198_vm11 = vcmask 1041408   ;;  %v6455_v23 = vld [vmem:[#allocation21 + $0x18] sm:$0xff]  ;;  %v6454_v27 = vld [vmem:[#allocation21 + $0x10] sm:$0xff] }
 0x7f9   :  { %v2062_v29 = vsub.f32 1.0, %v5434_v28  ;;  %v2067_v51 = vpack.c.bf16 %v2031_v39, %v2031_v39 }
 0x7fb   :  { %v2044_v30 = vpop.f32.mrf.mxu2  ;;  %v2057_v34 = vpop.f32.mrf.mxu3  ;;  %v2083_v54 = vunpack.c.l.bf16 %v2067_v51  ;;  %v2078_v60 = vpack.c.bf16 %v2062_v29, %v2062_v29  ;;  %v6451_v51 = vld [vmem:[#allocation16 + $0x58] sm:$0xff] }
 0x7fc   :  { %v2061_v35 = vmul.f32 %v5434_v28, %v2044_v30  ;;  %v2063_v36 = vmul.f32 %v2062_v29, %v2057_v34 }
 0x7fd   :  { %v2079_v3 = vunpack.c.l.bf16 %v2078_v60  ;;  %v6444_v60 = vld [vmem:[#allocation16 + $0x20] sm:$0xff] }
 0x7fe   :  { %v2064_v37 = vadd.f32 %v2063_v36, %v2061_v35  ;;  %v2009_v38 = vpop.f32.mrf.mxu0  ;;  %v2026_v49 = vpop.f32.mrf.mxu1 }
 0x7ff   :  { %v2190_v49 = vld [vmem:[%s8244_s9] sm:$0xf]  ;;  %s9528_s9 = sld [smem:[#allocation103_spill]] }
 0x800   :  { %v2066_v43 = vpack.c.bf16 %v2064_v37, %v2064_v37 }
 0x802   :  { %v2069_v44 = vunpack.c.l.bf16 %v2066_v43 }
 0x803   :  { %v2046_v45 = vpop.f32.mrf.mxu2  ;;  %v2059_v46 = vpop.f32.mrf.mxu3 }
 0x804   :  { %v2070_v52 = vmul.f32 %v5434_v28, %v2069_v44 }
 0x806   :  { %v2071_v53 = vpack.c.bf16 %v2070_v52, %v2070_v52 }
 0x808   :  { %v2072_v55 = vunpack.c.l.bf16 %v2071_v53  ;;  %v2192_v53 = vld [vmem:[%s8249_s20] sm:$0xf] }
 0x80a   :  { %v2073_v56 = vsub.f32 %v5434_v28, %v2072_v55  ;;  %v2075_v1 = vsub.f32 %v2069_v44, %v2072_v55  ;;  %v2084_v61 = vmul.f32 %v2083_v54, %v2072_v55  ;;  %v6442_v28 = vld [vmem:[#allocation16 + $0x10] sm:$0xff]  ;;  %v6445_v55 = vld [vmem:[#allocation16 + $0x28] sm:$0xff] }
 0x80b   :  { %2334 = vmatpush.bf16.msrb.mxu3 %v6442_v28  ;;  %2295 = vmatpush.bf16.msrb.mxu2 %v6445_v55  ;;  %v6453_v28 = vld [vmem:[#allocation21 + $0x8] sm:$0xff] }
 0x80c   :  { %v2074_v62 = vpack.c.bf16 %v2073_v56, %v2073_v56  ;;  %v2076_v63 = vpack.c.bf16 %v2075_v1, %v2075_v1  ;;  %v2085_v0 = vpack.c.bf16 %v2084_v61, %v2084_v61  ;;  %v6450_v56 = vld [vmem:[#allocation16 + $0x50] sm:$0xff]  ;;  %v6441_v1 = vld [vmem:[#allocation16 + $0x8] sm:$0xff] }
 0x80d   :  { %v6449_v61 = vld [vmem:[#allocation16 + $0x48] sm:$0xff] }
 0x80e   :  { %v2080_v4 = vunpack.c.l.bf16 %v2076_v63  ;;  %v2090_v6 = vunpack.c.l.bf16 %v2074_v62  ;;  %5454 = vmatmul.msk.bf16.vlgmr.msrb.gmra.mxu1 %vm1308_vm14, %v2085_v0  ;;  %v6440_v62 = vld [vmem:[#allocation16] sm:$0xff] }
 0x80f   :  { %2335 = vmatpush.bf16.msrb.mxu3 %v6441_v1  ;;  %2296 = vmatpush.bf16.msrb.mxu2 %v6444_v60  ;;  %v6448_v63 = vld [vmem:[#allocation16 + $0x40] sm:$0xff] }
 0x810   :  { %v2081_v7 = vsub.f32 %v2079_v3, %v2080_v4  ;;  %v2153_v8 = vmul.f32 %v2083_v54, %v2080_v4  ;;  %v2091_v9 = vmul.f32 %v2090_v6, %v2083_v54 }
 0x812   :  { %v2082_v12 = vpack.c.bf16 %v2081_v7, %v2081_v7  ;;  %v2154_v14 = vpack.c.bf16 %v2153_v8, %v2153_v8  ;;  %v2092_v15 = vpack.c.bf16 %v2091_v9, %v2091_v9 }
 0x813   :  { %2336 = vmatpush.bf16.msrb.mxu3 %v6440_v62 }
 0x814   :  { %v2155_v17 = vunpack.c.l.bf16 %v2082_v12  ;;  %5445 = vmatmul.msk.bf16.vlgmr.msra.gmra.mxu0 %vm1308_vm14, %v2092_v15  ;;  %5456 = vmatmul.msk.bf16.vlgmr.msra.gmra.mxu3 %vm1308_vm14, %v2154_v14 }
 0x816   :  { %v2156_v18 = vmul.f32 %v2155_v17, %v2083_v54 }
 0x818   :  { %v2157_v21 = vpack.c.bf16 %v2156_v18, %v2156_v18 }
 0x81a   :  { %5455 = vmatmul.msk.bf16.vlgmr.msra.gmra.mxu2 %vm1308_vm14, %v2157_v21 }
 0x81b   :  { %2473 = vmatpush.bf16.msra.mxu2 %v6453_v28  ;;  %v2541_v28 = vpack.c.bf16 %v8726_v33, %v8726_v33 }
 0x88b   :  { %v2149_v29 = vpop.f32.mrf.mxu1 }
 0x891   :  { %v2121_v30 = vpop.f32.mrf.mxu0 }
 0x892   :  { %v2150_v34 = vadd.f32 %v2149_v29, %v2121_v30  ;;  %v6457_v29 = vld [vmem:[#allocation21 + $0x28] sm:$0xff]  ;;  %v6452_v30 = vld [vmem:[#allocation21] sm:$0xff] }
 0x893   :  { %v2151_v35 = vpop.f32.mrf.mxu1  ;;  %2507 = vmatpush.bf16.msra.mxu3 %v6457_v29  ;;  %2474 = vmatpush.bf16.msra.mxu2 %v6452_v30 }
 0x894   :  { %v2191_v36 = vpack.c.bf16 %v2150_v34, %v2150_v34  ;;  %v6456_v34 = vld [vmem:[#allocation21 + $0x20] sm:$0xff] }
 0x896   :  { %v2219_v37 = vsel %vm2198_vm11, %v2191_v36, 0 }
 0x897   :  { %v2186_v38 = vpop.f32.mrf.mxu3  ;;  %2228 = vmatpush.bf16.msra.mxu1 %v2219_v37  ;;  %2508 = vmatpush.bf16.msra.mxu3 %v6456_v34 }
 0x899   :  { %v2123_v39 = vpop.f32.mrf.mxu0 }
 0x89a   :  { %5458 = vmatmul.msk.bf16.vlgmr.msra.gmra.mxu1 %vm2194_vm4, %v2190_v49  ;;  %v6748_v49 = vld [vmem:[#allocation18] ss:$0 sm:$0xff] }
 0x89b   :  { %2445 = vmatpush.bf16.msrb.mxu1 %v6455_v23 }
 0x89d   :  { %v2170_v43 = vpop.f32.mrf.mxu2 }
 0x89e   :  { %v2187_v44 = vadd.f32 %v2186_v38, %v2170_v43 }
 0x89f   :  { %v2188_v45 = vpop.f32.mrf.mxu3  ;;  %2446 = vmatpush.bf16.msrb.mxu1 %v6454_v27  ;;  %v2533_v27 = vpack.c.bf16 %v8720_v26, %v8720_v26  ;;  %v6471_v26 = vld [vmem:[#allocation25 + $0x38] sm:$0xff] }
 0x8a0   :  { %v2193_v46 = vpack.c.bf16 %v2187_v44, %v2187_v44  ;;  %v6749_v44 = vld [vmem:[#allocation19] ss:$0 sm:$0xff] }
 0x8a1   :  { %v2549_v34 = vunpack.c.l.bf16 %v2533_v27 }
 0x8a2   :  { %v2200_v52 = vsel %vm2198_vm11, %v2193_v46, 0 }
 0x8a3   :  { %2209 = vmatpush.bf16.msrb.mxu0 %v2200_v52 }
 0x8a5   :  { %v2172_v54 = vpop.f32.mrf.mxu2 }
 0x8a6   :  { %5457 = vmatmul.msk.bf16.vlgmr.msrb.gmra.mxu0 %vm2194_vm4, %v2192_v53  ;;  %vm9524_vm4 = vcmask 1046528  }
 0x8a7   :  { %2383 = vmatpush.bf16.msra.mxu0 %v6451_v51  ;;  %vm9525_vm11 = vmmov %vm9524_vm4 }
 0x8ab   :  { %2384 = vmatpush.bf16.msra.mxu0 %v6450_v56 }
 0x8af   :  { %2385 = vmatpush.bf16.msra.mxu0 %v6449_v61 }
 0x8b3   :  { %2386 = vmatpush.bf16.msra.mxu0 %v6448_v63 }
 0x917   :  { %v2230_v0 = vpop.f32.mrf.mxu1 }
 0x91f   :  { %v2232_v3 = vpop.f32.mrf.mxu1 }
 0x920   :  { %v6461_v3 = vld [vmem:[#allocation57 + $0x8] sm:$0xff] }
 0x921   :  { %2577 = vmatpush.bf16.msrb.mxu0 %v6461_v3 }
 0x923   :  { %v2211_v4 = vpop.f32.mrf.mxu0 }
 0x924   :  { %v2231_v6 = vadd.f32 %v2230_v0, %v2211_v4  ;;  %v6459_v4 = vld [vmem:[#allocation55 + $0x8] sm:$0xff] }
 0x925   :  { %2605 = vmatpush.bf16.msra.mxu1 %v6459_v4 }
 0x926   :  { %v2235_v7 = vrot.slane %v2231_v6, 7  ;;  %v2238_v8 = vrot.slane %v2231_v6, 1  ;;  %v2252_v9 = vpack.c.bf16 %v2231_v6, %v2231_v6  ;;  %v6460_v6 = vld [vmem:[#allocation57] sm:$0xff] }
 0x927   :  { %2578 = vmatpush.bf16.msrb.mxu0 %v6460_v6 }
 0x928   :  { %v2237_v12 = vsel %vm879_vm0, 0.0, %v2235_v7  ;;  %v2240_v14 = vsel %vm9524_vm4, %v2238_v8, 0.0  ;;  %5475 = vmatmul.msk.bf16.vlgmr.msrb.gmra.mxu2 %vm1204_vm7, %v2252_v9  ;;  %v6458_v7 = vld [vmem:[#allocation55] sm:$0xff] }
 0x929   :  { %v2241_v15 = vsel %vm8700_vm12, 0.0, %v2237_v12  ;;  %v2242_v17 = vsel %vm8704_vm13, 0.0, %v2240_v14  ;;  %2626 = vmatpush.bf16.msrb.mxu2 %v6461_v3  ;;  %2606 = vmatpush.bf16.msra.mxu1 %v6458_v7  ;;  %v6750_v14 = vld [vmem:[#allocation22] ss:$0 sm:$0xff] }
 0x92a   :  { %v2243_v18 = vpack.c.bf16 %v2241_v15, %v2241_v15  ;;  %v2342_v21 = vpack.c.bf16 %v2242_v17, %v2242_v17  ;;  %v6751_v17 = vld [vmem:[#allocation24] ss:$0 sm:$0xff] }
 0x92b   :  { %v2213_v22 = vpop.f32.mrf.mxu0 }
 0x92c   :  { %5492 = vmatmul.msk.bf16.vlgmr.msrb.gmra.mxu3 %vm1204_vm7, %v2243_v18  ;;  %5509 = vmatmul.msk.bf16.vlgmr.msra.gmra.mxu0 %vm1204_vm7, %v2342_v21 }
 0x92d   :  { %2642 = vmatpush.bf16.msrb.mxu3 %v6459_v4  ;;  %2627 = vmatpush.bf16.msrb.mxu2 %v6460_v6  ;;  %v6470_v4 = vld [vmem:[#allocation25 + $0x30] sm:$0xff]  ;;  %v6467_v6 = vld [vmem:[#allocation25 + $0x18] sm:$0xff] }
 0x931   :  { %2643 = vmatpush.bf16.msrb.mxu3 %v6458_v7  ;;  %v6475_v7 = vld [vmem:[#allocation25 + $0x58] sm:$0xff] }
 0x9a9   :  { %v2388_v35 = vpop.f32.mrf.mxu0 }
 0x9ab   :  { %v2298_v36 = vpop.f32.mrf.mxu2 }
 0x9af   :  { %v2338_v37 = vpop.f32.mrf.mxu3 }
 0x9b0   :  { %v2339_v38 = vadd.f32 %v2338_v37, %v2298_v36 }
 0x9b1   :  { %v2390_v39 = vpop.f32.mrf.mxu0 }
 0x9b2   :  { %v2392_v43 = vadd.f32 %v2388_v35, %v2339_v38  ;;  %v2614_v35 = vunpack.c.l.bf16 %v2541_v28 }
 0x9b3   :  { %v2300_v45 = vpop.f32.mrf.mxu2 }
 0x9b4   :  { %v2397_v46 = vmul.f32 %v6748_v49, %v2392_v43 }
 0x9b6   :  { %v2402_v51 = vadd.f32 %v6749_v44, %v2397_v46 }
 0x9b7   :  { %v2340_v52 = vpop.f32.mrf.mxu3 }
 0x9b8   :  { %v2403_v53 = vmax.f32 %v2402_v51, 0.0 }
 0x9ba   :  { %v2405_v54 = vrot.slane %v2403_v53, 7  ;;  %v2408_v55 = vrot.slane %v2403_v53, 1  ;;  %v2418_v56 = vpack.c.bf16 %v2403_v53, %v2403_v53  ;;  %v6462_v53 = vld [vmem:[#allocation61] sm:$0xff] }
 0x9bc   :  { %5518 = vmatmul.msk.bf16.vlgmr.msrb.gmra.mxu1 %vm1308_vm14, %v2418_v56  ;;  %v2407_v1 = vsel %vm879_vm0, 0.0, %v2405_v54  ;;  %v2410_v60 = vsel %vm9525_vm11, %v2408_v55, 0.0  ;;  %vm9530_vm11 = vmmov %vm9524_vm4 }
 0x9bd   :  { %v2411_v61 = vsel %vm8700_vm12, 0.0, %v2407_v1  ;;  %v2412_v62 = vsel %vm8704_vm13, 0.0, %v2410_v60  ;;  %vm9526_vm12 = vcmask 64512  }
 0x9be   :  { %v2413_v63 = vpack.c.bf16 %v2411_v61, %v2411_v61  ;;  %v2480_v0 = vpack.c.bf16 %v2412_v62, %v2412_v62  ;;  %vm9527_vm13 = vmmov %vm9526_vm12 }
 0x9c0   :  { %5527 = vmatmul.msk.bf16.vlgmr.msra.gmra.mxu2 %vm1308_vm14, %v2413_v63  ;;  %5536 = vmatmul.msk.bf16.vlgmr.msra.gmra.mxu3 %vm1308_vm14, %v2480_v0  ;;  %v6463_v63 = vld [vmem:[#allocation63] sm:$0xff] }
 0x9c1   :  { %2773 = vmatpush.bf16.msra.mxu2 %v6471_v26  ;;  %2814 = vmatpush.bf16.msra.mxu3 %v6467_v6 }
 0x9c5   :  { %2774 = vmatpush.bf16.msra.mxu2 %v6470_v4 }
 0xa39   :  { %v2448_v57 = vpop.f32.mrf.mxu1 }
 0xa41   :  { %v2450_v58 = vpop.f32.mrf.mxu1 }
 0xa42   :  { %v6466_v58 = vld [vmem:[#allocation25 + $0x10] sm:$0xff] }
 0xa43   :  { %v2476_v8 = vpop.f32.mrf.mxu2  ;;  %v2510_v9 = vpop.f32.mrf.mxu3  ;;  %2815 = vmatpush.bf16.msra.mxu3 %v6466_v58 }
 0xa44   :  { %v2477_v12 = vadd.f32 %v2476_v8, %v2448_v57  ;;  %v6469_v57 = vld [vmem:[#allocation25 + $0x28] sm:$0xff]  ;;  %v6474_v8 = vld [vmem:[#allocation25 + $0x50] sm:$0xff] }
 0xa45   :  { %2775 = vmatpush.bf16.msra.mxu2 %v6469_v57 }
 0xa46   :  { %v2514_v15 = vadd.f32 %v2510_v9, %v2477_v12  ;;  %v6468_v9 = vld [vmem:[#allocation25 + $0x20] sm:$0xff]  ;;  %v6465_v12 = vld [vmem:[#allocation25 + $0x8] sm:$0xff] }
 0xa47   :  { %2816 = vmatpush.bf16.msra.mxu3 %v6465_v12 }
 0xa48   :  { %v2519_v18 = vmul.f32 %v6750_v14, %v2514_v15  ;;  %v6473_v14 = vld [vmem:[#allocation25 + $0x48] sm:$0xff]  ;;  %v6464_v15 = vld [vmem:[#allocation25] sm:$0xff] }
 0xa49   :  { %2776 = vmatpush.bf16.msra.mxu2 %v6468_v9 }
 0xa4a   :  { %v2524_v21 = vadd.f32 %v6751_v17, %v2519_v18  ;;  %v6472_v17 = vld [vmem:[#allocation25 + $0x40] sm:$0xff] }
 0xa4b   :  { %v2478_v22 = vpop.f32.mrf.mxu2  ;;  %v2512_v23 = vpop.f32.mrf.mxu3  ;;  %2817 = vmatpush.bf16.msra.mxu3 %v6464_v15 }
 0xa4c   :  { %v2525_v29 = vmax.f32 %v2524_v21, 0.0 }
 0xa4e   :  { %v2526_v30 = vpack.c.bf16 %v2525_v29, %v2525_v29 }
 0xa50   :  { %v2542_v36 = vunpack.c.l.bf16 %v2526_v30 }
 0xa52   :  { %v2612_v37 = vmul.f32 %v2542_v36, %v8723_v31  ;;  %v2615_v38 = vmul.f32 %v2614_v35, %v2542_v36  ;;  %v2550_v49 = vmul.f32 %v2549_v34, %v2542_v36  ;;  %v2543_v39 = vmul.f32 %v2542_v36, %v8717_v25 }
 0xa54   :  { %v2613_v43 = vpack.c.bf16 %v2612_v37, %v2612_v37  ;;  %v2616_v44 = vpack.c.bf16 %v2615_v38, %v2615_v38  ;;  %v2551_v45 = vpack.c.bf16 %v2550_v49, %v2550_v49  ;;  %v2544_v46 = vpack.c.bf16 %v2543_v39, %v2543_v39 }
 0xa56   :  { %5545 = vmatmul.msk.bf16.vlgmr.msrb.gmra.mxu0 %vm1308_vm14, %v2551_v45  ;;  %5554 = vmatmul.msk.bf16.vlgmr.msra.gmra.mxu1 %vm1308_vm14, %v2544_v46 }
 0xa57   :  { %5555 = vmatmul.msk.bf16.vlgmr.msrb.gmra.mxu2 %vm1308_vm14, %v2616_v44  ;;  %5556 = vmatmul.msk.bf16.vlgmr.msrb.gmra.mxu3 %vm1308_vm14, %v2613_v43 }
 0xad3   :  { %v2580_v33 = vpop.f32.mrf.mxu0  ;;  %v2608_v31 = vpop.f32.mrf.mxu1 }
 0xad4   :  { %v2609_v51 = vadd.f32 %v2608_v31, %v2580_v33  ;;  %v6479_v31 = vld [vmem:[%s9528_s9 + $0x18] sm:$0xff] }
 0xad6   :  { %v2651_v52 = vpack.c.bf16 %v2609_v51, %v2609_v51  ;;  %v6478_v51 = vld [vmem:[%s9528_s9 + $0x10] sm:$0xff] }
 0xad8   :  { %v2689_v25 = vsel %vm1994_vm15, %v2651_v52, 0  ;;  %v6477_v52 = vld [vmem:[%s9528_s9 + $0x8] sm:$0xff] }
 0xad9   :  { %2698 = vmatpush.bf16.msrb.mxu1 %v2689_v25  ;;  %v6481_v25 = vld [vmem:[%s9528_s9 + $0x28] sm:$0xff]  ;;  %2970 = vmatpush.bf16.msrb.mxu2 %v6477_v52 }
 0xada   :  { %v2629_v54 = vpop.f32.mrf.mxu2  ;;  %v2645_v55 = vpop.f32.mrf.mxu3  ;;  %3005 = vmatpush.bf16.msrb.mxu3 %v6481_v25 }
 0xadb   :  { %v2646_v56 = vadd.f32 %v2645_v55, %v2629_v54  ;;  %v2582_v1 = vpop.f32.mrf.mxu0  ;;  %v2610_v60 = vpop.f32.mrf.mxu1  ;;  %v6480_v54 = vld [vmem:[%s9528_s9 + $0x20] sm:$0xff] }
 0xadc   :  { %5566 = vmatmul.msk.bf16.vlgmr.msrb.gmra.mxu1 %vm9526_vm12, %v6462_v53  ;;  %v6476_v53 = vld [vmem:[%s9528_s9] sm:$0xff]  ;;  %vm9531_vm12 = vmmov %vm9524_vm4 }
 0xadd   :  { %v2654_v61 = vpack.c.bf16 %v2646_v56, %v2646_v56  ;;  %2941 = vmatpush.bf16.msra.mxu1 %v6479_v31  ;;  %2971 = vmatpush.bf16.msrb.mxu2 %v6476_v53  ;;  %v6755_v53 = vld [vmem:[#allocation31] ss:$0 sm:$0xff] }
 0xade   :  { %3006 = vmatpush.bf16.msrb.mxu3 %v6480_v54 }
 0xadf   :  { %v2664_v62 = vsel %vm1994_vm15, %v2654_v61, 0  ;;  %vm9529_vm15 = vmmov %vm9524_vm4  ;;  %v6752_v61 = vld [vmem:[#allocation27] ss:$0 sm:$0xff] }
 0xae0   :  { %2673 = vmatpush.bf16.msra.mxu0 %v2664_v62 }
 0xae1   :  { %2942 = vmatpush.bf16.msra.mxu1 %v6478_v51  ;;  %v6754_v51 = vld [vmem:[#allocation30] ss:$0 sm:$0xff] }
 0xae2   :  { %v2631_v0 = vpop.f32.mrf.mxu2  ;;  %v2647_v3 = vpop.f32.mrf.mxu3 }
 0xae3   :  { %5561 = vmatmul.msk.bf16.vlgmr.msra.gmra.mxu0 %vm9527_vm13, %v6463_v63  ;;  %v6753_v63 = vld [vmem:[#allocation28] ss:$0 sm:$0xff]  ;;  %vm1351_vm13 = vcmp.ge.f32.partialorder %v8636_v5, %v8640_v10 }
 0xae4   :  { %2865 = vmatpush.bf16.msrb.mxu0 %v6475_v7  ;;  %v5287_v11 = vsel %vm1351_vm13, 1.0, %v7984_v2  ;;  %vm9542_vm13 = vmmov %vm9524_vm4 }
 0xae5   :  { %v1387_v20 = vmul.f32 %v5287_v11, %v8686_v59 }
 0xae8   :  { %2866 = vmatpush.bf16.msrb.mxu0 %v6474_v8 }
 0xaec   :  { %2867 = vmatpush.bf16.msrb.mxu0 %v6473_v14 }
 0xaf0   :  { %2868 = vmatpush.bf16.msrb.mxu0 %v6472_v17 }
 0xb59   :  { %v2700_v18 = vpop.f32.mrf.mxu1 }
 0xb60   :  { %v2675_v21 = vpop.f32.mrf.mxu0 }
 0xb61   :  { %v2701_v22 = vadd.f32 %v2700_v18, %v2675_v21  ;;  %v2702_v28 = vpop.f32.mrf.mxu1 }
 0xb63   :  { %v2707_v23 = vrot.slane %v2701_v22, 7  ;;  %v2713_v30 = vrot.slane %v2701_v22, 1 }
 0xb65   :  { %v2712_v34 = vsel %vm879_vm0, 0.0, %v2707_v23 }
 0xb66   :  { %v2719_v43 = vsel %vm8642_vm3, 0.0, %v2712_v34 }
 0xb68   :  { %v2677_v27 = vpop.f32.mrf.mxu0 }
 0xb69   :  { %v2703_v29 = vadd.f32 %v2702_v28, %v2677_v27 }
 0xb6b   :  { %v2708_v35 = vrot.slane %v2703_v29, 7  ;;  %v2714_v36 = vrot.slane %v2703_v29, 1  ;;  %v2732_v37 = vpack.c.bf16 %v2703_v29, %v2701_v22 }
 0xb6d   :  { %v2709_v38 = vsel %vm879_vm0, %v2707_v23, %v2708_v35  ;;  %v2715_v49 = vsel %vm9529_vm15, %v2713_v30, %v2714_v36  ;;  %v2718_v39 = vsel %vm9524_vm4, %v2714_v36, 0.0  ;;  %5583 = vmatmul.msk.bf16.vlgmr.msra.gmra.mxu2 %vm1204_vm7, %v2732_v37  ;;  %vm9538_vm15 = vmmov %vm9524_vm4 }
 0xb6e   :  { %v2720_v44 = vsel %vm8653_vm9, 0.0, %v2709_v38  ;;  %v2721_v45 = vsel %vm8657_vm10, 0.0, %v2715_v49  ;;  %v2722_v46 = vsel %vm8648_vm8, 0.0, %v2718_v39  ;;  %v1389_v49 = vsub.f32 1.0, %v5287_v11 }
 0xb6f   :  { %v2723_v26 = vpack.c.bf16 %v2720_v44, %v2719_v43  ;;  %v2824_v33 = vpack.c.bf16 %v2722_v46, %v2721_v45  ;;  %v6485_v44 = vld [vmem:[#allocation45 + $0x8] sm:$0xff]  ;;  %v6483_v45 = vld [vmem:[#allocation43 + $0x8] sm:$0xff] }
 0xb70   :  { %v1391_v32 = vmul.f32 %v1389_v49, %v8690_v24  ;;  %3100 = vmatpush.bf16.msra.mxu0 %v6485_v44  ;;  %3129 = vmatpush.bf16.msrb.mxu1 %v6483_v45 }
 0xb71   :  { %5600 = vmatmul.msk.bf16.vlgmr.msra.gmra.mxu3 %vm1204_vm7, %v2723_v26  ;;  %5617 = vmatmul.msk.bf16.vlgmr.msrb.gmra.mxu0 %vm1204_vm7, %v2824_v33  ;;  %v6484_v26 = vld [vmem:[#allocation45] sm:$0xff]  ;;  %v6482_v33 = vld [vmem:[#allocation43] sm:$0xff] }
 0xb72   :  { %v1393_v39 = vadd.f32 %v1391_v32, %v1387_v20  ;;  %3154 = vmatpush.bf16.msra.mxu2 %v6485_v44  ;;  %3171 = vmatpush.bf16.msra.mxu3 %v6483_v45  ;;  %v5759_v44 = vld [vmem:[%s9532_s14 + $0xe0] sm:$0xf]  ;;  %v6520_v45 = vld [vmem:[%s9532_s14 + $0xec] sm:$0xf0] }
 0xb74   :  { %v1397_v43 = vpack.c.bf16 %v1393_v39, %v1393_v39  ;;  %3101 = vmatpush.bf16.msra.mxu0 %v6484_v26  ;;  %3130 = vmatpush.bf16.msrb.mxu1 %v6482_v33 }
 0xb76   :  { %v3034_v13 = vunpack.c.l.bf16 %v1397_v43  ;;  %3155 = vmatpush.bf16.msra.mxu2 %v6484_v26  ;;  %3172 = vmatpush.bf16.msra.mxu3 %v6482_v33 }
 0xb78   :  { %v3036_v46 = vmul.f32 %v5287_v11, %v3034_v13 }
 0xb7a   :  { %v3038_v2 = vpack.c.bf16 %v3036_v46, %v3036_v46  ;;  %v6518_v46 = vld [vmem:[%s9532_s14 + $0xe4] sm:$0xf] }
 0xb7c   :  { %v3040_v5 = vunpack.c.l.bf16 %v3038_v2  ;;  %v5760_v2 = vor.u32 %v6520_v45, %v5759_v44  ;;  %v5721_v44 = vld [vmem:[%s9532_s14 + $0x98] sm:$0xf0] }
 0xb7e   :  { %v3046_v52 = vsub.f32 %v3034_v13, %v3040_v5 }
 0xbee   :  { %v2870_v56 = vpop.f32.mrf.mxu0 }
 0xbf0   :  { %v2778_v55 = vpop.f32.mrf.mxu2 }
 0xbf4   :  { %v2819_v1 = vpop.f32.mrf.mxu3 }
 0xbf5   :  { %v2820_v60 = vadd.f32 %v2819_v1, %v2778_v55  ;;  %v3048_v55 = vpack.c.bf16 %v3046_v52, %v3046_v52  ;;  %v3052_v1 = vpack.c.bf16 %v1389_v49, %v1389_v49 }
 0xbf6   :  { %v2872_v57 = vpop.f32.mrf.mxu0 }
 0xbf7   :  { %v2875_v62 = vadd.f32 %v2870_v56, %v2820_v60 }
 0xbf8   :  { %v2780_v4 = vpop.f32.mrf.mxu2 }
 0xbf9   :  { %v2881_v0 = vmul.f32 %v6752_v61, %v2875_v62 }
 0xbfb   :  { %v2887_v3 = vadd.f32 %v6753_v63, %v2881_v0 }
 0xbfc   :  { %v2821_v6 = vpop.f32.mrf.mxu3 }
 0xbfd   :  { %v2822_v7 = vadd.f32 %v2821_v6, %v2780_v4  ;;  %v2889_v58 = vmax.f32 %v2887_v3, 0.0  ;;  %v3054_v6 = vunpack.c.l.bf16 %v3052_v1 }
 0xbff   :  { %v2876_v8 = vadd.f32 %v2872_v57, %v2822_v7  ;;  %v2893_v12 = vrot.slane %v2889_v58, 7  ;;  %v2899_v17 = vrot.slane %v2889_v58, 1  ;;  %v3042_v57 = vsub.f32 %v5287_v11, %v3040_v5 }
 0xc01   :  { %v2882_v9 = vmul.f32 %v6752_v61, %v2876_v8  ;;  %v2898_v18 = vsel %vm879_vm0, 0.0, %v2893_v12 }
 0xc02   :  { %v2905_v30 = vsel %vm8642_vm3, 0.0, %v2898_v18 }
 0xc03   :  { %v2888_v14 = vadd.f32 %v6753_v63, %v2882_v9  ;;  %v3056_v63 = vunpack.c.l.bf16 %v3048_v55  ;;  %v6521_v55 = vld [vmem:[%s9532_s14 + $0xf4] sm:$0xf0] }
 0xc05   :  { %v2890_v15 = vmax.f32 %v2888_v14, 0.0  ;;  %v3059_v14 = vpack.c.bf16 %v8684_v50, %v8684_v50 }
 0xc07   :  { %v2894_v21 = vrot.slane %v2890_v15, 7  ;;  %v2900_v22 = vrot.slane %v2890_v15, 1  ;;  %v2914_v23 = vpack.c.bf16 %v2890_v15, %v2889_v58  ;;  %v3058_v58 = vsub.f32 %v3054_v6, %v3056_v63  ;;  %v5743_v6 = vld [vmem:[%s9532_s14 + $0xc0] sm:$0xf] }
 0xc08   :  { %v3044_v15 = vpack.c.bf16 %v3042_v57, %v3042_v57  ;;  %v6514_v57 = vld [vmem:[%s9532_s14 + $0xc4] sm:$0xf] }
 0xc09   :  { %v2895_v27 = vsel %vm879_vm0, %v2893_v12, %v2894_v21  ;;  %v2901_v28 = vsel %vm9530_vm11, %v2899_v17, %v2900_v22  ;;  %v2904_v29 = vsel %vm9531_vm12, %v2900_v22, 0.0  ;;  %5630 = vmatmul.msk.bf16.vlgmr.msra.gmra.mxu1 %vm1308_vm14, %v2914_v23  ;;  %v3043_v12 = vpack.c.bf16 %v8678_v42, %v8678_v42  ;;  %vm9539_vm11 = vmmov %vm9524_vm4 }
 0xc0a   :  { %v2906_v34 = vsel %vm8653_vm9, 0.0, %v2895_v27  ;;  %v2907_v35 = vsel %vm8657_vm10, 0.0, %v2901_v28  ;;  %v2908_v36 = vsel %vm8648_vm8, 0.0, %v2904_v29  ;;  %v3060_v17 = vpack.c.bf16 %v3058_v58, %v3058_v58  ;;  %vm9537_vm10 = vmmov %vm9524_vm4 }
 0xc0b   :  { %v2978_v37 = vpack.c.bf16 %v2908_v36, %v2907_v35  ;;  %v2909_v38 = vpack.c.bf16 %v2906_v34, %v2905_v30  ;;  %v3070_v23 = vunpack.c.l.bf16 %v3043_v12  ;;  %v3140_v27 = vunpack.c.l.bf16 %v3059_v14  ;;  %v6517_v12 = vld [vmem:[%s9532_s14 + $0xd4] sm:$0xf0]  ;;  %vm9541_vm12 = vmmov %vm9524_vm4 }
 0xc0c   :  { %v3071_v28 = vunpack.c.l.bf16 %v3044_v15  ;;  %v3141_v29 = vunpack.c.l.bf16 %v3060_v17  ;;  %v6515_v17 = vld [vmem:[%s9532_s14 + $0xcc] sm:$0xf] }
 0xc0d   :  { %5639 = vmatmul.msk.bf16.vlgmr.msrb.gmra.mxu2 %vm1308_vm14, %v2909_v38  ;;  %5652 = vmatmul.msk.bf16.vlgmr.msrb.gmra.mxu3 %vm1308_vm14, %v2978_v37 }
 0xc0e   :  { %3422 = vmatpush.bf16.msrb.mxu2 %v5760_v2  ;;  %v6502_v2 = vld [vmem:[%s9532_s14 + $0x64] sm:$0xf] }
 0xc86   :  { %v2944_v10 = vpop.f32.mrf.mxu1 }
 0xc8e   :  { %v2946_v60 = vpop.f32.mrf.mxu1 }
 0xc90   :  { %v2973_v59 = vpop.f32.mrf.mxu2  ;;  %v3008_v24 = vpop.f32.mrf.mxu3 }
 0xc91   :  { %v2974_v31 = vadd.f32 %v2973_v59, %v2944_v10 }
 0xc93   :  { %v3013_v25 = vadd.f32 %v3008_v24, %v2974_v31  ;;  %v6519_v31 = vld [vmem:[%s9532_s14 + $0xec] sm:$0xf] }
 0xc95   :  { %v3019_v54 = vmul.f32 %v6754_v51, %v3013_v25 }
 0xc97   :  { %v3025_v56 = vadd.f32 %v6755_v53, %v3019_v54  ;;  %v5767_v54 = vld [vmem:[%s9532_s14 + $0xe8] sm:$0xf] }
 0xc98   :  { %v2975_v61 = vpop.f32.mrf.mxu2  ;;  %v3010_v0 = vpop.f32.mrf.mxu3 }
 0xc99   :  { %v2976_v62 = vadd.f32 %v2975_v61, %v2946_v60  ;;  %v3027_v3 = vmax.f32 %v3025_v56, 0.0 }
 0xc9b   :  { %v3014_v4 = vadd.f32 %v3010_v0, %v2976_v62  ;;  %v3029_v8 = vpack.c.bf16 %v3027_v3, %v3027_v3  ;;  %v5768_v62 = vor.u32 %v6521_v55, %v5767_v54  ;;  %v6488_v0 = vld [vmem:[#allocation51] sm:$0xff]  ;;  %v6487_v3 = vld [vmem:[#allocation49 + $0x8] sm:$0xff]  ;;  %v6500_v55 = vld [vmem:[%s9532_s14 + $0x4c] sm:$0xf0] }
 0xc9d   :  { %v3020_v7 = vmul.f32 %v6754_v51, %v3014_v4  ;;  %v3061_v21 = vunpack.c.l.bf16 %v3029_v8  ;;  %v5769_v51 = vld [vmem:[%s9532_s14 + $0xf8] sm:$0xf0]  ;;  %v6489_v4 = vld [vmem:[#allocation51 + $0x8] sm:$0xff]  ;;  %v5745_v8 = vld [vmem:[%s9532_s14 + $0xd0] sm:$0xf0] }
 0xc9e   :  { %v5772_v52 = vor.u32 %v6519_v31, %v5769_v51  ;;  %v5748_v14 = vor.u32 %v6514_v57, %v5745_v8  ;;  %v6496_v57 = vld [vmem:[%s9532_s14 + $0x2c] sm:$0xf0]  ;;  %v6494_v8 = vld [vmem:[%s9532_s14 + $0x24] sm:$0xf] }
 0xc9f   :  { %v3026_v9 = vadd.f32 %v6755_v53, %v3020_v7  ;;  %v3063_v34 = vmul.f32 %v3061_v21, %v8675_v41  ;;  %v3072_v35 = vmul.f32 %v3070_v23, %v3061_v21  ;;  %v3137_v36 = vmul.f32 %v3061_v21, %v8681_v47  ;;  %v6486_v53 = vld [vmem:[#allocation49] sm:$0xff] }
 0xca0   :  { %v3142_v37 = vmul.f32 %v3140_v27, %v3061_v21  ;;  %v6516_v7 = vld [vmem:[%s9532_s14 + $0xcc] sm:$0xf0]  ;;  %v6510_v27 = vld [vmem:[%s9532_s14 + $0xa4] sm:$0xf] }
 0xca1   :  { %v3028_v18 = vmax.f32 %v3026_v9, 0.0  ;;  %v5744_v58 = vor.u32 %v6516_v7, %v5743_v6  ;;  %v5751_v9 = vld [vmem:[%s9532_s14 + $0xc8] sm:$0xf]  ;;  %v6512_v23 = vld [vmem:[%s9532_s14 + $0xac] sm:$0xf0] }
 0xca2   :  { %v5752_v15 = vor.u32 %v6517_v12, %v5751_v9  ;;  %v5825_v6 = vld [vmem:[%s9532_s14 + $0x58] sm:$0xf0]  ;;  %v5799_v7 = vld [vmem:[%s9532_s14 + $0x20] sm:$0xf]  ;;  %v5801_v9 = vld [vmem:[%s9532_s14 + $0x30] sm:$0xf0] }
 0xca3   :  { %v3030_v22 = vpack.c.bf16 %v3028_v18, %v3028_v18  ;;  %v5753_v18 = vld [vmem:[%s9532_s14 + $0xd8] sm:$0xf0]  ;;  %3423 = vmatpush.bf16.msrb.mxu2 %v5744_v58  ;;  %v5807_v12 = vld [vmem:[%s9532_s14 + $0x28] sm:$0xf] }
 0xca4   :  { %v5756_v21 = vor.u32 %v6515_v17, %v5753_v18  ;;  %v6495_v17 = vld [vmem:[%s9532_s14 + $0x2c] sm:$0xf] }
 0xca5   :  { %v3062_v30 = vunpack.c.l.bf16 %v3030_v22  ;;  %v5727_v22 = vld [vmem:[%s9532_s14 + $0xa0] sm:$0xf] }
 0xca7   :  { %v3064_v42 = vmul.f32 %v3062_v30, %v3040_v5  ;;  %v3073_v38 = vmul.f32 %v3071_v28, %v3062_v30  ;;  %v3138_v50 = vmul.f32 %v3062_v30, %v3056_v63  ;;  %v3143_v11 = vmul.f32 %v3141_v29, %v3062_v30  ;;  %v5761_v5 = vld [vmem:[%s9532_s14 + $0xf0] sm:$0xf0]  ;;  %v5735_v30 = vld [vmem:[%s9532_s14 + $0xa8] sm:$0xf] }
 0xca8   :  { %v5764_v24 = vor.u32 %v6518_v46, %v5761_v5  ;;  %v5728_v28 = vor.u32 %v6512_v23, %v5727_v22  ;;  %v5729_v29 = vld [vmem:[%s9532_s14 + $0xb0] sm:$0xf0]  ;;  %v5809_v23 = vld [vmem:[%s9532_s14 + $0x38] sm:$0xf0] }
 0xca9   :  { %v3065_v49 = vpack.c.bf16 %v3064_v42, %v3063_v34  ;;  %v3074_v32 = vpack.c.bf16 %v3073_v38, %v3072_v35  ;;  %v3139_v20 = vpack.c.bf16 %v3138_v50, %v3137_v36  ;;  %v3144_v39 = vpack.c.bf16 %v3143_v11, %v3142_v37  ;;  %v6513_v34 = vld [vmem:[%s9532_s14 + $0xb4] sm:$0xf0]  ;;  %v6511_v37 = vld [vmem:[%s9532_s14 + $0xac] sm:$0xf]  ;;  %v5737_v42 = vld [vmem:[%s9532_s14 + $0xb8] sm:$0xf0] }
 0xcaa   :  { %3441 = vmatpush.bf16.msrb.mxu3 %v5764_v24  ;;  %v5732_v35 = vor.u32 %v6510_v27, %v5729_v29  ;;  %v5736_v36 = vor.u32 %v6513_v34, %v5735_v30  ;;  %3424 = vmatpush.bf16.msrb.mxu2 %v5728_v28  ;;  %v5740_v38 = vor.u32 %v6511_v37, %v5737_v42  ;;  %v5711_v50 = vld [vmem:[%s9532_s14 + $0x80] sm:$0xf]  ;;  %v6508_v11 = vld [vmem:[%s9532_s14 + $0x8c] sm:$0xf0]  ;;  %v6505_v24 = vld [vmem:[%s9532_s14 + $0x74] sm:$0xf0] }
 0xcab   :  { %5661 = vmatmul.msk.bf16.vlgmr.msra.gmra.mxu0 %vm1308_vm14, %v3074_v32  ;;  %5670 = vmatmul.msk.bf16.vlgmr.msrb.gmra.mxu1 %vm1308_vm14, %v3065_v49  ;;  %v6506_v49 = vld [vmem:[%s9532_s14 + $0x84] sm:$0xf]  ;;  %v5712_v32 = vor.u32 %v6508_v11, %v5711_v50  ;;  %v5783_v27 = vld [vmem:[%s9532_s14] sm:$0xf]  ;;  %v6492_v28 = vld [vmem:[%s9532_s14 + $0xc] sm:$0xf0]  ;;  %v5812_v29 = vor.u32 %v6495_v17, %v5809_v23 }
 0xcac   :  { %5671 = vmatmul.msk.bf16.vlgmr.msra.gmra.mxu2 %vm1308_vm14, %v3144_v39  ;;  %5672 = vmatmul.msk.bf16.vlgmr.msra.gmra.mxu3 %vm1308_vm14, %v3139_v20  ;;  %vm9533_vm14 = vcmask 130048   ;;  %v5713_v20 = vld [vmem:[%s9532_s14 + $0x90] sm:$0xf0]  ;;  %v5719_v39 = vld [vmem:[%s9532_s14 + $0x88] sm:$0xf]  ;;  %v5784_v37 = vor.u32 %v6492_v28, %v5783_v27 }
 0xcad   :  { %vm9534_vm3 = vmmov %vm9533_vm14  ;;  %v6490_v30 = vld [vmem:[%s9532_s14 + $0x4] sm:$0xf]  ;;  %v5785_v34 = vld [vmem:[%s9532_s14 + $0x10] sm:$0xf0] }
 0xcae   :  { %vm9535_vm8 = vmmov %vm9534_vm3  ;;  %3442 = vmatpush.bf16.msrb.mxu3 %v5748_v14  ;;  %3425 = vmatpush.bf16.msrb.mxu2 %v5712_v32  ;;  %v5800_v14 = vor.u32 %v6496_v57, %v5799_v7  ;;  %v6491_v11 = vld [vmem:[%s9532_s14 + $0xc] sm:$0xf]  ;;  %v5913_v57 = vld [vmem:[%s9532_s14 + $0x158] sm:$0xf0] }
 0xcaf   :  { %vm9536_vm9 = vmmov %vm9534_vm3  ;;  %v6531_v7 = vld [vmem:[%s9532_s14 + $0x14c] sm:$0xf]  ;;  %v5895_v17 = vld [vmem:[%s9532_s14 + $0x128] sm:$0xf] }
 0xcb0   :  { %v5897_v23 = vld [vmem:[%s9532_s14 + $0x138] sm:$0xf0]  ;;  %v5871_v27 = vld [vmem:[%s9532_s14 + $0x100] sm:$0xf]  ;;  %v6524_v28 = vld [vmem:[%s9532_s14 + $0x10c] sm:$0xf0] }
 0xcb2   :  { %3443 = vmatpush.bf16.msrb.mxu3 %v5732_v35  ;;  %v5791_v35 = vld [vmem:[%s9532_s14 + $0x8] sm:$0xf] }
 0xd28   :  { %v3103_v41 = vpop.f32.mrf.mxu0  ;;  %v3132_v47 = vpop.f32.mrf.mxu1 }
 0xd29   :  { %v3133_v10 = vadd.f32 %v3132_v47, %v3103_v41  ;;  %v6509_v41 = vld [vmem:[%s9532_s14 + $0x94] sm:$0xf0]  ;;  %v5716_v47 = vor.u32 %v6506_v49, %v5713_v20  ;;  %v5793_v49 = vld [vmem:[%s9532_s14 + $0x18] sm:$0xf0] }
 0xd2b   :  { %3444 = vmatpush.bf16.msrb.mxu3 %v5716_v47 }
 0xd2f   :  { %v3157_v43 = vpop.f32.mrf.mxu2  ;;  %v3174_v13 = vpop.f32.mrf.mxu3 }
 0xd30   :  { %v3105_v26 = vpop.f32.mrf.mxu0  ;;  %v3134_v33 = vpop.f32.mrf.mxu1  ;;  %v3175_v60 = vadd.f32 %v3174_v13, %v3157_v43  ;;  %v5720_v43 = vor.u32 %v6509_v41, %v5719_v39  ;;  %v6507_v13 = vld [vmem:[%s9532_s14 + $0x8c] sm:$0xf]  ;;  %v5796_v41 = vor.u32 %v6491_v11, %v5793_v49  ;;  %v6525_v11 = vld [vmem:[%s9532_s14 + $0x114] sm:$0xf0] }
 0xd31   :  { %v3135_v59 = vadd.f32 %v3134_v33, %v3105_v26  ;;  %v5724_v45 = vor.u32 %v6507_v13, %v5721_v44  ;;  %v5831_v26 = vld [vmem:[%s9532_s14 + $0x60] sm:$0xf]  ;;  %v6504_v33 = vld [vmem:[%s9532_s14 + $0x6c] sm:$0xf0]  ;;  %v6523_v49 = vld [vmem:[%s9532_s14 + $0x10c] sm:$0xf] }
 0xd32   :  { %v5832_v5 = vor.u32 %v6504_v33, %v5831_v26  ;;  %v5919_v33 = vld [vmem:[%s9532_s14 + $0x160] sm:$0xf] }
 0xd33   :  { %v3183_v25 = vpack.c.bf16 %v3135_v59, %v3133_v10  ;;  %v5833_v10 = vld [vmem:[%s9532_s14 + $0x70] sm:$0xf0]  ;;  %v5839_v59 = vld [vmem:[%s9532_s14 + $0x68] sm:$0xf] }
 0xd34   :  { %v5836_v31 = vor.u32 %v6502_v2, %v5833_v10  ;;  %v5840_v51 = vor.u32 %v6505_v24, %v5839_v59  ;;  %3584 = vmatpush.bf16.msra.mxu2 %v5832_v5  ;;  %v6536_v2 = vld [vmem:[%s9532_s14 + $0x16c] sm:$0xf0]  ;;  %v6534_v5 = vld [vmem:[%s9532_s14 + $0x164] sm:$0xf] }
 0xd35   :  { %3247 = vmatpush.bf16.msra.mxu1 %v3183_v25  ;;  %v5841_v25 = vld [vmem:[%s9532_s14 + $0x78] sm:$0xf0]  ;;  %v5920_v24 = vor.u32 %v6536_v2, %v5919_v33 }
 0xd36   :  { %3603 = vmatpush.bf16.msra.mxu3 %v5836_v31  ;;  %v5921_v31 = vld [vmem:[%s9532_s14 + $0x170] sm:$0xf0] }
 0xd37   :  { %v3159_v56 = vpop.f32.mrf.mxu2  ;;  %v3176_v1 = vpop.f32.mrf.mxu3 }
 0xd38   :  { %v3177_v61 = vadd.f32 %v3176_v1, %v3159_v56  ;;  %5691 = vmatmul.msk.bf16.vlgmr.msra.gmra.mxu1 %vm9533_vm14, %v6486_v53  ;;  %v5815_v53 = vld [vmem:[%s9532_s14 + $0x40] sm:$0xf]  ;;  %v6498_v56 = vld [vmem:[%s9532_s14 + $0x44] sm:$0xf]  ;;  %v5817_v1 = vld [vmem:[%s9532_s14 + $0x50] sm:$0xf0] }
 0xd39   :  { %3479 = vmatpush.bf16.msrb.mxu1 %v5772_v52  ;;  %v6503_v52 = vld [vmem:[%s9532_s14 + $0x6c] sm:$0xf]  ;;  %vm9543_vm14 = vmmov %vm9524_vm4 }
 0xd3a   :  { %v3188_v63 = vpack.c.bf16 %v3177_v61, %v3175_v60  ;;  %v5844_v54 = vor.u32 %v6503_v52, %v5841_v25  ;;  %v5816_v61 = vor.u32 %v6500_v55, %v5815_v53  ;;  %v5924_v52 = vor.u32 %v6534_v5, %v5921_v31  ;;  %v6537_v25 = vld [vmem:[%s9532_s14 + $0x174] sm:$0xf0]  ;;  %v6535_v53 = vld [vmem:[%s9532_s14 + $0x16c] sm:$0xf] }
 0xd3c   :  { %3212 = vmatpush.bf16.msrb.mxu0 %v3188_v63  ;;  %v5823_v63 = vld [vmem:[%s9532_s14 + $0x48] sm:$0xf]  ;;  %3585 = vmatpush.bf16.msra.mxu2 %v5816_v61  ;;  %v6530_v61 = vld [vmem:[%s9532_s14 + $0x144] sm:$0xf] }
 0xd3d   :  { %3480 = vmatpush.bf16.msrb.mxu1 %v5756_v21  ;;  %v5804_v21 = vor.u32 %v6494_v8, %v5801_v9  ;;  %v5916_v8 = vor.u32 %v6531_v7, %v5913_v57  ;;  %v6528_v9 = vld [vmem:[%s9532_s14 + $0x12c] sm:$0xf0]  ;;  %v6601_v7 = vld [vmem:[#allocation36 + $0x1f8] sm:$0xff] }
 0xd3f   :  { %5681 = vmatmul.msk.bf16.vlgmr.msrb.gmra.mxu0 %vm9534_vm3, %v6488_v0  ;;  %v6501_v0 = vld [vmem:[%s9532_s14 + $0x54] sm:$0xf0]  ;;  %vm9544_vm3 = vmmov %vm9524_vm4 }
 0xd40   :  { %3460 = vmatpush.bf16.msra.mxu0 %v5768_v62  ;;  %v5820_v62 = vor.u32 %v6498_v56, %v5817_v1  ;;  %3586 = vmatpush.bf16.msra.mxu2 %v5800_v14  ;;  %v5903_v1 = vld [vmem:[%s9532_s14 + $0x140] sm:$0xf]  ;;  %v5889_v14 = vld [vmem:[%s9532_s14 + $0x130] sm:$0xf0] }
 0xd41   :  { %3481 = vmatpush.bf16.msrb.mxu1 %v5740_v38  ;;  %v5788_v38 = vor.u32 %v6490_v30, %v5785_v34  ;;  %v6522_v34 = vld [vmem:[%s9532_s14 + $0x104] sm:$0xf] }
 0xd42   :  { %3604 = vmatpush.bf16.msra.mxu3 %v5820_v62 }
 0xd44   :  { %3461 = vmatpush.bf16.msra.mxu0 %v5752_v15  ;;  %v6497_v15 = vld [vmem:[%s9532_s14 + $0x34] sm:$0xf0]  ;;  %3587 = vmatpush.bf16.msra.mxu2 %v5784_v37  ;;  %v5872_v37 = vor.u32 %v6524_v28, %v5871_v27  ;;  %v6576_v27 = vld [vmem:[#allocation36 + $0x130] sm:$0xff] }
 0xd45   :  { %3482 = vmatpush.bf16.msrb.mxu1 %v5724_v45  ;;  %v5808_v22 = vor.u32 %v6497_v15, %v5807_v12  ;;  %v6526_v12 = vld [vmem:[%s9532_s14 + $0x124] sm:$0xf]  ;;  %v6584_v28 = vld [vmem:[#allocation36 + $0x170] sm:$0xff] }
 0xd46   :  { %3605 = vmatpush.bf16.msra.mxu3 %v5804_v21  ;;  %v6527_v21 = vld [vmem:[%s9532_s14 + $0x12c] sm:$0xf] }
 0xd47   :  { %v5900_v30 = vor.u32 %v6527_v21, %v5897_v23  ;;  %v6599_v21 = vld [vmem:[#allocation36 + $0x1e8] sm:$0xff] }
 0xd48   :  { %5692 = vmatmul.msk.bf16.gmra.mxu1 %vm9535_vm8, %v6487_v3  ;;  %3462 = vmatpush.bf16.msra.mxu0 %v5736_v36  ;;  %v6499_v3 = vld [vmem:[%s9532_s14 + $0x4c] sm:$0xf]  ;;  %v6493_v36 = vld [vmem:[%s9532_s14 + $0x14] sm:$0xf0]  ;;  %vm9545_vm8 = vmmov %vm9544_vm3 }
 0xd49   :  { %3641 = vmatpush.bf16.msra.mxu1 %v5844_v54  ;;  %v5828_v58 = vor.u32 %v6499_v3, %v5825_v6  ;;  %v5792_v50 = vor.u32 %v6493_v36, %v5791_v35  ;;  %v5929_v54 = vld [vmem:[%s9532_s14 + $0x178] sm:$0xf0]  ;;  %v6533_v3 = vld [vmem:[%s9532_s14 + $0x154] sm:$0xf0]  ;;  %v5873_v35 = vld [vmem:[%s9532_s14 + $0x110] sm:$0xf0] }
 0xd4a   :  { %3606 = vmatpush.bf16.msra.mxu3 %v5788_v38  ;;  %v5932_v56 = vor.u32 %v6535_v53, %v5929_v54 }
 0xd4c   :  { %3463 = vmatpush.bf16.msra.mxu0 %v5720_v43 }
 0xd4d   :  { %3642 = vmatpush.bf16.msra.mxu1 %v5828_v58  ;;  %v5887_v58 = vld [vmem:[%s9532_s14 + $0x120] sm:$0xf] }
 0xd4e   :  { %v5888_v15 = vor.u32 %v6528_v9, %v5887_v58 }
 0xd4f   :  { %5682 = vmatmul.msk.bf16.gmra.mxu0 %vm9536_vm9, %v6489_v4  ;;  %v5824_v4 = vor.u32 %v6501_v0, %v5823_v63  ;;  %v5905_v63 = vld [vmem:[%s9532_s14 + $0x150] sm:$0xf0]  ;;  %v5911_v0 = vld [vmem:[%s9532_s14 + $0x148] sm:$0xf]  ;;  %vm9546_vm9 = vmmov %vm9544_vm3 }
 0xd50   :  { %3622 = vmatpush.bf16.msrb.mxu0 %v5840_v51  ;;  %v5927_v51 = vld [vmem:[%s9532_s14 + $0x168] sm:$0xf]  ;;  %v5912_v6 = vor.u32 %v6533_v3, %v5911_v0 }
 0xd51   :  { %3643 = vmatpush.bf16.msra.mxu1 %v5812_v29  ;;  %v5928_v55 = vor.u32 %v6537_v25, %v5927_v51 }
 0xd54   :  { %3623 = vmatpush.bf16.msrb.mxu0 %v5824_v4  ;;  %v5908_v4 = vor.u32 %v6530_v61, %v5905_v63 }
 0xd55   :  { %3644 = vmatpush.bf16.msra.mxu1 %v5796_v41 }
 0xd58   :  { %3624 = vmatpush.bf16.msrb.mxu0 %v5808_v22  ;;  %v5892_v22 = vor.u32 %v6526_v12, %v5889_v14  ;;  %v6592_v12 = vld [vmem:[#allocation36 + $0x1b0] sm:$0xff] }
 0xd59   :  { %v6600_v14 = vld [vmem:[#allocation36 + $0x1f0] sm:$0xff] }
 0xd5c   :  { %3625 = vmatpush.bf16.msrb.mxu0 %v5792_v50  ;;  %v5876_v50 = vor.u32 %v6522_v34, %v5873_v35 }
 0xdb5   :  { %v3249_v46 = vpop.f32.mrf.mxu1 }
 0xdbc   :  { %v3214_v60 = vpop.f32.mrf.mxu0 }
 0xdbd   :  { %v3251_v18 = vpop.f32.mrf.mxu1  ;;  %v8898_v32 = vadd.f32 %v3249_v46, %v3214_v60  ;;  %v6532_v60 = vld [vmem:[%s9532_s14 + $0x14c] sm:$0xf0] }
 0xdbe   :  { %v5904_v62 = vor.u32 %v6532_v60, %v5903_v1 }
 0xdbf   :  { %v3263_v10 = vrot.slane %v8898_v32, 7  ;;  %v3275_v51 = vrot.slane %v8898_v32, 1 }
 0xdc1   :  { %v3274_v36 = vsel %vm879_vm0, 0.0, %v3263_v10 }
 0xdc2   :  { %v3287_v41 = vsel %vm8574_vm2, 0.0, %v3274_v36  ;;  %v6590_v36 = vld [vmem:[#allocation36 + $0x1a0] sm:$0xff] }
 0xdc4   :  { %v3216_v42 = vpop.f32.mrf.mxu0 }
 0xdc5   :  { %v8900_v20 = vadd.f32 %v3251_v18, %v3216_v42  ;;  %v3254_v47 = vpop.f32.mrf.mxu1  ;;  %v6529_v18 = vld [vmem:[%s9532_s14 + $0x134] sm:$0xf0]  ;;  %v5879_v42 = vld [vmem:[%s9532_s14 + $0x108] sm:$0xf] }
 0xdc6   :  { %v5896_v29 = vor.u32 %v6529_v18, %v5895_v17  ;;  %v6585_v17 = vld [vmem:[#allocation36 + $0x178] sm:$0xff]  ;;  %v6591_v18 = vld [vmem:[#allocation36 + $0x1a8] sm:$0xff] }
 0xdc7   :  { %v3313_v39 = vpack.c.bf16 %v8900_v20, %v8898_v32  ;;  %v3264_v59 = vrot.slane %v8900_v20, 7  ;;  %v3276_v31 = vrot.slane %v8900_v20, 1 }
 0xdc9   :  { %5773 = vmatmul.msk.bf16.vlgmr.msrb.gmra.mxu2 %vm1204_vm7, %v3313_v39  ;;  %5775 = vmatmul.msk.bf16.vlgmr.msrb.gmra.mxu3 %vm1204_vm7, %v3313_v39  ;;  %v3265_v38 = vsel %vm879_vm0, %v3263_v10, %v3264_v59  ;;  %v3277_v25 = vsel %vm9538_vm15, %v3275_v51, %v3276_v31  ;;  %v6580_v51 = vld [vmem:[#allocation36 + $0x150] sm:$0xff]  ;;  %vm9548_vm15 = vmmov %vm9544_vm3 }
 0xdca   :  { %5777 = vmatmul.msk.bf16.vlgmr.msra.gmra.mxu0 %vm1204_vm7, %v3313_v39  ;;  %5779 = vmatmul.msk.bf16.vlgmr.msrb.gmra.mxu1 %vm1204_vm7, %v3313_v39  ;;  %v5881_v39 = vld [vmem:[%s9532_s14 + $0x118] sm:$0xf0] }
 0xdcb   :  { %3765 = vmatpush.bf16.msrb.mxu2 %v5920_v24  ;;  %3784 = vmatpush.bf16.msrb.mxu3 %v5924_v52 }
 0xdcc   :  { %v3219_v43 = vpop.f32.mrf.mxu0  ;;  %3803 = vmatpush.bf16.msra.mxu0 %v5928_v55  ;;  %3822 = vmatpush.bf16.msrb.mxu1 %v5932_v56 }
 0xdcd   :  { %v3256_v44 = vpop.f32.mrf.mxu1  ;;  %v8908_v45 = vadd.f32 %v3254_v47, %v3219_v43  ;;  %v3295_v47 = vpack.c.bf16 %v3265_v38, %v3287_v41  ;;  %v5880_v43 = vor.u32 %v6525_v11, %v5879_v42  ;;  %v6583_v11 = vld [vmem:[#allocation36 + $0x168] sm:$0xff]  ;;  %v6574_v41 = vld [vmem:[#allocation36 + $0x120] sm:$0xff] }
 0xdcf   :  { %3766 = vmatpush.bf16.msrb.mxu2 %v5904_v62  ;;  %3785 = vmatpush.bf16.msrb.mxu3 %v5908_v4  ;;  %v3278_v24 = vrot.slane %v8908_v45, 1 }
 0xdd0   :  { %3804 = vmatpush.bf16.msra.mxu0 %v5912_v6  ;;  %3823 = vmatpush.bf16.msrb.mxu1 %v5916_v8  ;;  %v6593_v6 = vld [vmem:[#allocation36 + $0x1b8] sm:$0xff] }
 0xdd3   :  { %3767 = vmatpush.bf16.msrb.mxu2 %v5888_v15  ;;  %3786 = vmatpush.bf16.msrb.mxu3 %v5892_v22  ;;  %v6577_v15 = vld [vmem:[#allocation36 + $0x138] sm:$0xff] }
 0xdd4   :  { %v3221_v13 = vpop.f32.mrf.mxu0  ;;  %3805 = vmatpush.bf16.msra.mxu0 %v5896_v29  ;;  %3824 = vmatpush.bf16.msrb.mxu1 %v5900_v30 }
 0xdd5   :  { %v8910_v46 = vadd.f32 %v3256_v44, %v3221_v13  ;;  %v5884_v13 = vor.u32 %v6523_v49, %v5881_v39  ;;  %v3266_v44 = vrot.slane %v8908_v45, 7  ;;  %v6589_v49 = vld [vmem:[#allocation36 + $0x198] sm:$0xff] }
 0xdd6   :  { %v6597_v39 = vld [vmem:[#allocation36 + $0x1d8] sm:$0xff] }
 0xdd7   :  { %v3314_v26 = vpack.c.bf16 %v8910_v46, %v8908_v45  ;;  %3768 = vmatpush.bf16.msrb.mxu2 %v5872_v37  ;;  %3787 = vmatpush.bf16.msrb.mxu3 %v5876_v50  ;;  %v3267_v33 = vsel %vm879_vm0, %v3264_v59, %v3266_v44  ;;  %v3279_v59 = vsel %vm9537_vm10, %v3276_v31, %v3278_v24  ;;  %v3280_v20 = vrot.slane %v8910_v46, 1  ;;  %v6598_v37 = vld [vmem:[#allocation36 + $0x1e0] sm:$0xff]  ;;  %v6575_v50 = vld [vmem:[#allocation36 + $0x128] sm:$0xff]  ;;  %vm9547_vm10 = vmmov %vm9544_vm3 }
 0xdd8   :  { %3806 = vmatpush.bf16.msra.mxu0 %v5880_v43  ;;  %3825 = vmatpush.bf16.msrb.mxu1 %v5884_v13  ;;  %v3289_v5 = vsel %vm8570_vm1, 0.0, %v3267_v33  ;;  %v3292_v52 = vsel %vm8597_vm5, 0.0, %v3279_v59  ;;  %v6595_v31 = vld [vmem:[#allocation36 + $0x1c8] sm:$0xff]  ;;  %v6572_v59 = vld [vmem:[#allocation36 + $0x110] sm:$0xff] }
 0xdd9   :  { %5774 = vmatmul.msk.bf16.gmra.mxu2 %vm1204_vm7, %v3314_v26  ;;  %5776 = vmatmul.msk.bf16.gmra.mxu3 %vm1204_vm7, %v3314_v26  ;;  %v3656_v53 = vpack.c.bf16 %v3292_v52, %v3277_v25  ;;  %v3286_v45 = vsel %vm9524_vm4, %v3280_v20, 0.0  ;;  %v3281_v32 = vsel %vm9539_vm11, %v3278_v24, %v3280_v20  ;;  %v6587_v24 = vld [vmem:[#allocation36 + $0x188] sm:$0xff]  ;;  %v6594_v20 = vld [vmem:[#allocation36 + $0x1c0] sm:$0xff]  ;;  %vm9550_vm11 = vmmov %vm9544_vm3 }
 0xdda   :  { %5778 = vmatmul.msk.bf16.gmra.mxu0 %vm1204_vm7, %v3314_v26  ;;  %5780 = vmatmul.msk.bf16.gmra.mxu1 %vm1204_vm7, %v3314_v26  ;;  %v3268_v26 = vrot.slane %v8910_v46, 7  ;;  %v3294_v54 = vsel %vm8607_vm6, 0.0, %v3286_v45 }
 0xddb   :  { %v3657_v55 = vpack.c.bf16 %v3294_v54, %v3281_v32  ;;  %v6571_v54 = vld [vmem:[#allocation36 + $0x108] sm:$0xff] }
 0xddc   :  { %v3269_v2 = vsel %vm879_vm0, %v3266_v44, %v3268_v26  ;;  %v6588_v44 = vld [vmem:[#allocation36 + $0x190] sm:$0xff] }
 0xddd   :  { %v3296_v10 = vpack.c.bf16 %v3269_v2, %v3289_v5  ;;  %v6596_v26 = vld [vmem:[#allocation36 + $0x1d0] sm:$0xff]  ;;  %v6573_v5 = vld [vmem:[#allocation36 + $0x118] sm:$0xff] }
 0xde9   :  { %5845 = vmatmul.msk.bf16.vlgmr.msra.gmra.mxu2 %vm1204_vm7, %v3295_v47  ;;  %5847 = vmatmul.msk.bf16.vlgmr.msra.gmra.mxu3 %vm1204_vm7, %v3295_v47 }
 0xdea   :  { %5849 = vmatmul.msk.bf16.vlgmr.msrb.gmra.mxu0 %vm1204_vm7, %v3295_v47  ;;  %5851 = vmatmul.msk.bf16.vlgmr.msra.gmra.mxu1 %vm1204_vm7, %v3295_v47  ;;  %v6582_v47 = vld [vmem:[#allocation36 + $0x160] sm:$0xff] }
 0xdeb   :  { %4440 = vmatpush.bf16.msrb.mxu0 %v6593_v6  ;;  %4459 = vmatpush.bf16.msra.mxu1 %v6601_v7  ;;  %v6561_v6 = vld [vmem:[#allocation36 + $0xb8] sm:$0xff] }
 0xdec   :  { %4402 = vmatpush.bf16.msra.mxu2 %v6577_v15  ;;  %4421 = vmatpush.bf16.msra.mxu3 %v6585_v17  ;;  %v6569_v7 = vld [vmem:[#allocation36 + $0xf8] sm:$0xff] }
 0xdef   :  { %4441 = vmatpush.bf16.msrb.mxu0 %v6592_v12  ;;  %4460 = vmatpush.bf16.msra.mxu1 %v6600_v14  ;;  %v6570_v12 = vld [vmem:[#allocation36 + $0x100] sm:$0xff] }
 0xdf0   :  { %4403 = vmatpush.bf16.msra.mxu2 %v6576_v27  ;;  %4422 = vmatpush.bf16.msra.mxu3 %v6584_v28  ;;  %v6578_v14 = vld [vmem:[#allocation36 + $0x140] sm:$0xff]  ;;  %v6568_v27 = vld [vmem:[#allocation36 + $0xf0] sm:$0xff] }
 0xdf3   :  { %4442 = vmatpush.bf16.msrb.mxu0 %v6591_v18  ;;  %4461 = vmatpush.bf16.msra.mxu1 %v6599_v21  ;;  %v3853_v18 = vld [vmem:[#allocation33] sm:$0xf]  ;;  %v6560_v21 = vld [vmem:[#allocation36 + $0xb0] sm:$0xff] }
 0xdf4   :  { %4404 = vmatpush.bf16.msra.mxu2 %v6575_v50  ;;  %4423 = vmatpush.bf16.msra.mxu3 %v6583_v11  ;;  %v6545_v11 = vld [vmem:[#allocation36 + $0x38] sm:$0xff] }
 0xdf7   :  { %4443 = vmatpush.bf16.msrb.mxu0 %v6590_v36  ;;  %4462 = vmatpush.bf16.msra.mxu1 %v6598_v37 }
 0xdf8   :  { %4405 = vmatpush.bf16.msra.mxu2 %v6574_v41  ;;  %4424 = vmatpush.bf16.msra.mxu3 %v6582_v47  ;;  %v9062_v41 = vperm.slane %v3853_v18, 2 }
 0xdf9   :  { %5846 = vmatmul.msk.bf16.gmra.mxu2 %vm1204_vm7, %v3296_v10  ;;  %5848 = vmatmul.msk.bf16.gmra.mxu3 %vm1204_vm7, %v3296_v10 }
 0xdfa   :  { %5850 = vmatmul.msk.bf16.gmra.mxu0 %vm1204_vm7, %v3296_v10  ;;  %5852 = vmatmul.msk.bf16.gmra.mxu1 %vm1204_vm7, %v3296_v10  ;;  %v6581_v10 = vld [vmem:[#allocation36 + $0x158] sm:$0xff] }
 0xdfb   :  { %4444 = vmatpush.bf16.msrb.mxu0 %v6589_v49  ;;  %4463 = vmatpush.bf16.msra.mxu1 %v6597_v39  ;;  %v6553_v49 = vld [vmem:[#allocation36 + $0x78] sm:$0xff] }
 0xdfc   :  { %4406 = vmatpush.bf16.msra.mxu2 %v6573_v5  ;;  %4425 = vmatpush.bf16.msra.mxu3 %v6581_v10  ;;  %v6559_v5 = vld [vmem:[#allocation36 + $0xa8] sm:$0xff] }
 0xdff   :  { %4445 = vmatpush.bf16.msrb.mxu0 %v6588_v44  ;;  %4464 = vmatpush.bf16.msra.mxu1 %v6596_v26  ;;  %v9064_v44 = vperm.slane %v3853_v18, 3  ;;  %v3879_v26 = vld [vmem:[#allocation34] sm:$0xf] }
 0xe00   :  { %4407 = vmatpush.bf16.msra.mxu2 %v6572_v59  ;;  %4426 = vmatpush.bf16.msra.mxu3 %v6580_v51  ;;  %v9072_v59 = vperm.slane %v3879_v26, 3 }
 0xe03   :  { %4446 = vmatpush.bf16.msrb.mxu0 %v6587_v24  ;;  %4465 = vmatpush.bf16.msra.mxu1 %v6595_v31  ;;  %v9069_v24 = vperm.slane %v3879_v26, 2 }
 0xe04   :  { %4408 = vmatpush.bf16.msra.mxu2 %v6571_v54  ;;  %v9074_v54 = vperm.slane %v3853_v18, 1 }
 0xe07   :  { %4466 = vmatpush.bf16.msra.mxu1 %v6594_v20 }
 0xe08   :  { %4409 = vmatpush.bf16.msra.mxu2 %v6570_v12 }
 0xe09   :  { %5933 = vmatmul.msk.bf16.vlgmr.msrb.gmra.mxu2 %vm1204_vm7, %v3656_v53  ;;  %5935 = vmatmul.msk.bf16.vlgmr.msrb.gmra.mxu3 %vm1204_vm7, %v3656_v53 }
 0xe0a   :  { %5937 = vmatmul.msk.bf16.vlgmr.msra.gmra.mxu0 %vm1204_vm7, %v3656_v53  ;;  %5939 = vmatmul.msk.bf16.vlgmr.msrb.gmra.mxu1 %vm1204_vm7, %v3656_v53  ;;  %v6586_v53 = vld [vmem:[#allocation36 + $0x180] sm:$0xff] }
 0xe0b   :  { %4447 = vmatpush.bf16.msrb.mxu0 %v6586_v53  ;;  %4727 = vmatpush.bf16.msrb.mxu1 %v6569_v7 }
 0xe0c   :  { %4670 = vmatpush.bf16.msrb.mxu2 %v6545_v11  ;;  %v6542_v11 = vld [vmem:[#allocation36 + $0x20] sm:$0xff] }
 0xe0f   :  { %4708 = vmatpush.bf16.msra.mxu0 %v6561_v6  ;;  %4728 = vmatpush.bf16.msrb.mxu1 %v6568_v27  ;;  %v6551_v27 = vld [vmem:[#allocation36 + $0x68] sm:$0xff] }
 0xe13   :  { %4709 = vmatpush.bf16.msra.mxu0 %v6560_v21  ;;  %v6543_v21 = vld [vmem:[#allocation36 + $0x28] sm:$0xff] }
 0xe17   :  { %4710 = vmatpush.bf16.msra.mxu0 %v6559_v5  ;;  %v6564_v5 = vld [vmem:[#allocation36 + $0xd0] sm:$0xff] }
 0xe19   :  { %5934 = vmatmul.msk.bf16.gmra.mxu2 %vm1204_vm7, %v3657_v55  ;;  %5936 = vmatmul.msk.bf16.gmra.mxu3 %vm1204_vm7, %v3657_v55 }
 0xe1a   :  { %5938 = vmatmul.msk.bf16.gmra.mxu0 %vm1204_vm7, %v3657_v55  ;;  %5940 = vmatmul.msk.bf16.gmra.mxu1 %vm1204_vm7, %v3657_v55  ;;  %v6579_v55 = vld [vmem:[#allocation36 + $0x148] sm:$0xff]  ;;  %vm9540_vm7 = vmmov %vm9524_vm4 }
 0xe1b   :  { %4427 = vmatpush.bf16.msra.mxu3 %v6579_v55  ;;  %vm9549_vm4 = vmmov %vm9544_vm3 }
 0xe1f   :  { %4428 = vmatpush.bf16.msra.mxu3 %v6578_v14 }
 0xe23   :  { %4689 = vmatpush.bf16.msrb.mxu3 %v6553_v49  ;;  %v6550_v49 = vld [vmem:[#allocation36 + $0x60] sm:$0xff] }
 0xe47   :  { %v8994_v56 = vpop.f32.mrf.mxu0  ;;  %v8996_v1 = vpop.f32.mrf.mxu1 }
 0xe4c   :  { %v8998_v46 = vpop.f32.mrf.mxu2  ;;  %v9000_v60 = vpop.f32.mrf.mxu3 }
 0xe4f   :  { %v9002_v61 = vpop.f32.mrf.mxu0  ;;  %v9004_v62 = vpop.f32.mrf.mxu1 }
 0xe54   :  { %v9006_v63 = vpop.f32.mrf.mxu2  ;;  %v9008_v0 = vpop.f32.mrf.mxu3 }
 0xe57   :  { %v9010_v3 = vpop.f32.mrf.mxu0  ;;  %v9012_v4 = vpop.f32.mrf.mxu1 }
 0xe5c   :  { %v9014_v57 = vpop.f32.mrf.mxu2  ;;  %v9016_v58 = vpop.f32.mrf.mxu3 }
 0xe5f   :  { %v9018_v8 = vpop.f32.mrf.mxu0  ;;  %v9020_v9 = vpop.f32.mrf.mxu1 }
 0xe64   :  { %v9022_v22 = vpop.f32.mrf.mxu2  ;;  %v9024_v23 = vpop.f32.mrf.mxu3 }
 0xe67   :  { %v9026_v29 = vpop.f32.mrf.mxu0  ;;  %v9028_v30 = vpop.f32.mrf.mxu1 }
 0xe68   :  { %v3628_v28 = vadd.f32 %v9026_v29, %v8994_v56  ;;  %v3647_v36 = vadd.f32 %v9028_v30, %v8996_v1  ;;  %v6567_v56 = vld [vmem:[#allocation36 + $0xe8] sm:$0xff]  ;;  %v6544_v29 = vld [vmem:[#allocation36 + $0x30] sm:$0xff] }
 0xe69   :  { %4729 = vmatpush.bf16.msrb.mxu1 %v6567_v56  ;;  %v6552_v30 = vld [vmem:[#allocation36 + $0x70] sm:$0xff]  ;;  %4671 = vmatpush.bf16.msrb.mxu2 %v6544_v29  ;;  %v9095_v29 = vperm.slane %v3879_v26, 0 }
 0xe6a   :  { %4690 = vmatpush.bf16.msrb.mxu3 %v6552_v30 }
 0xe6c   :  { %v9030_v34 = vpop.f32.mrf.mxu2  ;;  %v9032_v35 = vpop.f32.mrf.mxu3 }
 0xe6d   :  { %v3609_v1 = vadd.f32 %v9032_v35, %v9000_v60  ;;  %v6558_v60 = vld [vmem:[#allocation36 + $0xa0] sm:$0xff]  ;;  %v3590_v55 = vadd.f32 %v9030_v34, %v8998_v46  ;;  %4672 = vmatpush.bf16.msrb.mxu2 %v6543_v21 }
 0xe6e   :  { %v6566_v35 = vld [vmem:[#allocation36 + $0xe0] sm:$0xff]  ;;  %4711 = vmatpush.bf16.msra.mxu0 %v6558_v60  ;;  %4691 = vmatpush.bf16.msrb.mxu3 %v6551_v27  ;;  %v6541_v60 = vld [vmem:[#allocation36 + $0x18] sm:$0xff] }
 0xe6f   :  { %v9034_v42 = vpop.f32.mrf.mxu0  ;;  %v9036_v38 = vpop.f32.mrf.mxu1  ;;  %4730 = vmatpush.bf16.msrb.mxu1 %v6566_v35 }
 0xe70   :  { %v3630_v6 = vadd.f32 %v9034_v42, %v9002_v61  ;;  %v3649_v7 = vadd.f32 %v9036_v38, %v9004_v62  ;;  %v6557_v62 = vld [vmem:[#allocation36 + $0x98] sm:$0xff] }
 0xe71   :  { %v6565_v38 = vld [vmem:[#allocation36 + $0xd8] sm:$0xff]  ;;  %4673 = vmatpush.bf16.msrb.mxu2 %v6542_v11 }
 0xe72   :  { %4712 = vmatpush.bf16.msra.mxu0 %v6557_v62  ;;  %4692 = vmatpush.bf16.msrb.mxu3 %v6550_v49 }
 0xe73   :  { %4731 = vmatpush.bf16.msrb.mxu1 %v6565_v38  ;;  %v6548_v38 = vld [vmem:[#allocation36 + $0x50] sm:$0xff] }
 0xe74   :  { %v9038_v43 = vpop.f32.mrf.mxu2  ;;  %v9040_v13 = vpop.f32.mrf.mxu3 }
 0xe75   :  { %v3592_v56 = vadd.f32 %v9038_v43, %v9006_v63  ;;  %4674 = vmatpush.bf16.msrb.mxu2 %v6541_v60 }
 0xe77   :  { %v9042_v33 = vpop.f32.mrf.mxu0  ;;  %v9044_v2 = vpop.f32.mrf.mxu1  ;;  %4732 = vmatpush.bf16.msrb.mxu1 %v6564_v5  ;;  %v6562_v5 = vld [vmem:[#allocation36 + $0xc0] sm:$0xff] }
 0xe7c   :  { %v9046_v52 = vpop.f32.mrf.mxu2  ;;  %v9048_v25 = vpop.f32.mrf.mxu3 }
 0xe7f   :  { %v9050_v45 = vpop.f32.mrf.mxu0  ;;  %v9052_v32 = vpop.f32.mrf.mxu1 }
 0xe84   :  { %v9054_v15 = vpop.f32.mrf.mxu2  ;;  %v9056_v17 = vpop.f32.mrf.mxu3 }
 0xe87   :  { %v3808_v37 = vpop.f32.mrf.mxu0  ;;  %v3827_v50 = vpop.f32.mrf.mxu1 }
 0xe88   :  { %v3839_v39 = vadd.f32 %v3808_v37, %v3628_v28  ;;  %v3840_v47 = vadd.f32 %v3827_v50, %v3647_v36  ;;  %v9084_v37 = vperm.slane %v3853_v18, 0  ;;  %v9086_v50 = vperm.slane %v3879_v26, 1  ;;  %v6556_v18 = vld [vmem:[#allocation36 + $0x90] sm:$0xff] }
 0xe89   :  { %v3633_v26 = vadd.f32 %v9042_v33, %v9010_v3  ;;  %4713 = vmatpush.bf16.msra.mxu0 %v6556_v18  ;;  %v6554_v18 = vld [vmem:[#allocation36 + $0x80] sm:$0xff] }
 0xe8a   :  { %v3865_v10 = vmul.f32 %v9062_v41, %v3839_v39  ;;  %v3866_v31 = vmul.f32 %v9064_v44, %v3840_v47 }
 0xe8c   :  { %v3770_v51 = vpop.f32.mrf.mxu2  ;;  %v3789_v53 = vpop.f32.mrf.mxu3  ;;  %v3891_v28 = vadd.f32 %v9069_v24, %v3865_v10  ;;  %v3892_v36 = vadd.f32 %v9072_v59, %v3866_v31 }
 0xe8d   :  { %v3838_v20 = vadd.f32 %v3789_v53, %v3609_v1  ;;  %v3837_v46 = vadd.f32 %v3770_v51, %v3590_v55  ;;  %v3611_v1 = vadd.f32 %v9040_v13, %v9008_v0  ;;  %v6549_v13 = vld [vmem:[#allocation36 + $0x58] sm:$0xff]  ;;  %v3652_v55 = vadd.f32 %v9044_v2, %v9012_v4  ;;  %v6540_v2 = vld [vmem:[#allocation36 + $0x10] sm:$0xff] }
 0xe8e   :  { %v9097_v31 = vmax.f32 %v3891_v28, 0.0  ;;  %v9099_v51 = vmax.f32 %v3892_v36, 0.0  ;;  %4693 = vmatpush.bf16.msrb.mxu3 %v6549_v13  ;;  %4675 = vmatpush.bf16.msrb.mxu2 %v6540_v2 }
 0xe8f   :  { %v3810_v12 = vpop.f32.mrf.mxu0  ;;  %v3829_v14 = vpop.f32.mrf.mxu1  ;;  %v3864_v61 = vmul.f32 %v9074_v54, %v3838_v20  ;;  %v3863_v53 = vmul.f32 %v9084_v37, %v3837_v46 }
 0xe90   :  { %v3843_v34 = vadd.f32 %v3810_v12, %v3630_v6  ;;  %v3844_v42 = vadd.f32 %v3829_v14, %v3649_v7  ;;  %v6555_v12 = vld [vmem:[#allocation36 + $0x88] sm:$0xff]  ;;  %v3991_v46 = vrot.slane %v9097_v31, 1  ;;  %v3994_v3 = vrot.slane %v9099_v51, 1 }
 0xe91   :  { %v3890_v20 = vadd.f32 %v9086_v50, %v3864_v61  ;;  %v6563_v14 = vld [vmem:[#allocation36 + $0xc8] sm:$0xff]  ;;  %v3889_v4 = vadd.f32 %v9095_v29, %v3863_v53  ;;  %4714 = vmatpush.bf16.msra.mxu0 %v6555_v12 }
 0xe92   :  { %v3869_v39 = vmul.f32 %v9062_v41, %v3843_v34  ;;  %v3870_v47 = vmul.f32 %v9064_v44, %v3844_v42  ;;  %4733 = vmatpush.bf16.msrb.mxu1 %v6563_v14  ;;  %4694 = vmatpush.bf16.msrb.mxu3 %v6548_v38  ;;  %v6625_v14 = vld [vmem:[#allocation36 + $0x2b8] sm:$0xff] }
 0xe93   :  { %v9118_v61 = vmax.f32 %v3890_v20, 0.0  ;;  %v3614_v20 = vadd.f32 %v9048_v25, %v9016_v58  ;;  %v9138_v60 = vmax.f32 %v3889_v4, 0.0  ;;  %v6539_v58 = vld [vmem:[#allocation36 + $0x8] sm:$0xff] }
 0xe94   :  { %v3772_v30 = vpop.f32.mrf.mxu2  ;;  %v3791_v10 = vpop.f32.mrf.mxu3  ;;  %v3895_v35 = vadd.f32 %v9069_v24, %v3869_v39  ;;  %v3896_v63 = vadd.f32 %v9072_v59, %v3870_v47  ;;  %4676 = vmatpush.bf16.msrb.mxu2 %v6539_v58 }
 0xe95   :  { %v3841_v43 = vadd.f32 %v3772_v30, %v3592_v56  ;;  %v3842_v0 = vadd.f32 %v3791_v10, %v3611_v1  ;;  %v3595_v56 = vadd.f32 %v9046_v52, %v9014_v57  ;;  %v3988_v25 = vrot.slane %v9118_v61, 1  ;;  %4715 = vmatpush.bf16.msra.mxu0 %v6554_v18 }
 0xe96   :  { %v9109_v21 = vmax.f32 %v3895_v35, 0.0  ;;  %v9111_v27 = vmax.f32 %v3896_v63, 0.0  ;;  %4734 = vmatpush.bf16.msrb.mxu1 %v6562_v5  ;;  %v6632_v5 = vld [vmem:[#allocation36 + $0x2f0] sm:$0xff] }
 0xe97   :  { %v3813_v6 = vpop.f32.mrf.mxu0  ;;  %v3832_v7 = vpop.f32.mrf.mxu1  ;;  %v3867_v28 = vmul.f32 %v9084_v37, %v3841_v43  ;;  %v3868_v36 = vmul.f32 %v9074_v54, %v3842_v0 }
 0xe98   :  { %v3847_v33 = vadd.f32 %v3813_v6, %v3633_v26  ;;  %v3992_v34 = vrot.slane %v9109_v21, 1  ;;  %v4139_v42 = vpack.c.bf16 %v9109_v21, %v9097_v31  ;;  %v3848_v62 = vadd.f32 %v3832_v7, %v3652_v55  ;;  %v6547_v26 = vld [vmem:[#allocation36 + $0x48] sm:$0xff] }
 0xe99   :  { %v3995_v11 = vrot.slane %v9111_v27, 1  ;;  %v4140_v49 = vpack.c.bf16 %v9111_v27, %v9099_v51  ;;  %v3893_v39 = vadd.f32 %v9095_v29, %v3867_v28  ;;  %v3894_v47 = vadd.f32 %v9086_v50, %v3868_v36  ;;  %v6633_v28 = vld [vmem:[#allocation36 + $0x2f8] sm:$0xff]  ;;  %4695 = vmatpush.bf16.msrb.mxu3 %v6547_v26 }
 0xe9a   :  { %v9133_v1 = vsel %vm9540_vm7, %v3991_v46, %v3992_v34  ;;  %v3873_v30 = vmul.f32 %v9062_v41, %v3847_v33  ;;  %4448 = vmatmul.bf16.vlgmr.msrb.gmra.mxu0 %v4139_v42  ;;  %v3874_v43 = vmul.f32 %v9064_v44, %v3848_v62  ;;  %v3635_v36 = vadd.f32 %v9050_v45, %v9018_v8  ;;  %vm9551_vm7 = vmmov %vm9544_vm3 }
 0xe9b   :  { %v9143_v35 = vsel %vm9541_vm12, %v3994_v3, %v3995_v11  ;;  %v9145_v57 = vmax.f32 %v3893_v39, 0.0  ;;  %4467 = vmatmul.bf16.vlgmr.msra.gmra.mxu1 %v4140_v49  ;;  %v9147_v52 = vmax.f32 %v3894_v47, 0.0  ;;  %v3654_v46 = vadd.f32 %v9052_v32, %v9020_v9  ;;  %v6538_v9 = vld [vmem:[#allocation36] sm:$0xff]  ;;  %5049 = vmatpush.bf16.msrb.mxu0 %v6625_v14  ;;  %v6623_v14 = vld [vmem:[#allocation36 + $0x2a8] sm:$0xff]  ;;  %vm9552_vm12 = vmmov %vm9544_vm3 }
 0xe9c   :  { %v3775_v10 = vpop.f32.mrf.mxu2  ;;  %v3794_v53 = vpop.f32.mrf.mxu3  ;;  %v3899_v63 = vadd.f32 %v9069_v24, %v3873_v30  ;;  %v3900_v3 = vadd.f32 %v9072_v59, %v3874_v43  ;;  %v3597_v42 = vadd.f32 %v9054_v15, %v9022_v22  ;;  %v3616_v62 = vadd.f32 %v9056_v17, %v9024_v23  ;;  %v6546_v22 = vld [vmem:[#allocation36 + $0x40] sm:$0xff]  ;;  %v6624_v23 = vld [vmem:[#allocation36 + $0x2b0] sm:$0xff]  ;;  %5068 = vmatpush.bf16.msra.mxu1 %v6633_v28 }
 0xe9d   :  { %v3845_v0 = vadd.f32 %v3775_v10, %v3595_v56  ;;  %v4137_v13 = vpack.c.bf16 %v9145_v57, %v9138_v60  ;;  %v3989_v55 = vrot.slane %v9147_v52, 1  ;;  %v4138_v6 = vpack.c.bf16 %v9147_v52, %v9118_v61  ;;  %v6609_v56 = vld [vmem:[#allocation36 + $0x238] sm:$0xff]  ;;  %4677 = vmatpush.bf16.msrb.mxu2 %v6538_v9  ;;  %4696 = vmatpush.bf16.msrb.mxu3 %v6546_v22 }
 0xe9e   :  { %v9157_v7 = vmax.f32 %v3899_v63, 0.0  ;;  %v3846_v12 = vadd.f32 %v3794_v53, %v3614_v20  ;;  %v3985_v45 = vrot.slane %v9138_v60, 1  ;;  %v9176_v38 = vmax.f32 %v3900_v3, 0.0  ;;  %v6617_v63 = vld [vmem:[#allocation36 + $0x278] sm:$0xff] }
 0xe9f   :  { %v3871_v4 = vmul.f32 %v9084_v37, %v3845_v0  ;;  %v3815_v33 = vpop.f32.mrf.mxu0  ;;  %v3834_v2 = vpop.f32.mrf.mxu1  ;;  %4410 = vmatmul.bf16.vlgmr.msra.gmra.mxu2 %v4137_v13  ;;  %v9172_v8 = vsel %vm9542_vm13, %v3988_v25, %v3989_v55  ;;  %4429 = vmatmul.bf16.vlgmr.msra.gmra.mxu3 %v4138_v6  ;;  %v3945_v15 = vrot.slane %v9109_v21, 7  ;;  %v3986_v30 = vrot.slane %v9145_v57, 1  ;;  %vm9553_vm13 = vmmov %vm9544_vm3  ;;  %v6618_v21 = vld [vmem:[#allocation36 + $0x280] sm:$0xff] }
 0xea0   :  { %v4001_v32 = vrot.slane %v9157_v7, 1  ;;  %v3872_v17 = vmul.f32 %v9074_v54, %v3846_v12  ;;  %v3851_v39 = vadd.f32 %v3815_v33, %v3635_v36  ;;  %v3852_v47 = vadd.f32 %v3834_v2, %v3654_v46  ;;  %5050 = vmatpush.bf16.msrb.mxu0 %v6624_v23  ;;  %5069 = vmatpush.bf16.msra.mxu1 %v6632_v5  ;;  %v6631_v46 = vld [vmem:[#allocation36 + $0x2e8] sm:$0xff] }
 0xea1   :  { %v3897_v49 = vadd.f32 %v9095_v29, %v3871_v4  ;;  %v4003_v53 = vrot.slane %v9176_v38, 1  ;;  %v3947_v26 = vrot.slane %v9111_v27, 7  ;;  %5011 = vmatpush.bf16.msra.mxu2 %v6609_v56  ;;  %v9213_v3 = vsel %vm9545_vm8, %v3985_v45, %v3986_v30  ;;  %5030 = vmatpush.bf16.msra.mxu3 %v6617_v63  ;;  %v6607_v5 = vld [vmem:[#allocation36 + $0x228] sm:$0xff]  ;;  %v6630_v63 = vld [vmem:[#allocation36 + $0x2e0] sm:$0xff]  ;;  %vm6201_vm8 = vmneg %vm8570_vm1 }
 0xea2   :  { %v9187_v10 = vsel %vm9543_vm14, %v3992_v34, %v4001_v32  ;;  %v3898_v0 = vadd.f32 %v9086_v50, %v3872_v17  ;;  %v3877_v58 = vmul.f32 %v9062_v41, %v3851_v39  ;;  %v3878_v25 = vmul.f32 %v9064_v44, %v3852_v47  ;;  %vm6197_vm14 = vmneg %vm8574_vm2  ;;  %v6626_v27 = vld [vmem:[#allocation36 + $0x2c0] sm:$0xff] }
 0xea3   :  { %v9190_v20 = vmax.f32 %v3897_v49, 0.0  ;;  %v6375_v43 = vpack.c.bf16 %v9187_v10, %v9133_v1  ;;  %v9203_v34 = vsel %vm9544_vm3, %v3995_v11, %v4003_v53  ;;  %v6608_v11 = vld [vmem:[#allocation36 + $0x230] sm:$0xff]  ;;  %v3955_v45 = vrot.slane %v9176_v38, 7  ;;  %vm6357_vm1 = vmneg %vm8597_vm5 }
 0xea4   :  { %v3777_v18 = vpop.f32.mrf.mxu2  ;;  %v3796_v13 = vpop.f32.mrf.mxu3  ;;  %v6383_v41 = vpack.c.bf16 %v9203_v34, %v9143_v35  ;;  %v9208_v44 = vmax.f32 %v3898_v0, 0.0  ;;  %v3903_v28 = vadd.f32 %v9069_v24, %v3877_v58  ;;  %v3904_v36 = vadd.f32 %v9072_v59, %v3878_v25  ;;  %5051 = vmatpush.bf16.msrb.mxu0 %v6623_v14  ;;  %5070 = vmatpush.bf16.msra.mxu1 %v6631_v46  ;;  %v6615_v58 = vld [vmem:[#allocation36 + $0x268] sm:$0xff] }
 0xea5   :  { %v3997_v6 = vrot.slane %v9190_v20, 1  ;;  %v3849_v12 = vadd.f32 %v3777_v18, %v3597_v42  ;;  %v3850_v2 = vadd.f32 %v3796_v13, %v3616_v62  ;;  %v6616_v42 = vld [vmem:[#allocation36 + $0x270] sm:$0xff]  ;;  %v3953_v24 = vrot.slane %v9157_v7, 7  ;;  %5012 = vmatpush.bf16.msra.mxu2 %v6608_v11  ;;  %v6621_v11 = vld [vmem:[#allocation36 + $0x298] sm:$0xff] }
 0xea6   :  { %v3999_v9 = vrot.slane %v9208_v44, 1  ;;  %v3919_v49 = vmax.f32 %v3903_v28, 0.0  ;;  %v3920_v22 = vmax.f32 %v3904_v36, 0.0  ;;  %5031 = vmatpush.bf16.msra.mxu3 %v6616_v42  ;;  %v9258_v28 = vsel %vm879_vm0, %v3947_v26, %v3955_v45 }
 0xea7   :  { %v9218_v4 = vsel %vm9546_vm9, %v3986_v30, %v3997_v6  ;;  %v3875_v33 = vmul.f32 %v9084_v37, %v3849_v12  ;;  %v3876_v17 = vmul.f32 %v9074_v54, %v3850_v2  ;;  %v6622_v37 = vld [vmem:[#allocation36 + $0x2a0] sm:$0xff]  ;;  %v9245_v25 = vsel %vm879_vm0, %v3945_v15, %v3953_v24 }
 0xea8   :  { %v6359_v59 = vpack.c.bf16 %v9218_v4, %v9213_v3  ;;  %v9233_v62 = vsel %vm9547_vm10, %v3989_v55, %v3999_v9  ;;  %v3961_v39 = vrot.slane %v3919_v49, 7  ;;  %v4009_v47 = vrot.slane %v3919_v49, 1  ;;  %5052 = vmatpush.bf16.msrb.mxu0 %v6622_v37  ;;  %5071 = vmatpush.bf16.msra.mxu1 %v6630_v63  ;;  %v6614_v37 = vld [vmem:[#allocation36 + $0x260] sm:$0xff] }
 0xea9   :  { %v3901_v23 = vadd.f32 %v9095_v29, %v3875_v33  ;;  %v4143_v18 = vpack.c.bf16 %v3919_v49, %v9157_v7  ;;  %v6367_v29 = vpack.c.bf16 %v9233_v62, %v9172_v8  ;;  %v3963_v54 = vrot.slane %v3920_v22, 7  ;;  %5013 = vmatpush.bf16.msra.mxu2 %v6607_v5  ;;  %v6606_v33 = vld [vmem:[#allocation36 + $0x220] sm:$0xff]  ;;  %v6629_v49 = vld [vmem:[#allocation36 + $0x2d8] sm:$0xff] }
 0xeaa   :  { %v4011_v56 = vrot.slane %v3920_v22, 1  ;;  %v3902_v0 = vadd.f32 %v9086_v50, %v3876_v17  ;;  %v4144_v55 = vpack.c.bf16 %v3920_v22, %v9176_v38  ;;  %v9248_v13 = vsel %vm879_vm0, %v3953_v24, %v3961_v39  ;;  %5032 = vmatpush.bf16.msra.mxu3 %v6615_v58  ;;  %v6620_v39 = vld [vmem:[#allocation36 + $0x290] sm:$0xff]  ;;  %v6605_v5 = vld [vmem:[#allocation36 + $0x218] sm:$0xff] }
 0xeab   :  { %v9238_v30 = vmax.f32 %v3901_v23, 0.0  ;;  %4453 = vmatmul.bf16.gmra.mxu0 %v4143_v18  ;;  %v3951_v12 = vrot.slane %v9208_v44, 7  ;;  %v6219_v50 = vpack.c.bf16 %v9248_v13, %v9245_v25  ;;  %v9261_v46 = vsel %vm879_vm0, %v3955_v45, %v3963_v54  ;;  %v6628_v38 = vld [vmem:[#allocation36 + $0x2d0] sm:$0xff] }
 0xeac   :  { %v3918_v36 = vmax.f32 %v3902_v0, 0.0  ;;  %4472 = vmatmul.bf16.gmra.mxu1 %v4144_v55  ;;  %v9266_v2 = vsel %vm9548_vm15, %v4001_v32, %v4009_v47  ;;  %v9269_v42 = vsel %vm9549_vm4, %v4009_v47, 0.0  ;;  %v6227_v24 = vpack.c.bf16 %v9261_v46, %v9258_v28  ;;  %5053 = vmatpush.bf16.msrb.mxu0 %v6621_v11  ;;  %v6613_v0 = vld [vmem:[#allocation36 + $0x258] sm:$0xff]  ;;  %v6627_v11 = vld [vmem:[#allocation36 + $0x2c8] sm:$0xff]  ;;  %vm9556_vm15 = vmmov %vm9549_vm4 }
 0xead   :  { %v4141_v14 = vpack.c.bf16 %v9238_v30, %v9190_v20  ;;  %v6379_v45 = vpack.c.bf16 %v9269_v42, %v9266_v2  ;;  %v9276_v22 = vsel %vm9550_vm11, %v4011_v56, 0.0  ;;  %v3943_v7 = vrot.slane %v9147_v52, 7  ;;  %5014 = vmatpush.bf16.msra.mxu2 %v6606_v33  ;;  %5072 = vmatpush.bf16.msra.mxu1 %v6629_v49 }
 0xeae   :  { %v3959_v23 = vrot.slane %v3918_v36, 7  ;;  %v4007_v32 = vrot.slane %v3918_v36, 1  ;;  %v4142_v17 = vpack.c.bf16 %v3918_v36, %v9208_v44  ;;  %v9283_v47 = vsel %vm9551_vm7, %v4003_v53, %v4011_v56  ;;  %5033 = vmatpush.bf16.msra.mxu3 %v6614_v37  ;;  %v6604_v36 = vld [vmem:[#allocation36 + $0x210] sm:$0xff]  ;;  %v6611_v37 = vld [vmem:[#allocation36 + $0x248] sm:$0xff] }
 0xeaf   :  { %4415 = vmatmul.bf16.gmra.mxu2 %v4141_v14  ;;  %v9286_v18 = vsel %vm879_vm0, %v3943_v7, %v3951_v12  ;;  %v6387_v54 = vpack.c.bf16 %v9276_v22, %v9283_v47  ;;  %v3939_v58 = vrot.slane %v9097_v31, 7  ;;  %v3941_v14 = vrot.slane %v9145_v57, 7  ;;  %v6612_v31 = vld [vmem:[#allocation36 + $0x250] sm:$0xff] }
 0xeb0   :  { %4434 = vmatmul.bf16.gmra.mxu3 %v4142_v17  ;;  %v9289_v52 = vsel %vm879_vm0, %v3951_v12, %v3959_v23  ;;  %v9294_v63 = vsel %vm9552_vm12, %v4007_v32, 0.0  ;;  %v9301_v56 = vsel %vm9553_vm13, %v3999_v9, %v4007_v32  ;;  %5054 = vmatpush.bf16.msrb.mxu0 %v6620_v39  ;;  %v6619_v12 = vld [vmem:[#allocation36 + $0x288] sm:$0xff]  ;;  %v3940_v44 = vrot.slane %v9099_v51, 7 }
 0xeb1   :  { %v6211_v53 = vpack.c.bf16 %v9289_v52, %v9286_v18  ;;  %v6371_v55 = vpack.c.bf16 %v9294_v63, %v9301_v56  ;;  %5015 = vmatpush.bf16.msra.mxu2 %v6605_v5  ;;  %v3946_v9 = vsel %vm879_vm0, %v3939_v58, %v3945_v15  ;;  %5073 = vmatpush.bf16.msra.mxu1 %v6628_v38  ;;  %v3937_v33 = vrot.slane %v9138_v60, 7  ;;  %v6603_v60 = vld [vmem:[#allocation36 + $0x208] sm:$0xff]  ;;  %v6602_v38 = vld [vmem:[#allocation36 + $0x200] sm:$0xff] }
 0xeb2   :  { %5034 = vmatpush.bf16.msra.mxu3 %v6613_v0  ;;  %v3983_v49 = vsel %vm879_vm0, 0.0, %v3939_v58  ;;  %v3948_v19 = vsel %vm879_vm0, %v3940_v44, %v3947_v26  ;;  %vm7985_vm2 = vmmov 1   ;;  %v3984_v23 = vsel %vm879_vm0, 0.0, %v3940_v44  ;;  %v6610_v58 = vld [vmem:[#allocation36 + $0x240] sm:$0xff] }
 0xeb3   :  { %vm9319_vm3 = vmpackc.low %vm7985_vm2, %vm6197_vm14  ;;  %v6215_v57 = vpack.c.bf16 %v3946_v9, %v3983_v49  ;;  %v3942_v15 = vsel %vm879_vm0, %v3937_v33, %v3941_v14  ;;  %v3938_v32 = vrot.slane %v9118_v61, 7  ;;  %v3981_v26 = vsel %vm879_vm0, 0.0, %v3937_v33 }
 0xeb4   :  { %5055 = vmatpush.bf16.msrb.mxu0 %v6619_v12  ;;  %v6223_v17 = vpack.c.bf16 %v3948_v19, %v3984_v23  ;;  %v6199_v39 = vpack.c.bf16 %v3942_v15, %v3981_v26  ;;  %v3949_v12 = vrot.slane %v9190_v20, 7  ;;  %vm6202_vm9 = vmpackc.low %vm7985_vm2, %vm6201_vm8  ;;  %v4005_v16 = vrot.slane %v9238_v30, 1 }
 0xeb5   :  { %5016 = vmatpush.bf16.msra.mxu2 %v6604_v36  ;;  %5074 = vmatpush.bf16.msra.mxu1 %v6627_v11  ;;  %v3944_v5 = vsel %vm879_vm0, %v3938_v32, %v3943_v7  ;;  %v3982_v61 = vsel %vm879_vm0, 0.0, %v3938_v32  ;;  %v3957_v7 = vrot.slane %v9238_v30, 7  ;;  %vm6358_vm10 = vmpackc.low %vm6357_vm1, %vm7985_vm2 }
 0xeb6   :  { %5035 = vmatpush.bf16.msra.mxu3 %v6612_v31  ;;  %v6207_v0 = vpack.c.bf16 %v3944_v5, %v3982_v61  ;;  %v3950_v44 = vsel %vm879_vm0, %v3941_v14, %v3949_v12  ;;  %v4006_v40 = vsel %vm9556_vm15, %v3997_v6, %v4005_v16  ;;  %v4029_v1 = vsel %vm9549_vm4, %v4005_v16, 0.0 }
 0xeb7   :  { %v3958_v36 = vsel %vm879_vm0, %v3949_v12, %v3957_v7  ;;  %vm6361_vm0 = vmneg %vm8607_vm6  ;;  %v6363_v35 = vpack.c.bf16 %v4029_v1, %v4006_v40 }
 0xeb8   :  { %5056 = vmatpush.bf16.msrb.mxu0 %v6618_v21  ;;  %v6203_v9 = vpack.c.bf16 %v3958_v36, %v3950_v44  ;;  %vm6362_vm5 = vmpackc.low %vm6361_vm0, %vm7985_vm2 }
 0xeb9   :  { %5017 = vmatpush.bf16.msra.mxu2 %v6603_v60  ;;  %5075 = vmatpush.bf16.msra.mxu1 %v6626_v27 }
 0xeba   :  { %5036 = vmatpush.bf16.msra.mxu3 %v6611_v37 }
 0xebb   :  { %6216 = vmatmul.msk.bf16.vlgmr.msra.gmra.mxu0 %vm9319_vm3, %v6215_v57 }
 0xebc   :  { %6224 = vmatmul.msk.bf16.vlgmr.msrb.gmra.mxu1 %vm9319_vm3, %v6223_v17 }
 0xebd   :  { %5018 = vmatpush.bf16.msra.mxu2 %v6602_v38 }
 0xebe   :  { %5037 = vmatpush.bf16.msra.mxu3 %v6610_v58 }
 0xebf   :  { %6200 = vmatmul.msk.bf16.vlgmr.msrb.gmra.mxu2 %vm9319_vm3, %v6199_v39 }
 0xec0   :  { %6208 = vmatmul.msk.bf16.vlgmr.msrb.gmra.mxu3 %vm9319_vm3, %v6207_v0  ;;  %v6756_v0 = vld [vmem:[#allocation37] ss:$0 sm:$0xff] }
 0xecb   :  { %6220 = vmatmul.msk.bf16.gmra.mxu0 %vm6202_vm9, %v6219_v50 }
 0xecc   :  { %6228 = vmatmul.msk.bf16.gmra.mxu1 %vm6202_vm9, %v6227_v24 }
 0xecf   :  { %6204 = vmatmul.msk.bf16.gmra.mxu2 %vm6202_vm9, %v6203_v9  ;;  %v6757_v9 = vld [vmem:[#allocation39] ss:$0 sm:$0xff] }
 0xed0   :  { %6212 = vmatmul.msk.bf16.gmra.mxu3 %vm6202_vm9, %v6211_v53 }
 0xedb   :  { %6376 = vmatmul.msk.bf16.vlgmr.msrb.gmra.mxu0 %vm6358_vm10, %v6375_v43 }
 0xedc   :  { %6384 = vmatmul.msk.bf16.vlgmr.msra.gmra.mxu1 %vm6358_vm10, %v6383_v41 }
 0xedf   :  { %6360 = vmatmul.msk.bf16.vlgmr.msra.gmra.mxu2 %vm6358_vm10, %v6359_v59 }
 0xee0   :  { %6368 = vmatmul.msk.bf16.vlgmr.msra.gmra.mxu3 %vm6358_vm10, %v6367_v29 }
 0xeeb   :  { %6380 = vmatmul.msk.bf16.gmra.mxu0 %vm6362_vm5, %v6379_v45 }
 0xeec   :  { %6388 = vmatmul.msk.bf16.gmra.mxu1 %vm6362_vm5, %v6387_v54 }
 0xeef   :  { %6364 = vmatmul.msk.bf16.gmra.mxu2 %vm6362_vm5, %v6363_v35 }
 0xef0   :  { %6372 = vmatmul.msk.bf16.gmra.mxu3 %vm6362_vm5, %v6371_v55 }
 0xf17   :  { %v4449_v48 = vpop.f32.mrf.mxu0 }
 0xf18   :  { %v4468_v8 = vpop.f32.mrf.mxu1 }
 0xf1f   :  { %v4451_v10 = vpop.f32.mrf.mxu0 }
 0xf20   :  { %v4470_v20 = vpop.f32.mrf.mxu1 }
 0xf22   :  { %v4411_v43 = vpop.f32.mrf.mxu2  ;;  %v4430_v34 = vpop.f32.mrf.mxu3 }
 0xf23   :  { %v4431_v54 = vadd.f32 %v4430_v34, %v4411_v43 }
 0xf25   :  { %v4450_v56 = vadd.f32 %v4449_v48, %v4431_v54 }
 0xf27   :  { %v4469_v33 = vadd.f32 %v4468_v8, %v4450_v56 }
 0xf28   :  { %v4454_v6 = vpop.f32.mrf.mxu0 }
 0xf29   :  { %v4473_v3 = vpop.f32.mrf.mxu1 }
 0xf2a   :  { %v4413_v41 = vpop.f32.mrf.mxu2  ;;  %v4432_v4 = vpop.f32.mrf.mxu3 }
 0xf2b   :  { %v4433_v11 = vadd.f32 %v4432_v4, %v4413_v41 }
 0xf2d   :  { %v4452_v19 = vadd.f32 %v4451_v10, %v4433_v11 }
 0xf2f   :  { %v4471_v23 = vadd.f32 %v4470_v20, %v4452_v19 }
 0xf30   :  { %v4456_v59 = vpop.f32.mrf.mxu0 }
 0xf31   :  { %v4475_v29 = vpop.f32.mrf.mxu1 }
 0xf32   :  { %v4416_v62 = vpop.f32.mrf.mxu2 }
 0xf33   :  { %v4435_v30 = vpop.f32.mrf.mxu3 }
 0xf34   :  { %v4436_v60 = vadd.f32 %v4435_v30, %v4416_v62 }
 0xf36   :  { %v4455_v37 = vadd.f32 %v4454_v6, %v4436_v60 }
 0xf38   :  { %v4717_v25 = vpop.f32.mrf.mxu0  ;;  %v4474_v36 = vadd.f32 %v4473_v3, %v4455_v37 }
 0xf39   :  { %v4736_v50 = vpop.f32.mrf.mxu1 }
 0xf3a   :  { %v4418_v13 = vpop.f32.mrf.mxu2 }
 0xf3b   :  { %v4437_v28 = vpop.f32.mrf.mxu3 }
 0xf3c   :  { %v4438_v12 = vadd.f32 %v4437_v28, %v4418_v13 }
 0xf3e   :  { %v4457_v10 = vadd.f32 %v4456_v59, %v4438_v12 }
 0xf40   :  { %v4719_v2 = vpop.f32.mrf.mxu0  ;;  %v4476_v30 = vadd.f32 %v4475_v29, %v4457_v10 }
 0xf41   :  { %v4738_v42 = vpop.f32.mrf.mxu1 }
 0xf42   :  { %v4679_v46 = vpop.f32.mrf.mxu2 }
 0xf43   :  { %v4698_v24 = vpop.f32.mrf.mxu3  ;;  %v4680_v49 = vadd.f32 %v4679_v46, %v4469_v33 }
 0xf45   :  { %v4699_v21 = vadd.f32 %v4698_v24, %v4680_v49 }
 0xf47   :  { %v4718_v27 = vadd.f32 %v4717_v25, %v4699_v21 }
 0xf48   :  { %v4722_v22 = vpop.f32.mrf.mxu0 }
 0xf49   :  { %v4741_v18 = vpop.f32.mrf.mxu1  ;;  %v4737_v5 = vadd.f32 %v4736_v50, %v4718_v27 }
 0xf4a   :  { %v4681_v45 = vpop.f32.mrf.mxu2 }
 0xf4b   :  { %v4700_v47 = vpop.f32.mrf.mxu3  ;;  %v4682_v26 = vadd.f32 %v4681_v45, %v4471_v23 }
 0xf4d   :  { %v4701_v38 = vadd.f32 %v4700_v47, %v4682_v26 }
 0xf4f   :  { %v4720_v1 = vadd.f32 %v4719_v2, %v4701_v38 }
 0xf50   :  { %v9385_v53 = vpop.f32.mrf.mxu0 }
 0xf51   :  { %v9387_v55 = vpop.f32.mrf.mxu1  ;;  %v4739_v34 = vadd.f32 %v4738_v42, %v4720_v1 }
 0xf52   :  { %v4684_v52 = vpop.f32.mrf.mxu2 }
 0xf53   :  { %v4703_v63 = vpop.f32.mrf.mxu3  ;;  %v4685_v35 = vadd.f32 %v4684_v52, %v4474_v36 }
 0xf55   :  { %v4704_v6 = vadd.f32 %v4703_v63, %v4685_v35 }
 0xf57   :  { %v4723_v50 = vadd.f32 %v4722_v22, %v4704_v6 }
 0xf58   :  { %v5058_v51 = vpop.f32.mrf.mxu0 }
 0xf59   :  { %v5077_v15 = vpop.f32.mrf.mxu1  ;;  %v4742_v47 = vadd.f32 %v4741_v18, %v4723_v50 }
 0xf5a   :  { %v4686_v14 = vpop.f32.mrf.mxu2 }
 0xf5b   :  { %v4705_v31 = vpop.f32.mrf.mxu3  ;;  %v4687_v28 = vadd.f32 %v4686_v14, %v4476_v30 }
 0xf5d   :  { %v4706_v52 = vadd.f32 %v4705_v31, %v4687_v28 }
 0xf5f   :  { %v4725_v11 = vadd.f32 %v9385_v53, %v4706_v52 }
 0xf60   :  { %v5060_v7 = vpop.f32.mrf.mxu0 }
 0xf61   :  { %v5079_v16 = vpop.f32.mrf.mxu1  ;;  %v4744_v21 = vadd.f32 %v9387_v55, %v4725_v11 }
 0xf62   :  { %v5020_v57 = vpop.f32.mrf.mxu2 }
 0xf63   :  { %v5039_v32 = vpop.f32.mrf.mxu3 }
 0xf64   :  { %v5040_v17 = vadd.f32 %v5039_v32, %v5020_v57 }
 0xf66   :  { %v5059_v39 = vadd.f32 %v5058_v51, %v5040_v17 }
 0xf68   :  { %v5078_v61 = vadd.f32 %v5077_v15, %v5059_v39  ;;  %v5063_v25 = vpop.f32.mrf.mxu0 }
 0xf69   :  { %v5082_v24 = vpop.f32.mrf.mxu1 }
 0xf6a   :  { %v5022_v58 = vpop.f32.mrf.mxu2  ;;  %v5087_v44 = vadd.f32 %v5078_v61, %v4737_v5 }
 0xf6b   :  { %v5041_v40 = vpop.f32.mrf.mxu3 }
 0xf6c   :  { %v5095_v48 = vmul.f32 %v6756_v0, %v5087_v44  ;;  %v5042_v8 = vadd.f32 %v5041_v40, %v5022_v58 }
 0xf6e   :  { %v5103_v20 = vadd.f32 %v6757_v9, %v5095_v48  ;;  %v5061_v43 = vadd.f32 %v5060_v7, %v5042_v8 }
 0xf70   :  { %v5107_v41 = vmax.f32 %v5103_v20, 0.0  ;;  %v5080_v4 = vadd.f32 %v5079_v16, %v5061_v43  ;;  %v5065_v14 = vpop.f32.mrf.mxu0 }
 0xf71   :  { %v5084_v51 = vpop.f32.mrf.mxu1 }
 0xf72   :  { %v5025_v62 = vpop.f32.mrf.mxu2  ;;  %5111 = vst [vmem:[%s8254_s17] sm:$0xff] %v5107_v41  ;;  %v5088_v3 = vadd.f32 %v5080_v4, %v4739_v34 }
 0xf73   :  { %v5044_v13 = vpop.f32.mrf.mxu3 }
 0xf74   :  { %v5096_v46 = vmul.f32 %v6756_v0, %v5088_v3  ;;  %v5045_v2 = vadd.f32 %v5044_v13, %v5025_v62 }
 0xf76   :  { %v5104_v45 = vadd.f32 %v6757_v9, %v5096_v46  ;;  %v5064_v59 = vadd.f32 %v5063_v25, %v5045_v2 }
 0xf78   :  { %v5108_v42 = vmax.f32 %v5104_v45, 0.0  ;;  %v5083_v54 = vadd.f32 %v5082_v24, %v5064_v59 }
 0xf7a   :  { %v5027_v63 = vpop.f32.mrf.mxu2  ;;  %5112 = vst [vmem:[%s8254_s17 + $0x8] sm:$0xff] %v5108_v42  ;;  %v5089_v29 = vadd.f32 %v5083_v54, %v4742_v47 }
 0xf7b   :  { %v5046_v56 = vpop.f32.mrf.mxu3 }
 0xf7c   :  { %v5097_v33 = vmul.f32 %v6756_v0, %v5089_v29  ;;  %v5047_v22 = vadd.f32 %v5046_v56, %v5027_v63 }
 0xf7e   :  { %v5105_v49 = vadd.f32 %v6757_v9, %v5097_v33  ;;  %v5066_v19 = vadd.f32 %v5065_v14, %v5047_v22 }
 0xf80   :  { %v5109_v18 = vmax.f32 %v5105_v49, 0.0  ;;  %v5085_v31 = vadd.f32 %v5084_v51, %v5066_v19 }
 0xf82   :  { %5113 = vst [vmem:[%s8254_s17 + $0x10] sm:$0xff] %v5109_v18  ;;  %v5090_v57 = vadd.f32 %v5085_v31, %v4744_v21 }
 0xf84   :  { %v5098_v15 = vmul.f32 %v6756_v0, %v5090_v57 }
 0xf86   :  { %v5106_v60 = vadd.f32 %v6757_v9, %v5098_v15 }
 0xf88   :  { %v5110_v23 = vmax.f32 %v5106_v60, 0.0 }
 0xf8a   :  { %5114 = vst [vmem:[%s8254_s17 + $0x18] sm:$0xff] %v5110_v23 }
 0xf8b   :  { %5119 = vsyncpa [#allocation3], 1 }
 0xf8c   :  { %5120 = vsyncpa [#allocation5], 1 }
 0xf8d   :  { %5121 = vsyncpa [#allocation8], 1 }
 0xf8e   :  { %5122 = vsyncpa [#allocation11], 1 }
 0xf8f   :  { %5123 = vsyncpa [#allocation14], 1 }
 0xf90   :  { %5124 = vsyncpa [#allocation17], 1 }
 0xf91   :  { %5125 = vsyncpa [#allocation20], 1 }
 0xf92   :  { %5126 = vsyncpa [#allocation23], 1 }
 0xf93   :  { %5127 = vsyncpa [#allocation26], 1 }
 0xf94   :  { %5128 = vsyncpa [#allocation29], 1 }
 0xf95   :  { %5129 = vsyncpa [#allocation32], 1 }
 0xf96   :  { %5130 = vsyncpa [#allocation35], 1 }
 0xf97   :  { %5131 = vsyncpa [#allocation38], 1 }
 0xf98   :  { %5132 = vsyncpa [#allocation41], 1 }
 0xf99   :  { %5133 = vsyncpa [#allocation44], 1 }
 0xf9a   :  { %5134 = vsyncpa [#allocation47], 1 }
 0xf9b   :  { %5135 = vsyncpa [#allocation50], 1 }
 0xf9c   :  { %5136 = vsyncpa [#allocation53], 1 }
 0xf9d   :  { %5137 = vsyncpa [#allocation56], 1 }
 0xf9e   :  { %5138 = vsyncpa [#allocation59], 1 }
 0xf9f   :  { %5139 = vsyncpa [#allocation62], 1 }
 0xfa0   :  { %5140 = vsyncpa [#allocation65], 1 }
 0xfa1   :  { %5141 = vsyncpa [#allocation68], 1 }

</bundles_post_ra>
